<compile_context>
chip_gen: v7x
topology: tpu7x:2x2x1
jax: 0.10.0
libtpu: 0.0.40
codegen_flags: <defaults>
</compile_context>

<pallas_src>
import jax
import jax.numpy as jnp
import numpy as np
from jax import lax
from jax.experimental import pallas as pl
from jax.experimental.pallas import tpu as pltpu


# ------------------------------ Pallas kernel ------------------------------ #

def fused_cnn_kernel(x_ref, w1_ref, b1_ref, w2_ref, b2_ref, wo_ref, bo_ref,
                     logits_ref, y2_ref):
    """conv1+ReLU+pool -> conv2+ReLU+pool -> Linear, all intermediates in VMEM.

    x_ref  : (28, bb, 160) bf16  row-im2col'd zero-padded input; rows=(oh, b),
                                 lane = 32*kh + padded_col.
    w1_ref : (160, 512)  bf16    banded conv1 weight; out lane =
                                 256*(ow%2) + 16*(ow//2) + co.
    b1_ref : (1, 512)    f32     conv1 bias tiled over width slots.
    w2_ref : (2560, 512) bf16    banded conv2 weight; in lane =
                                 512*kh + 16*j + cin, out lane =
                                 256*(ow%2) + 32*(ow//2) + co.
    b2_ref : (1, 512)    f32
    wo_ref : (3584, 128) bf16    Linear weight scattered to the kernel's padded
                                 pooled-conv2 layout (only 10 valid columns).
    bo_ref : (1, 128)    f32
    logits_ref : (bb, 128)    f32  logits (columns >= 10 are bias padding).
    y2_ref     : (7, bb, 512) f32  pooled conv2; valid values at lane 32*j + co
                                   (j < 7, co < 32), rest garbage/duplicates.
    """
    bb = logits_ref.shape[0]
    f32, bf16 = jnp.float32, jnp.bfloat16

    def pool_pairs(acc, half_rows):
        # Column pool: partner columns are parity-split exactly 256 lanes
        # apart, so a half-width lane roll (self-inverse -> direction-proof)
        # pairs them; pooled value lands in the low 224 lanes of each half.
        cmax = jnp.maximum(acc, pltpu.roll(acc, shift=256, axis=1))
        # Row pool: partner rows sit bb apart inside each 2*bb row group
        # (rows are (out_row, batch)), so the max is over aligned slices.
        cmax = cmax.reshape(half_rows, 2 * bb, 512)
        return jnp.maximum(cmax[:, :bb, :], cmax[:, bb:, :])

    # ---- conv1 (5x5, pad 2): one MXU matmul, M = 28*bb, K = 160 ------------
    lhs1 = x_ref[...].reshape(28 * bb, 160)                        # bf16
    acc1 = jnp.dot(lhs1, w1_ref[...], preferred_element_type=f32)  # (28*bb,512)

    # ---- 2x2 max-pool, then bias + ReLU (hoisted past the pool) ------------
    p1 = pool_pairs(acc1, 14)                                      # (14,bb,512)
    y1 = jnp.maximum(p1 + b1_ref[...], 0.0).astype(bf16)           # lane 16j+ci

    # ---- conv2 (5x5, pad 2): one concatenated-K matmul, K = 5*512 ----------
    zpad = jnp.zeros((2, bb, 512), bf16)
    y1p = jnp.concatenate([zpad, y1, zpad], axis=0)                # (18,bb,512)
    lhs2 = jnp.concatenate([y1p[kh:kh + 14] for kh in range(5)],
                           axis=-1).reshape(14 * bb, 5 * 512)
    acc2 = jnp.dot(lhs2, w2_ref[...], preferred_element_type=f32)  # (14*bb,512)

    p2 = pool_pairs(acc2, 7)                                       # (7,bb,512)
    y2 = jnp.maximum(p2 + b2_ref[...], 0.0)                        # lane 32j+co
    y2_ref[...] = y2

    # ---- fused Linear(32*7*7, 10) on the padded pooled layout --------------
    feats = jnp.concatenate([y2[i] for i in range(7)], axis=-1)    # (bb, 3584)
    logits_ref[...] = (
        jnp.dot(feats.astype(bf16), wo_ref[...],
                preferred_element_type=f32) + bo_ref[...])


# ---------------------------- pallas_call wrapper --------------------------- #

def fused_forward(xim, prep, block_b):
    Bp = xim.shape[1]
    assert Bp % block_b == 0
    grid = (Bp // block_b,)
    return pl.pallas_call(
        fused_cnn_kernel,
        out_shape=(
            jax.ShapeDtypeStruct((Bp, 128), jnp.float32),       # padded logits
            jax.ShapeDtypeStruct((7, Bp, 512), jnp.float32),    # pooled conv2
        ),
        grid_spec=pltpu.PrefetchScalarGridSpec(
            num_scalar_prefetch=0,
            grid=grid,
            in_specs=[
                pl.BlockSpec((28, block_b, 160), lambda i: (0, i, 0)),
                # weights / biases: constant index_map -> stay VMEM-resident
                pl.BlockSpec((160, 512), lambda i: (0, 0)),
                pl.BlockSpec((1, 512), lambda i: (0, 0)),
                pl.BlockSpec((2560, 512), lambda i: (0, 0)),
                pl.BlockSpec((1, 512), lambda i: (0, 0)),
                pl.BlockSpec((3584, 128), lambda i: (0, 0)),
                pl.BlockSpec((1, 128), lambda i: (0, 0)),
            ],
            out_specs=(
                pl.BlockSpec((block_b, 128), lambda i: (i, 0)),
                pl.BlockSpec((7, block_b, 512), lambda i: (0, i, 0)),
            ),
        ),
        compiler_params=pltpu.CompilerParams(
            dimension_semantics=("parallel",),
            # ~13 MiB live at block_b=32: explicit limit is safe on v5e
            # (16 MiB default scoped) and leaves headroom on v7x (64 MiB).
            # Raise together with block_b on 128-MiB parts (v5e/v6e).
            vmem_limit_bytes=32 * 1024 * 1024),
    )(xim, prep["w1b"], prep["b1b"], prep["w2b"], prep["b2b"],
      prep["wob"], prep["bob"])


# ------------------------------ host-side prep ------------------------------ #

def prepare_params(params):
    """Build banded conv / scattered FC weights + lane-tiled biases (host, once)."""
    c1w = np.asarray(params["conv1_w"], np.float32)      # (16, 1, 5, 5)
    c1b = np.asarray(params["conv1_b"], np.float32)      # (16,)
    c2w = np.asarray(params["conv2_w"], np.float32)      # (32, 16, 5, 5)
    c2b = np.asarray(params["conv2_b"], np.float32)      # (32,)
    ow = np.asarray(params["out_w"], np.float32)         # (10, 1568)
    ob = np.asarray(params["out_b"], np.float32)         # (10,)

    # conv1, single K=160 band: lhs lane = 32*kh + (o + kw)  (padded column),
    # out lane = 256*(o%2) + 16*(o//2) + co  (parity-split so pool partners
    # sit exactly 256 lanes apart).
    w1b = np.zeros((160, 512), np.float32)
    for kh in range(5):
        for o in range(28):
            base = 256 * (o % 2) + 16 * (o // 2)
            for kw in range(5):
                w1b[32 * kh + o + kw, base:base + 16] = c1w[:, 0, kh, kw]

    # conv2, single K=2560 band: in lane = 512*kh + 16*j + cin (j = pooled col,
    # band j = o + kw - 2; out-of-range taps = implicit zero padding),
    # out lane = 256*(o%2) + 32*(o//2) + co.
    w2b = np.zeros((2560, 512), np.float32)
    for kh in range(5):
        for o in range(14):
            obase = 256 * (o % 2) + 32 * (o // 2)
            for kw in range(5):
                j = o + kw - 2
                if 0 <= j < 14:
                    w2b[512 * kh + 16 * j:512 * kh + 16 * j + 16,
                        obase:obase + 32] = c2w[:, :, kh, kw].T
    # Garbage / duplicate lanes of the pooled conv1 activations (lanes >= 224
    # of each 512 block) must hit all-zero weight rows.
    assert not w2b.reshape(5, 512, 512)[:, 224:, :].any(), "w2b garbage rows"

    # fused Linear: rows match the kernel's padded pooled-conv2 layout,
    # row = 512*i + 32*j + co  <->  torch flat index co*49 + i*7 + j.
    wo_big = np.zeros((7 * 512, 128), np.float32)
    for i in range(7):
        for j in range(7):
            for co in range(32):
                wo_big[512 * i + 32 * j + co, :10] = ow[:, co * 49 + i * 7 + j]
    assert not wo_big.reshape(7, 512, 128)[:, 224:, :].any(), "wo garbage rows"

    ob_pad = np.zeros((1, 128), np.float32)
    ob_pad[0, :10] = ob

    return {
        "w1b": jnp.asarray(w1b, jnp.bfloat16),
        "b1b": jnp.asarray(np.tile(c1b, 32)[None, :], jnp.float32),
        "w2b": jnp.asarray(w2b, jnp.bfloat16),
        "b2b": jnp.asarray(np.tile(c2b, 16)[None, :], jnp.float32),
        "wob": jnp.asarray(wo_big, jnp.bfloat16),
        "bob": jnp.asarray(ob_pad, jnp.float32),
    }


def cnn_forward(x_nchw, prep, block_b=32):
    """Returns (logits, flat_features) like CNN.forward (inference)."""
    assert block_b % 16 == 0 and block_b >= 16
    B = x_nchw.shape[0]
    Bp = ((B + block_b - 1) // block_b) * block_b
    if Bp != B:
        x_nchw = jnp.pad(x_nchw, ((0, Bp - B), (0, 0), (0, 0), (0, 0)))

    # Host-side row im2col, batch-minor, bf16:
    #   xim[oh, b, 32*kh + c] = padded_image[b, oh + kh, c]  (pad = 2).
    xpad = jnp.zeros((32, Bp, 32), jnp.float32)
    xpad = xpad.at[2:30, :, 2:30].set(jnp.transpose(x_nchw[:, 0], (1, 0, 2)))
    xim = jnp.concatenate([xpad[kh:kh + 28] for kh in range(5)],
                          axis=-1).astype(jnp.bfloat16)          # (28, Bp, 160)

    logits_pad, y2p = fused_forward(xim, prep, block_b)
    logits = logits_pad[:B, :10]

    # Flat features in PyTorch's NCHW .view order (c, h, w); this gather is
    # off the logits critical path (logits come straight out of the kernel).
    y2v = y2p.reshape(7, Bp, 16, 32)[:, :B, :7, :]               # (i, b, j, co)
    flat = jnp.transpose(y2v, (1, 3, 0, 2)).reshape(B, 32 * 7 * 7)
    # TODO(synk): nn.Dropout(0.3) is identity at inference; not applied here.
    return logits, flat


# ---------------------------- pure-JAX reference ----------------------------- #

def ref_forward(x, params):
    def conv_block(x, w, b):
        y = lax.conv_general_dilated(
            x, w, window_strides=(1, 1), padding=((2, 2), (2, 2)),
            dimension_numbers=("NCHW", "OIHW", "NCHW"))
        y = jnp.maximum(y + b.reshape(1, -1, 1, 1), 0.0)
        B, C, H, W = y.shape
        return y.reshape(B, C, H // 2, 2, W // 2, 2).max(axis=(3, 5))

    y = conv_block(x, params["conv1_w"], params["conv1_b"])
    y = conv_block(y, params["conv2_w"], params["conv2_b"])
    flat = y.reshape(y.shape[0], -1)
    out = flat @ params["out_w"].T + params["out_b"]
    return out, flat


# ----------------------------------- main ------------------------------------ #

if __name__ == "__main__":
    key = jax.random.PRNGKey(0)
    k = jax.random.split(key, 7)
    params = {
        "conv1_w": 0.10 * jax.random.normal(k[0], (16, 1, 5, 5), jnp.float32),
        "conv1_b": 0.10 * jax.random.normal(k[1], (16,), jnp.float32),
        "conv2_w": 0.05 * jax.random.normal(k[2], (32, 16, 5, 5), jnp.float32),
        "conv2_b": 0.05 * jax.random.normal(k[3], (32,), jnp.float32),
        "out_w":   0.02 * jax.random.normal(k[4], (10, 32 * 7 * 7), jnp.float32),
        "out_b":   0.02 * jax.random.normal(k[5], (10,), jnp.float32),
    }
    # 28x28 inputs are implied by Linear(32*7*7, 10).  B=64 with block_b=32
    # gives a 2-step "parallel" grid (even, so both v7x TensorCores get work).
    B = 64
    x = jax.random.normal(k[6], (B, 1, 28, 28), jnp.float32)

    prep = prepare_params(params)
    fwd = jax.jit(lambda xx: cnn_forward(xx, prep, block_b=32))
    out, flat = jax.block_until_ready(fwd(x))

    ref_out, ref_flat = ref_forward(x, params)
    assert out.shape == (B, 10) and flat.shape == (B, 32 * 7 * 7)
    # bf16 MXU operands with f32 accumulation -> bf16-level tolerance.
    assert jnp.allclose(out, ref_out, atol=2e-2, rtol=2e-2), \
        float(jnp.max(jnp.abs(out - ref_out)))
    assert jnp.allclose(flat, ref_flat, atol=2e-2, rtol=2e-2), \
        float(jnp.max(jnp.abs(flat - ref_flat)))
    print("KERNEL_OK")
</pallas_src>

<mosaic_0001>
module attributes {stable_mosaic.version = 11 : i64} {
  func.func @fused_cnn_kernel(%arg0: i32, %arg1: memref<28x32x160xbf16, #tpu.memory_space<vmem>>, %arg2: memref<160x512xbf16, #tpu.memory_space<vmem>>, %arg3: memref<1x512xf32, #tpu.memory_space<vmem>>, %arg4: memref<2560x512xbf16, #tpu.memory_space<vmem>>, %arg5: memref<1x512xf32, #tpu.memory_space<vmem>>, %arg6: memref<3584x128xbf16, #tpu.memory_space<vmem>>, %arg7: memref<1x128xf32, #tpu.memory_space<vmem>>, %arg8: memref<32x128xf32, #tpu.memory_space<vmem>>, %arg9: memref<7x32x512xf32, #tpu.memory_space<vmem>>) attributes {dimension_semantics = [#tpu.dimension_semantics<parallel>], iteration_bounds = array<i64: 2>, scalar_prefetch = 0 : i64, scratch_operands = 0 : i64, tpu.core_type = #tpu.core_type<tc>, window_params = [{transform_indices = @transform_0, window_bounds = array<i64: 28, 32, 160>}, {pipeline_mode = #tpu.pipeline_mode<synchronous>, transform_indices = @transform_1, window_bounds = array<i64: 160, 512>}, {pipeline_mode = #tpu.pipeline_mode<synchronous>, transform_indices = @transform_2, window_bounds = array<i64: 1, 512>}, {pipeline_mode = #tpu.pipeline_mode<synchronous>, transform_indices = @transform_3, window_bounds = array<i64: 2560, 512>}, {pipeline_mode = #tpu.pipeline_mode<synchronous>, transform_indices = @transform_4, window_bounds = array<i64: 1, 512>}, {pipeline_mode = #tpu.pipeline_mode<synchronous>, transform_indices = @transform_5, window_bounds = array<i64: 3584, 128>}, {pipeline_mode = #tpu.pipeline_mode<synchronous>, transform_indices = @transform_6, window_bounds = array<i64: 1, 128>}, {transform_indices = @transform_7, window_bounds = array<i64: 32, 128>}, {transform_indices = @transform_8, window_bounds = array<i64: 7, 32, 512>}]} {
    %c0 = arith.constant 0 : index
    %c0_0 = arith.constant 0 : index
    %c0_1 = arith.constant 0 : index
    %0 = vector.load %arg1[%c0, %c0_0, %c0_1] : memref<28x32x160xbf16, #tpu.memory_space<vmem>>, vector<28x32x160xbf16>
    %1 = vector.shape_cast %0 : vector<28x32x160xbf16> to vector<896x160xbf16>
    %c0_2 = arith.constant 0 : index
    %c0_3 = arith.constant 0 : index
    %2 = vector.load %arg2[%c0_2, %c0_3] : memref<160x512xbf16, #tpu.memory_space<vmem>>, vector<160x512xbf16>
    %cst = arith.constant dense<0.000000e+00> : vector<896x512xf32>
    %3 = tpu.matmul %1, %2, %cst {dimension_numbers = #tpu.dot_dimension_numbers<[1], [0], [0], [1], [0, 0, 1, 1], [], []>} : vector<896x160xbf16>, vector<160x512xbf16>, vector<896x512xf32> -> vector<896x512xf32>
    %c256_i32 = arith.constant 256 : i32
    %4 = tpu.dynamic_rotate %3 by %c256_i32 dim 1 : vector<896x512xf32>, i32 -> vector<896x512xf32>
    %5 = arith.maximumf %3, %4 : vector<896x512xf32>
    %6 = vector.shape_cast %5 : vector<896x512xf32> to vector<14x64x512xf32>
    %7 = vector.extract_strided_slice %6 {offsets = [0, 0, 0], sizes = [14, 32, 512], strides = [1, 1, 1]} : vector<14x64x512xf32> to vector<14x32x512xf32>
    %8 = vector.extract_strided_slice %6 {offsets = [0, 32, 0], sizes = [14, 32, 512], strides = [1, 1, 1]} : vector<14x64x512xf32> to vector<14x32x512xf32>
    %9 = arith.maximumf %7, %8 : vector<14x32x512xf32>
    %c0_4 = arith.constant 0 : index
    %c0_5 = arith.constant 0 : index
    %10 = vector.load %arg3[%c0_4, %c0_5] : memref<1x512xf32, #tpu.memory_space<vmem>>, vector<1x512xf32>
    %11 = vector.shape_cast %10 : vector<1x512xf32> to vector<1x1x512xf32>
    %12 = vector.broadcast %11 : vector<1x1x512xf32> to vector<14x32x512xf32>
    %13 = arith.addf %9, %12 : vector<14x32x512xf32>
    %cst_6 = arith.constant 0.000000e+00 : f32
    %14 = vector.broadcast %cst_6 : f32 to vector<14x32x512xf32>
    %15 = arith.maximumf %13, %14 : vector<14x32x512xf32>
    %16 = arith.truncf %15 : vector<14x32x512xf32> to vector<14x32x512xbf16>
    %cst_7 = arith.constant 0.000000e+00 : bf16
    %17 = vector.broadcast %cst_7 : bf16 to vector<2x32x512xbf16>
    %18 = tpu.concatenate %17, %16, %17 in 0 : vector<2x32x512xbf16>, vector<14x32x512xbf16>, vector<2x32x512xbf16> -> vector<18x32x512xbf16>
    %19 = vector.extract_strided_slice %18 {offsets = [0, 0, 0], sizes = [14, 32, 512], strides = [1, 1, 1]} : vector<18x32x512xbf16> to vector<14x32x512xbf16>
    %20 = vector.extract_strided_slice %18 {offsets = [1, 0, 0], sizes = [14, 32, 512], strides = [1, 1, 1]} : vector<18x32x512xbf16> to vector<14x32x512xbf16>
    %21 = vector.extract_strided_slice %18 {offsets = [2, 0, 0], sizes = [14, 32, 512], strides = [1, 1, 1]} : vector<18x32x512xbf16> to vector<14x32x512xbf16>
    %22 = vector.extract_strided_slice %18 {offsets = [3, 0, 0], sizes = [14, 32, 512], strides = [1, 1, 1]} : vector<18x32x512xbf16> to vector<14x32x512xbf16>
    %23 = vector.extract_strided_slice %18 {offsets = [4, 0, 0], sizes = [14, 32, 512], strides = [1, 1, 1]} : vector<18x32x512xbf16> to vector<14x32x512xbf16>
    %24 = tpu.concatenate %19, %20, %21, %22, %23 in 2 : vector<14x32x512xbf16>, vector<14x32x512xbf16>, vector<14x32x512xbf16>, vector<14x32x512xbf16>, vector<14x32x512xbf16> -> vector<14x32x2560xbf16>
    %25 = vector.shape_cast %24 : vector<14x32x2560xbf16> to vector<448x2560xbf16>
    %c0_8 = arith.constant 0 : index
    %c0_9 = arith.constant 0 : index
    %26 = vector.load %arg4[%c0_8, %c0_9] : memref<2560x512xbf16, #tpu.memory_space<vmem>>, vector<2560x512xbf16>
    %cst_10 = arith.constant dense<0.000000e+00> : vector<448x512xf32>
    %27 = tpu.matmul %25, %26, %cst_10 {dimension_numbers = #tpu.dot_dimension_numbers<[1], [0], [0], [1], [0, 0, 1, 1], [], []>} : vector<448x2560xbf16>, vector<2560x512xbf16>, vector<448x512xf32> -> vector<448x512xf32>
    %c256_i32_11 = arith.constant 256 : i32
    %28 = tpu.dynamic_rotate %27 by %c256_i32_11 dim 1 : vector<448x512xf32>, i32 -> vector<448x512xf32>
    %29 = arith.maximumf %27, %28 : vector<448x512xf32>
    %30 = vector.shape_cast %29 : vector<448x512xf32> to vector<7x64x512xf32>
    %31 = vector.extract_strided_slice %30 {offsets = [0, 0, 0], sizes = [7, 32, 512], strides = [1, 1, 1]} : vector<7x64x512xf32> to vector<7x32x512xf32>
    %32 = vector.extract_strided_slice %30 {offsets = [0, 32, 0], sizes = [7, 32, 512], strides = [1, 1, 1]} : vector<7x64x512xf32> to vector<7x32x512xf32>
    %33 = arith.maximumf %31, %32 : vector<7x32x512xf32>
    %c0_12 = arith.constant 0 : index
    %c0_13 = arith.constant 0 : index
    %34 = vector.load %arg5[%c0_12, %c0_13] : memref<1x512xf32, #tpu.memory_space<vmem>>, vector<1x512xf32>
    %35 = vector.shape_cast %34 : vector<1x512xf32> to vector<1x1x512xf32>
    %36 = vector.broadcast %35 : vector<1x1x512xf32> to vector<7x32x512xf32>
    %37 = arith.addf %33, %36 : vector<7x32x512xf32>
    %cst_14 = arith.constant 0.000000e+00 : f32
    %38 = vector.broadcast %cst_14 : f32 to vector<7x32x512xf32>
    %39 = arith.maximumf %37, %38 : vector<7x32x512xf32>
    %c0_15 = arith.constant 0 : index
    %c0_16 = arith.constant 0 : index
    %c0_17 = arith.constant 0 : index
    %40 = vector.load %arg9[%c0_15, %c0_16, %c0_17] : memref<7x32x512xf32, #tpu.memory_space<vmem>>, vector<7x32x512xf32>
    tpu.vector_store %arg9[%c0_15, %c0_16, %c0_17], %39 {strides = array<i32>} : memref<7x32x512xf32, #tpu.memory_space<vmem>>, vector<7x32x512xf32>,
    %41 = vector.extract_strided_slice %39 {offsets = [0, 0, 0], sizes = [1, 32, 512], strides = [1, 1, 1]} : vector<7x32x512xf32> to vector<1x32x512xf32>
    %42 = vector.shape_cast %41 : vector<1x32x512xf32> to vector<32x512xf32>
    %43 = vector.extract_strided_slice %39 {offsets = [1, 0, 0], sizes = [1, 32, 512], strides = [1, 1, 1]} : vector<7x32x512xf32> to vector<1x32x512xf32>
    %44 = vector.shape_cast %43 : vector<1x32x512xf32> to vector<32x512xf32>
    %45 = vector.extract_strided_slice %39 {offsets = [2, 0, 0], sizes = [1, 32, 512], strides = [1, 1, 1]} : vector<7x32x512xf32> to vector<1x32x512xf32>
    %46 = vector.shape_cast %45 : vector<1x32x512xf32> to vector<32x512xf32>
    %47 = vector.extract_strided_slice %39 {offsets = [3, 0, 0], sizes = [1, 32, 512], strides = [1, 1, 1]} : vector<7x32x512xf32> to vector<1x32x512xf32>
    %48 = vector.shape_cast %47 : vector<1x32x512xf32> to vector<32x512xf32>
    %49 = vector.extract_strided_slice %39 {offsets = [4, 0, 0], sizes = [1, 32, 512], strides = [1, 1, 1]} : vector<7x32x512xf32> to vector<1x32x512xf32>
    %50 = vector.shape_cast %49 : vector<1x32x512xf32> to vector<32x512xf32>
    %51 = vector.extract_strided_slice %39 {offsets = [5, 0, 0], sizes = [1, 32, 512], strides = [1, 1, 1]} : vector<7x32x512xf32> to vector<1x32x512xf32>
    %52 = vector.shape_cast %51 : vector<1x32x512xf32> to vector<32x512xf32>
    %53 = vector.extract_strided_slice %39 {offsets = [6, 0, 0], sizes = [1, 32, 512], strides = [1, 1, 1]} : vector<7x32x512xf32> to vector<1x32x512xf32>
    %54 = vector.shape_cast %53 : vector<1x32x512xf32> to vector<32x512xf32>
    %55 = tpu.concatenate %42, %44, %46, %48, %50, %52, %54 in 1 : vector<32x512xf32>, vector<32x512xf32>, vector<32x512xf32>, vector<32x512xf32>, vector<32x512xf32>, vector<32x512xf32>, vector<32x512xf32> -> vector<32x3584xf32>
    %56 = arith.truncf %55 : vector<32x3584xf32> to vector<32x3584xbf16>
    %c0_18 = arith.constant 0 : index
    %c0_19 = arith.constant 0 : index
    %57 = vector.load %arg6[%c0_18, %c0_19] : memref<3584x128xbf16, #tpu.memory_space<vmem>>, vector<3584x128xbf16>
    %cst_20 = arith.constant dense<0.000000e+00> : vector<32x128xf32>
    %58 = tpu.matmul %56, %57, %cst_20 {dimension_numbers = #tpu.dot_dimension_numbers<[1], [0], [0], [1], [0, 0, 1, 1], [], []>} : vector<32x3584xbf16>, vector<3584x128xbf16>, vector<32x128xf32> -> vector<32x128xf32>
    %c0_21 = arith.constant 0 : index
    %c0_22 = arith.constant 0 : index
    %59 = vector.load %arg7[%c0_21, %c0_22] : memref<1x128xf32, #tpu.memory_space<vmem>>, vector<1x128xf32>
    %60 = vector.broadcast %59 : vector<1x128xf32> to vector<32x128xf32>
    %61 = arith.addf %58, %60 : vector<32x128xf32>
    %c0_23 = arith.constant 0 : index
    %c0_24 = arith.constant 0 : index
    %62 = vector.load %arg8[%c0_23, %c0_24] : memref<32x128xf32, #tpu.memory_space<vmem>>, vector<32x128xf32>
    tpu.vector_store %arg8[%c0_23, %c0_24], %61 {strides = array<i32>} : memref<32x128xf32, #tpu.memory_space<vmem>>, vector<32x128xf32>,
    return
  }
  func.func @transform_0(%arg0: i32) -> (i32, i32, i32) {
    %c0_i32 = arith.constant 0 : i32
    %c0_i32_0 = arith.constant 0 : i32
    %c0_i32_1 = arith.constant 0 : i32
    return %c0_i32, %arg0, %c0_i32_0 : i32, i32, i32
  }
  func.func @transform_1(%arg0: i32) -> (i32, i32) {
    %c0_i32 = arith.constant 0 : i32
    %c0_i32_0 = arith.constant 0 : i32
    %c0_i32_1 = arith.constant 0 : i32
    return %c0_i32, %c0_i32_0 : i32, i32
  }
  func.func @transform_2(%arg0: i32) -> (i32, i32) {
    %c0_i32 = arith.constant 0 : i32
    %c0_i32_0 = arith.constant 0 : i32
    %c0_i32_1 = arith.constant 0 : i32
    return %c0_i32, %c0_i32_0 : i32, i32
  }
  func.func @transform_3(%arg0: i32) -> (i32, i32) {
    %c0_i32 = arith.constant 0 : i32
    %c0_i32_0 = arith.constant 0 : i32
    %c0_i32_1 = arith.constant 0 : i32
    return %c0_i32, %c0_i32_0 : i32, i32
  }
  func.func @transform_4(%arg0: i32) -> (i32, i32) {
    %c0_i32 = arith.constant 0 : i32
    %c0_i32_0 = arith.constant 0 : i32
    %c0_i32_1 = arith.constant 0 : i32
    return %c0_i32, %c0_i32_0 : i32, i32
  }
  func.func @transform_5(%arg0: i32) -> (i32, i32) {
    %c0_i32 = arith.constant 0 : i32
    %c0_i32_0 = arith.constant 0 : i32
    %c0_i32_1 = arith.constant 0 : i32
    return %c0_i32, %c0_i32_0 : i32, i32
  }
  func.func @transform_6(%arg0: i32) -> (i32, i32) {
    %c0_i32 = arith.constant 0 : i32
    %c0_i32_0 = arith.constant 0 : i32
    %c0_i32_1 = arith.constant 0 : i32
    return %c0_i32, %c0_i32_0 : i32, i32
  }
  func.func @transform_7(%arg0: i32) -> (i32, i32) {
    %c0_i32 = arith.constant 0 : i32
    %c0_i32_0 = arith.constant 0 : i32
    return %arg0, %c0_i32 : i32, i32
  }
  func.func @transform_8(%arg0: i32) -> (i32, i32, i32) {
    %c0_i32 = arith.constant 0 : i32
    %c0_i32_0 = arith.constant 0 : i32
    %c0_i32_1 = arith.constant 0 : i32
    return %c0_i32, %arg0, %c0_i32_0 : i32, i32, i32
  }
}

</mosaic_0001>

<bundles_post_ra>
// kernel: _lambda_.1
= control target key start
LH: loop header
LB: loop body
LE: loop exit
PB: predicated region body
PF: predicated region fallthrough
CT: control target
= control target key end

     0   :  { %s22502_s27 = smov 0   ;;  %s22504_s28 = smov 0   ;;  %s28880_s0 = inlined_call_operand.vmem [shape: bf16[28,64,160], index: 0, kind: input, shape index: {}]   ;;  %s28881_s1 = inlined_call_operand.vmem [shape: bf16[160,512], index: 1, kind: input, shape index: {}]   ;;  %s28882_s2 = inlined_call_operand.vmem [shape: f32[1,512], index: 2, kind: input, shape index: {}]   ;;  %s28883_s3 = inlined_call_operand.vmem [shape: bf16[2560,512], index: 3, kind: input, shape index: {}]   ;;  %s28884_s4 = inlined_call_operand.vmem [shape: f32[1,512], index: 4, kind: input, shape index: {}]   ;;  %s28885_s5 = inlined_call_operand.vmem [shape: bf16[3584,128], index: 5, kind: input, shape index: {}]   ;;  %s28886_s6 = inlined_call_operand.vmem [shape: f32[1,128], index: 6, kind: input, shape index: {}]   ;;  %s28887_s7 = inlined_call_operand.vmem [shape: f32[64,128], index: 7, kind: output, shape index: {0}]   ;;  %s28888_s8 = inlined_call_operand.vmem [shape: f32[7,64,512], index: 8, kind: output, shape index: {1}]  }
   0x1   :  { %s22506_s29 = smov 0  }
   0x2 LB: > { %s22518_s30 = sadd.s32 4294967295, %s22454_s29   ;;  %s22521_s9 = sadd.s32 1, %s22454_s29   ;;  %s22454_s29 = sphi %s22506_s29, %s29578_s29   ;;  %s22450_s28 = sphi %s22504_s28, %s29577_s28   ;;  %s22446_s27 = sphi %s22502_s27, %s29576_s27  }
   0x3   : > { %s23_s10 = ssub.s32 %s22454_s29, %s22521_s9  ;;  %s26_s11 = sadd.s32 1, %s22450_s28 }
   0x4   : > { %p24_p0 = scmp.eq.s32.totalorder %s23_s10, 0  ;;  %p33_p1 = scmp.ne.s32.totalorder %s22450_s28, %s22446_s27 }
   0x5   : > { %p34_p2 = scmp.eq.s32.totalorder %s22454_s29, 0  ;;  %p215_p3 = scmp.eq.s32.totalorder %s22518_s30, 1 }
   0x6   : > { %s22531_s12 = scalar_select %p24_p0, %s22450_s28, %s26_s11  }
   0x7   : > { %p35_p4 = por %p34_p2, %p33_p1  ;;  %p22533_p5 = por %p215_p3, %p33_p1 }
   0x8   : > { %p17440_p6 = scmp.ge.s32.totalorder %s22454_s29, 2 }
   0xa   : > { %255 = sbr.rel (%p17440_p6) target bundleno = 78 (0x4e), region = 40 }
  0x11   : > { %258 = sbr.rel (!%p35_p4) target bundleno = 78 (0x4e), region = 44  ;;  %s260_s14 = sand.u32 (%p35_p4), 1, %s22450_s28  }
  0x12   : > { %s18582_s15 = sshll.u32 (%p35_p4), %s22454_s29, 5  ;;  %s20993_s16 = smul.u32 (%p35_p4), 896, %s260_s14 }
  0x13   : > { %s22543_s19 = scalar_lea.vmem (%p35_p4), %s28880_s0, %s18582_s15 }
  0x14   : > { %v516_v0 = vld [vmem:[%s22543_s19] sm:$0xff] (%p35_p4)  ;;  %v518_v1 = vld [vmem:[%s22543_s19 + $0x8] sm:$0xff] (%p35_p4)  ;;  %v520_v2 = vld [vmem:[%s22543_s19 + $0x10] sm:$0xff] (%p35_p4)  ;;  %s22551_s20 = scalar_lea.vmem (%p35_p4), [#allocation2], %s20993_s16 }
  0x15   : > { %v522_v3 = vld [vmem:[%s22543_s19 + $0x18] sm:$0xff] (%p35_p4)  ;;  %v524_v4 = vld [vmem:[%s22543_s19 + $0x40] sm:$0xff] (%p35_p4)  ;;  %v526_v5 = vld [vmem:[%s22543_s19 + $0x48] sm:$0xff] (%p35_p4)  ;;  %517 = vst [vmem:[%s22551_s20] sm:$0xff] (%p35_p4), %v516_v0 }
  0x16   : > { %519 = vst [vmem:[%s22551_s20 + $0x8] sm:$0xff] (%p35_p4), %v518_v1  ;;  %521 = vst [vmem:[%s22551_s20 + $0x10] sm:$0xff] (%p35_p4), %v520_v2  ;;  %v528_v6 = vld [vmem:[%s22543_s19 + $0x50] sm:$0xff] (%p35_p4)  ;;  %v530_v7 = vld [vmem:[%s22543_s19 + $0x58] sm:$0xff] (%p35_p4) }
  0x17   : > { %523 = vst [vmem:[%s22551_s20 + $0x18] sm:$0xff] (%p35_p4), %v522_v3  ;;  %525 = vst [vmem:[%s22551_s20 + $0x20] sm:$0xff] (%p35_p4), %v524_v4  ;;  %v532_v8 = vld [vmem:[%s22543_s19 + $0x80] sm:$0xff] (%p35_p4)  ;;  %v534_v9 = vld [vmem:[%s22543_s19 + $0x88] sm:$0xff] (%p35_p4) }
  0x18   : > { %527 = vst [vmem:[%s22551_s20 + $0x28] sm:$0xff] %v526_v5  ;;  %529 = vst [vmem:[%s22551_s20 + $0x30] sm:$0xff] %v528_v6  ;;  %v536_v10 = vld [vmem:[%s22543_s19 + $0x90] sm:$0xff]  ;;  %v538_v11 = vld [vmem:[%s22543_s19 + $0x98] sm:$0xff] }
  0x19   : > { %531 = vst [vmem:[%s22551_s20 + $0x38] sm:$0xff] %v530_v7  ;;  %533 = vst [vmem:[%s22551_s20 + $0x40] sm:$0xff] %v532_v8  ;;  %v540_v12 = vld [vmem:[%s22543_s19 + $0xc0] sm:$0xff]  ;;  %v542_v13 = vld [vmem:[%s22543_s19 + $0xc8] sm:$0xff] }
  0x1a   : > { %535 = vst [vmem:[%s22551_s20 + $0x48] sm:$0xff] %v534_v9  ;;  %537 = vst [vmem:[%s22551_s20 + $0x50] sm:$0xff] %v536_v10  ;;  %v544_v14 = vld [vmem:[%s22543_s19 + $0xd0] sm:$0xff]  ;;  %v546_v15 = vld [vmem:[%s22543_s19 + $0xd8] sm:$0xff] }
  0x1b   : > { %539 = vst [vmem:[%s22551_s20 + $0x58] sm:$0xff] %v538_v11  ;;  %541 = vst [vmem:[%s22551_s20 + $0x60] sm:$0xff] %v540_v12  ;;  %v548_v16 = vld [vmem:[%s22543_s19 + $0x100] sm:$0xff]  ;;  %v550_v17 = vld [vmem:[%s22543_s19 + $0x108] sm:$0xff] }
  0x1c   : > { %543 = vst [vmem:[%s22551_s20 + $0x68] sm:$0xff] %v542_v13  ;;  %545 = vst [vmem:[%s22551_s20 + $0x70] sm:$0xff] %v544_v14  ;;  %v552_v18 = vld [vmem:[%s22543_s19 + $0x110] sm:$0xff]  ;;  %v554_v19 = vld [vmem:[%s22543_s19 + $0x118] sm:$0xff] }
  0x1d   : > { %547 = vst [vmem:[%s22551_s20 + $0x78] sm:$0xff] %v546_v15  ;;  %549 = vst [vmem:[%s22551_s20 + $0x80] sm:$0xff] %v548_v16  ;;  %v556_v20 = vld [vmem:[%s22543_s19 + $0x140] sm:$0xff]  ;;  %v558_v21 = vld [vmem:[%s22543_s19 + $0x148] sm:$0xff] }
  0x1e   : > { %551 = vst [vmem:[%s22551_s20 + $0x88] sm:$0xff] %v550_v17  ;;  %553 = vst [vmem:[%s22551_s20 + $0x90] sm:$0xff] %v552_v18  ;;  %v560_v22 = vld [vmem:[%s22543_s19 + $0x150] sm:$0xff]  ;;  %v562_v23 = vld [vmem:[%s22543_s19 + $0x158] sm:$0xff] }
  0x1f   : > { %555 = vst [vmem:[%s22551_s20 + $0x98] sm:$0xff] %v554_v19  ;;  %557 = vst [vmem:[%s22551_s20 + $0xa0] sm:$0xff] %v556_v20  ;;  %v564_v24 = vld [vmem:[%s22543_s19 + $0x180] sm:$0xff]  ;;  %v566_v25 = vld [vmem:[%s22543_s19 + $0x188] sm:$0xff] }
  0x20   : > { %559 = vst [vmem:[%s22551_s20 + $0xa8] sm:$0xff] %v558_v21  ;;  %561 = vst [vmem:[%s22551_s20 + $0xb0] sm:$0xff] %v560_v22  ;;  %v568_v26 = vld [vmem:[%s22543_s19 + $0x190] sm:$0xff]  ;;  %v570_v27 = vld [vmem:[%s22543_s19 + $0x198] sm:$0xff] }
  0x21   : > { %563 = vst [vmem:[%s22551_s20 + $0xb8] sm:$0xff] %v562_v23  ;;  %565 = vst [vmem:[%s22551_s20 + $0xc0] sm:$0xff] %v564_v24  ;;  %v572_v28 = vld [vmem:[%s22543_s19 + $0x1c0] sm:$0xff]  ;;  %v574_v29 = vld [vmem:[%s22543_s19 + $0x1c8] sm:$0xff] }
  0x22   : > { %567 = vst [vmem:[%s22551_s20 + $0xc8] sm:$0xff] %v566_v25  ;;  %569 = vst [vmem:[%s22551_s20 + $0xd0] sm:$0xff] %v568_v26  ;;  %v576_v30 = vld [vmem:[%s22543_s19 + $0x1d0] sm:$0xff]  ;;  %v578_v31 = vld [vmem:[%s22543_s19 + $0x1d8] sm:$0xff] }
  0x23   : > { %571 = vst [vmem:[%s22551_s20 + $0xd8] sm:$0xff] %v570_v27  ;;  %573 = vst [vmem:[%s22551_s20 + $0xe0] sm:$0xff] %v572_v28  ;;  %v580_v32 = vld [vmem:[%s22543_s19 + $0x200] sm:$0xff]  ;;  %v582_v33 = vld [vmem:[%s22543_s19 + $0x208] sm:$0xff] }
  0x24   : > { %575 = vst [vmem:[%s22551_s20 + $0xe8] sm:$0xff] %v574_v29  ;;  %577 = vst [vmem:[%s22551_s20 + $0xf0] sm:$0xff] %v576_v30  ;;  %v584_v34 = vld [vmem:[%s22543_s19 + $0x210] sm:$0xff]  ;;  %v586_v35 = vld [vmem:[%s22543_s19 + $0x218] sm:$0xff] }
  0x25   : > { %579 = vst [vmem:[%s22551_s20 + $0xf8] sm:$0xff] %v578_v31  ;;  %581 = vst [vmem:[%s22551_s20 + $0x100] sm:$0xff] %v580_v32  ;;  %v588_v36 = vld [vmem:[%s22543_s19 + $0x240] sm:$0xff]  ;;  %v590_v37 = vld [vmem:[%s22543_s19 + $0x248] sm:$0xff] }
  0x26   : > { %583 = vst [vmem:[%s22551_s20 + $0x108] sm:$0xff] %v582_v33  ;;  %585 = vst [vmem:[%s22551_s20 + $0x110] sm:$0xff] %v584_v34  ;;  %v592_v38 = vld [vmem:[%s22543_s19 + $0x250] sm:$0xff]  ;;  %v594_v39 = vld [vmem:[%s22543_s19 + $0x258] sm:$0xff] }
  0x27   : > { %587 = vst [vmem:[%s22551_s20 + $0x118] sm:$0xff] %v586_v35  ;;  %589 = vst [vmem:[%s22551_s20 + $0x120] sm:$0xff] %v588_v36  ;;  %v596_v40 = vld [vmem:[%s22543_s19 + $0x280] sm:$0xff]  ;;  %v598_v41 = vld [vmem:[%s22543_s19 + $0x288] sm:$0xff] }
  0x28   : > { %591 = vst [vmem:[%s22551_s20 + $0x128] sm:$0xff] %v590_v37  ;;  %593 = vst [vmem:[%s22551_s20 + $0x130] sm:$0xff] %v592_v38  ;;  %v600_v42 = vld [vmem:[%s22543_s19 + $0x290] sm:$0xff]  ;;  %v602_v43 = vld [vmem:[%s22543_s19 + $0x298] sm:$0xff] }
  0x29   : > { %595 = vst [vmem:[%s22551_s20 + $0x138] sm:$0xff] %v594_v39  ;;  %597 = vst [vmem:[%s22551_s20 + $0x140] sm:$0xff] %v596_v40  ;;  %v604_v44 = vld [vmem:[%s22543_s19 + $0x2c0] sm:$0xff]  ;;  %v606_v45 = vld [vmem:[%s22543_s19 + $0x2c8] sm:$0xff] }
  0x2a   : > { %599 = vst [vmem:[%s22551_s20 + $0x148] sm:$0xff] %v598_v41  ;;  %601 = vst [vmem:[%s22551_s20 + $0x150] sm:$0xff] %v600_v42  ;;  %v608_v46 = vld [vmem:[%s22543_s19 + $0x2d0] sm:$0xff]  ;;  %v610_v47 = vld [vmem:[%s22543_s19 + $0x2d8] sm:$0xff] }
  0x2b   : > { %603 = vst [vmem:[%s22551_s20 + $0x158] sm:$0xff] %v602_v43  ;;  %605 = vst [vmem:[%s22551_s20 + $0x160] sm:$0xff] %v604_v44  ;;  %v612_v48 = vld [vmem:[%s22543_s19 + $0x300] sm:$0xff]  ;;  %v614_v49 = vld [vmem:[%s22543_s19 + $0x308] sm:$0xff] }
  0x2c   : > { %607 = vst [vmem:[%s22551_s20 + $0x168] sm:$0xff] %v606_v45  ;;  %609 = vst [vmem:[%s22551_s20 + $0x170] sm:$0xff] %v608_v46  ;;  %v616_v50 = vld [vmem:[%s22543_s19 + $0x310] sm:$0xff]  ;;  %v618_v51 = vld [vmem:[%s22543_s19 + $0x318] sm:$0xff] }
  0x2d   : > { %611 = vst [vmem:[%s22551_s20 + $0x178] sm:$0xff] %v610_v47  ;;  %613 = vst [vmem:[%s22551_s20 + $0x180] sm:$0xff] %v612_v48  ;;  %v620_v52 = vld [vmem:[%s22543_s19 + $0x340] sm:$0xff]  ;;  %v622_v53 = vld [vmem:[%s22543_s19 + $0x348] sm:$0xff] }
  0x2e   : > { %615 = vst [vmem:[%s22551_s20 + $0x188] sm:$0xff] %v614_v49  ;;  %617 = vst [vmem:[%s22551_s20 + $0x190] sm:$0xff] %v616_v50  ;;  %v624_v54 = vld [vmem:[%s22543_s19 + $0x350] sm:$0xff]  ;;  %v626_v55 = vld [vmem:[%s22543_s19 + $0x358] sm:$0xff] }
  0x2f   : > { %619 = vst [vmem:[%s22551_s20 + $0x198] sm:$0xff] %v618_v51  ;;  %621 = vst [vmem:[%s22551_s20 + $0x1a0] sm:$0xff] %v620_v52  ;;  %v628_v56 = vld [vmem:[%s22543_s19 + $0x380] sm:$0xff]  ;;  %v630_v57 = vld [vmem:[%s22543_s19 + $0x388] sm:$0xff] }
  0x30   : > { %623 = vst [vmem:[%s22551_s20 + $0x1a8] sm:$0xff] %v622_v53  ;;  %625 = vst [vmem:[%s22551_s20 + $0x1b0] sm:$0xff] %v624_v54  ;;  %v632_v58 = vld [vmem:[%s22543_s19 + $0x390] sm:$0xff]  ;;  %v634_v59 = vld [vmem:[%s22543_s19 + $0x398] sm:$0xff] }
  0x31   : > { %627 = vst [vmem:[%s22551_s20 + $0x1b8] sm:$0xff] %v626_v55  ;;  %629 = vst [vmem:[%s22551_s20 + $0x1c0] sm:$0xff] %v628_v56  ;;  %v636_v60 = vld [vmem:[%s22543_s19 + $0x3c0] sm:$0xff]  ;;  %v638_v61 = vld [vmem:[%s22543_s19 + $0x3c8] sm:$0xff] }
  0x32   : > { %631 = vst [vmem:[%s22551_s20 + $0x1c8] sm:$0xff] %v630_v57  ;;  %633 = vst [vmem:[%s22551_s20 + $0x1d0] sm:$0xff] %v632_v58  ;;  %v640_v62 = vld [vmem:[%s22543_s19 + $0x3d0] sm:$0xff]  ;;  %v642_v63 = vld [vmem:[%s22543_s19 + $0x3d8] sm:$0xff] }
  0x33   : > { %635 = vst [vmem:[%s22551_s20 + $0x1d8] sm:$0xff] %v634_v59  ;;  %637 = vst [vmem:[%s22551_s20 + $0x1e0] sm:$0xff] %v636_v60  ;;  %v644_v0 = vld [vmem:[%s22543_s19 + $0x400] sm:$0xff]  ;;  %v646_v1 = vld [vmem:[%s22543_s19 + $0x408] sm:$0xff] }
  0x34   : > { %639 = vst [vmem:[%s22551_s20 + $0x1e8] sm:$0xff] %v638_v61  ;;  %641 = vst [vmem:[%s22551_s20 + $0x1f0] sm:$0xff] %v640_v62  ;;  %v648_v2 = vld [vmem:[%s22543_s19 + $0x410] sm:$0xff]  ;;  %v650_v3 = vld [vmem:[%s22543_s19 + $0x418] sm:$0xff] }
  0x35   : > { %643 = vst [vmem:[%s22551_s20 + $0x1f8] sm:$0xff] %v642_v63  ;;  %645 = vst [vmem:[%s22551_s20 + $0x200] sm:$0xff] %v644_v0  ;;  %v652_v4 = vld [vmem:[%s22543_s19 + $0x440] sm:$0xff]  ;;  %v654_v5 = vld [vmem:[%s22543_s19 + $0x448] sm:$0xff] }
  0x36   : > { %647 = vst [vmem:[%s22551_s20 + $0x208] sm:$0xff] %v646_v1  ;;  %649 = vst [vmem:[%s22551_s20 + $0x210] sm:$0xff] %v648_v2  ;;  %v656_v6 = vld [vmem:[%s22543_s19 + $0x450] sm:$0xff]  ;;  %v658_v7 = vld [vmem:[%s22543_s19 + $0x458] sm:$0xff] }
  0x37   : > { %651 = vst [vmem:[%s22551_s20 + $0x218] sm:$0xff] %v650_v3  ;;  %653 = vst [vmem:[%s22551_s20 + $0x220] sm:$0xff] %v652_v4  ;;  %v660_v8 = vld [vmem:[%s22543_s19 + $0x480] sm:$0xff]  ;;  %v662_v9 = vld [vmem:[%s22543_s19 + $0x488] sm:$0xff] }
  0x38   : > { %655 = vst [vmem:[%s22551_s20 + $0x228] sm:$0xff] %v654_v5  ;;  %657 = vst [vmem:[%s22551_s20 + $0x230] sm:$0xff] %v656_v6  ;;  %v664_v10 = vld [vmem:[%s22543_s19 + $0x490] sm:$0xff]  ;;  %v666_v11 = vld [vmem:[%s22543_s19 + $0x498] sm:$0xff] }
  0x39   : > { %659 = vst [vmem:[%s22551_s20 + $0x238] sm:$0xff] %v658_v7  ;;  %661 = vst [vmem:[%s22551_s20 + $0x240] sm:$0xff] %v660_v8  ;;  %v668_v12 = vld [vmem:[%s22543_s19 + $0x4c0] sm:$0xff]  ;;  %v670_v13 = vld [vmem:[%s22543_s19 + $0x4c8] sm:$0xff] }
  0x3a   : > { %663 = vst [vmem:[%s22551_s20 + $0x248] sm:$0xff] %v662_v9  ;;  %665 = vst [vmem:[%s22551_s20 + $0x250] sm:$0xff] %v664_v10  ;;  %v672_v14 = vld [vmem:[%s22543_s19 + $0x4d0] sm:$0xff]  ;;  %v674_v15 = vld [vmem:[%s22543_s19 + $0x4d8] sm:$0xff] }
  0x3b   : > { %667 = vst [vmem:[%s22551_s20 + $0x258] sm:$0xff] %v666_v11  ;;  %669 = vst [vmem:[%s22551_s20 + $0x260] sm:$0xff] %v668_v12  ;;  %v676_v16 = vld [vmem:[%s22543_s19 + $0x500] sm:$0xff]  ;;  %v678_v17 = vld [vmem:[%s22543_s19 + $0x508] sm:$0xff] }
  0x3c   : > { %671 = vst [vmem:[%s22551_s20 + $0x268] sm:$0xff] %v670_v13  ;;  %673 = vst [vmem:[%s22551_s20 + $0x270] sm:$0xff] %v672_v14  ;;  %v680_v18 = vld [vmem:[%s22543_s19 + $0x510] sm:$0xff]  ;;  %v682_v19 = vld [vmem:[%s22543_s19 + $0x518] sm:$0xff] }
  0x3d   : > { %675 = vst [vmem:[%s22551_s20 + $0x278] sm:$0xff] %v674_v15  ;;  %677 = vst [vmem:[%s22551_s20 + $0x280] sm:$0xff] %v676_v16  ;;  %v684_v20 = vld [vmem:[%s22543_s19 + $0x540] sm:$0xff]  ;;  %v686_v21 = vld [vmem:[%s22543_s19 + $0x548] sm:$0xff] }
  0x3e   : > { %679 = vst [vmem:[%s22551_s20 + $0x288] sm:$0xff] %v678_v17  ;;  %681 = vst [vmem:[%s22551_s20 + $0x290] sm:$0xff] %v680_v18  ;;  %v688_v22 = vld [vmem:[%s22543_s19 + $0x550] sm:$0xff]  ;;  %v690_v23 = vld [vmem:[%s22543_s19 + $0x558] sm:$0xff] }
  0x3f   : > { %683 = vst [vmem:[%s22551_s20 + $0x298] sm:$0xff] %v682_v19  ;;  %685 = vst [vmem:[%s22551_s20 + $0x2a0] sm:$0xff] %v684_v20  ;;  %v692_v24 = vld [vmem:[%s22543_s19 + $0x580] sm:$0xff]  ;;  %v694_v25 = vld [vmem:[%s22543_s19 + $0x588] sm:$0xff] }
  0x40   : > { %687 = vst [vmem:[%s22551_s20 + $0x2a8] sm:$0xff] %v686_v21  ;;  %689 = vst [vmem:[%s22551_s20 + $0x2b0] sm:$0xff] %v688_v22  ;;  %v696_v26 = vld [vmem:[%s22543_s19 + $0x590] sm:$0xff]  ;;  %v698_v27 = vld [vmem:[%s22543_s19 + $0x598] sm:$0xff] }
  0x41   : > { %691 = vst [vmem:[%s22551_s20 + $0x2b8] sm:$0xff] %v690_v23  ;;  %693 = vst [vmem:[%s22551_s20 + $0x2c0] sm:$0xff] %v692_v24  ;;  %v700_v28 = vld [vmem:[%s22543_s19 + $0x5c0] sm:$0xff]  ;;  %v702_v29 = vld [vmem:[%s22543_s19 + $0x5c8] sm:$0xff] }
  0x42   : > { %695 = vst [vmem:[%s22551_s20 + $0x2c8] sm:$0xff] %v694_v25  ;;  %697 = vst [vmem:[%s22551_s20 + $0x2d0] sm:$0xff] %v696_v26  ;;  %v704_v30 = vld [vmem:[%s22543_s19 + $0x5d0] sm:$0xff]  ;;  %v706_v31 = vld [vmem:[%s22543_s19 + $0x5d8] sm:$0xff] }
  0x43   : > { %699 = vst [vmem:[%s22551_s20 + $0x2d8] sm:$0xff] %v698_v27  ;;  %701 = vst [vmem:[%s22551_s20 + $0x2e0] sm:$0xff] %v700_v28  ;;  %v708_v32 = vld [vmem:[%s22543_s19 + $0x600] sm:$0xff]  ;;  %v710_v33 = vld [vmem:[%s22543_s19 + $0x608] sm:$0xff] }
  0x44   : > { %703 = vst [vmem:[%s22551_s20 + $0x2e8] sm:$0xff] %v702_v29  ;;  %705 = vst [vmem:[%s22551_s20 + $0x2f0] sm:$0xff] %v704_v30  ;;  %v712_v34 = vld [vmem:[%s22543_s19 + $0x610] sm:$0xff]  ;;  %v714_v35 = vld [vmem:[%s22543_s19 + $0x618] sm:$0xff] }
  0x45   : > { %707 = vst [vmem:[%s22551_s20 + $0x2f8] sm:$0xff] %v706_v31  ;;  %709 = vst [vmem:[%s22551_s20 + $0x300] sm:$0xff] %v708_v32  ;;  %v716_v36 = vld [vmem:[%s22543_s19 + $0x640] sm:$0xff]  ;;  %v718_v37 = vld [vmem:[%s22543_s19 + $0x648] sm:$0xff] }
  0x46   : > { %711 = vst [vmem:[%s22551_s20 + $0x308] sm:$0xff] %v710_v33  ;;  %713 = vst [vmem:[%s22551_s20 + $0x310] sm:$0xff] %v712_v34  ;;  %v720_v38 = vld [vmem:[%s22543_s19 + $0x650] sm:$0xff]  ;;  %v722_v39 = vld [vmem:[%s22543_s19 + $0x658] sm:$0xff] }
  0x47   : > { %715 = vst [vmem:[%s22551_s20 + $0x318] sm:$0xff] %v714_v35  ;;  %717 = vst [vmem:[%s22551_s20 + $0x320] sm:$0xff] %v716_v36  ;;  %v724_v40 = vld [vmem:[%s22543_s19 + $0x680] sm:$0xff]  ;;  %v726_v41 = vld [vmem:[%s22543_s19 + $0x688] sm:$0xff] }
  0x48   : > { %719 = vst [vmem:[%s22551_s20 + $0x328] sm:$0xff] %v718_v37  ;;  %721 = vst [vmem:[%s22551_s20 + $0x330] sm:$0xff] %v720_v38  ;;  %v728_v42 = vld [vmem:[%s22543_s19 + $0x690] sm:$0xff]  ;;  %v730_v43 = vld [vmem:[%s22543_s19 + $0x698] sm:$0xff] }
  0x49   : > { %723 = vst [vmem:[%s22551_s20 + $0x338] sm:$0xff] %v722_v39  ;;  %725 = vst [vmem:[%s22551_s20 + $0x340] sm:$0xff] %v724_v40  ;;  %v732_v44 = vld [vmem:[%s22543_s19 + $0x6c0] sm:$0xff]  ;;  %v734_v45 = vld [vmem:[%s22543_s19 + $0x6c8] sm:$0xff] }
  0x4a   : > { %727 = vst [vmem:[%s22551_s20 + $0x348] sm:$0xff] %v726_v41  ;;  %729 = vst [vmem:[%s22551_s20 + $0x350] sm:$0xff] %v728_v42  ;;  %v736_v46 = vld [vmem:[%s22543_s19 + $0x6d0] sm:$0xff]  ;;  %v738_v47 = vld [vmem:[%s22543_s19 + $0x6d8] sm:$0xff] }
  0x4b   : > { %731 = vst [vmem:[%s22551_s20 + $0x358] sm:$0xff] %v730_v43  ;;  %733 = vst [vmem:[%s22551_s20 + $0x360] sm:$0xff] %v732_v44 }
  0x4c   : > { %735 = vst [vmem:[%s22551_s20 + $0x368] sm:$0xff] %v734_v45  ;;  %737 = vst [vmem:[%s22551_s20 + $0x370] sm:$0xff] %v736_v46 }
  0x4d   : > { %739 = vst [vmem:[%s22551_s20 + $0x378] sm:$0xff] %v738_v47 }
  0x4e PF: > { %p17444_p7 = scmp.ge.s32.totalorder %s22454_s29, 1  ;;  %p744_p8 = scmp.lt.s32.totalorder %s22454_s29, 3 }
  0x50   : > { %p745_p9 = pnand %p17444_p7, %p744_p8 }
  0x52   : > { %748 = sbr.rel (%p745_p9) target bundleno = 3276 (0xccc), region = 82 }
  0x59   : > { %v21020_v48 = vld [vmem:[%s28881_s1 + $0x4] ss:$16 sps:$4 sm:$0xff]   ;;  %v21022_v49 = vld [vmem:[%s28881_s1 + $0xc] ss:$16 sps:$4 sm:$0xff]   ;;  %v21024_v50 = vld [vmem:[%s28881_s1] ss:$16 sps:$4 sm:$0xff]  }
  0x5a   : > { %1822 = vmatprep.subr.bf16.mxu0 %v21020_v48  ;;  %v21025_v51 = vld [vmem:[%s28881_s1 + $0x8] ss:$16 sps:$4 sm:$0xff]   ;;  %2415 = vmatprep.subr.bf16.mxu1 %v21022_v49  ;;  %v21026_v52 = vld [vmem:[%s28881_s1 + $0x24] ss:$16 sps:$4 sm:$0xff]   ;;  %v21028_v53 = vld [vmem:[%s28881_s1 + $0x2c] ss:$16 sps:$4 sm:$0xff]  }
  0x5b   : > { %1823 = vmatpush1.bf16.msra.mxu0 %v21024_v50  ;;  %2416 = vmatpush1.bf16.msra.mxu1 %v21025_v51  ;;  %v21030_v54 = vld [vmem:[%s28881_s1 + $0x20] ss:$16 sps:$4 sm:$0xff]   ;;  %v21031_v55 = vld [vmem:[%s28881_s1 + $0x28] ss:$16 sps:$4 sm:$0xff]   ;;  %v21032_v56 = vld [vmem:[%s28881_s1 + $0x44] ss:$16 sps:$4 sm:$0xff]  }
  0x5c   : > { %1824 = vmatprep.subr.bf16.mxu0 %v21026_v52  ;;  %2417 = vmatprep.subr.bf16.mxu1 %v21028_v53  ;;  %v21034_v57 = vld [vmem:[%s28881_s1 + $0x4c] ss:$16 sps:$4 sm:$0xff]   ;;  %v21036_v58 = vld [vmem:[%s28881_s1 + $0x40] ss:$16 sps:$4 sm:$0xff]   ;;  %v21037_v59 = vld [vmem:[%s28881_s1 + $0x48] ss:$16 sps:$4 sm:$0xff]  }
  0x5d   : > { %v21038_v60 = vld [vmem:[%s28881_s1 + $0x64] ss:$16 sps:$4 sm:$0xff]   ;;  %v21040_v61 = vld [vmem:[%s28881_s1 + $0x6c] ss:$16 sps:$4 sm:$0xff]   ;;  %v21042_v62 = vld [vmem:[%s28881_s1 + $0x60] ss:$16 sps:$4 sm:$0xff]  }
  0x5e   : > { %v21043_v63 = vld [vmem:[%s28881_s1 + $0x68] ss:$16 sps:$4 sm:$0xff]   ;;  %v21044_v0 = vld [vmem:[%s28881_s1 + $0x84] ss:$16 sps:$4 sm:$0xff]   ;;  %v21046_v1 = vld [vmem:[%s28881_s1 + $0x8c] ss:$16 sps:$4 sm:$0xff]  }
  0x5f   : > { %1825 = vmatpush1.bf16.msra.mxu0 %v21030_v54  ;;  %2418 = vmatpush1.bf16.msra.mxu1 %v21031_v55  ;;  %v21048_v2 = vld [vmem:[%s28881_s1 + $0x80] ss:$16 sps:$4 sm:$0xff]   ;;  %v21049_v3 = vld [vmem:[%s28881_s1 + $0x88] ss:$16 sps:$4 sm:$0xff]   ;;  %v21050_v4 = vld [vmem:[%s28881_s1 + $0xa4] ss:$16 sps:$4 sm:$0xff]  }
  0x60   : > { %1826 = vmatprep.subr.bf16.mxu0 %v21032_v56  ;;  %2419 = vmatprep.subr.bf16.mxu1 %v21034_v57  ;;  %v21052_v5 = vld [vmem:[%s28881_s1 + $0xac] ss:$16 sps:$4 sm:$0xff]   ;;  %s751_s17 = sand.u32 1, %s22446_s27   ;;  %v21054_v6 = vld [vmem:[%s28881_s1 + $0xa0] ss:$16 sps:$4 sm:$0xff]   ;;  %vm1653_vm0 = vcmask 261120  }
  0x61   : > { %v21055_v7 = vld [vmem:[%s28881_s1 + $0xa8] ss:$16 sps:$4 sm:$0xff]   ;;  %v21056_v8 = vld [vmem:[%s28881_s1 + $0xc4] ss:$16 sps:$4 sm:$0xff]   ;;  %s22849_s24 = smul.u32 896, %s751_s17  ;;  %s18584_s10 = sshll.u32 (%p22533_p5), %s22518_s30, 7 }
  0x62   : > { %v21058_v9 = vld [vmem:[%s28881_s1 + $0xcc] ss:$16 sps:$4 sm:$0xff]   ;;  %v21060_v10 = vld [vmem:[%s28881_s1 + $0xc0] ss:$16 sps:$4 sm:$0xff]   ;;  %v21061_v11 = vld [vmem:[%s28881_s1 + $0xc8] ss:$16 sps:$4 sm:$0xff]   ;;  %s28647_s14 = scalar_lea.vmem (%p22533_p5), %s28888_s8, %s18584_s10 }
  0x63   : > { %1827 = vmatpush1.bf16.msra.mxu0 %v21036_v58  ;;  %2420 = vmatpush1.bf16.msra.mxu1 %v21037_v59  ;;  %v21062_v12 = vld [vmem:[%s28881_s1 + $0xe4] ss:$16 sps:$4 sm:$0xff]   ;;  %v21064_v13 = vld [vmem:[%s28881_s1 + $0xec] ss:$16 sps:$4 sm:$0xff]   ;;  %v21066_v14 = vld [vmem:[%s28881_s1 + $0xe0] ss:$16 sps:$4 sm:$0xff]  }
  0x64   : > { %1828 = vmatprep.subr.bf16.mxu0 %v21038_v60  ;;  %2421 = vmatprep.subr.bf16.mxu1 %v21040_v61  ;;  %s22870_s20 = scalar_lea.vmem [#allocation2], %s22849_s24  ;;  %v21067_v15 = vld [vmem:[%s28881_s1 + $0xe8] ss:$16 sps:$4 sm:$0xff]   ;;  %v21068_v17 = vld [vmem:[%s28881_s1 + $0x104] ss:$16 sps:$4 sm:$0xff]   ;;  %s27399_s27 = scalar_lea.vmem [#allocation3], %s22849_s24 }
  0x65   : > { %v21082_v16 = vld [vmem:[%s22870_s20 + $0x4] ss:$8 sps:$4 sm:$0xff]   ;;  %v21072_v19 = vld [vmem:[%s28881_s1 + $0x100] ss:$16 sps:$4 sm:$0xff]   ;;  %v21073_v20 = vld [vmem:[%s28881_s1 + $0x108] ss:$16 sps:$4 sm:$0xff]  }
  0x66   : > { %v21070_v18 = vld [vmem:[%s28881_s1 + $0x10c] ss:$16 sps:$4 sm:$0xff]   ;;  %17599 = vmatprep.mubr.msk.bf16.mxu0 %vm1653_vm0, %v21082_v16  ;;  %17655 = vmatprep.mubr.msk.bf16.mxu1 %vm1653_vm0, %v21082_v16  ;;  %v21074_v21 = vld [vmem:[%s28881_s1 + $0x124] ss:$16 sps:$4 sm:$0xff]   ;;  %v21078_v23 = vld [vmem:[%s28881_s1 + $0x120] ss:$16 sps:$4 sm:$0xff]  }
  0x67   : > { %1829 = vmatpush1.bf16.msra.mxu0 %v21042_v62  ;;  %2422 = vmatpush1.bf16.msra.mxu1 %v21043_v63  ;;  %v21076_v22 = vld [vmem:[%s28881_s1 + $0x12c] ss:$16 sps:$4 sm:$0xff]   ;;  %v21079_v24 = vld [vmem:[%s28881_s1 + $0x128] ss:$16 sps:$4 sm:$0xff]   ;;  %v21085_v25 = vld [vmem:[%s28883_s3 + $0x4] ss:$16 sps:$4 sm:$0xff]  }
  0x68   : > { %1830 = vmatprep.subr.bf16.mxu0 %v21044_v0  ;;  %2423 = vmatprep.subr.bf16.mxu1 %v21046_v1  ;;  %v21088_v26 = vld [vmem:[%s28883_s3 + $0xc] ss:$16 sps:$4 sm:$0xff]   ;;  %v21080_v27 = vld [vmem:[%s22870_s20] ss:$8 sps:$4 sm:$0xff]   ;;  %v21100_v31 = vld [vmem:[%s28883_s3 + $0x24] ss:$16 sps:$4 sm:$0xff]  }
  0x69   : > { %v21083_v28 = vld [vmem:[%s28883_s3] ss:$16 sps:$4 sm:$0xff]   ;;  %v21086_v29 = vld [vmem:[%s28883_s3 + $0x8] ss:$16 sps:$4 sm:$0xff]   ;;  %v21089_v30 = vld [vmem:[%s22870_s20 + $0x14] ss:$8 sps:$4 sm:$0xff]  }
  0x6a   : > { %v21103_v32 = vld [vmem:[%s28883_s3 + $0x2c] ss:$16 sps:$4 sm:$0xff]   ;;  %v21098_v33 = vld [vmem:[%s28883_s3 + $0x20] ss:$16 sps:$4 sm:$0xff]   ;;  %v21101_v34 = vld [vmem:[%s28883_s3 + $0x28] ss:$16 sps:$4 sm:$0xff]  }
  0x6b   : > { %1831 = vmatpush1.bf16.msra.mxu0 %v21048_v2  ;;  %2424 = vmatpush1.bf16.msra.mxu1 %v21049_v3  ;;  %v21118_v35 = vld [vmem:[%s28883_s3 + $0x44] ss:$16 sps:$4 sm:$0xff]   ;;  %v21121_v36 = vld [vmem:[%s28883_s3 + $0x4c] ss:$16 sps:$4 sm:$0xff]   ;;  %v21091_v37 = vld [vmem:[%s22870_s20 + $0x10] ss:$8 sps:$4 sm:$0xff]  }
  0x6c   : > { %1832 = vmatprep.subr.bf16.mxu0 %v21050_v4  ;;  %2425 = vmatprep.subr.bf16.mxu1 %v21052_v5  ;;  %v21092_v38 = vld [vmem:[%s22870_s20 + $0x24] ss:$8 sps:$4 sm:$0xff]   ;;  %v21116_v39 = vld [vmem:[%s28883_s3 + $0x40] ss:$16 sps:$4 sm:$0xff]   ;;  %v21119_v40 = vld [vmem:[%s28883_s3 + $0x48] ss:$16 sps:$4 sm:$0xff]  }
  0x6d   : > { %v21133_v41 = vld [vmem:[%s28883_s3 + $0x64] ss:$16 sps:$4 sm:$0xff]   ;;  %v21136_v42 = vld [vmem:[%s28883_s3 + $0x6c] ss:$16 sps:$4 sm:$0xff]   ;;  %v21131_v43 = vld [vmem:[%s28883_s3 + $0x60] ss:$16 sps:$4 sm:$0xff]  }
  0x6e   : > { %v21134_v44 = vld [vmem:[%s28883_s3 + $0x68] ss:$16 sps:$4 sm:$0xff]   ;;  %v21095_v46 = vld [vmem:[%s22870_s20 + $0x34] ss:$8 sps:$4 sm:$0xff]   ;;  %v21149_v47 = vld [vmem:[%s28883_s3 + $0x80] ss:$16 sps:$4 sm:$0xff]  }
  0x6f   : > { %1833 = vmatpush1.bf16.msra.mxu0 %v21054_v6  ;;  %2426 = vmatpush1.bf16.msra.mxu1 %v21055_v7  ;;  %v21094_v45 = vld [vmem:[%s22870_s20 + $0x20] ss:$8 sps:$4 sm:$0xff]   ;;  %v21151_v48 = vld [vmem:[%s28883_s3 + $0x84] ss:$16 sps:$4 sm:$0xff]   ;;  %v21154_v50 = vld [vmem:[%s28883_s3 + $0x8c] ss:$16 sps:$4 sm:$0xff]  }
  0x70   : > { %1834 = vmatprep.subr.bf16.mxu0 %v21056_v8  ;;  %2427 = vmatprep.subr.bf16.mxu1 %v21058_v9  ;;  %v21152_v49 = vld [vmem:[%s28883_s3 + $0x88] ss:$16 sps:$4 sm:$0xff]   ;;  %v21104_v52 = vld [vmem:[%s22870_s20 + $0x44] ss:$8 sps:$4 sm:$0xff]   ;;  %v21164_v53 = vld [vmem:[%s28883_s3 + $0xa0] ss:$16 sps:$4 sm:$0xff]  }
  0x71   : > { %v21097_v51 = vld [vmem:[%s22870_s20 + $0x30] ss:$8 sps:$4 sm:$0xff]   ;;  %v21166_v54 = vld [vmem:[%s28883_s3 + $0xa4] ss:$16 sps:$4 sm:$0xff]   ;;  %v21169_v56 = vld [vmem:[%s28883_s3 + $0xac] ss:$16 sps:$4 sm:$0xff]  }
  0x72   : > { %v21167_v55 = vld [vmem:[%s28883_s3 + $0xa8] ss:$16 sps:$4 sm:$0xff]   ;;  %v21107_v58 = vld [vmem:[%s22870_s20 + $0x54] ss:$8 sps:$4 sm:$0xff]   ;;  %v21110_v60 = vld [vmem:[%s22870_s20 + $0x64] ss:$8 sps:$4 sm:$0xff]  }
  0x73   : > { %1835 = vmatpush1.bf16.msra.mxu0 %v21060_v10  ;;  %2428 = vmatpush1.bf16.msra.mxu1 %v21061_v11  ;;  %v21106_v57 = vld [vmem:[%s22870_s20 + $0x40] ss:$8 sps:$4 sm:$0xff]   ;;  %v21109_v59 = vld [vmem:[%s22870_s20 + $0x50] ss:$8 sps:$4 sm:$0xff]   ;;  %v21184_v62 = vld [vmem:[%s28883_s3 + $0xc4] ss:$16 sps:$4 sm:$0xff]  }
  0x74   : > { %1836 = vmatprep.subr.bf16.mxu0 %v21062_v12  ;;  %2429 = vmatprep.subr.bf16.mxu1 %v21064_v13  ;;  %v21182_v61 = vld [vmem:[%s28883_s3 + $0xc0] ss:$16 sps:$4 sm:$0xff]   ;;  %v21185_v63 = vld [vmem:[%s28883_s3 + $0xc8] ss:$16 sps:$4 sm:$0xff]   ;;  %v21187_v0 = vld [vmem:[%s28883_s3 + $0xcc] ss:$16 sps:$4 sm:$0xff]  }
  0x75   : > { %v21112_v1 = vld [vmem:[%s22870_s20 + $0x60] ss:$8 sps:$4 sm:$0xff]   ;;  %v21113_v2 = vld [vmem:[%s22870_s20 + $0x74] ss:$8 sps:$4 sm:$0xff]   ;;  %v21115_v3 = vld [vmem:[%s22870_s20 + $0x70] ss:$8 sps:$4 sm:$0xff]  }
  0x76   : > { %v21122_v4 = vld [vmem:[%s22870_s20 + $0x84] ss:$8 sps:$4 sm:$0xff]   ;;  %v21124_v5 = vld [vmem:[%s22870_s20 + $0x80] ss:$8 sps:$4 sm:$0xff]   ;;  %v21125_v6 = vld [vmem:[%s22870_s20 + $0x94] ss:$8 sps:$4 sm:$0xff]  }
  0x77   : > { %1837 = vmatpush1.bf16.msra.mxu0 %v21066_v14  ;;  %2430 = vmatpush1.bf16.msra.mxu1 %v21067_v15  ;;  %v21197_v7 = vld [vmem:[%s28883_s3 + $0xe0] ss:$16 sps:$4 sm:$0xff]   ;;  %v21199_v8 = vld [vmem:[%s28883_s3 + $0xe4] ss:$16 sps:$4 sm:$0xff]   ;;  %v21200_v9 = vld [vmem:[%s28883_s3 + $0xe8] ss:$16 sps:$4 sm:$0xff]  }
  0x78   : > { %1838 = vmatprep.subr.bf16.mxu0 %v21068_v17  ;;  %2431 = vmatprep.subr.bf16.mxu1 %v21070_v18  ;;  %v21202_v10 = vld [vmem:[%s28883_s3 + $0xec] ss:$16 sps:$4 sm:$0xff]   ;;  %v21127_v11 = vld [vmem:[%s22870_s20 + $0x90] ss:$8 sps:$4 sm:$0xff]   ;;  %v21130_v13 = vld [vmem:[%s22870_s20 + $0xa0] ss:$8 sps:$4 sm:$0xff]  }
  0x79   : > { %v21128_v12 = vld [vmem:[%s22870_s20 + $0xa4] ss:$8 sps:$4 sm:$0xff]   ;;  %v21137_v14 = vld [vmem:[%s22870_s20 + $0xb4] ss:$8 sps:$4 sm:$0xff]   ;;  %v21139_v15 = vld [vmem:[%s22870_s20 + $0xb0] ss:$8 sps:$4 sm:$0xff]  }
  0x7a   : > { %v21140_v16 = vld [vmem:[%s22870_s20 + $0xc4] ss:$8 sps:$4 sm:$0xff]   ;;  %v21142_v17 = vld [vmem:[%s22870_s20 + $0xc0] ss:$8 sps:$4 sm:$0xff]   ;;  %v21143_v18 = vld [vmem:[%s22870_s20 + $0xd4] ss:$8 sps:$4 sm:$0xff]  }
  0x7b   : > { %1839 = vmatpush1.bf16.msra.mxu0 %v21072_v19  ;;  %2432 = vmatpush1.bf16.msra.mxu1 %v21073_v20  ;;  %v21215_v19 = vld [vmem:[%s28883_s3 + $0x100] ss:$16 sps:$4 sm:$0xff]   ;;  %v21217_v20 = vld [vmem:[%s28883_s3 + $0x104] ss:$16 sps:$4 sm:$0xff]  }
  0x7c   : > { %1840 = vmatprep.subr.bf16.mxu0 %v21074_v21  ;;  %2433 = vmatprep.subr.bf16.mxu1 %v21076_v22  ;;  %v21218_v21 = vld [vmem:[%s28883_s3 + $0x108] ss:$16 sps:$4 sm:$0xff]   ;;  %v21220_v22 = vld [vmem:[%s28883_s3 + $0x10c] ss:$16 sps:$4 sm:$0xff]  }
  0x7f   : > { %1841 = vmatpush1.bf16.msra.mxu0 %v21078_v23  ;;  %2434 = vmatpush1.bf16.msra.mxu1 %v21079_v24  ;;  %v21145_v23 = vld [vmem:[%s22870_s20 + $0xd0] ss:$8 sps:$4 sm:$0xff]   ;;  %v21146_v24 = vld [vmem:[%s22870_s20 + $0xe4] ss:$8 sps:$4 sm:$0xff]  }
  0x80   : > { %7766 = vmatprep.subr.bf16.mxu0 %v21085_v25  ;;  %10896 = vmatprep.subr.bf16.mxu1 %v21088_v26  ;;  %v21148_v25 = vld [vmem:[%s22870_s20 + $0xe0] ss:$8 sps:$4 sm:$0xff]   ;;  %v21155_v26 = vld [vmem:[%s22870_s20 + $0xf4] ss:$8 sps:$4 sm:$0xff]  }
  0x82   : > { %1855 = vmatmul.mubr.bf16.vlgmr.msra.gmra.mrb[0].mxu0 %v21080_v27  ;;  %2448 = vmatmul.mubr.bf16.vlgmr.msra.gmra.mrb[0].mxu1 %v21080_v27  ;;  %v21157_v27 = vld [vmem:[%s22870_s20 + $0xf0] ss:$8 sps:$4 sm:$0xff]  }
  0x83   : > { %7767 = vmatpush1.bf16.msra.mxu0 %v21083_v28  ;;  %10897 = vmatpush1.bf16.msra.mxu1 %v21086_v29  ;;  %v21158_v28 = vld [vmem:[%s22870_s20 + $0x104] ss:$8 sps:$4 sm:$0xff]   ;;  %v21160_v29 = vld [vmem:[%s22870_s20 + $0x100] ss:$8 sps:$4 sm:$0xff]  }
  0x84   : > { %17600 = vmatprep.mubr.msk.bf16.mxu0 %vm1653_vm0, %v21089_v30  ;;  %17656 = vmatprep.mubr.msk.bf16.mxu1 %vm1653_vm0, %v21089_v30  ;;  %v21230_v30 = vld [vmem:[%s28883_s3 + $0x120] ss:$16 sps:$4 sm:$0xff]  }
  0x85   : > { %7768 = vmatprep.subr.bf16.mxu0 %v21100_v31  ;;  %10898 = vmatprep.subr.bf16.mxu1 %v21103_v32  ;;  %v21232_v31 = vld [vmem:[%s28883_s3 + $0x124] ss:$16 sps:$4 sm:$0xff]  }
  0x86   : > { %v21161_v32 = vld [vmem:[%s22870_s20 + $0x114] ss:$8 sps:$4 sm:$0xff]  }
  0x87   : > { %7769 = vmatpush1.bf16.msra.mxu0 %v21098_v33  ;;  %10899 = vmatpush1.bf16.msra.mxu1 %v21101_v34  ;;  %v21235_v33 = vld [vmem:[%s28883_s3 + $0x12c] ss:$16 sps:$4 sm:$0xff]   ;;  %v21233_v34 = vld [vmem:[%s28883_s3 + $0x128] ss:$16 sps:$4 sm:$0xff]  }
  0x88   : > { %7770 = vmatprep.subr.bf16.mxu0 %v21118_v35  ;;  %10900 = vmatprep.subr.bf16.mxu1 %v21121_v36  ;;  %v21163_v35 = vld [vmem:[%s22870_s20 + $0x110] ss:$8 sps:$4 sm:$0xff]   ;;  %v21170_v36 = vld [vmem:[%s22870_s20 + $0x124] ss:$8 sps:$4 sm:$0xff]  }
  0x8a   : > { %1865 = vmatmul.mubr.bf16.gmra.mrb[4].mxu0 %v21091_v37  ;;  %2458 = vmatmul.mubr.bf16.gmra.mrb[4].mxu1 %v21091_v37  ;;  %v21172_v37 = vld [vmem:[%s22870_s20 + $0x120] ss:$8 sps:$4 sm:$0xff]  }
  0x8b   : > { %17601 = vmatprep.mubr.msk.bf16.mxu0 %vm1653_vm0, %v21092_v38  ;;  %17657 = vmatprep.mubr.msk.bf16.mxu1 %vm1653_vm0, %v21092_v38  ;;  %v21173_v38 = vld [vmem:[%s22870_s20 + $0x134] ss:$8 sps:$4 sm:$0xff]  }
  0x8c   : > { %7771 = vmatpush1.bf16.msra.mxu0 %v21116_v39  ;;  %10901 = vmatpush1.bf16.msra.mxu1 %v21119_v40  ;;  %v21175_v39 = vld [vmem:[%s22870_s20 + $0x130] ss:$8 sps:$4 sm:$0xff]   ;;  %v21176_v40 = vld [vmem:[%s22870_s20 + $0x144] ss:$8 sps:$4 sm:$0xff]  }
  0x8d   : > { %7772 = vmatprep.subr.bf16.mxu0 %v21133_v41  ;;  %10902 = vmatprep.subr.bf16.mxu1 %v21136_v42  ;;  %v21248_v41 = vld [vmem:[%s28883_s3 + $0x140] ss:$16 sps:$4 sm:$0xff]   ;;  %v21250_v42 = vld [vmem:[%s28883_s3 + $0x144] ss:$16 sps:$4 sm:$0xff]  }
  0x90   : > { %7773 = vmatpush1.bf16.msra.mxu0 %v21131_v43  ;;  %10903 = vmatpush1.bf16.msra.mxu1 %v21134_v44  ;;  %v21251_v43 = vld [vmem:[%s28883_s3 + $0x148] ss:$16 sps:$4 sm:$0xff]   ;;  %v21253_v44 = vld [vmem:[%s28883_s3 + $0x14c] ss:$16 sps:$4 sm:$0xff]  }
  0x91   : > { %7774 = vmatprep.subr.bf16.mxu0 %v21151_v48  ;;  %10904 = vmatprep.subr.bf16.mxu1 %v21154_v50  ;;  %v21188_v48 = vld [vmem:[%s22870_s20 + $0x164] ss:$8 sps:$4 sm:$0xff]   ;;  %v21191_v50 = vld [vmem:[%s22870_s20 + $0x174] ss:$8 sps:$4 sm:$0xff]  }
  0x92   : > { %1875 = vmatmul.mubr.bf16.gmra.mrb[8].mxu0 %v21094_v45  ;;  %2468 = vmatmul.mubr.bf16.gmra.mrb[8].mxu1 %v21094_v45  ;;  %v21178_v45 = vld [vmem:[%s22870_s20 + $0x140] ss:$8 sps:$4 sm:$0xff]  }
  0x93   : > { %17602 = vmatprep.mubr.msk.bf16.mxu0 %vm1653_vm0, %v21095_v46  ;;  %17658 = vmatprep.mubr.msk.bf16.mxu1 %vm1653_vm0, %v21095_v46  ;;  %v21179_v46 = vld [vmem:[%s22870_s20 + $0x154] ss:$8 sps:$4 sm:$0xff]  }
  0x94   : > { %7775 = vmatpush1.bf16.msra.mxu0 %v21149_v47  ;;  %10905 = vmatpush1.bf16.msra.mxu1 %v21152_v49  ;;  %v21181_v47 = vld [vmem:[%s22870_s20 + $0x150] ss:$8 sps:$4 sm:$0xff]   ;;  %v21190_v49 = vld [vmem:[%s22870_s20 + $0x160] ss:$8 sps:$4 sm:$0xff]  }
  0x95   : > { %7776 = vmatprep.subr.bf16.mxu0 %v21166_v54  ;;  %10906 = vmatprep.subr.bf16.mxu1 %v21169_v56  ;;  %v21265_v54 = vld [vmem:[%s28883_s3 + $0x164] ss:$16 sps:$4 sm:$0xff]   ;;  %v21268_v56 = vld [vmem:[%s28883_s3 + $0x16c] ss:$16 sps:$4 sm:$0xff]  }
  0x98   : > { %7777 = vmatpush1.bf16.msra.mxu0 %v21164_v53  ;;  %10907 = vmatpush1.bf16.msra.mxu1 %v21167_v55  ;;  %v21263_v53 = vld [vmem:[%s28883_s3 + $0x160] ss:$16 sps:$4 sm:$0xff]   ;;  %v21266_v55 = vld [vmem:[%s28883_s3 + $0x168] ss:$16 sps:$4 sm:$0xff]  }
  0x99   : > { %7778 = vmatprep.subr.bf16.mxu0 %v21184_v62  ;;  %10908 = vmatprep.subr.bf16.mxu1 %v21187_v0  ;;  %v21209_v62 = vld [vmem:[%s22870_s20 + $0x1b4] ss:$8 sps:$4 sm:$0xff]  }
  0x9a   : > { %1885 = vmatmul.mubr.bf16.gmra.mrb[12].mxu0 %v21097_v51  ;;  %2478 = vmatmul.mubr.bf16.gmra.mrb[12].mxu1 %v21097_v51  ;;  %v21193_v51 = vld [vmem:[%s22870_s20 + $0x170] ss:$8 sps:$4 sm:$0xff]  }
  0x9b   : > { %17603 = vmatprep.mubr.msk.bf16.mxu0 %vm1653_vm0, %v21104_v52  ;;  %17659 = vmatprep.mubr.msk.bf16.mxu1 %vm1653_vm0, %v21104_v52  ;;  %v21194_v52 = vld [vmem:[%s22870_s20 + $0x184] ss:$8 sps:$4 sm:$0xff]  }
  0x9c   : > { %7779 = vmatpush1.bf16.msra.mxu0 %v21182_v61  ;;  %10909 = vmatpush1.bf16.msra.mxu1 %v21185_v63  ;;  %v21208_v61 = vld [vmem:[%s22870_s20 + $0x1a0] ss:$8 sps:$4 sm:$0xff]   ;;  %v21211_v63 = vld [vmem:[%s22870_s20 + $0x1b0] ss:$8 sps:$4 sm:$0xff]  }
  0x9d   : > { %7780 = vmatprep.subr.bf16.mxu0 %v21199_v8  ;;  %10910 = vmatprep.subr.bf16.mxu1 %v21202_v10 }
  0xa0   : > { %7781 = vmatpush1.bf16.msra.mxu0 %v21197_v7  ;;  %10911 = vmatpush1.bf16.msra.mxu1 %v21200_v9  ;;  %v21212_v7 = vld [vmem:[%s22870_s20 + $0x1c4] ss:$8 sps:$4 sm:$0xff]  }
  0xa1   : > { %7782 = vmatprep.subr.bf16.mxu0 %v21217_v20  ;;  %10912 = vmatprep.subr.bf16.mxu1 %v21220_v22 }
  0xa2   : > { %1895 = vmatmul.mubr.bf16.gmra.mrb[16].mxu0 %v21106_v57  ;;  %2488 = vmatmul.mubr.bf16.gmra.mrb[16].mxu1 %v21106_v57  ;;  %v21196_v57 = vld [vmem:[%s22870_s20 + $0x180] ss:$8 sps:$4 sm:$0xff]  }
  0xa3   : > { %17604 = vmatprep.mubr.msk.bf16.mxu0 %vm1653_vm0, %v21107_v58  ;;  %17660 = vmatprep.mubr.msk.bf16.mxu1 %vm1653_vm0, %v21107_v58  ;;  %v21203_v58 = vld [vmem:[%s22870_s20 + $0x194] ss:$8 sps:$4 sm:$0xff]  }
  0xa4   : > { %7783 = vmatpush1.bf16.msra.mxu0 %v21215_v19  ;;  %10913 = vmatpush1.bf16.msra.mxu1 %v21218_v21 }
  0xa5   : > { %7784 = vmatprep.subr.bf16.mxu0 %v21232_v31  ;;  %10914 = vmatprep.subr.bf16.mxu1 %v21235_v33 }
  0xa8   : > { %7785 = vmatpush1.bf16.msra.mxu0 %v21230_v30  ;;  %10915 = vmatpush1.bf16.msra.mxu1 %v21233_v34 }
  0xa9   : > { %7786 = vmatprep.subr.bf16.mxu0 %v21250_v42  ;;  %10916 = vmatprep.subr.bf16.mxu1 %v21253_v44 }
  0xaa   : > { %1905 = vmatmul.mubr.bf16.gmra.mrb[20].mxu0 %v21109_v59  ;;  %2498 = vmatmul.mubr.bf16.gmra.mrb[20].mxu1 %v21109_v59  ;;  %v21205_v59 = vld [vmem:[%s22870_s20 + $0x190] ss:$8 sps:$4 sm:$0xff]  }
  0xab   : > { %17605 = vmatprep.mubr.msk.bf16.mxu0 %vm1653_vm0, %v21110_v60  ;;  %17661 = vmatprep.mubr.msk.bf16.mxu1 %vm1653_vm0, %v21110_v60  ;;  %v21206_v60 = vld [vmem:[%s22870_s20 + $0x1a4] ss:$8 sps:$4 sm:$0xff]  }
  0xac   : > { %7787 = vmatpush1.bf16.msra.mxu0 %v21248_v41  ;;  %10917 = vmatpush1.bf16.msra.mxu1 %v21251_v43 }
  0xad   : > { %7788 = vmatprep.subr.bf16.mxu0 %v21265_v54  ;;  %10918 = vmatprep.subr.bf16.mxu1 %v21268_v56 }
  0xb0   : > { %7789 = vmatpush1.bf16.msra.mxu0 %v21263_v53  ;;  %10919 = vmatpush1.bf16.msra.mxu1 %v21266_v55 }
  0xb2   : > { %1915 = vmatmul.mubr.bf16.gmra.mrb[24].mxu0 %v21112_v1  ;;  %2508 = vmatmul.mubr.bf16.gmra.mrb[24].mxu1 %v21112_v1 }
  0xb3   : > { %17606 = vmatprep.mubr.msk.bf16.mxu0 %vm1653_vm0, %v21113_v2  ;;  %17662 = vmatprep.mubr.msk.bf16.mxu1 %vm1653_vm0, %v21113_v2 }
  0xba   : > { %1925 = vmatmul.mubr.bf16.gmra.mrb[28].mxu0 %v21115_v3  ;;  %2518 = vmatmul.mubr.bf16.gmra.mrb[28].mxu1 %v21115_v3 }
  0xbb   : > { %17607 = vmatprep.mubr.msk.bf16.mxu0 %vm1653_vm0, %v21122_v4  ;;  %17663 = vmatprep.mubr.msk.bf16.mxu1 %vm1653_vm0, %v21122_v4 }
  0xc2   : > { %1935 = vmatmul.mubr.bf16.gmra.mrb[32].mxu0 %v21124_v5  ;;  %2528 = vmatmul.mubr.bf16.gmra.mrb[32].mxu1 %v21124_v5 }
  0xc3   : > { %17608 = vmatprep.mubr.msk.bf16.mxu0 %vm1653_vm0, %v21125_v6  ;;  %17664 = vmatprep.mubr.msk.bf16.mxu1 %vm1653_vm0, %v21125_v6 }
  0xca   : > { %1945 = vmatmul.mubr.bf16.gmra.mrb[36].mxu0 %v21127_v11  ;;  %2538 = vmatmul.mubr.bf16.gmra.mrb[36].mxu1 %v21127_v11 }
  0xcb   : > { %17609 = vmatprep.mubr.msk.bf16.mxu0 %vm1653_vm0, %v21128_v12  ;;  %17665 = vmatprep.mubr.msk.bf16.mxu1 %vm1653_vm0, %v21128_v12  ;;  %v21281_v12 = vld [vmem:[%s28883_s3 + $0x180] ss:$16 sps:$4 sm:$0xff]  }
  0xd2   : > { %1955 = vmatmul.mubr.bf16.gmra.mrb[40].mxu0 %v21130_v13  ;;  %2548 = vmatmul.mubr.bf16.gmra.mrb[40].mxu1 %v21130_v13  ;;  %v21283_v13 = vld [vmem:[%s28883_s3 + $0x184] ss:$16 sps:$4 sm:$0xff]  }
  0xd3   : > { %17610 = vmatprep.mubr.msk.bf16.mxu0 %vm1653_vm0, %v21137_v14  ;;  %17666 = vmatprep.mubr.msk.bf16.mxu1 %vm1653_vm0, %v21137_v14  ;;  %v21284_v14 = vld [vmem:[%s28883_s3 + $0x188] ss:$16 sps:$4 sm:$0xff]  }
  0xd4   : > { %7790 = vmatprep.subr.bf16.mxu0 %v21283_v13 }
  0xd5   : > { %7791 = vmatpush1.bf16.msra.mxu0 %v21281_v12 }
  0xda   : > { %1965 = vmatmul.mubr.bf16.gmra.mrb[44].mxu0 %v21139_v15  ;;  %2558 = vmatmul.mubr.bf16.gmra.mrb[44].mxu1 %v21139_v15 }
  0xdb   : > { %17611 = vmatprep.mubr.msk.bf16.mxu0 %vm1653_vm0, %v21140_v16  ;;  %17667 = vmatprep.mubr.msk.bf16.mxu1 %vm1653_vm0, %v21140_v16  ;;  %v3346_v16 = vlaneseq }
  0xe2   : > { %1975 = vmatmul.mubr.bf16.gmra.mrb[48].mxu0 %v21142_v17  ;;  %2568 = vmatmul.mubr.bf16.gmra.mrb[48].mxu1 %v21142_v17  ;;  %v21286_v17 = vld [vmem:[%s28883_s3 + $0x18c] ss:$16 sps:$4 sm:$0xff]  }
  0xe3   : > { %17612 = vmatprep.mubr.msk.bf16.mxu0 %vm1653_vm0, %v21143_v18  ;;  %17668 = vmatprep.mubr.msk.bf16.mxu1 %vm1653_vm0, %v21143_v18  ;;  %v21214_v18 = vld [vmem:[%s22870_s20 + $0x1c0] ss:$8 sps:$4 sm:$0xff]  }
  0xe4   : > { %10920 = vmatprep.subr.bf16.mxu1 %v21286_v17 }
  0xe5   : > { %10921 = vmatpush1.bf16.msra.mxu1 %v21284_v14 }
  0xea   : > { %1985 = vmatmul.mubr.bf16.gmra.mrb[52].mxu0 %v21145_v23  ;;  %2578 = vmatmul.mubr.bf16.gmra.mrb[52].mxu1 %v21145_v23  ;;  %v23203_v23 = vshrl.u32 %v3346_v16, 7 }
  0xeb   : > { %17613 = vmatprep.mubr.msk.bf16.mxu0 %vm1653_vm0, %v21146_v24  ;;  %17669 = vmatprep.mubr.msk.bf16.mxu1 %vm1653_vm0, %v21146_v24 }
  0xec   : > { %29181 = vst [vmem:[#allocation4_spill] sm:$0xff] %v23203_v23  ;;  %v28892_v34 = vsub.s32 0, %v23203_v23 }
  0xf2   : > { %1995 = vmatmul.mubr.bf16.gmra.mrb[56].mxu0 %v21148_v25  ;;  %2588 = vmatmul.mubr.bf16.gmra.mrb[56].mxu1 %v21148_v25 }
  0xf3   : > { %17614 = vmatprep.mubr.msk.bf16.mxu0 %vm1653_vm0, %v21155_v26  ;;  %17670 = vmatprep.mubr.msk.bf16.mxu1 %vm1653_vm0, %v21155_v26 }
  0xfa   : > { %2005 = vmatmul.mubr.bf16.gmra.mrb[60].mxu0 %v21157_v27  ;;  %2598 = vmatmul.mubr.bf16.gmra.mrb[60].mxu1 %v21157_v27  ;;  %v21221_v27 = vld [vmem:[%s22870_s20 + $0x1d4] ss:$8 sps:$4 sm:$0xff]  }
  0xfb   : > { %17615 = vmatprep.mubr.msk.bf16.mxu0 %vm1653_vm0, %v21158_v28  ;;  %17671 = vmatprep.mubr.msk.bf16.mxu1 %vm1653_vm0, %v21158_v28 }
 0x102   : > { %2015 = vmatmul.mubr.bf16.gmra.mrb[64].mxu0 %v21160_v29  ;;  %2608 = vmatmul.mubr.bf16.gmra.mrb[64].mxu1 %v21160_v29 }
 0x103   : > { %17616 = vmatprep.mubr.msk.bf16.mxu0 %vm1653_vm0, %v21161_v32  ;;  %17672 = vmatprep.mubr.msk.bf16.mxu1 %vm1653_vm0, %v21161_v32  ;;  %v3344_v32 = vld [vmem:[%s28882_s2] sm:$0xf] }
 0x104   : > { %v23234_v43 = vrot.slane %v3344_v32, %v28892_v34 }
 0x10a   : > { %2025 = vmatmul.mubr.bf16.gmra.mrb[68].mxu0 %v21163_v35  ;;  %2618 = vmatmul.mubr.bf16.gmra.mrb[68].mxu1 %v21163_v35  ;;  %v28891_v35 = vsub.s32 2, %v23203_v23 }
 0x10b   : > { %17617 = vmatprep.mubr.msk.bf16.mxu0 %vm1653_vm0, %v21170_v36  ;;  %17673 = vmatprep.mubr.msk.bf16.mxu1 %vm1653_vm0, %v21170_v36  ;;  %v28890_v36 = vsub.s32 1, %v23203_v23 }
 0x10c   : > { %v23238_v44 = vrot.slane %v3344_v32, %v28891_v35 }
 0x112   : > { %2035 = vmatmul.mubr.bf16.gmra.mrb[72].mxu0 %v21172_v37  ;;  %2628 = vmatmul.mubr.bf16.gmra.mrb[72].mxu1 %v21172_v37  ;;  %v28889_v37 = vsub.s32 3, %v23203_v23 }
 0x113   : > { %17618 = vmatprep.mubr.msk.bf16.mxu0 %vm1653_vm0, %v21173_v38  ;;  %17674 = vmatprep.mubr.msk.bf16.mxu1 %vm1653_vm0, %v21173_v38  ;;  %v21223_v38 = vld [vmem:[%s22870_s20 + $0x1d0] ss:$8 sps:$4 sm:$0xff]  }
 0x11a   : > { %2045 = vmatmul.mubr.bf16.gmra.mrb[76].mxu0 %v21175_v39  ;;  %2638 = vmatmul.mubr.bf16.gmra.mrb[76].mxu1 %v21175_v39 }
 0x11b   : > { %17619 = vmatprep.mubr.msk.bf16.mxu0 %vm1653_vm0, %v21176_v40  ;;  %17675 = vmatprep.mubr.msk.bf16.mxu1 %vm1653_vm0, %v21176_v40 }
 0x122   : > { %2055 = vmatmul.mubr.bf16.gmra.mrb[80].mxu0 %v21178_v45  ;;  %2648 = vmatmul.mubr.bf16.gmra.mrb[80].mxu1 %v21178_v45 }
 0x123   : > { %17620 = vmatprep.mubr.msk.bf16.mxu0 %vm1653_vm0, %v21179_v46  ;;  %17676 = vmatprep.mubr.msk.bf16.mxu1 %vm1653_vm0, %v21179_v46 }
 0x12a   : > { %2065 = vmatmul.mubr.bf16.gmra.mrb[84].mxu0 %v21181_v47  ;;  %2658 = vmatmul.mubr.bf16.gmra.mrb[84].mxu1 %v21181_v47 }
 0x12b   : > { %17621 = vmatprep.mubr.msk.bf16.mxu0 %vm1653_vm0, %v21188_v48  ;;  %17677 = vmatprep.mubr.msk.bf16.mxu1 %vm1653_vm0, %v21188_v48  ;;  %v21224_v48 = vld [vmem:[%s22870_s20 + $0x1e4] ss:$8 sps:$4 sm:$0xff]  }
 0x132   : > { %2075 = vmatmul.mubr.bf16.gmra.mrb[88].mxu0 %v21190_v49  ;;  %2668 = vmatmul.mubr.bf16.gmra.mrb[88].mxu1 %v21190_v49  ;;  %v23243_v49 = vrot.slane %v3344_v32, %v28890_v36 }
 0x133   : > { %17622 = vmatprep.mubr.msk.bf16.mxu0 %vm1653_vm0, %v21191_v50  ;;  %17678 = vmatprep.mubr.msk.bf16.mxu1 %vm1653_vm0, %v21191_v50  ;;  %v23247_v50 = vrot.slane %v3344_v32, %v28889_v37 }
 0x13a   : > { %2085 = vmatmul.mubr.bf16.gmra.mrb[92].mxu0 %v21193_v51  ;;  %2678 = vmatmul.mubr.bf16.gmra.mrb[92].mxu1 %v21193_v51 }
 0x13b   : > { %17623 = vmatprep.mubr.msk.bf16.mxu0 %vm1653_vm0, %v21194_v52  ;;  %17679 = vmatprep.mubr.msk.bf16.mxu1 %vm1653_vm0, %v21194_v52 }
 0x142   : > { %2095 = vmatmul.mubr.bf16.gmra.mrb[96].mxu0 %v21196_v57  ;;  %2688 = vmatmul.mubr.bf16.gmra.mrb[96].mxu1 %v21196_v57 }
 0x143   : > { %17624 = vmatprep.mubr.msk.bf16.mxu0 %vm1653_vm0, %v21203_v58  ;;  %17680 = vmatprep.mubr.msk.bf16.mxu1 %vm1653_vm0, %v21203_v58 }
 0x14a   : > { %2105 = vmatmul.mubr.bf16.gmra.mrb[100].mxu0 %v21205_v59  ;;  %2698 = vmatmul.mubr.bf16.gmra.mrb[100].mxu1 %v21205_v59 }
 0x14b   : > { %17625 = vmatprep.mubr.msk.bf16.mxu0 %vm1653_vm0, %v21206_v60  ;;  %17681 = vmatprep.mubr.msk.bf16.mxu1 %vm1653_vm0, %v21206_v60 }
 0x152   : > { %2115 = vmatmul.mubr.bf16.gmra.mrb[104].mxu0 %v21208_v61  ;;  %2708 = vmatmul.mubr.bf16.gmra.mrb[104].mxu1 %v21208_v61 }
 0x153   : > { %17626 = vmatprep.mubr.msk.bf16.mxu0 %vm1653_vm0, %v21209_v62  ;;  %17682 = vmatprep.mubr.msk.bf16.mxu1 %vm1653_vm0, %v21209_v62 }
 0x155   : > { %v23155_v0 = vpop.f32.mrb[0].mxu0  ;;  %v23157_v1 = vpop.f32.mrb[0].mxu1 }
 0x156   : > { %v23159_v2 = vpop.f32.mrb[1].mxu0  ;;  %v23161_v3 = vpop.f32.mrb[1].mxu1  ;;  %v3008_v4 = vmax.f32 %v23155_v0, %v23157_v1  ;;  %v21226_v0 = vld [vmem:[%s22870_s20 + $0x1e0] ss:$8 sps:$4 sm:$0xff]  }
 0x157   : > { %v23165_v5 = vpop.f32.mrb[2].mxu0  ;;  %v23167_v6 = vpop.f32.mrb[2].mxu1  ;;  %v3009_v8 = vmax.f32 %v23159_v2, %v23161_v3 }
 0x158   : > { %v23172_v9 = vpop.f32.mrb[3].mxu0  ;;  %v23174_v10 = vpop.f32.mrb[3].mxu1  ;;  %v3010_v11 = vmax.f32 %v23165_v5, %v23167_v6  ;;  %v21227_v6 = vld [vmem:[%s22870_s20 + $0x1f4] ss:$8 sps:$4 sm:$0xff]  }
 0x159   : > { %v3011_v15 = vmax.f32 %v23172_v9, %v23174_v10 }
 0x15a   : > { %2125 = vmatmul.mubr.bf16.gmra.mrb[108].mxu0 %v21211_v63  ;;  %2718 = vmatmul.mubr.bf16.gmra.mrb[108].mxu1 %v21211_v63 }
 0x15b   : > { %17627 = vmatprep.mubr.msk.bf16.mxu0 %vm1653_vm0, %v21212_v7  ;;  %17683 = vmatprep.mubr.msk.bf16.mxu1 %vm1653_vm0, %v21212_v7 }
 0x15d   : > { %v23195_v19 = vpop.f32.mrb[4].mxu0  ;;  %v23197_v20 = vpop.f32.mrb[4].mxu1 }
 0x15e   : > { %v23199_v21 = vpop.f32.mrb[5].mxu0  ;;  %v23201_v22 = vpop.f32.mrb[5].mxu1  ;;  %v3012_v24 = vmax.f32 %v23195_v19, %v23197_v20 }
 0x15f   : > { %v23207_v25 = vpop.f32.mrb[6].mxu0  ;;  %v23209_v26 = vpop.f32.mrb[6].mxu1  ;;  %v3013_v28 = vmax.f32 %v23199_v21, %v23201_v22  ;;  %v21229_v22 = vld [vmem:[%s22870_s20 + $0x1f0] ss:$8 sps:$4 sm:$0xff]  }
 0x160   : > { %v23214_v29 = vpop.f32.mrb[7].mxu0  ;;  %v23216_v30 = vpop.f32.mrb[7].mxu1  ;;  %v3014_v31 = vmax.f32 %v23207_v25, %v23209_v26 }
 0x161   : > { %v3015_v33 = vmax.f32 %v23214_v29, %v23216_v30  ;;  %v21296_v29 = vld [vmem:[%s28883_s3 + $0x1a0] ss:$16 sps:$4 sm:$0xff]   ;;  %v21298_v30 = vld [vmem:[%s28883_s3 + $0x1a4] ss:$16 sps:$4 sm:$0xff]  }
 0x162   : > { %2135 = vmatmul.mubr.bf16.gmra.mrb[112].mxu0 %v21214_v18  ;;  %2728 = vmatmul.mubr.bf16.gmra.mrb[112].mxu1 %v21214_v18 }
 0x163   : > { %17628 = vmatprep.mubr.msk.bf16.mxu0 %vm1653_vm0, %v21221_v27  ;;  %17684 = vmatprep.mubr.msk.bf16.mxu1 %vm1653_vm0, %v21221_v27 }
 0x164   : > { %7792 = vmatprep.subr.bf16.mxu0 %v21298_v30 }
 0x165   : > { %v1876_v39 = vpop.f32.mrb[8].mxu0  ;;  %v2469_v40 = vpop.f32.mrb[8].mxu1  ;;  %7793 = vmatpush1.bf16.msra.mxu0 %v21296_v29  ;;  %v21242_v29 = vld [vmem:[%s22870_s20 + $0x224] ss:$8 sps:$4 sm:$0xff]  }
 0x166   : > { %v1878_v41 = vpop.f32.mrb[9].mxu0  ;;  %v2471_v42 = vpop.f32.mrb[9].mxu1  ;;  %v3016_v45 = vmax.f32 %v1876_v39, %v2469_v40 }
 0x167   : > { %v1880_v46 = vpop.f32.mrb[10].mxu0  ;;  %v2473_v47 = vpop.f32.mrb[10].mxu1  ;;  %v3017_v51 = vmax.f32 %v1878_v41, %v2471_v42 }
 0x168   : > { %v1882_v52 = vpop.f32.mrb[11].mxu0  ;;  %v2475_v53 = vpop.f32.mrb[11].mxu1  ;;  %v3018_v54 = vmax.f32 %v1880_v46, %v2473_v47  ;;  %v3232_v55 = vmax.f32 %v3008_v4, %v3016_v45 }
 0x169   : > { %v3019_v56 = vmax.f32 %v1882_v52, %v2475_v53  ;;  %v3233_v57 = vmax.f32 %v3009_v8, %v3017_v51 }
 0x16a   : > { %2145 = vmatmul.mubr.bf16.gmra.mrb[116].mxu0 %v21223_v38  ;;  %2738 = vmatmul.mubr.bf16.gmra.mrb[116].mxu1 %v21223_v38  ;;  %v3234_v58 = vmax.f32 %v3010_v11, %v3018_v54  ;;  %v3366_v59 = vadd.f32 %v23234_v43, %v3232_v55  ;;  %v3368_v60 = vadd.f32 %v23238_v44, %v3232_v55  ;;  %v21236_v54 = vld [vmem:[%s22870_s20 + $0x204] ss:$8 sps:$4 sm:$0xff]  }
 0x16b   : > { %17629 = vmatprep.mubr.msk.bf16.mxu0 %vm1653_vm0, %v21224_v48  ;;  %17685 = vmatprep.mubr.msk.bf16.mxu1 %vm1653_vm0, %v21224_v48  ;;  %v3235_v61 = vmax.f32 %v3011_v15, %v3019_v56  ;;  %v3367_v62 = vadd.f32 %v23243_v49, %v3233_v57  ;;  %v3369_v63 = vadd.f32 %v23247_v50, %v3233_v57 }
 0x16c   : > { %v3370_v1 = vadd.f32 %v23234_v43, %v3234_v58  ;;  %v3590_v2 = vmax.f32 %v3366_v59, 0.0  ;;  %v3372_v3 = vadd.f32 %v23238_v44, %v3234_v58  ;;  %v3592_v10 = vmax.f32 %v3368_v60, 0.0  ;;  %v21299_v59 = vld [vmem:[%s28883_s3 + $0x1a8] ss:$16 sps:$4 sm:$0xff]   ;;  %v21301_v60 = vld [vmem:[%s28883_s3 + $0x1ac] ss:$16 sps:$4 sm:$0xff]  }
 0x16d   : > { %v1886_v4 = vpop.f32.mrb[12].mxu0  ;;  %v2479_v5 = vpop.f32.mrb[12].mxu1  ;;  %v3371_v7 = vadd.f32 %v23243_v49, %v3235_v61  ;;  %v3591_v8 = vmax.f32 %v3367_v62, 0.0  ;;  %v3373_v9 = vadd.f32 %v23247_v50, %v3235_v61  ;;  %v3593_v32 = vmax.f32 %v3369_v63, 0.0  ;;  %10922 = vmatprep.subr.bf16.mxu1 %v21301_v60 }
 0x16e   : > { %v1888_v11 = vpop.f32.mrb[13].mxu0  ;;  %v2481_v12 = vpop.f32.mrb[13].mxu1  ;;  %v3594_v13 = vmax.f32 %v3370_v1, 0.0  ;;  %v3020_v14 = vmax.f32 %v1886_v4, %v2479_v5  ;;  %v3596_v15 = vmax.f32 %v3372_v3, 0.0  ;;  %10923 = vmatpush1.bf16.msra.mxu1 %v21299_v59 }
 0x16f   : > { %v1890_v16 = vpop.f32.mrb[14].mxu0  ;;  %v2483_v17 = vpop.f32.mrb[14].mxu1  ;;  %v3595_v18 = vmax.f32 %v3371_v7, 0.0  ;;  %v3021_v27 = vmax.f32 %v1888_v11, %v2481_v12  ;;  %v3597_v38 = vmax.f32 %v3373_v9, 0.0 }
 0x170   : > { %v1892_v39 = vpop.f32.mrb[15].mxu0  ;;  %v2485_v40 = vpop.f32.mrb[15].mxu1  ;;  %v23264_v41 = vpack.c.bf16 %v3594_v13, %v3590_v2  ;;  %v3022_v42 = vmax.f32 %v1890_v16, %v2483_v17  ;;  %v3236_v45 = vmax.f32 %v3012_v24, %v3020_v14  ;;  %v23269_v46 = vpack.c.bf16 %v3596_v15, %v3592_v10  ;;  %v21238_v17 = vld [vmem:[%s22870_s20 + $0x200] ss:$8 sps:$4 sm:$0xff]  }
 0x171   : > { %v23271_v47 = vpack.c.bf16 %v3595_v18, %v3591_v8  ;;  %v3023_v48 = vmax.f32 %v1892_v39, %v2485_v40  ;;  %v3237_v51 = vmax.f32 %v3013_v28, %v3021_v27  ;;  %v23276_v52 = vpack.c.bf16 %v3597_v38, %v3593_v32 }
 0x172   : > { %29182 = vst [vmem:[#allocation5_spill] sm:$0xff] %v23264_v41  ;;  %29183 = vst [vmem:[#allocation6_spill] sm:$0xff] %v23269_v46  ;;  %2155 = vmatmul.mubr.bf16.gmra.mrb[120].mxu0 %v21226_v0  ;;  %2748 = vmatmul.mubr.bf16.gmra.mrb[120].mxu1 %v21226_v0  ;;  %v3238_v53 = vmax.f32 %v3014_v31, %v3022_v42  ;;  %v3374_v21 = vadd.f32 %v23234_v43, %v3236_v45 }
 0x173   : > { %29184 = vst [vmem:[#allocation7_spill] sm:$0xff] %v23271_v47  ;;  %29185 = vst [vmem:[#allocation8_spill] sm:$0xff] %v23276_v52  ;;  %17630 = vmatprep.mubr.msk.bf16.mxu0 %vm1653_vm0, %v21227_v6  ;;  %17686 = vmatprep.mubr.msk.bf16.mxu1 %vm1653_vm0, %v21227_v6  ;;  %v3239_v19 = vmax.f32 %v3015_v33, %v3023_v48  ;;  %v3375_v20 = vadd.f32 %v23243_v49, %v3237_v51 }
 0x174   : > { %v3378_v24 = vadd.f32 %v23234_v43, %v3238_v53  ;;  %v3377_v28 = vadd.f32 %v23247_v50, %v3237_v51  ;;  %v3376_v25 = vadd.f32 %v23238_v44, %v3236_v45  ;;  %v3380_v56 = vadd.f32 %v23238_v44, %v3238_v53  ;;  %v21239_v45 = vld [vmem:[%s22870_s20 + $0x214] ss:$8 sps:$4 sm:$0xff]  }
 0x175   : > { %v23292_v26 = vpop.f32.mrb[16].mxu0  ;;  %v23294_v31 = vpop.f32.mrb[16].mxu1  ;;  %v3379_v33 = vadd.f32 %v23243_v49, %v3239_v19  ;;  %v3381_v55 = vadd.f32 %v23247_v50, %v3239_v19  ;;  %v3599_v0 = vmax.f32 %v3375_v20, 0.0  ;;  %v3598_v2 = vmax.f32 %v3374_v21, 0.0  ;;  %v21241_v21 = vld [vmem:[%s22870_s20 + $0x210] ss:$8 sps:$4 sm:$0xff]  }
 0x176   : > { %v23306_v57 = vpop.f32.mrb[17].mxu0  ;;  %v23308_v58 = vpop.f32.mrb[17].mxu1  ;;  %v3024_v61 = vmax.f32 %v23292_v26, %v23294_v31  ;;  %v3602_v6 = vmax.f32 %v3378_v24, 0.0  ;;  %v3601_v8 = vmax.f32 %v3377_v28, 0.0  ;;  %v3600_v9 = vmax.f32 %v3376_v25, 0.0 }
 0x177   : > { %v23318_v62 = vpop.f32.mrb[18].mxu0  ;;  %v23320_v63 = vpop.f32.mrb[18].mxu1  ;;  %v3603_v1 = vmax.f32 %v3379_v33, 0.0  ;;  %v3025_v3 = vmax.f32 %v23306_v57, %v23308_v58  ;;  %v3605_v12 = vmax.f32 %v3381_v55, 0.0  ;;  %v3604_v13 = vmax.f32 %v3380_v56, 0.0 }
 0x178   : > { %v1902_v4 = vpop.f32.mrb[19].mxu0  ;;  %v2495_v5 = vpop.f32.mrb[19].mxu1  ;;  %v3026_v7 = vmax.f32 %v23318_v62, %v23320_v63  ;;  %v23328_v14 = vpack.c.bf16 %v3602_v6, %v3598_v2 }
 0x179   : > { %v23326_v10 = vpack.c.bf16 %v3603_v1, %v3599_v0  ;;  %v3027_v11 = vmax.f32 %v1902_v4, %v2495_v5  ;;  %v23332_v15 = vpack.c.bf16 %v3605_v12, %v3601_v8  ;;  %v23334_v16 = vpack.c.bf16 %v3604_v13, %v3600_v9  ;;  %v21245_v8 = vld [vmem:[%s22870_s20 + $0x234] ss:$8 sps:$4 sm:$0xff]  }
 0x17a   : > { %2165 = vmatmul.mubr.bf16.gmra.mrb[124].mxu0 %v21229_v22  ;;  %2758 = vmatmul.mubr.bf16.gmra.mrb[124].mxu1 %v21229_v22  ;;  %29187 = vst [vmem:[#allocation10_spill] sm:$0xff] %v23328_v14 }
 0x17b   : > { %29186 = vst [vmem:[#allocation9_spill] sm:$0xff] %v23326_v10  ;;  %17631 = vmatprep.mubr.msk.bf16.mxu0 %vm1653_vm0, %v21236_v54  ;;  %17687 = vmatprep.mubr.msk.bf16.mxu1 %vm1653_vm0, %v21236_v54  ;;  %29188 = vst [vmem:[#allocation11_spill] sm:$0xff] %v23332_v15 }
 0x17c   : > { %29189 = vst [vmem:[#allocation12_spill] sm:$0xff] %v23334_v16 }
 0x17d   : > { %v23337_v18 = vpop.f32.mrb[20].mxu0  ;;  %v23339_v27 = vpop.f32.mrb[20].mxu1 }
 0x17e   : > { %v23341_v32 = vpop.f32.mrb[21].mxu0  ;;  %v23343_v38 = vpop.f32.mrb[21].mxu1  ;;  %v3028_v39 = vmax.f32 %v23337_v18, %v23339_v27 }
 0x17f   : > { %v23347_v40 = vpop.f32.mrb[22].mxu0  ;;  %v23349_v42 = vpop.f32.mrb[22].mxu1  ;;  %v3029_v48 = vmax.f32 %v23341_v32, %v23343_v38 }
 0x180   : > { %v23354_v51 = vpop.f32.mrb[23].mxu0  ;;  %v23356_v53 = vpop.f32.mrb[23].mxu1  ;;  %v3030_v19 = vmax.f32 %v23347_v40, %v23349_v42 }
 0x181   : > { %v3031_v20 = vmax.f32 %v23354_v51, %v23356_v53 }
 0x182   : > { %2175 = vmatmul.mubr.bf16.gmra.mrb[128].mxu0 %v21238_v17  ;;  %2768 = vmatmul.mubr.bf16.gmra.mrb[128].mxu1 %v21238_v17 }
 0x183   : > { %17632 = vmatprep.mubr.msk.bf16.mxu0 %vm1653_vm0, %v21239_v45  ;;  %17688 = vmatprep.mubr.msk.bf16.mxu1 %vm1653_vm0, %v21239_v45 }
 0x185   : > { %v1916_v22 = vpop.f32.mrb[24].mxu0  ;;  %v2509_v24 = vpop.f32.mrb[24].mxu1 }
 0x186   : > { %v1918_v28 = vpop.f32.mrb[25].mxu0  ;;  %v2511_v25 = vpop.f32.mrb[25].mxu1  ;;  %v3032_v26 = vmax.f32 %v1916_v22, %v2509_v24 }
 0x187   : > { %v1920_v31 = vpop.f32.mrb[26].mxu0  ;;  %v2513_v54 = vpop.f32.mrb[26].mxu1  ;;  %v3033_v30 = vmax.f32 %v1918_v28, %v2511_v25 }
 0x188   : > { %v1922_v33 = vpop.f32.mrb[27].mxu0  ;;  %v2515_v55 = vpop.f32.mrb[27].mxu1  ;;  %v3034_v56 = vmax.f32 %v1920_v31, %v2513_v54  ;;  %v3240_v57 = vmax.f32 %v3024_v61, %v3032_v26  ;;  %v21244_v61 = vld [vmem:[%s22870_s20 + $0x220] ss:$8 sps:$4 sm:$0xff]  }
 0x189   : > { %v3035_v58 = vmax.f32 %v1922_v33, %v2515_v55  ;;  %v3241_v59 = vmax.f32 %v3025_v3, %v3033_v30 }
 0x18a   : > { %2185 = vmatmul.mubr.bf16.gmra.mrb[132].mxu0 %v21241_v21  ;;  %2778 = vmatmul.mubr.bf16.gmra.mrb[132].mxu1 %v21241_v21  ;;  %v3242_v60 = vmax.f32 %v3026_v7, %v3034_v56  ;;  %v3382_v62 = vadd.f32 %v23234_v43, %v3240_v57  ;;  %v3384_v63 = vadd.f32 %v23238_v44, %v3240_v57 }
 0x18b   : > { %17633 = vmatprep.mubr.msk.bf16.mxu0 %vm1653_vm0, %v21242_v29  ;;  %17689 = vmatprep.mubr.msk.bf16.mxu1 %vm1653_vm0, %v21242_v29  ;;  %v3243_v0 = vmax.f32 %v3027_v11, %v3035_v58  ;;  %v3383_v1 = vadd.f32 %v23243_v49, %v3241_v59  ;;  %v3385_v2 = vadd.f32 %v23247_v50, %v3241_v59  ;;  %v21314_v59 = vld [vmem:[%s28883_s3 + $0x1c0] ss:$16 sps:$4 sm:$0xff]  }
 0x18c   : > { %v3386_v3 = vadd.f32 %v23234_v43, %v3242_v60  ;;  %v3606_v4 = vmax.f32 %v3382_v62, 0.0  ;;  %v3388_v5 = vadd.f32 %v23238_v44, %v3242_v60  ;;  %v3608_v17 = vmax.f32 %v3384_v63, 0.0  ;;  %v21316_v60 = vld [vmem:[%s28883_s3 + $0x1c4] ss:$16 sps:$4 sm:$0xff]   ;;  %v21317_v62 = vld [vmem:[%s28883_s3 + $0x1c8] ss:$16 sps:$4 sm:$0xff]  }
 0x18d   : > { %v1926_v6 = vpop.f32.mrb[28].mxu0  ;;  %v2519_v7 = vpop.f32.mrb[28].mxu1  ;;  %v3387_v9 = vadd.f32 %v23243_v49, %v3243_v0  ;;  %v3607_v12 = vmax.f32 %v3383_v1, 0.0  ;;  %v3389_v13 = vadd.f32 %v23247_v50, %v3243_v0  ;;  %v3609_v54 = vmax.f32 %v3385_v2, 0.0  ;;  %7794 = vmatprep.subr.bf16.mxu0 %v21316_v60 }
 0x18e   : > { %v1928_v11 = vpop.f32.mrb[29].mxu0  ;;  %v2521_v45 = vpop.f32.mrb[29].mxu1  ;;  %v3610_v21 = vmax.f32 %v3386_v3, 0.0  ;;  %v3036_v22 = vmax.f32 %v1926_v6, %v2519_v7  ;;  %v3612_v24 = vmax.f32 %v3388_v5, 0.0  ;;  %v21254_v6 = vld [vmem:[%s22870_s20 + $0x244] ss:$8 sps:$4 sm:$0xff]   ;;  %7795 = vmatpush1.bf16.msra.mxu0 %v21314_v59 }
 0x18f   : > { %v1930_v28 = vpop.f32.mrb[30].mxu0  ;;  %v2523_v25 = vpop.f32.mrb[30].mxu1  ;;  %v3611_v26 = vmax.f32 %v3387_v9, 0.0  ;;  %v3037_v31 = vmax.f32 %v1928_v11, %v2521_v45  ;;  %v3613_v29 = vmax.f32 %v3389_v13, 0.0 }
 0x190   : > { %v1932_v30 = vpop.f32.mrb[31].mxu0  ;;  %v2525_v33 = vpop.f32.mrb[31].mxu1  ;;  %v23378_v55 = vpack.c.bf16 %v3610_v21, %v3606_v4  ;;  %v3038_v56 = vmax.f32 %v1930_v28, %v2523_v25  ;;  %v3244_v57 = vmax.f32 %v3028_v39, %v3036_v22  ;;  %v23383_v58 = vpack.c.bf16 %v3612_v24, %v3608_v17  ;;  %v21319_v39 = vld [vmem:[%s28883_s3 + $0x1cc] ss:$16 sps:$4 sm:$0xff]  }
 0x191   : > { %v23394_v63 = vpack.c.bf16 %v3611_v26, %v3607_v12  ;;  %v3039_v0 = vmax.f32 %v1932_v30, %v2525_v33  ;;  %v3245_v18 = vmax.f32 %v3029_v48, %v3037_v31  ;;  %v23399_v27 = vpack.c.bf16 %v3613_v29, %v3609_v54  ;;  %10924 = vmatprep.subr.bf16.mxu1 %v21319_v39 }
 0x192   : > { %29190 = vst [vmem:[#allocation13_spill] sm:$0xff] %v23378_v55  ;;  %29191 = vst [vmem:[#allocation14_spill] sm:$0xff] %v23383_v58  ;;  %2195 = vmatmul.mubr.bf16.gmra.mrb[136].mxu0 %v21244_v61  ;;  %2788 = vmatmul.mubr.bf16.gmra.mrb[136].mxu1 %v21244_v61  ;;  %v3246_v1 = vmax.f32 %v3030_v19, %v3038_v56  ;;  %v3390_v2 = vadd.f32 %v23234_v43, %v3244_v57  ;;  %v21247_v61 = vld [vmem:[%s22870_s20 + $0x230] ss:$8 sps:$4 sm:$0xff]  }
 0x193   : > { %29192 = vst [vmem:[#allocation15_spill] sm:$0xff] %v23394_v63  ;;  %29193 = vst [vmem:[#allocation16_spill] sm:$0xff] %v23399_v27  ;;  %v3392_v3 = vadd.f32 %v23238_v44, %v3244_v57  ;;  %17634 = vmatprep.mubr.msk.bf16.mxu0 %vm1653_vm0, %v21245_v8  ;;  %17690 = vmatprep.mubr.msk.bf16.mxu1 %vm1653_vm0, %v21245_v8  ;;  %v3247_v32 = vmax.f32 %v3031_v20, %v3039_v0  ;;  %v21256_v57 = vld [vmem:[%s22870_s20 + $0x240] ss:$8 sps:$4 sm:$0xff]  }
 0x194   : > { %v3391_v38 = vadd.f32 %v23243_v49, %v3245_v18  ;;  %v3393_v48 = vadd.f32 %v23247_v50, %v3245_v18  ;;  %v3394_v40 = vadd.f32 %v23234_v43, %v3246_v1  ;;  %v3614_v42 = vmax.f32 %v3390_v2, 0.0  ;;  %10925 = vmatpush1.bf16.msra.mxu1 %v21317_v62 }
 0x195   : > { %v3396_v19 = vadd.f32 %v23238_v44, %v3246_v1  ;;  %v1936_v4 = vpop.f32.mrb[32].mxu0  ;;  %v2529_v5 = vpop.f32.mrb[32].mxu1  ;;  %v3395_v51 = vadd.f32 %v23243_v49, %v3247_v32  ;;  %v3397_v20 = vadd.f32 %v23247_v50, %v3247_v32  ;;  %v3616_v7 = vmax.f32 %v3392_v3, 0.0  ;;  %v21257_v3 = vld [vmem:[%s22870_s20 + $0x254] ss:$8 sps:$4 sm:$0xff]  }
 0x196   : > { %v3615_v53 = vmax.f32 %v3391_v38, 0.0  ;;  %v3040_v8 = vmax.f32 %v1936_v4, %v2529_v5  ;;  %v1938_v9 = vpop.f32.mrb[33].mxu0  ;;  %v2531_v12 = vpop.f32.mrb[33].mxu1  ;;  %v3618_v13 = vmax.f32 %v3394_v40, 0.0  ;;  %v3617_v24 = vmax.f32 %v3393_v48, 0.0 }
 0x197   : > { %v3620_v17 = vmax.f32 %v3396_v19, 0.0  ;;  %v3041_v11 = vmax.f32 %v1938_v9, %v2531_v12  ;;  %v1940_v45 = vpop.f32.mrb[34].mxu0  ;;  %v2533_v21 = vpop.f32.mrb[34].mxu1  ;;  %v3619_v22 = vmax.f32 %v3395_v51, 0.0  ;;  %v3621_v28 = vmax.f32 %v3397_v20, 0.0 }
 0x198   : > { %v3042_v25 = vmax.f32 %v1940_v45, %v2533_v21  ;;  %v1942_v26 = vpop.f32.mrb[35].mxu0  ;;  %v2535_v31 = vpop.f32.mrb[35].mxu1  ;;  %v23422_v54 = vpack.c.bf16 %v3618_v13, %v3614_v42  ;;  %v21259_v40 = vld [vmem:[%s22870_s20 + $0x250] ss:$8 sps:$4 sm:$0xff]  }
 0x199   : > { %v23424_v29 = vpack.c.bf16 %v3620_v17, %v3616_v7  ;;  %v3043_v30 = vmax.f32 %v1942_v26, %v2535_v31  ;;  %v23426_v33 = vpack.c.bf16 %v3619_v22, %v3615_v53  ;;  %v23428_v56 = vpack.c.bf16 %v3621_v28, %v3617_v24  ;;  %v21260_v7 = vld [vmem:[%s22870_s20 + $0x264] ss:$8 sps:$4 sm:$0xff]  }
 0x19a   : > { %29194 = vst [vmem:[#allocation17_spill] sm:$0xff] %v23422_v54  ;;  %2205 = vmatmul.mubr.bf16.gmra.mrb[140].mxu0 %v21247_v61  ;;  %2798 = vmatmul.mubr.bf16.gmra.mrb[140].mxu1 %v21247_v61 }
 0x19b   : > { %29195 = vst [vmem:[#allocation18_spill] sm:$0xff] %v23424_v29  ;;  %29196 = vst [vmem:[#allocation19_spill] sm:$0xff] %v23426_v33  ;;  %17635 = vmatprep.mubr.msk.bf16.mxu0 %vm1653_vm0, %v21254_v6  ;;  %17691 = vmatprep.mubr.msk.bf16.mxu1 %vm1653_vm0, %v21254_v6 }
 0x19c   : > { %29197 = vst [vmem:[#allocation20_spill] sm:$0xff] %v23428_v56 }
 0x19d   : > { %v23433_v59 = vpop.f32.mrb[36].mxu0  ;;  %v23435_v60 = vpop.f32.mrb[36].mxu1 }
 0x19e   : > { %v3044_v62 = vmax.f32 %v23433_v59, %v23435_v60  ;;  %v23439_v0 = vpop.f32.mrb[37].mxu0  ;;  %v23441_v18 = vpop.f32.mrb[37].mxu1  ;;  %v21332_v59 = vld [vmem:[%s28883_s3 + $0x1e8] ss:$16 sps:$4 sm:$0xff]  }
 0x19f   : > { %v3045_v39 = vmax.f32 %v23439_v0, %v23441_v18  ;;  %v23445_v1 = vpop.f32.mrb[38].mxu0  ;;  %v23447_v2 = vpop.f32.mrb[38].mxu1 }
 0x1a0   : > { %v3046_v32 = vmax.f32 %v23445_v1, %v23447_v2  ;;  %v23452_v38 = vpop.f32.mrb[39].mxu0  ;;  %v23454_v48 = vpop.f32.mrb[39].mxu1  ;;  %v21271_v2 = vld [vmem:[%s22870_s20 + $0x270] ss:$8 sps:$4 sm:$0xff]  }
 0x1a1   : > { %v3047_v61 = vmax.f32 %v23452_v38, %v23454_v48  ;;  %v21272_v48 = vld [vmem:[%s22870_s20 + $0x284] ss:$8 sps:$4 sm:$0xff]  }
 0x1a2   : > { %2215 = vmatmul.mubr.bf16.gmra.mrb[144].mxu0 %v21256_v57  ;;  %2808 = vmatmul.mubr.bf16.gmra.mrb[144].mxu1 %v21256_v57 }
 0x1a3   : > { %17636 = vmatprep.mubr.msk.bf16.mxu0 %vm1653_vm0, %v21257_v3  ;;  %17692 = vmatprep.mubr.msk.bf16.mxu1 %vm1653_vm0, %v21257_v3 }
 0x1a5   : > { %v1956_v42 = vpop.f32.mrb[40].mxu0  ;;  %v2549_v19 = vpop.f32.mrb[40].mxu1 }
 0x1a6   : > { %v3048_v4 = vmax.f32 %v1956_v42, %v2549_v19  ;;  %v1958_v5 = vpop.f32.mrb[41].mxu0  ;;  %v2551_v6 = vpop.f32.mrb[41].mxu1  ;;  %v21262_v42 = vld [vmem:[%s22870_s20 + $0x260] ss:$8 sps:$4 sm:$0xff]  }
 0x1a7   : > { %v3049_v51 = vmax.f32 %v1958_v5, %v2551_v6  ;;  %v1960_v53 = vpop.f32.mrb[42].mxu0  ;;  %v2553_v20 = vpop.f32.mrb[42].mxu1 }
 0x1a8   : > { %v3248_v9 = vmax.f32 %v3040_v8, %v3048_v4  ;;  %v3050_v12 = vmax.f32 %v1960_v53, %v2553_v20  ;;  %v1962_v13 = vpop.f32.mrb[43].mxu0  ;;  %v2555_v17 = vpop.f32.mrb[43].mxu1 }
 0x1a9   : > { %v3249_v45 = vmax.f32 %v3041_v11, %v3049_v51  ;;  %v3051_v21 = vmax.f32 %v1962_v13, %v2555_v17  ;;  %v21269_v51 = vld [vmem:[%s22870_s20 + $0x274] ss:$8 sps:$4 sm:$0xff]  }
 0x1aa   : > { %v3398_v22 = vadd.f32 %v23234_v43, %v3248_v9  ;;  %v3400_v24 = vadd.f32 %v23238_v44, %v3248_v9  ;;  %v3250_v28 = vmax.f32 %v3042_v25, %v3050_v12  ;;  %2225 = vmatmul.mubr.bf16.gmra.mrb[148].mxu0 %v21259_v40  ;;  %2818 = vmatmul.mubr.bf16.gmra.mrb[148].mxu1 %v21259_v40  ;;  %v21331_v13 = vld [vmem:[%s28883_s3 + $0x1e4] ss:$16 sps:$4 sm:$0xff]  }
 0x1ab   : > { %v3399_v26 = vadd.f32 %v23243_v49, %v3249_v45  ;;  %v3401_v31 = vadd.f32 %v23247_v50, %v3249_v45  ;;  %v3251_v57 = vmax.f32 %v3043_v30, %v3051_v21  ;;  %17637 = vmatprep.mubr.msk.bf16.mxu0 %vm1653_vm0, %v21260_v7  ;;  %17693 = vmatprep.mubr.msk.bf16.mxu1 %vm1653_vm0, %v21260_v7  ;;  %v21329_v30 = vld [vmem:[%s28883_s3 + $0x1e0] ss:$16 sps:$4 sm:$0xff]  }
 0x1ac   : > { %v3622_v8 = vmax.f32 %v3398_v22, 0.0  ;;  %v3402_v11 = vadd.f32 %v23234_v43, %v3250_v28  ;;  %v3404_v3 = vadd.f32 %v23238_v44, %v3250_v28  ;;  %v3624_v19 = vmax.f32 %v3400_v24, 0.0  ;;  %7796 = vmatprep.subr.bf16.mxu0 %v21331_v13 }
 0x1ad   : > { %v3623_v25 = vmax.f32 %v3399_v26, 0.0  ;;  %v3403_v40 = vadd.f32 %v23243_v49, %v3251_v57  ;;  %v3405_v4 = vadd.f32 %v23247_v50, %v3251_v57  ;;  %v1966_v5 = vpop.f32.mrb[44].mxu0  ;;  %v2559_v6 = vpop.f32.mrb[44].mxu1  ;;  %v3625_v17 = vmax.f32 %v3401_v31, 0.0  ;;  %v21334_v31 = vld [vmem:[%s28883_s3 + $0x1ec] ss:$16 sps:$4 sm:$0xff]   ;;  %7797 = vmatpush1.bf16.msra.mxu0 %v21329_v30 }
 0x1ae   : > { %v3626_v53 = vmax.f32 %v3402_v11, 0.0  ;;  %v3628_v20 = vmax.f32 %v3404_v3, 0.0  ;;  %v3052_v7 = vmax.f32 %v1966_v5, %v2559_v6  ;;  %v1968_v9 = vpop.f32.mrb[45].mxu0  ;;  %v2561_v12 = vpop.f32.mrb[45].mxu1  ;;  %10926 = vmatprep.subr.bf16.mxu1 %v21334_v31 }
 0x1af   : > { %v3627_v45 = vmax.f32 %v3403_v40, 0.0  ;;  %v3629_v21 = vmax.f32 %v3405_v4, 0.0  ;;  %v3053_v22 = vmax.f32 %v1968_v9, %v2561_v12  ;;  %v1970_v24 = vpop.f32.mrb[46].mxu0  ;;  %v2563_v28 = vpop.f32.mrb[46].mxu1  ;;  %10927 = vmatpush1.bf16.msra.mxu1 %v21332_v59 }
 0x1b0   : > { %v23480_v26 = vpack.c.bf16 %v3626_v53, %v3622_v8  ;;  %v23482_v57 = vpack.c.bf16 %v3628_v20, %v3624_v19  ;;  %v3252_v11 = vmax.f32 %v3044_v62, %v3052_v7  ;;  %v3054_v3 = vmax.f32 %v1970_v24, %v2563_v28  ;;  %v1972_v5 = vpop.f32.mrb[47].mxu0  ;;  %v2565_v6 = vpop.f32.mrb[47].mxu1 }
 0x1b1   : > { %v23490_v40 = vpack.c.bf16 %v3627_v45, %v3623_v25  ;;  %v23492_v4 = vpack.c.bf16 %v3629_v21, %v3625_v17  ;;  %v3253_v8 = vmax.f32 %v3045_v39, %v3053_v22  ;;  %v3055_v19 = vmax.f32 %v1972_v5, %v2565_v6 }
 0x1b2   : > { %29198 = vst [vmem:[#allocation21_spill] sm:$0xff] %v23480_v26  ;;  %29199 = vst [vmem:[#allocation22_spill] sm:$0xff] %v23482_v57  ;;  %v3406_v60 = vadd.f32 %v23234_v43, %v3252_v11  ;;  %v3408_v62 = vadd.f32 %v23238_v44, %v3252_v11  ;;  %v3254_v25 = vmax.f32 %v3046_v32, %v3054_v3  ;;  %2235 = vmatmul.mubr.bf16.gmra.mrb[152].mxu0 %v21262_v42 }
 0x1b3   : > { %29200 = vst [vmem:[#allocation23_spill] sm:$0xff] %v23490_v40  ;;  %29201 = vst [vmem:[#allocation24_spill] sm:$0xff] %v23492_v4  ;;  %2828 = vmatmul.mubr.bf16.gmra.mrb[152].mxu1 %v21262_v42  ;;  %v3407_v0 = vadd.f32 %v23243_v49, %v3253_v8  ;;  %v3409_v18 = vadd.f32 %v23247_v50, %v3253_v8  ;;  %v3255_v39 = vmax.f32 %v3047_v61, %v3055_v19 }
 0x1b4   : > { %17638 = vmatprep.mubr.msk.bf16.mxu0 %vm1653_vm0, %v21269_v51  ;;  %17694 = vmatprep.mubr.msk.bf16.mxu1 %vm1653_vm0, %v21269_v51  ;;  %v3630_v30 = vmax.f32 %v3406_v60, 0.0  ;;  %v3410_v53 = vadd.f32 %v23234_v43, %v3254_v25  ;;  %v3412_v1 = vadd.f32 %v23238_v44, %v3254_v25  ;;  %v3632_v32 = vmax.f32 %v3408_v62, 0.0  ;;  %v21274_v62 = vld [vmem:[%s22870_s20 + $0x280] ss:$8 sps:$4 sm:$0xff]  }
 0x1b5   : > { %v3631_v42 = vmax.f32 %v3407_v0, 0.0  ;;  %v3411_v20 = vadd.f32 %v23243_v49, %v3255_v39  ;;  %v3413_v7 = vadd.f32 %v23247_v50, %v3255_v39  ;;  %v1976_v9 = vpop.f32.mrb[48].mxu0  ;;  %v2569_v38 = vpop.f32.mrb[48].mxu1  ;;  %v3633_v45 = vmax.f32 %v3409_v18, 0.0  ;;  %v21275_v18 = vld [vmem:[%s22870_s20 + $0x294] ss:$8 sps:$4 sm:$0xff]  }
 0x1b6   : > { %v3634_v61 = vmax.f32 %v3410_v53, 0.0  ;;  %v3636_v12 = vmax.f32 %v3412_v1, 0.0  ;;  %v3056_v51 = vmax.f32 %v1976_v9, %v2569_v38  ;;  %v1978_v13 = vpop.f32.mrb[49].mxu0  ;;  %v2571_v17 = vpop.f32.mrb[49].mxu1  ;;  %v21346_v38 = vld [vmem:[%s28883_s3 + $0x204] ss:$16 sps:$4 sm:$0xff]  }
 0x1b7   : > { %v3635_v21 = vmax.f32 %v3411_v20, 0.0  ;;  %v3637_v22 = vmax.f32 %v3413_v7, 0.0  ;;  %v3057_v24 = vmax.f32 %v1978_v13, %v2571_v17  ;;  %v1980_v28 = vpop.f32.mrb[50].mxu0  ;;  %v2573_v11 = vpop.f32.mrb[50].mxu1  ;;  %8079 = vmatprep.subr.bf16.mxu0 %v21346_v38  ;;  %v21278_v17 = vld [vmem:[%s22870_s20 + $0x2a4] ss:$8 sps:$4 sm:$0xff]  }
 0x1b8   : > { %v23518_v3 = vpack.c.bf16 %v3634_v61, %v3630_v30  ;;  %v23520_v5 = vpack.c.bf16 %v3636_v12, %v3632_v32  ;;  %v3058_v6 = vmax.f32 %v1980_v28, %v2573_v11  ;;  %v1982_v31 = vpop.f32.mrb[51].mxu0  ;;  %v2575_v8 = vpop.f32.mrb[51].mxu1  ;;  %v21277_v61 = vld [vmem:[%s22870_s20 + $0x290] ss:$8 sps:$4 sm:$0xff]  }
 0x1b9   : > { %v23522_v19 = vpack.c.bf16 %v3635_v21, %v3631_v42  ;;  %v23524_v59 = vpack.c.bf16 %v3637_v22, %v3633_v45  ;;  %v3059_v60 = vmax.f32 %v1982_v31, %v2575_v8 }
 0x1ba   : > { %29202 = vst [vmem:[#allocation25_spill] sm:$0xff] %v23518_v3  ;;  %29203 = vst [vmem:[#allocation26_spill] sm:$0xff] %v23520_v5  ;;  %2245 = vmatmul.mubr.bf16.gmra.mrb[156].mxu0 %v21271_v2 }
 0x1bb   : > { %29204 = vst [vmem:[#allocation27_spill] sm:$0xff] %v23522_v19  ;;  %29205 = vst [vmem:[#allocation28_spill] sm:$0xff] %v23524_v59  ;;  %2838 = vmatmul.mubr.bf16.gmra.mrb[156].mxu1 %v21271_v2  ;;  %17639 = vmatprep.mubr.msk.bf16.mxu0 %vm1653_vm0, %v21272_v48 }
 0x1bc   : > { %17695 = vmatprep.mubr.msk.bf16.mxu1 %vm1653_vm0, %v21272_v48  ;;  %v21349_v48 = vld [vmem:[%s28883_s3 + $0x20c] ss:$16 sps:$4 sm:$0xff]  }
 0x1bd   : > { %v23529_v25 = vpop.f32.mrb[52].mxu0  ;;  %v23531_v0 = vpop.f32.mrb[52].mxu1  ;;  %11209 = vmatprep.subr.bf16.mxu1 %v21349_v48 }
 0x1be   : > { %v3060_v39 = vmax.f32 %v23529_v25, %v23531_v0  ;;  %v23536_v30 = vpop.f32.mrb[53].mxu0  ;;  %v23538_v53 = vpop.f32.mrb[53].mxu1 }
 0x1bf   : > { %v23542_v2 = vpop.f32.mrb[54].mxu0  ;;  %v23544_v32 = vpop.f32.mrb[54].mxu1 }
 0x1c0   : > { %v23548_v20 = vpop.f32.mrb[55].mxu0  ;;  %v23550_v7 = vpop.f32.mrb[55].mxu1  ;;  %v29211_v25 = vmax.f32 %v23542_v2, %v23544_v32 }
 0x1c2   : > { %2255 = vmatmul.mubr.bf16.gmra.mrb[160].mxu0 %v21274_v62 }
 0x1c3   : > { %2848 = vmatmul.mubr.bf16.gmra.mrb[160].mxu1 %v21274_v62  ;;  %17640 = vmatprep.mubr.msk.bf16.mxu0 %vm1653_vm0, %v21275_v18 }
 0x1c4   : > { %17696 = vmatprep.mubr.msk.bf16.mxu1 %vm1653_vm0, %v21275_v18 }
 0x1c5   : > { %v1996_v12 = vpop.f32.mrb[56].mxu0  ;;  %v2589_v13 = vpop.f32.mrb[56].mxu1 }
 0x1c6   : > { %v3064_v45 = vmax.f32 %v1996_v12, %v2589_v13  ;;  %v1998_v21 = vpop.f32.mrb[57].mxu0  ;;  %v2591_v22 = vpop.f32.mrb[57].mxu1 }
 0x1c7   : > { %v3065_v28 = vmax.f32 %v1998_v21, %v2591_v22  ;;  %v2000_v11 = vpop.f32.mrb[58].mxu0  ;;  %v2593_v31 = vpop.f32.mrb[58].mxu1  ;;  %v21280_v21 = vld [vmem:[%s22870_s20 + $0x2a0] ss:$8 sps:$4 sm:$0xff]  }
 0x1c8   : > { %v3256_v8 = vmax.f32 %v3056_v51, %v3064_v45  ;;  %v3066_v62 = vmax.f32 %v2000_v11, %v2593_v31  ;;  %v2002_v37 = vpop.f32.mrb[59].mxu0  ;;  %v2595_v18 = vpop.f32.mrb[59].mxu1 }
 0x1c9   : > { %v3257_v36 = vmax.f32 %v3057_v24, %v3065_v28  ;;  %v3067_v35 = vmax.f32 %v2002_v37, %v2595_v18 }
 0x1ca   : > { %v3414_v34 = vadd.f32 %v23234_v43, %v3256_v8  ;;  %v3416_v38 = vadd.f32 %v23238_v44, %v3256_v8  ;;  %v3258_v9 = vmax.f32 %v3058_v6, %v3066_v62  ;;  %2265 = vmatmul.mubr.bf16.gmra.mrb[164].mxu0 %v21277_v61 }
 0x1cb   : > { %2858 = vmatmul.mubr.bf16.gmra.mrb[164].mxu1 %v21277_v61  ;;  %v3415_v48 = vadd.f32 %v23243_v49, %v3257_v36  ;;  %v3417_v12 = vadd.f32 %v23247_v50, %v3257_v36  ;;  %v3259_v13 = vmax.f32 %v3059_v60, %v3067_v35  ;;  %17641 = vmatprep.mubr.msk.bf16.mxu0 %vm1653_vm0, %v21278_v17  ;;  %v21287_v35 = vld [vmem:[%s22870_s20 + $0x2b4] ss:$8 sps:$4 sm:$0xff]  }
 0x1cc   : > { %17697 = vmatprep.mubr.msk.bf16.mxu1 %vm1653_vm0, %v21278_v17  ;;  %v3638_v51 = vmax.f32 %v3414_v34, 0.0  ;;  %v3640_v24 = vmax.f32 %v3416_v38, 0.0  ;;  %v3418_v37 = vadd.f32 %v23234_v43, %v3258_v9  ;;  %v3420_v45 = vadd.f32 %v23238_v44, %v3258_v9 }
 0x1cd   : > { %v3639_v6 = vmax.f32 %v3415_v48, 0.0  ;;  %v3641_v22 = vmax.f32 %v3417_v12, 0.0  ;;  %v3419_v61 = vadd.f32 %v23243_v49, %v3259_v13  ;;  %v3421_v28 = vadd.f32 %v23247_v50, %v3259_v13  ;;  %v2006_v11 = vpop.f32.mrb[60].mxu0  ;;  %v2599_v36 = vpop.f32.mrb[60].mxu1 }
 0x1ce   : > { %v3642_v60 = vmax.f32 %v3418_v37, 0.0  ;;  %v3644_v31 = vmax.f32 %v3420_v45, 0.0  ;;  %v3068_v8 = vmax.f32 %v2006_v11, %v2599_v36  ;;  %v2008_v17 = vpop.f32.mrb[61].mxu0  ;;  %v2601_v34 = vpop.f32.mrb[61].mxu1 }
 0x1cf   : > { %v3643_v62 = vmax.f32 %v3419_v61, 0.0  ;;  %v3645_v18 = vmax.f32 %v3421_v28, 0.0  ;;  %v3069_v38 = vmax.f32 %v2008_v17, %v2601_v34  ;;  %v2010_v42 = vpop.f32.mrb[62].mxu0  ;;  %v2603_v9 = vpop.f32.mrb[62].mxu1  ;;  %v29210_v61 = vmax.f32 %v23536_v30, %v23538_v53 }
 0x1d0   : > { %v23576_v1 = vpack.c.bf16 %v3642_v60, %v3638_v51  ;;  %v23578_v48 = vpack.c.bf16 %v3644_v31, %v3640_v24  ;;  %v3260_v12 = vmax.f32 %v3060_v39, %v3068_v8  ;;  %v3070_v13 = vmax.f32 %v2010_v42, %v2603_v9  ;;  %v2012_v23 = vpop.f32.mrb[63].mxu0  ;;  %v2605_v37 = vpop.f32.mrb[63].mxu1 }
 0x1d1   : > { %v23583_v45 = vpack.c.bf16 %v3643_v62, %v3639_v6  ;;  %v23585_v11 = vpack.c.bf16 %v3645_v18, %v3641_v22  ;;  %v3261_v28 = vmax.f32 %v29210_v61, %v3069_v38  ;;  %v3071_v51 = vmax.f32 %v2012_v23, %v2605_v37 }
 0x1d2   : > { %29206 = vst [vmem:[#allocation29_spill] sm:$0xff] %v23576_v1  ;;  %29207 = vst [vmem:[#allocation30_spill] sm:$0xff] %v23578_v48  ;;  %v3422_v24 = vadd.f32 %v23234_v43, %v3260_v12  ;;  %v3424_v36 = vadd.f32 %v23238_v44, %v3260_v12  ;;  %v3262_v0 = vmax.f32 %v29211_v25, %v3070_v13  ;;  %2275 = vmatmul.mubr.bf16.gmra.mrb[168].mxu0 %v21280_v21 }
 0x1d3   : > { %29208 = vst [vmem:[#allocation31_spill] sm:$0xff] %v23583_v45  ;;  %29209 = vst [vmem:[#allocation32_spill] sm:$0xff] %v23585_v11  ;;  %2868 = vmatmul.mubr.bf16.gmra.mrb[168].mxu1 %v21280_v21  ;;  %v3423_v39 = vadd.f32 %v23243_v49, %v3261_v28  ;;  %v3425_v42 = vadd.f32 %v23247_v50, %v3261_v28  ;;  %v29212_v30 = vmax.f32 %v23548_v20, %v23550_v7  ;;  %v21289_v21 = vld [vmem:[%s22870_s20 + $0x2b0] ss:$8 sps:$4 sm:$0xff]   ;;  %v21290_v7 = vld [vmem:[%s22870_s20 + $0x2c4] ss:$8 sps:$4 sm:$0xff]  }
 0x1d4   : > { %17642 = vmatprep.mubr.msk.bf16.mxu0 %vm1653_vm0, %v21287_v35  ;;  %17698 = vmatprep.mubr.msk.bf16.mxu1 %vm1653_vm0, %v21287_v35  ;;  %v3646_v23 = vmax.f32 %v3422_v24, 0.0  ;;  %v3648_v6 = vmax.f32 %v3424_v36, 0.0  ;;  %v3426_v2 = vadd.f32 %v23234_v43, %v3262_v0  ;;  %v3428_v32 = vadd.f32 %v23238_v44, %v3262_v0 }
 0x1d5   : > { %v3263_v53 = vmax.f32 %v29212_v30, %v3071_v51  ;;  %v3647_v22 = vmax.f32 %v3423_v39, 0.0  ;;  %v3649_v60 = vmax.f32 %v3425_v42, 0.0  ;;  %v2016_v17 = vpop.f32.mrb[64].mxu0  ;;  %v2609_v20 = vpop.f32.mrb[64].mxu1  ;;  %v21292_v30 = vld [vmem:[%s22870_s20 + $0x2c0] ss:$8 sps:$4 sm:$0xff]  }
 0x1d6   : > { %v3650_v34 = vmax.f32 %v3426_v2, 0.0  ;;  %v3652_v62 = vmax.f32 %v3428_v32, 0.0  ;;  %v3072_v18 = vmax.f32 %v2016_v17, %v2609_v20  ;;  %v2018_v35 = vpop.f32.mrb[65].mxu0  ;;  %v2611_v38 = vpop.f32.mrb[65].mxu1 }
 0x1d7   : > { %v3427_v31 = vadd.f32 %v23243_v49, %v3263_v53  ;;  %v3429_v8 = vadd.f32 %v23247_v50, %v3263_v53  ;;  %v3073_v13 = vmax.f32 %v2018_v35, %v2611_v38  ;;  %v2020_v37 = vpop.f32.mrb[66].mxu0  ;;  %v2613_v61 = vpop.f32.mrb[66].mxu1  ;;  %v21302_v38 = vld [vmem:[%s22870_s20 + $0x2e4] ss:$8 sps:$4 sm:$0xff]  }
 0x1d8   : > { %v23608_v28 = vpack.c.bf16 %v3650_v34, %v3646_v23  ;;  %v23610_v51 = vpack.c.bf16 %v3652_v62, %v3648_v6  ;;  %v3074_v24 = vmax.f32 %v2020_v37, %v2613_v61  ;;  %v2022_v36 = vpop.f32.mrb[67].mxu0  ;;  %v2615_v25 = vpop.f32.mrb[67].mxu1  ;;  %v21295_v34 = vld [vmem:[%s22870_s20 + $0x2d0] ss:$8 sps:$4 sm:$0xff]  }
 0x1d9   : > { %v3651_v9 = vmax.f32 %v3427_v31, 0.0  ;;  %v3653_v12 = vmax.f32 %v3429_v8, 0.0  ;;  %v3075_v42 = vmax.f32 %v2022_v36, %v2615_v25  ;;  %v21293_v31 = vld [vmem:[%s22870_s20 + $0x2d4] ss:$8 sps:$4 sm:$0xff]  }
 0x1da   : > { %29213 = vst [vmem:[#allocation33_spill] sm:$0xff] %v23608_v28  ;;  %29214 = vst [vmem:[#allocation34_spill] sm:$0xff] %v23610_v51  ;;  %2285 = vmatmul.mubr.bf16.gmra.mrb[172].mxu0 %v21289_v21 }
 0x1db   : > { %v23612_v0 = vpack.c.bf16 %v3651_v9, %v3647_v22  ;;  %v23614_v39 = vpack.c.bf16 %v3653_v12, %v3649_v60  ;;  %2878 = vmatmul.mubr.bf16.gmra.mrb[172].mxu1 %v21289_v21  ;;  %17643 = vmatprep.mubr.msk.bf16.mxu0 %vm1653_vm0, %v21290_v7 }
 0x1dc   : > { %17699 = vmatprep.mubr.msk.bf16.mxu1 %vm1653_vm0, %v21290_v7 }
 0x1dd   : > { %29215 = vst [vmem:[#allocation35_spill] sm:$0xff] %v23612_v0  ;;  %29216 = vst [vmem:[#allocation36_spill] sm:$0xff] %v23614_v39  ;;  %v23619_v53 = vpop.f32.mrb[68].mxu0  ;;  %v23621_v23 = vpop.f32.mrb[68].mxu1 }
 0x1de   : > { %v23625_v2 = vpop.f32.mrb[69].mxu0  ;;  %v23627_v32 = vpop.f32.mrb[69].mxu1 }
 0x1df   : > { %v23631_v22 = vpop.f32.mrb[70].mxu0  ;;  %v23633_v60 = vpop.f32.mrb[70].mxu1 }
 0x1e0   : > { %v23638_v17 = vpop.f32.mrb[71].mxu0  ;;  %v23640_v20 = vpop.f32.mrb[71].mxu1 }
 0x1e2   : > { %2295 = vmatmul.mubr.bf16.gmra.mrb[176].mxu0 %v21292_v30 }
 0x1e3   : > { %2888 = vmatmul.mubr.bf16.gmra.mrb[176].mxu1 %v21292_v30  ;;  %17644 = vmatprep.mubr.msk.bf16.mxu0 %vm1653_vm0, %v21293_v31 }
 0x1e4   : > { %17700 = vmatprep.mubr.msk.bf16.mxu1 %vm1653_vm0, %v21293_v31 }
 0x1e5   : > { %v2036_v62 = vpop.f32.mrb[72].mxu0  ;;  %v2629_v35 = vpop.f32.mrb[72].mxu1 }
 0x1e6   : > { %v3080_v9 = vmax.f32 %v2036_v62, %v2629_v35  ;;  %v2038_v12 = vpop.f32.mrb[73].mxu0  ;;  %v2631_v37 = vpop.f32.mrb[73].mxu1 }
 0x1e7   : > { %v3081_v61 = vmax.f32 %v2038_v12, %v2631_v37  ;;  %v2040_v36 = vpop.f32.mrb[74].mxu0  ;;  %v2633_v25 = vpop.f32.mrb[74].mxu1 }
 0x1e8   : > { %v3264_v8 = vmax.f32 %v3072_v18, %v3080_v9  ;;  %v3082_v21 = vmax.f32 %v2040_v36, %v2633_v25  ;;  %v2042_v6 = vpop.f32.mrb[75].mxu0  ;;  %v2635_v7 = vpop.f32.mrb[75].mxu1 }
 0x1e9   : > { %v3265_v51 = vmax.f32 %v3073_v13, %v3081_v61  ;;  %v3083_v30 = vmax.f32 %v2042_v6, %v2635_v7 }
 0x1ea   : > { %v3430_v39 = vadd.f32 %v23234_v43, %v3264_v8  ;;  %v3432_v31 = vadd.f32 %v23238_v44, %v3264_v8  ;;  %v3266_v48 = vmax.f32 %v3074_v24, %v3082_v21  ;;  %2305 = vmatmul.mubr.bf16.gmra.mrb[180].mxu0 %v21295_v34  ;;  %v21304_v8 = vld [vmem:[%s22870_s20 + $0x2e0] ss:$8 sps:$4 sm:$0xff]  }
 0x1eb   : > { %2898 = vmatmul.mubr.bf16.gmra.mrb[180].mxu1 %v21295_v34  ;;  %v3431_v62 = vadd.f32 %v23243_v49, %v3265_v51  ;;  %v3433_v35 = vadd.f32 %v23247_v50, %v3265_v51  ;;  %v3267_v12 = vmax.f32 %v3075_v42, %v3083_v30  ;;  %17645 = vmatprep.mubr.msk.bf16.mxu0 %vm1653_vm0, %v21302_v38  ;;  %v21305_v42 = vld [vmem:[%s22870_s20 + $0x2f4] ss:$8 sps:$4 sm:$0xff]  }
 0x1ec   : > { %17701 = vmatprep.mubr.msk.bf16.mxu1 %vm1653_vm0, %v21302_v38  ;;  %v3654_v18 = vmax.f32 %v3430_v39, 0.0  ;;  %v3656_v13 = vmax.f32 %v3432_v31, 0.0  ;;  %v3434_v6 = vadd.f32 %v23234_v43, %v3266_v48  ;;  %v3436_v7 = vadd.f32 %v23238_v44, %v3266_v48 }
 0x1ed   : > { %v3655_v24 = vmax.f32 %v3431_v62, 0.0  ;;  %v3657_v21 = vmax.f32 %v3433_v35, 0.0  ;;  %v3435_v34 = vadd.f32 %v23243_v49, %v3267_v12  ;;  %v3437_v9 = vadd.f32 %v23247_v50, %v3267_v12  ;;  %v2046_v37 = vpop.f32.mrb[76].mxu0  ;;  %v2639_v51 = vpop.f32.mrb[76].mxu1 }
 0x1ee   : > { %v3658_v61 = vmax.f32 %v3434_v6, 0.0  ;;  %v3660_v36 = vmax.f32 %v3436_v7, 0.0  ;;  %v3084_v25 = vmax.f32 %v2046_v37, %v2639_v51  ;;  %v2048_v38 = vpop.f32.mrb[77].mxu0  ;;  %v2641_v39 = vpop.f32.mrb[77].mxu1  ;;  %v29219_v35 = vmax.f32 %v23619_v53, %v23621_v23 }
 0x1ef   : > { %v3659_v30 = vmax.f32 %v3435_v34, 0.0  ;;  %v3661_v31 = vmax.f32 %v3437_v9, 0.0  ;;  %v3085_v11 = vmax.f32 %v2048_v38, %v2641_v39  ;;  %v2050_v5 = vpop.f32.mrb[78].mxu0  ;;  %v2643_v48 = vpop.f32.mrb[78].mxu1  ;;  %v29222_v34 = vmax.f32 %v23625_v2, %v23627_v32 }
 0x1f0   : > { %v23660_v59 = vpack.c.bf16 %v3658_v61, %v3654_v18  ;;  %v23662_v62 = vpack.c.bf16 %v3660_v36, %v3656_v13  ;;  %v3268_v12 = vmax.f32 %v29219_v35, %v3084_v25  ;;  %v3086_v57 = vmax.f32 %v2050_v5, %v2643_v48  ;;  %v2052_v4 = vpop.f32.mrb[79].mxu0  ;;  %v2645_v6 = vpop.f32.mrb[79].mxu1 }
 0x1f1   : > { %v23667_v7 = vpack.c.bf16 %v3659_v30, %v3655_v24  ;;  %v23669_v37 = vpack.c.bf16 %v3661_v31, %v3657_v21  ;;  %v3269_v9 = vmax.f32 %v29222_v34, %v3085_v11  ;;  %v3087_v18 = vmax.f32 %v2052_v4, %v2645_v6 }
 0x1f2   : > { %29217 = vst [vmem:[#allocation37_spill] sm:$0xff] %v23660_v59  ;;  %29218 = vst [vmem:[#allocation38_spill] sm:$0xff] %v23662_v62  ;;  %v3438_v13 = vadd.f32 %v23234_v43, %v3268_v12  ;;  %v3440_v51 = vadd.f32 %v23238_v44, %v3268_v12  ;;  %v29223_v53 = vmax.f32 %v23631_v22, %v23633_v60  ;;  %2315 = vmatmul.mubr.bf16.gmra.mrb[184].mxu0 %v21304_v8  ;;  %v21307_v60 = vld [vmem:[%s22870_s20 + $0x2f0] ss:$8 sps:$4 sm:$0xff]  }
 0x1f3   : > { %29220 = vst [vmem:[#allocation39_spill] sm:$0xff] %v23667_v7  ;;  %29221 = vst [vmem:[#allocation40_spill] sm:$0xff] %v23669_v37  ;;  %2908 = vmatmul.mubr.bf16.gmra.mrb[184].mxu1 %v21304_v8  ;;  %v3439_v23 = vadd.f32 %v23243_v49, %v3269_v9  ;;  %v3441_v24 = vadd.f32 %v23247_v50, %v3269_v9  ;;  %v29224_v11 = vmax.f32 %v23638_v17, %v23640_v20  ;;  %v21308_v20 = vld [vmem:[%s22870_s20 + $0x304] ss:$8 sps:$4 sm:$0xff]  }
 0x1f4   : > { %v3270_v5 = vmax.f32 %v29223_v53, %v3086_v57  ;;  %17646 = vmatprep.mubr.msk.bf16.mxu0 %vm1653_vm0, %v21305_v42  ;;  %17702 = vmatprep.mubr.msk.bf16.mxu1 %vm1653_vm0, %v21305_v42  ;;  %v3662_v4 = vmax.f32 %v3438_v13, 0.0  ;;  %v3664_v32 = vmax.f32 %v3440_v51, 0.0 }
 0x1f5   : > { %v3271_v2 = vmax.f32 %v29224_v11, %v3087_v18  ;;  %v3663_v8 = vmax.f32 %v3439_v23, 0.0  ;;  %v3665_v21 = vmax.f32 %v3441_v24, 0.0  ;;  %v2056_v25 = vpop.f32.mrb[80].mxu0  ;;  %v2649_v17 = vpop.f32.mrb[80].mxu1  ;;  %v21310_v11 = vld [vmem:[%s22870_s20 + $0x300] ss:$8 sps:$4 sm:$0xff]  }
 0x1f6   : > { %v3442_v22 = vadd.f32 %v23234_v43, %v3270_v5  ;;  %v3444_v57 = vadd.f32 %v23238_v44, %v3270_v5  ;;  %v3088_v30 = vmax.f32 %v2056_v25, %v2649_v17  ;;  %v2058_v42 = vpop.f32.mrb[81].mxu0  ;;  %v2651_v31 = vpop.f32.mrb[81].mxu1 }
 0x1f7   : > { %v3443_v61 = vadd.f32 %v23243_v49, %v3271_v2  ;;  %v3445_v36 = vadd.f32 %v23247_v50, %v3271_v2  ;;  %v3089_v12 = vmax.f32 %v2058_v42, %v2651_v31  ;;  %v2060_v6 = vpop.f32.mrb[82].mxu0  ;;  %v2653_v34 = vpop.f32.mrb[82].mxu1  ;;  %v21320_v31 = vld [vmem:[%s22870_s20 + $0x324] ss:$8 sps:$4 sm:$0xff]  }
 0x1f8   : > { %v3666_v38 = vmax.f32 %v3442_v22, 0.0  ;;  %v3668_v39 = vmax.f32 %v3444_v57, 0.0  ;;  %v3090_v13 = vmax.f32 %v2060_v6, %v2653_v34  ;;  %v2062_v51 = vpop.f32.mrb[83].mxu0  ;;  %v2655_v53 = vpop.f32.mrb[83].mxu1 }
 0x1f9   : > { %v3667_v48 = vmax.f32 %v3443_v61, 0.0  ;;  %v3669_v35 = vmax.f32 %v3445_v36, 0.0  ;;  %v3091_v24 = vmax.f32 %v2062_v51, %v2655_v53 }
 0x1fa   : > { %v23692_v9 = vpack.c.bf16 %v3666_v38, %v3662_v4  ;;  %v23694_v18 = vpack.c.bf16 %v3668_v39, %v3664_v32  ;;  %2325 = vmatmul.mubr.bf16.gmra.mrb[188].mxu0 %v21307_v60  ;;  %v21311_v32 = vld [vmem:[%s22870_s20 + $0x314] ss:$8 sps:$4 sm:$0xff]   ;;  %v21313_v38 = vld [vmem:[%s22870_s20 + $0x310] ss:$8 sps:$4 sm:$0xff]  }
 0x1fb   : > { %v23696_v5 = vpack.c.bf16 %v3667_v48, %v3663_v8  ;;  %v23698_v23 = vpack.c.bf16 %v3669_v35, %v3665_v21  ;;  %2918 = vmatmul.mubr.bf16.gmra.mrb[188].mxu1 %v21307_v60  ;;  %17647 = vmatprep.mubr.msk.bf16.mxu0 %vm1653_vm0, %v21308_v20 }
 0x1fc   : > { %29225 = vst [vmem:[#allocation41_spill] sm:$0xff] %v23692_v9  ;;  %29226 = vst [vmem:[#allocation42_spill] sm:$0xff] %v23694_v18  ;;  %17703 = vmatprep.mubr.msk.bf16.mxu1 %vm1653_vm0, %v21308_v20 }
 0x1fd   : > { %29227 = vst [vmem:[#allocation43_spill] sm:$0xff] %v23696_v5  ;;  %29228 = vst [vmem:[#allocation44_spill] sm:$0xff] %v23698_v23  ;;  %v23703_v2 = vpop.f32.mrb[84].mxu0  ;;  %v23705_v4 = vpop.f32.mrb[84].mxu1 }
 0x1fe   : > { %v23710_v57 = vpop.f32.mrb[85].mxu0  ;;  %v23712_v8 = vpop.f32.mrb[85].mxu1 }
 0x1ff   : > { %v23716_v21 = vpop.f32.mrb[86].mxu0  ;;  %v23718_v61 = vpop.f32.mrb[86].mxu1 }
 0x200   : > { %v23722_v25 = vpop.f32.mrb[87].mxu0  ;;  %v23724_v17 = vpop.f32.mrb[87].mxu1 }
 0x202   : > { %2335 = vmatmul.mubr.bf16.gmra.mrb[192].mxu0 %v21310_v11 }
 0x203   : > { %2928 = vmatmul.mubr.bf16.gmra.mrb[192].mxu1 %v21310_v11  ;;  %17648 = vmatprep.mubr.msk.bf16.mxu0 %vm1653_vm0, %v21311_v32 }
 0x204   : > { %17704 = vmatprep.mubr.msk.bf16.mxu1 %vm1653_vm0, %v21311_v32 }
 0x205   : > { %v2076_v39 = vpop.f32.mrb[88].mxu0  ;;  %v2669_v42 = vpop.f32.mrb[88].mxu1 }
 0x206   : > { %v3096_v48 = vmax.f32 %v2076_v39, %v2669_v42  ;;  %v2078_v35 = vpop.f32.mrb[89].mxu0  ;;  %v2671_v6 = vpop.f32.mrb[89].mxu1 }
 0x207   : > { %v3097_v34 = vmax.f32 %v2078_v35, %v2671_v6  ;;  %v2080_v51 = vpop.f32.mrb[90].mxu0  ;;  %v2673_v53 = vpop.f32.mrb[90].mxu1 }
 0x208   : > { %v3272_v36 = vmax.f32 %v3088_v30, %v3096_v48  ;;  %v3098_v60 = vmax.f32 %v2080_v51, %v2673_v53  ;;  %v2082_v22 = vpop.f32.mrb[91].mxu0  ;;  %v2675_v20 = vpop.f32.mrb[91].mxu1 }
 0x209   : > { %v3273_v18 = vmax.f32 %v3089_v12, %v3097_v34  ;;  %v3099_v11 = vmax.f32 %v2082_v22, %v2675_v20 }
 0x20a   : > { %v3446_v23 = vadd.f32 %v23234_v43, %v3272_v36  ;;  %v3448_v32 = vadd.f32 %v23238_v44, %v3272_v36  ;;  %v3274_v62 = vmax.f32 %v3090_v13, %v3098_v60  ;;  %2345 = vmatmul.mubr.bf16.gmra.mrb[196].mxu0 %v21313_v38  ;;  %v21322_v36 = vld [vmem:[%s22870_s20 + $0x320] ss:$8 sps:$4 sm:$0xff]  }
 0x20b   : > { %2938 = vmatmul.mubr.bf16.gmra.mrb[196].mxu1 %v21313_v38  ;;  %v3447_v39 = vadd.f32 %v23243_v49, %v3273_v18  ;;  %v3449_v42 = vadd.f32 %v23247_v50, %v3273_v18  ;;  %v3275_v35 = vmax.f32 %v3091_v24, %v3099_v11  ;;  %17649 = vmatprep.mubr.msk.bf16.mxu0 %vm1653_vm0, %v21320_v31  ;;  %v21323_v24 = vld [vmem:[%s22870_s20 + $0x334] ss:$8 sps:$4 sm:$0xff]  }
 0x20c   : > { %17705 = vmatprep.mubr.msk.bf16.mxu1 %vm1653_vm0, %v21320_v31  ;;  %v3670_v30 = vmax.f32 %v3446_v23, 0.0  ;;  %v3672_v12 = vmax.f32 %v3448_v32, 0.0  ;;  %v3450_v22 = vadd.f32 %v23234_v43, %v3274_v62  ;;  %v3452_v20 = vadd.f32 %v23238_v44, %v3274_v62 }
 0x20d   : > { %v3671_v13 = vmax.f32 %v3447_v39, 0.0  ;;  %v3673_v60 = vmax.f32 %v3449_v42, 0.0  ;;  %v3451_v38 = vadd.f32 %v23243_v49, %v3275_v35  ;;  %v3453_v48 = vadd.f32 %v23247_v50, %v3275_v35  ;;  %v2086_v6 = vpop.f32.mrb[92].mxu0  ;;  %v2679_v18 = vpop.f32.mrb[92].mxu1 }
 0x20e   : > { %v3674_v34 = vmax.f32 %v3450_v22, 0.0  ;;  %v3676_v51 = vmax.f32 %v3452_v20, 0.0  ;;  %v3100_v53 = vmax.f32 %v2086_v6, %v2679_v18  ;;  %v2088_v31 = vpop.f32.mrb[93].mxu0  ;;  %v2681_v23 = vpop.f32.mrb[93].mxu1  ;;  %v29231_v42 = vmax.f32 %v23703_v2, %v23705_v4 }
 0x20f   : > { %v3675_v11 = vmax.f32 %v3451_v38, 0.0  ;;  %v3677_v32 = vmax.f32 %v3453_v48, 0.0  ;;  %v3101_v37 = vmax.f32 %v2088_v31, %v2681_v23  ;;  %v2090_v29 = vpop.f32.mrb[94].mxu0  ;;  %v2683_v62 = vpop.f32.mrb[94].mxu1  ;;  %v29234_v38 = vmax.f32 %v23710_v57, %v23712_v8 }
 0x210   : > { %v23744_v56 = vpack.c.bf16 %v3674_v34, %v3670_v30  ;;  %v23746_v39 = vpack.c.bf16 %v3676_v51, %v3672_v12  ;;  %v3276_v35 = vmax.f32 %v29231_v42, %v3100_v53  ;;  %v3102_v58 = vmax.f32 %v2090_v29, %v2683_v62  ;;  %v2092_v27 = vpop.f32.mrb[95].mxu0  ;;  %v2685_v22 = vpop.f32.mrb[95].mxu1 }
 0x211   : > { %v23751_v20 = vpack.c.bf16 %v3675_v11, %v3671_v13  ;;  %v23753_v6 = vpack.c.bf16 %v3677_v32, %v3673_v60  ;;  %v3277_v48 = vmax.f32 %v29234_v38, %v3101_v37  ;;  %v3103_v30 = vmax.f32 %v2092_v27, %v2685_v22 }
 0x212   : > { %29229 = vst [vmem:[#allocation45_spill] sm:$0xff] %v23744_v56  ;;  %29230 = vst [vmem:[#allocation46_spill] sm:$0xff] %v23746_v39  ;;  %v3454_v12 = vadd.f32 %v23234_v43, %v3276_v35  ;;  %v3456_v18 = vadd.f32 %v23238_v44, %v3276_v35  ;;  %v29235_v2 = vmax.f32 %v23716_v21, %v23718_v61  ;;  %2355 = vmatmul.mubr.bf16.gmra.mrb[200].mxu0 %v21322_v36  ;;  %v21325_v61 = vld [vmem:[%s22870_s20 + $0x330] ss:$8 sps:$4 sm:$0xff]  }
 0x213   : > { %29232 = vst [vmem:[#allocation47_spill] sm:$0xff] %v23751_v20  ;;  %29233 = vst [vmem:[#allocation48_spill] sm:$0xff] %v23753_v6  ;;  %2948 = vmatmul.mubr.bf16.gmra.mrb[200].mxu1 %v21322_v36  ;;  %v3455_v4 = vadd.f32 %v23243_v49, %v3277_v48  ;;  %v3457_v13 = vadd.f32 %v23247_v50, %v3277_v48  ;;  %v29236_v37 = vmax.f32 %v23722_v25, %v23724_v17  ;;  %v21326_v17 = vld [vmem:[%s22870_s20 + $0x344] ss:$8 sps:$4 sm:$0xff]  }
 0x214   : > { %v3278_v29 = vmax.f32 %v29235_v2, %v3102_v58  ;;  %17650 = vmatprep.mubr.msk.bf16.mxu0 %vm1653_vm0, %v21323_v24  ;;  %17706 = vmatprep.mubr.msk.bf16.mxu1 %vm1653_vm0, %v21323_v24  ;;  %v3678_v27 = vmax.f32 %v3454_v12, 0.0  ;;  %v3680_v8 = vmax.f32 %v3456_v18, 0.0 }
 0x215   : > { %v3279_v57 = vmax.f32 %v29236_v37, %v3103_v30  ;;  %v3679_v36 = vmax.f32 %v3455_v4, 0.0  ;;  %v3681_v60 = vmax.f32 %v3457_v13, 0.0  ;;  %v2096_v53 = vpop.f32.mrb[96].mxu0  ;;  %v2689_v25 = vpop.f32.mrb[96].mxu1  ;;  %v21328_v37 = vld [vmem:[%s22870_s20 + $0x340] ss:$8 sps:$4 sm:$0xff]  }
 0x216   : > { %v3458_v21 = vadd.f32 %v23234_v43, %v3278_v29  ;;  %v3460_v58 = vadd.f32 %v23238_v44, %v3278_v29  ;;  %v3104_v11 = vmax.f32 %v2096_v53, %v2689_v25  ;;  %v2098_v24 = vpop.f32.mrb[97].mxu0  ;;  %v2691_v32 = vpop.f32.mrb[97].mxu1 }
 0x217   : > { %v3459_v34 = vadd.f32 %v23243_v49, %v3279_v57  ;;  %v3461_v51 = vadd.f32 %v23247_v50, %v3279_v57  ;;  %v3105_v35 = vmax.f32 %v2098_v24, %v2691_v32  ;;  %v2100_v22 = vpop.f32.mrb[98].mxu0  ;;  %v2693_v38 = vpop.f32.mrb[98].mxu1  ;;  %v21338_v32 = vld [vmem:[%s22870_s20 + $0x364] ss:$8 sps:$4 sm:$0xff]  }
 0x218   : > { %v3682_v31 = vmax.f32 %v3458_v21, 0.0  ;;  %v3684_v23 = vmax.f32 %v3460_v58, 0.0  ;;  %v3106_v12 = vmax.f32 %v2100_v22, %v2693_v38  ;;  %v2102_v18 = vpop.f32.mrb[99].mxu0  ;;  %v2695_v2 = vpop.f32.mrb[99].mxu1 }
 0x219   : > { %v3683_v62 = vmax.f32 %v3459_v34, 0.0  ;;  %v3685_v42 = vmax.f32 %v3461_v51, 0.0  ;;  %v3107_v13 = vmax.f32 %v2102_v18, %v2695_v2 }
 0x21a   : > { %v23776_v48 = vpack.c.bf16 %v3682_v31, %v3678_v27  ;;  %v23778_v30 = vpack.c.bf16 %v3684_v23, %v3680_v8  ;;  %2365 = vmatmul.mubr.bf16.gmra.mrb[204].mxu0 %v21325_v61  ;;  %v21335_v8 = vld [vmem:[%s22870_s20 + $0x354] ss:$8 sps:$4 sm:$0xff]   ;;  %v21337_v31 = vld [vmem:[%s22870_s20 + $0x350] ss:$8 sps:$4 sm:$0xff]  }
 0x21b   : > { %v23780_v29 = vpack.c.bf16 %v3683_v62, %v3679_v36  ;;  %v23782_v4 = vpack.c.bf16 %v3685_v42, %v3681_v60  ;;  %2958 = vmatmul.mubr.bf16.gmra.mrb[204].mxu1 %v21325_v61  ;;  %17651 = vmatprep.mubr.msk.bf16.mxu0 %vm1653_vm0, %v21326_v17 }
 0x21c   : > { %29237 = vst [vmem:[#allocation49_spill] sm:$0xff] %v23776_v48  ;;  %29238 = vst [vmem:[#allocation50_spill] sm:$0xff] %v23778_v30  ;;  %17707 = vmatprep.mubr.msk.bf16.mxu1 %vm1653_vm0, %v21326_v17 }
 0x21d   : > { %29239 = vst [vmem:[#allocation51_spill] sm:$0xff] %v23780_v29  ;;  %29240 = vst [vmem:[#allocation52_spill] sm:$0xff] %v23782_v4  ;;  %v23787_v57 = vpop.f32.mrb[100].mxu0  ;;  %v23789_v27 = vpop.f32.mrb[100].mxu1 }
 0x21e   : > { %v23794_v58 = vpop.f32.mrb[101].mxu0  ;;  %v23796_v36 = vpop.f32.mrb[101].mxu1 }
 0x21f   : > { %v23800_v60 = vpop.f32.mrb[102].mxu0  ;;  %v23802_v34 = vpop.f32.mrb[102].mxu1 }
 0x220   : > { %v23806_v53 = vpop.f32.mrb[103].mxu0  ;;  %v23808_v25 = vpop.f32.mrb[103].mxu1 }
 0x222   : > { %2375 = vmatmul.mubr.bf16.gmra.mrb[208].mxu0 %v21328_v37 }
 0x223   : > { %2968 = vmatmul.mubr.bf16.gmra.mrb[208].mxu1 %v21328_v37  ;;  %17652 = vmatprep.mubr.msk.bf16.mxu0 %vm1653_vm0, %v21335_v8 }
 0x224   : > { %17708 = vmatprep.mubr.msk.bf16.mxu1 %vm1653_vm0, %v21335_v8 }
 0x225   : > { %v2116_v23 = vpop.f32.mrb[104].mxu0  ;;  %v2709_v24 = vpop.f32.mrb[104].mxu1 }
 0x226   : > { %v3112_v62 = vmax.f32 %v2116_v23, %v2709_v24  ;;  %v2118_v42 = vpop.f32.mrb[105].mxu0  ;;  %v2711_v22 = vpop.f32.mrb[105].mxu1 }
 0x227   : > { %v3113_v38 = vmax.f32 %v2118_v42, %v2711_v22  ;;  %v2120_v18 = vpop.f32.mrb[106].mxu0  ;;  %v2713_v2 = vpop.f32.mrb[106].mxu1 }
 0x228   : > { %v3280_v51 = vmax.f32 %v3104_v11, %v3112_v62  ;;  %v3114_v61 = vmax.f32 %v2120_v18, %v2713_v2  ;;  %v2122_v21 = vpop.f32.mrb[107].mxu0  ;;  %v2715_v17 = vpop.f32.mrb[107].mxu1 }
 0x229   : > { %v3281_v30 = vmax.f32 %v3105_v35, %v3113_v38  ;;  %v3115_v37 = vmax.f32 %v2122_v21, %v2715_v17 }
 0x22a   : > { %v3462_v4 = vadd.f32 %v23234_v43, %v3280_v51  ;;  %v3464_v8 = vadd.f32 %v23238_v44, %v3280_v51  ;;  %v3282_v39 = vmax.f32 %v3106_v12, %v3114_v61  ;;  %2385 = vmatmul.mubr.bf16.gmra.mrb[212].mxu0 %v21337_v31  ;;  %v21340_v51 = vld [vmem:[%s22870_s20 + $0x360] ss:$8 sps:$4 sm:$0xff]  }
 0x22b   : > { %2978 = vmatmul.mubr.bf16.gmra.mrb[212].mxu1 %v21337_v31  ;;  %v3463_v23 = vadd.f32 %v23243_v49, %v3281_v30  ;;  %v3465_v24 = vadd.f32 %v23247_v50, %v3281_v30  ;;  %v3283_v42 = vmax.f32 %v3107_v13, %v3115_v37  ;;  %17653 = vmatprep.mubr.msk.bf16.mxu0 %vm1653_vm0, %v21338_v32  ;;  %v21341_v13 = vld [vmem:[%s22870_s20 + $0x374] ss:$8 sps:$4 sm:$0xff]  }
 0x22c   : > { %17709 = vmatprep.mubr.msk.bf16.mxu1 %vm1653_vm0, %v21338_v32  ;;  %v3686_v11 = vmax.f32 %v3462_v4, 0.0  ;;  %v3688_v35 = vmax.f32 %v3464_v8, 0.0  ;;  %v3466_v21 = vadd.f32 %v23234_v43, %v3282_v39  ;;  %v3468_v17 = vadd.f32 %v23238_v44, %v3282_v39 }
 0x22d   : > { %v3687_v12 = vmax.f32 %v3463_v23, 0.0  ;;  %v3689_v61 = vmax.f32 %v3465_v24, 0.0  ;;  %v3467_v31 = vadd.f32 %v23243_v49, %v3283_v42  ;;  %v3469_v62 = vadd.f32 %v23247_v50, %v3283_v42  ;;  %v2126_v22 = vpop.f32.mrb[108].mxu0  ;;  %v2719_v30 = vpop.f32.mrb[108].mxu1 }
 0x22e   : > { %v3690_v38 = vmax.f32 %v3466_v21, 0.0  ;;  %v3692_v18 = vmax.f32 %v3468_v17, 0.0  ;;  %v3116_v2 = vmax.f32 %v2126_v22, %v2719_v30  ;;  %v2128_v32 = vpop.f32.mrb[109].mxu0  ;;  %v2721_v4 = vpop.f32.mrb[109].mxu1  ;;  %v29243_v24 = vmax.f32 %v23787_v57, %v23789_v27 }
 0x22f   : > { %v3691_v37 = vmax.f32 %v3467_v31, 0.0  ;;  %v3693_v8 = vmax.f32 %v3469_v62, 0.0  ;;  %v3117_v6 = vmax.f32 %v2128_v32, %v2721_v4  ;;  %v2130_v16 = vpop.f32.mrb[110].mxu0  ;;  %v2723_v39 = vpop.f32.mrb[110].mxu1  ;;  %v29246_v31 = vmax.f32 %v23794_v58, %v23796_v36 }
 0x230   : > { %v23828_v15 = vpack.c.bf16 %v3690_v38, %v3686_v11  ;;  %v23830_v23 = vpack.c.bf16 %v3692_v18, %v3688_v35  ;;  %v3284_v42 = vmax.f32 %v29243_v24, %v3116_v2  ;;  %v3118_v46 = vmax.f32 %v2130_v16, %v2723_v39  ;;  %v2132_v52 = vpop.f32.mrb[111].mxu0  ;;  %v2725_v21 = vpop.f32.mrb[111].mxu1 }
 0x231   : > { %v23835_v17 = vpack.c.bf16 %v3691_v37, %v3687_v12  ;;  %v23837_v22 = vpack.c.bf16 %v3693_v8, %v3689_v61  ;;  %v3285_v62 = vmax.f32 %v29246_v31, %v3117_v6  ;;  %v3119_v11 = vmax.f32 %v2132_v52, %v2725_v21 }
 0x232   : > { %29241 = vst [vmem:[#allocation53_spill] sm:$0xff] %v23828_v15  ;;  %29242 = vst [vmem:[#allocation54_spill] sm:$0xff] %v23830_v23  ;;  %v3470_v35 = vadd.f32 %v23234_v43, %v3284_v42  ;;  %v3472_v30 = vadd.f32 %v23238_v44, %v3284_v42  ;;  %v29247_v57 = vmax.f32 %v23800_v60, %v23802_v34  ;;  %2395 = vmatmul.mubr.bf16.gmra.mrb[216].mxu0 %v21340_v51  ;;  %v21343_v60 = vld [vmem:[%s22870_s20 + $0x370] ss:$8 sps:$4 sm:$0xff]   ;;  %s17445_s20 = sshll.u32 %s22518_s30, 2 }
 0x233   : > { %29244 = vst [vmem:[#allocation55_spill] sm:$0xff] %v23835_v17  ;;  %29245 = vst [vmem:[#allocation56_spill] sm:$0xff] %v23837_v22  ;;  %2988 = vmatmul.mubr.bf16.gmra.mrb[216].mxu1 %v21340_v51  ;;  %v3471_v27 = vadd.f32 %v23243_v49, %v3285_v62  ;;  %v3473_v12 = vadd.f32 %v23247_v50, %v3285_v62  ;;  %v29248_v58 = vmax.f32 %v23806_v53, %v23808_v25  ;;  %v21356_v23 = vld [vmem:[%s28883_s3 + $0x240] ss:$16 sps:$4 sm:$0xff]   ;;  %p790_p10 = scmp.lt.s32.totalorder %s17445_s20, 7 }
 0x234   : > { %v3286_v16 = vmax.f32 %v29247_v57, %v3118_v46  ;;  %17654 = vmatprep.mubr.msk.bf16.mxu0 %vm1653_vm0, %v21341_v13  ;;  %17710 = vmatprep.mubr.msk.bf16.mxu1 %vm1653_vm0, %v21341_v13  ;;  %v3694_v52 = vmax.f32 %v3470_v35, 0.0  ;;  %v3696_v36 = vmax.f32 %v3472_v30, 0.0 }
 0x235   : > { %v3287_v6 = vmax.f32 %v29248_v58, %v3119_v11  ;;  %v3695_v34 = vmax.f32 %v3471_v27, 0.0  ;;  %v3697_v51 = vmax.f32 %v3473_v12, 0.0  ;;  %v23859_v2 = vpop.f32.mrb[112].mxu0  ;;  %v23861_v53 = vpop.f32.mrb[112].mxu1  ;;  %v28924_v12 = vmov 0   ;;  %s29580_s20 = smov (!%p790_p10, %s17445_s20), 7 }
 0x236   : > { %v3474_v61 = vadd.f32 %v23234_v43, %v3286_v16  ;;  %v3476_v46 = vadd.f32 %v23238_v44, %v3286_v16  ;;  %v23865_v4 = vpop.f32.mrb[113].mxu0  ;;  %v23867_v37 = vpop.f32.mrb[113].mxu1  ;;  %v21361_v27 = vld [vmem:[%s28883_s3 + $0x24c] ss:$16 sps:$4 sm:$0xff]   ;;  %s17446_s23 = sshll.u32 %s29580_s20, 3 }
 0x237   : > { %v3475_v38 = vadd.f32 %v23243_v49, %v3287_v6  ;;  %v3477_v18 = vadd.f32 %v23247_v50, %v3287_v6  ;;  %v23871_v42 = vpop.f32.mrb[114].mxu0  ;;  %v23873_v21 = vpop.f32.mrb[114].mxu1  ;;  %s793_s26 = scalar_lea.vmem %s28887_s7, %s17446_s23 }
 0x238   : > { %v3698_v25 = vmax.f32 %v3474_v61, 0.0  ;;  %v3700_v32 = vmax.f32 %v3476_v46, 0.0  ;;  %v23881_v35 = vpop.f32.mrb[115].mxu0  ;;  %v23883_v30 = vpop.f32.mrb[115].mxu1  ;;  %v21353_v61 = vld [vmem:[%s28883_s3 + $0x228] ss:$16 sps:$4 sm:$0xff]   ;;  %v29255_v48 = vmax.f32 %v23871_v42, %v23873_v21 }
 0x239   : > { %v3699_v8 = vmax.f32 %v3475_v38, 0.0  ;;  %v3701_v39 = vmax.f32 %v3477_v18, 0.0  ;;  %v21355_v18 = vld [vmem:[%s28883_s3 + $0x22c] ss:$16 sps:$4 sm:$0xff]  }
 0x23a   : > { %v23875_v31 = vpack.c.bf16 %v3698_v25, %v3694_v52  ;;  %v23877_v62 = vpack.c.bf16 %v3700_v32, %v3696_v36  ;;  %2405 = vmatmul.mubr.bf16.gmra.mrb[220].mxu0 %v21343_v60  ;;  %v21344_v52 = vld [vmem:[%s28883_s3 + $0x200] ss:$16 sps:$4 sm:$0xff]   ;;  %v21347_v36 = vld [vmem:[%s28883_s3 + $0x208] ss:$16 sps:$4 sm:$0xff]  }
 0x23b   : > { %v23885_v57 = vpack.c.bf16 %v3699_v8, %v3695_v34  ;;  %v23887_v16 = vpack.c.bf16 %v3701_v39, %v3697_v51  ;;  %2998 = vmatmul.mubr.bf16.gmra.mrb[220].mxu1 %v21343_v60  ;;  %7798 = vmatprep.mubr.bf16.mxu0 %v28924_v12  ;;  %v21350_v39 = vld [vmem:[%s28883_s3 + $0x220] ss:$16 sps:$4 sm:$0xff]   ;;  %v21352_v34 = vld [vmem:[%s28883_s3 + $0x224] ss:$16 sps:$4 sm:$0xff]  }
 0x23c   : > { %29249 = vst [vmem:[#allocation57_spill] sm:$0xff] %v23875_v31  ;;  %29250 = vst [vmem:[#allocation58_spill] sm:$0xff] %v23877_v62  ;;  %10928 = vmatprep.mubr.bf16.mxu1 %v28924_v12  ;;  %v21358_v8 = vld [vmem:[%s28883_s3 + $0x244] ss:$16 sps:$4 sm:$0xff]  }
 0x23d   : > { %29251 = vst [vmem:[#allocation59_spill] sm:$0xff] %v23885_v57  ;;  %29252 = vst [vmem:[#allocation60_spill] sm:$0xff] %v23887_v16  ;;  %v23893_v58 = vpop.f32.mrb[116].mxu0  ;;  %v23895_v6 = vpop.f32.mrb[116].mxu1 }
 0x23e   : > { %v23905_v46 = vpop.f32.mrb[117].mxu0  ;;  %v23907_v60 = vpop.f32.mrb[117].mxu1 }
 0x23f   : > { %v23911_v51 = vpop.f32.mrb[118].mxu0  ;;  %v23913_v38 = vpop.f32.mrb[118].mxu1 }
 0x240   : > { %v23917_v25 = vpop.f32.mrb[119].mxu0  ;;  %v23919_v32 = vpop.f32.mrb[119].mxu1 }
 0x242   : > { %7799 = vmatmul.mubr.bf16.vlgmr.msra.gmra.mrb[224].mxu0 %v28924_v12 }
 0x243   : > { %10929 = vmatmul.mubr.bf16.vlgmr.msra.gmra.mrb[224].mxu1 %v28924_v12  ;;  %8080 = vmatpush1.bf16.msra.mxu0 %v21344_v52  ;;  %v21359_v52 = vld [vmem:[%s28883_s3 + $0x248] ss:$16 sps:$4 sm:$0xff]  }
 0x244   : > { %11210 = vmatpush1.bf16.msra.mxu1 %v21347_v36  ;;  %7808 = vmatprep.mubr.bf16.mxu0 %v28924_v12 }
 0x245   : > { %10938 = vmatprep.mubr.bf16.mxu1 %v28924_v12  ;;  %v2156_v11 = vpop.f32.mrb[120].mxu0  ;;  %v2749_v24 = vpop.f32.mrb[120].mxu1  ;;  %8081 = vmatprep.subr.bf16.mxu0 %v21352_v34  ;;  %v21364_v34 = vld [vmem:[%s28883_s3 + $0x264] ss:$16 sps:$4 sm:$0xff]  }
 0x246   : > { %11211 = vmatprep.subr.bf16.mxu1 %v21355_v18  ;;  %v3128_v13 = vmax.f32 %v2156_v11, %v2749_v24  ;;  %v2158_v62 = vpop.f32.mrb[121].mxu0  ;;  %v2751_v16 = vpop.f32.mrb[121].mxu1  ;;  %v21367_v24 = vld [vmem:[%s28883_s3 + $0x26c] ss:$16 sps:$4 sm:$0xff]   ;;  %v29253_v11 = vmax.f32 %v23859_v2, %v23861_v53  ;;  %v29256_v2 = vmov 0  }
 0x247   : > { %v3129_v36 = vmax.f32 %v2158_v62, %v2751_v16  ;;  %v2160_v22 = vpop.f32.mrb[122].mxu0  ;;  %v2753_v31 = vpop.f32.mrb[122].mxu1  ;;  %8082 = vmatpush1.bf16.msra.mxu0 %v21350_v39  ;;  %v29254_v62 = vmax.f32 %v23865_v4, %v23867_v37 }
 0x248   : > { %11212 = vmatpush1.bf16.msra.mxu1 %v21353_v61  ;;  %v3288_v18 = vmax.f32 %v29253_v11, %v3128_v13  ;;  %v3130_v12 = vmax.f32 %v2160_v22, %v2753_v31  ;;  %v2162_v57 = vpop.f32.mrb[123].mxu0  ;;  %v2755_v15 = vpop.f32.mrb[123].mxu1  ;;  %8083 = vmatprep.subr.bf16.mxu0 %v21358_v8  ;;  %v21362_v22 = vld [vmem:[%s28883_s3 + $0x260] ss:$16 sps:$4 sm:$0xff]   ;;  %v29257_v13 = vmax.f32 %v23881_v35, %v23883_v30 }
 0x249   : > { %11213 = vmatprep.subr.bf16.mxu1 %v21361_v27  ;;  %v3289_v16 = vmax.f32 %v29254_v62, %v3129_v36  ;;  %v3131_v61 = vmax.f32 %v2162_v57, %v2755_v15 }
 0x24a   : > { %v3478_v39 = vadd.f32 %v23234_v43, %v3288_v18  ;;  %v3480_v17 = vadd.f32 %v23238_v44, %v3288_v18  ;;  %v3290_v29 = vmax.f32 %v29255_v48, %v3130_v12  ;;  %7809 = vmatmul.mubr.bf16.gmra.mrb[228].mxu0 %v29256_v2  ;;  %v21365_v48 = vld [vmem:[%s28883_s3 + $0x268] ss:$16 sps:$4 sm:$0xff]  }
 0x24b   : > { %10939 = vmatmul.mubr.bf16.gmra.mrb[228].mxu1 %v29256_v2  ;;  %v3479_v53 = vadd.f32 %v23243_v49, %v3289_v16  ;;  %v3481_v15 = vadd.f32 %v23247_v50, %v3289_v16  ;;  %v3291_v4 = vmax.f32 %v29257_v13, %v3131_v61  ;;  %7818 = vmatprep.mubr.bf16.mxu0 %v29256_v2 }
 0x24c   : > { %10948 = vmatprep.mubr.bf16.mxu1 %v29256_v2  ;;  %v3702_v37 = vmax.f32 %v3478_v39, 0.0  ;;  %v3704_v42 = vmax.f32 %v3480_v17, 0.0  ;;  %v3482_v21 = vadd.f32 %v23234_v43, %v3290_v29  ;;  %v3484_v31 = vadd.f32 %v23238_v44, %v3290_v29  ;;  %8084 = vmatpush1.bf16.msra.mxu0 %v21356_v23  ;;  %v21370_v29 = vld [vmem:[%s28883_s3 + $0x284] ss:$16 sps:$4 sm:$0xff]   ;;  %v21373_v23 = vld [vmem:[%s28883_s3 + $0x28c] ss:$16 sps:$4 sm:$0xff]  }
 0x24d   : > { %11214 = vmatpush1.bf16.msra.mxu1 %v21359_v52  ;;  %v3703_v57 = vmax.f32 %v3479_v53, 0.0  ;;  %v3705_v27 = vmax.f32 %v3481_v15, 0.0  ;;  %v3483_v35 = vadd.f32 %v23243_v49, %v3291_v4  ;;  %v3485_v30 = vadd.f32 %v23247_v50, %v3291_v4  ;;  %v2166_v12 = vpop.f32.mrb[124].mxu0  ;;  %v2759_v8 = vpop.f32.mrb[124].mxu1  ;;  %8085 = vmatprep.subr.bf16.mxu0 %v21364_v34  ;;  %v21368_v34 = vld [vmem:[%s28883_s3 + $0x280] ss:$16 sps:$4 sm:$0xff]  }
 0x24e   : > { %11215 = vmatprep.subr.bf16.mxu1 %v21367_v24  ;;  %v3706_v36 = vmax.f32 %v3482_v21, 0.0  ;;  %v3708_v11 = vmax.f32 %v3484_v31, 0.0  ;;  %v3132_v18 = vmax.f32 %v2166_v12, %v2759_v8  ;;  %v2168_v17 = vpop.f32.mrb[125].mxu0  ;;  %v2761_v62 = vpop.f32.mrb[125].mxu1  ;;  %v21371_v24 = vld [vmem:[%s28883_s3 + $0x288] ss:$16 sps:$4 sm:$0xff]   ;;  %v29260_v4 = vmax.f32 %v23893_v58, %v23895_v6 }
 0x24f   : > { %v3707_v52 = vmax.f32 %v3483_v35, 0.0  ;;  %v3709_v16 = vmax.f32 %v3485_v30, 0.0  ;;  %v3133_v61 = vmax.f32 %v2168_v17, %v2761_v62  ;;  %v2170_v39 = vpop.f32.mrb[126].mxu0  ;;  %v2763_v53 = vpop.f32.mrb[126].mxu1  ;;  %v21376_v12 = vld [vmem:[%s28883_s3 + $0x2a4] ss:$16 sps:$4 sm:$0xff]   ;;  %v29263_v58 = vmax.f32 %v23905_v46, %v23907_v60 }
 0x250   : > { %v23999_v15 = vpack.c.bf16 %v3706_v36, %v3702_v37  ;;  %v24001_v13 = vpack.c.bf16 %v3708_v11, %v3704_v42  ;;  %v3292_v21 = vmax.f32 %v29260_v4, %v3132_v18  ;;  %v3134_v31 = vmax.f32 %v2170_v39, %v2763_v53  ;;  %v2172_v35 = vpop.f32.mrb[127].mxu0  ;;  %v2765_v30 = vpop.f32.mrb[127].mxu1  ;;  %8086 = vmatpush1.bf16.msra.mxu0 %v21362_v22  ;;  %v21379_v8 = vld [vmem:[%s28883_s3 + $0x2ac] ss:$16 sps:$4 sm:$0xff]  }
 0x251   : > { %v24012_v37 = vpack.c.bf16 %v3707_v52, %v3703_v57  ;;  %v24014_v42 = vpack.c.bf16 %v3709_v16, %v3705_v27  ;;  %v3293_v6 = vmax.f32 %v29263_v58, %v3133_v61  ;;  %v3135_v36 = vmax.f32 %v2172_v35, %v2765_v30  ;;  %11216 = vmatpush1.bf16.msra.mxu1 %v21365_v48 }
 0x252   : > { %29258 = vst [vmem:[#allocation61_spill] sm:$0xff] %v23999_v15  ;;  %29259 = vst [vmem:[#allocation62_spill] sm:$0xff] %v24001_v13  ;;  %v3486_v22 = vadd.f32 %v23234_v43, %v3292_v21  ;;  %v3488_v11 = vadd.f32 %v23238_v44, %v3292_v21  ;;  %v29264_v18 = vmax.f32 %v23911_v51, %v23913_v38  ;;  %7819 = vmatmul.mubr.bf16.gmra.mrb[232].mxu0 %v29256_v2  ;;  %v21374_v38 = vld [vmem:[%s28883_s3 + $0x2a0] ss:$16 sps:$4 sm:$0xff]  }
 0x253   : > { %29261 = vst [vmem:[#allocation63_spill] sm:$0xff] %v24012_v37  ;;  %29262 = vst [vmem:[#allocation64_spill] sm:$0xff] %v24014_v42  ;;  %10949 = vmatmul.mubr.bf16.gmra.mrb[232].mxu1 %v29256_v2  ;;  %v3487_v57 = vadd.f32 %v23243_v49, %v3293_v6  ;;  %v3489_v27 = vadd.f32 %v23247_v50, %v3293_v6  ;;  %v29265_v46 = vmax.f32 %v23917_v25, %v23919_v32 }
 0x254   : > { %v3294_v17 = vmax.f32 %v29264_v18, %v3134_v31  ;;  %7828 = vmatprep.mubr.bf16.mxu0 %v29256_v2  ;;  %10958 = vmatprep.mubr.bf16.mxu1 %v29256_v2  ;;  %v3710_v62 = vmax.f32 %v3486_v22, 0.0  ;;  %v3712_v52 = vmax.f32 %v3488_v11, 0.0 }
 0x255   : > { %v3295_v60 = vmax.f32 %v29265_v46, %v3135_v36  ;;  %8087 = vmatprep.subr.bf16.mxu0 %v21370_v29  ;;  %11217 = vmatprep.subr.bf16.mxu1 %v21373_v23  ;;  %v24040_v32 = vpop.f32.mrb[128].mxu0  ;;  %v24042_v61 = vpop.f32.mrb[128].mxu1  ;;  %v21377_v29 = vld [vmem:[%s28883_s3 + $0x2a8] ss:$16 sps:$4 sm:$0xff]   ;;  %v3711_v23 = vmax.f32 %v3487_v57, 0.0  ;;  %v3713_v35 = vmax.f32 %v3489_v27, 0.0 }
 0x256   : > { %v3490_v48 = vadd.f32 %v23234_v43, %v3294_v17  ;;  %v3492_v51 = vadd.f32 %v23238_v44, %v3294_v17  ;;  %8088 = vmatpush1.bf16.msra.mxu0 %v21368_v34  ;;  %11218 = vmatpush1.bf16.msra.mxu1 %v21371_v24  ;;  %v24049_v21 = vpop.f32.mrb[129].mxu0  ;;  %v24051_v31 = vpop.f32.mrb[129].mxu1  ;;  %v21382_v34 = vld [vmem:[%s28883_s3 + $0x2c4] ss:$16 sps:$4 sm:$0xff]   ;;  %v21385_v24 = vld [vmem:[%s28883_s3 + $0x2cc] ss:$16 sps:$4 sm:$0xff]  }
 0x257   : > { %v3491_v16 = vadd.f32 %v23243_v49, %v3295_v60  ;;  %v3493_v25 = vadd.f32 %v23247_v50, %v3295_v60  ;;  %8089 = vmatprep.subr.bf16.mxu0 %v21376_v12  ;;  %11219 = vmatprep.subr.bf16.mxu1 %v21379_v8  ;;  %v24061_v36 = vpop.f32.mrb[130].mxu0  ;;  %v24063_v22 = vpop.f32.mrb[130].mxu1  ;;  %v21380_v12 = vld [vmem:[%s28883_s3 + $0x2c0] ss:$16 sps:$4 sm:$0xff]   ;;  %v21383_v8 = vld [vmem:[%s28883_s3 + $0x2c8] ss:$16 sps:$4 sm:$0xff]  }
 0x258   : > { %v3714_v39 = vmax.f32 %v3490_v48, 0.0  ;;  %v3716_v53 = vmax.f32 %v3492_v51, 0.0  ;;  %v24077_v57 = vpop.f32.mrb[131].mxu0  ;;  %v24079_v27 = vpop.f32.mrb[131].mxu1  ;;  %v21388_v46 = vld [vmem:[%s28883_s3 + $0x2e4] ss:$16 sps:$4 sm:$0xff]  }
 0x259   : > { %v3715_v30 = vmax.f32 %v3491_v16, 0.0  ;;  %v3717_v58 = vmax.f32 %v3493_v25, 0.0  ;;  %v21391_v60 = vld [vmem:[%s28883_s3 + $0x2ec] ss:$16 sps:$4 sm:$0xff]   ;;  %v21389_v16 = vld [vmem:[%s28883_s3 + $0x2e8] ss:$16 sps:$4 sm:$0xff]  }
 0x25a   : > { %v24071_v11 = vpack.c.bf16 %v3714_v39, %v3710_v62  ;;  %v24073_v18 = vpack.c.bf16 %v3716_v53, %v3712_v52  ;;  %8090 = vmatpush1.bf16.msra.mxu0 %v21374_v38  ;;  %11220 = vmatpush1.bf16.msra.mxu1 %v21377_v29  ;;  %v21386_v52 = vld [vmem:[%s28883_s3 + $0x2e0] ss:$16 sps:$4 sm:$0xff]   ;;  %v21394_v53 = vld [vmem:[%s28883_s3 + $0x304] ss:$16 sps:$4 sm:$0xff]   ;;  %v21403_v29 = vld [vmem:[%s28883_s3 + $0x32c] ss:$16 sps:$4 sm:$0xff]  }
 0x25b   : > { %v24087_v48 = vpack.c.bf16 %v3715_v30, %v3711_v23  ;;  %v24089_v51 = vpack.c.bf16 %v3717_v58, %v3713_v35  ;;  %7829 = vmatmul.mubr.bf16.gmra.mrb[236].mxu0 %v29256_v2  ;;  %10959 = vmatmul.mubr.bf16.gmra.mrb[236].mxu1 %v29256_v2  ;;  %v21392_v58 = vld [vmem:[%s28883_s3 + $0x300] ss:$16 sps:$4 sm:$0xff]   ;;  %v21401_v17 = vld [vmem:[%s28883_s3 + $0x328] ss:$16 sps:$4 sm:$0xff]  }
 0x25c   : > { %29266 = vst [vmem:[#allocation65_spill] sm:$0xff] %v24071_v11  ;;  %29267 = vst [vmem:[#allocation66_spill] sm:$0xff] %v24073_v18  ;;  %7838 = vmatprep.mubr.bf16.mxu0 %v23271_v47  ;;  %10968 = vmatprep.mubr.bf16.mxu1 %v23271_v47 }
 0x25d   : > { %29268 = vst [vmem:[#allocation67_spill] sm:$0xff] %v24087_v48  ;;  %29269 = vst [vmem:[#allocation68_spill] sm:$0xff] %v24089_v51  ;;  %8091 = vmatprep.subr.bf16.mxu0 %v21382_v34  ;;  %11221 = vmatprep.subr.bf16.mxu1 %v21385_v24  ;;  %v24103_v38 = vpop.f32.mrb[132].mxu0  ;;  %v24105_v25 = vpop.f32.mrb[132].mxu1  ;;  %v21397_v34 = vld [vmem:[%s28883_s3 + $0x30c] ss:$16 sps:$4 sm:$0xff]   ;;  %v29271_v51 = vmax.f32 %v24049_v21, %v24051_v31 }
 0x25e   : > { %8092 = vmatpush1.bf16.msra.mxu0 %v21380_v12  ;;  %11222 = vmatpush1.bf16.msra.mxu1 %v21383_v8  ;;  %v24109_v23 = vpop.f32.mrb[133].mxu0  ;;  %v24111_v39 = vpop.f32.mrb[133].mxu1  ;;  %v21395_v12 = vld [vmem:[%s28883_s3 + $0x308] ss:$16 sps:$4 sm:$0xff]   ;;  %v21400_v24 = vld [vmem:[%s28883_s3 + $0x324] ss:$16 sps:$4 sm:$0xff]  }
 0x25f   : > { %8093 = vmatprep.subr.bf16.mxu0 %v21388_v46  ;;  %11223 = vmatprep.subr.bf16.mxu1 %v21391_v60  ;;  %v24121_v35 = vpop.f32.mrb[134].mxu0  ;;  %v24123_v30 = vpop.f32.mrb[134].mxu1  ;;  %v21398_v8 = vld [vmem:[%s28883_s3 + $0x320] ss:$16 sps:$4 sm:$0xff]  }
 0x260   : > { %v24133_v46 = vpop.f32.mrb[135].mxu0  ;;  %v24135_v60 = vpop.f32.mrb[135].mxu1 }
 0x262   : > { %8094 = vmatpush1.bf16.msra.mxu0 %v21386_v52  ;;  %11224 = vmatpush1.bf16.msra.mxu1 %v21389_v16 }
 0x263   : > { %7839 = vmatmul.mubr.bf16.gmra.mrb[240].mxu0 %v23264_v41  ;;  %10969 = vmatmul.mubr.bf16.gmra.mrb[240].mxu1 %v23264_v41  ;;  %v21409_v41 = vld [vmem:[%s28883_s3 + $0x34c] ss:$16 sps:$4 sm:$0xff]  }
 0x264   : > { %7848 = vmatprep.mubr.bf16.mxu0 %v23326_v10  ;;  %10978 = vmatprep.mubr.bf16.mxu1 %v23326_v10  ;;  %v21406_v10 = vld [vmem:[%s28883_s3 + $0x344] ss:$16 sps:$4 sm:$0xff]  }
 0x265   : > { %8095 = vmatprep.subr.bf16.mxu0 %v21394_v53  ;;  %11225 = vmatprep.subr.bf16.mxu1 %v21397_v34  ;;  %v2196_v52 = vpop.f32.mrb[136].mxu0  ;;  %v2789_v16 = vpop.f32.mrb[136].mxu1 }
 0x266   : > { %8096 = vmatpush1.bf16.msra.mxu0 %v21392_v58  ;;  %11226 = vmatpush1.bf16.msra.mxu1 %v21395_v12  ;;  %v3144_v62 = vmax.f32 %v2196_v52, %v2789_v16  ;;  %v2198_v6 = vpop.f32.mrb[137].mxu0  ;;  %v2791_v4 = vpop.f32.mrb[137].mxu1  ;;  %v21404_v58 = vld [vmem:[%s28883_s3 + $0x340] ss:$16 sps:$4 sm:$0xff]  }
 0x267   : > { %8097 = vmatprep.subr.bf16.mxu0 %v21400_v24  ;;  %11227 = vmatprep.subr.bf16.mxu1 %v21403_v29  ;;  %v3145_v47 = vmax.f32 %v2198_v6, %v2791_v4  ;;  %v2200_v53 = vpop.f32.mrb[138].mxu0  ;;  %v2793_v34 = vpop.f32.mrb[138].mxu1  ;;  %v21407_v24 = vld [vmem:[%s28883_s3 + $0x348] ss:$16 sps:$4 sm:$0xff]   ;;  %v29270_v29 = vmax.f32 %v24040_v32, %v24042_v61  ;;  %v21412_v4 = vld [vmem:[%s28883_s3 + $0x364] ss:$16 sps:$4 sm:$0xff]  }
 0x268   : > { %v3146_v52 = vmax.f32 %v2200_v53, %v2793_v34  ;;  %v2202_v16 = vpop.f32.mrb[139].mxu0  ;;  %v2795_v18 = vpop.f32.mrb[139].mxu1  ;;  %v21415_v6 = vld [vmem:[%s28883_s3 + $0x36c] ss:$16 sps:$4 sm:$0xff]  }
 0x269   : > { %v3296_v12 = vmax.f32 %v29270_v29, %v3144_v62  ;;  %v3297_v13 = vmax.f32 %v29271_v51, %v3145_v47  ;;  %v3147_v42 = vmax.f32 %v2202_v16, %v2795_v18  ;;  %v29272_v62 = vmax.f32 %v24061_v36, %v24063_v22  ;;  %v21410_v36 = vld [vmem:[%s28883_s3 + $0x360] ss:$16 sps:$4 sm:$0xff]  }
 0x26a   : > { %8098 = vmatpush1.bf16.msra.mxu0 %v21398_v8  ;;  %11228 = vmatpush1.bf16.msra.mxu1 %v21401_v17  ;;  %v29273_v47 = vmax.f32 %v24077_v57, %v24079_v27 }
 0x26b   : > { %v3494_v32 = vadd.f32 %v23234_v43, %v3296_v12  ;;  %v3496_v61 = vadd.f32 %v23238_v44, %v3296_v12  ;;  %v3298_v53 = vmax.f32 %v29272_v62, %v3146_v52  ;;  %7849 = vmatmul.mubr.bf16.gmra.mrb[244].mxu0 %v23328_v14  ;;  %10979 = vmatmul.mubr.bf16.gmra.mrb[244].mxu1 %v23328_v14 }
 0x26c   : > { %v3495_v34 = vadd.f32 %v23243_v49, %v3297_v13  ;;  %v3497_v21 = vadd.f32 %v23247_v50, %v3297_v13  ;;  %v3299_v31 = vmax.f32 %v29273_v47, %v3147_v42  ;;  %7858 = vmatprep.mubr.bf16.mxu0 %v23394_v63  ;;  %10988 = vmatprep.mubr.bf16.mxu1 %v23394_v63 }
 0x26d   : > { %v3718_v22 = vmax.f32 %v3494_v32, 0.0  ;;  %v3720_v18 = vmax.f32 %v3496_v61, 0.0  ;;  %v3498_v17 = vadd.f32 %v23234_v43, %v3298_v53  ;;  %v3500_v51 = vadd.f32 %v23238_v44, %v3298_v53  ;;  %8099 = vmatprep.subr.bf16.mxu0 %v21406_v10  ;;  %11229 = vmatprep.subr.bf16.mxu1 %v21409_v41  ;;  %v2206_v27 = vpop.f32.mrb[140].mxu0  ;;  %v2799_v29 = vpop.f32.mrb[140].mxu1  ;;  %v21413_v41 = vld [vmem:[%s28883_s3 + $0x368] ss:$16 sps:$4 sm:$0xff]  }
 0x26e   : > { %v3719_v13 = vmax.f32 %v3495_v34, 0.0  ;;  %v3721_v8 = vmax.f32 %v3497_v21, 0.0  ;;  %v3499_v42 = vadd.f32 %v23243_v49, %v3299_v31  ;;  %v3501_v57 = vadd.f32 %v23247_v50, %v3299_v31  ;;  %8100 = vmatpush1.bf16.msra.mxu0 %v21404_v58  ;;  %11230 = vmatpush1.bf16.msra.mxu1 %v21407_v24  ;;  %v2208_v32 = vpop.f32.mrb[141].mxu0  ;;  %v2801_v61 = vpop.f32.mrb[141].mxu1 }
 0x26f   : > { %v3722_v12 = vmax.f32 %v3498_v17, 0.0  ;;  %v3724_v52 = vmax.f32 %v3500_v51, 0.0  ;;  %v3148_v16 = vmax.f32 %v2206_v27, %v2799_v29  ;;  %8101 = vmatprep.subr.bf16.mxu0 %v21412_v4  ;;  %11231 = vmatprep.subr.bf16.mxu1 %v21415_v6  ;;  %v3149_v53 = vmax.f32 %v2208_v32, %v2801_v61  ;;  %v2210_v34 = vpop.f32.mrb[142].mxu0  ;;  %v2803_v21 = vpop.f32.mrb[142].mxu1 }
 0x270   : > { %v3723_v10 = vmax.f32 %v3499_v42, 0.0  ;;  %v3725_v62 = vmax.f32 %v3501_v57, 0.0  ;;  %v29275_v24 = vmax.f32 %v24103_v38, %v24105_v25  ;;  %v3150_v17 = vmax.f32 %v2210_v34, %v2803_v21  ;;  %v2212_v4 = vpop.f32.mrb[143].mxu0  ;;  %v2805_v51 = vpop.f32.mrb[143].mxu1  ;;  %v21418_v38 = vld [vmem:[%s28883_s3 + $0x384] ss:$16 sps:$4 sm:$0xff]  }
 0x271   : > { %v24203_v47 = vpack.c.bf16 %v3722_v12, %v3718_v22  ;;  %v24205_v58 = vpack.c.bf16 %v3724_v52, %v3720_v18  ;;  %v29277_v6 = vmax.f32 %v24109_v23, %v24111_v39  ;;  %v3151_v57 = vmax.f32 %v2212_v4, %v2805_v51  ;;  %v21416_v22 = vld [vmem:[%s28883_s3 + $0x380] ss:$16 sps:$4 sm:$0xff]   ;;  %v21419_v23 = vld [vmem:[%s28883_s3 + $0x388] ss:$16 sps:$4 sm:$0xff]   ;;  %v21421_v39 = vld [vmem:[%s28883_s3 + $0x38c] ss:$16 sps:$4 sm:$0xff]  }
 0x272   : > { %v3300_v31 = vmax.f32 %v29275_v24, %v3148_v16  ;;  %v24210_v27 = vpack.c.bf16 %v3723_v10, %v3719_v13  ;;  %v24212_v29 = vpack.c.bf16 %v3725_v62, %v3721_v8  ;;  %8102 = vmatpush1.bf16.msra.mxu0 %v21410_v36  ;;  %v29278_v13 = vmax.f32 %v24121_v35, %v24123_v30 }
 0x273   : > { %29274 = vst [vmem:[#allocation69_spill] sm:$0xff] %v24203_v47  ;;  %v3301_v42 = vmax.f32 %v29277_v6, %v3149_v53  ;;  %7859 = vmatmul.mubr.bf16.gmra.mrb[248].mxu0 %v23378_v55  ;;  %10989 = vmatmul.mubr.bf16.gmra.mrb[248].mxu1 %v23378_v55  ;;  %v29279_v35 = vmax.f32 %v24133_v46, %v24135_v60 }
 0x274   : > { %29276 = vst [vmem:[#allocation70_spill] sm:$0xff] %v24210_v27  ;;  %v3502_v25 = vadd.f32 %v23234_v43, %v3300_v31  ;;  %v3504_v18 = vadd.f32 %v23238_v44, %v3300_v31  ;;  %v3302_v8 = vmax.f32 %v29278_v13, %v3150_v17  ;;  %7868 = vmatprep.mubr.bf16.mxu0 %v23426_v33 }
 0x275   : > { %v3503_v36 = vadd.f32 %v23243_v49, %v3301_v42  ;;  %v3505_v12 = vadd.f32 %v23247_v50, %v3301_v42  ;;  %v3303_v30 = vmax.f32 %v29279_v35, %v3151_v57  ;;  %10998 = vmatprep.mubr.bf16.mxu1 %v23426_v33  ;;  %11232 = vmatpush1.bf16.msra.mxu1 %v21413_v41  ;;  %v2216_v46 = vpop.f32.mrb[144].mxu0  ;;  %v2809_v60 = vpop.f32.mrb[144].mxu1  ;;  %v21424_v35 = vld [vmem:[%s28883_s3 + $0x3a4] ss:$16 sps:$4 sm:$0xff]  }
 0x276   : > { %v3726_v52 = vmax.f32 %v3502_v25, 0.0  ;;  %v3728_v16 = vmax.f32 %v3504_v18, 0.0  ;;  %v3506_v32 = vadd.f32 %v23234_v43, %v3302_v8  ;;  %v3508_v61 = vadd.f32 %v23238_v44, %v3302_v8  ;;  %8103 = vmatprep.subr.bf16.mxu0 %v21418_v38  ;;  %11233 = vmatprep.subr.bf16.mxu1 %v21421_v39  ;;  %v2218_v17 = vpop.f32.mrb[145].mxu0  ;;  %v2811_v4 = vpop.f32.mrb[145].mxu1 }
 0x277   : > { %v3727_v10 = vmax.f32 %v3503_v36, 0.0  ;;  %v3729_v62 = vmax.f32 %v3505_v12, 0.0  ;;  %v3507_v53 = vadd.f32 %v23243_v49, %v3303_v30  ;;  %v3509_v34 = vadd.f32 %v23247_v50, %v3303_v30  ;;  %8104 = vmatpush1.bf16.msra.mxu0 %v21416_v22  ;;  %v2220_v41 = vpop.f32.mrb[146].mxu0  ;;  %v2813_v57 = vpop.f32.mrb[146].mxu1  ;;  %v21422_v12 = vld [vmem:[%s28883_s3 + $0x3a0] ss:$16 sps:$4 sm:$0xff]  }
 0x278   : > { %v3730_v21 = vmax.f32 %v3506_v32, 0.0  ;;  %v3732_v24 = vmax.f32 %v3508_v61, 0.0  ;;  %v3152_v31 = vmax.f32 %v2216_v46, %v2809_v60  ;;  %v3153_v42 = vmax.f32 %v2218_v17, %v2811_v4  ;;  %v2222_v13 = vpop.f32.mrb[147].mxu0  ;;  %v2815_v8 = vpop.f32.mrb[147].mxu1  ;;  %v21425_v30 = vld [vmem:[%s28883_s3 + $0x3a8] ss:$16 sps:$4 sm:$0xff]   ;;  %8105 = vmatprep.subr.bf16.mxu0 %v21424_v35 }
 0x279   : > { %v3731_v51 = vmax.f32 %v3507_v53, 0.0  ;;  %v3733_v6 = vmax.f32 %v3509_v34, 0.0  ;;  %v3154_v18 = vmax.f32 %v2220_v41, %v2813_v57  ;;  %11234 = vmatpush1.bf16.msra.mxu1 %v21419_v23  ;;  %v3155_v36 = vmax.f32 %v2222_v13, %v2815_v8  ;;  %v21427_v23 = vld [vmem:[%s28883_s3 + $0x3ac] ss:$16 sps:$4 sm:$0xff]  }
 0x27a   : > { %v24247_v38 = vpack.c.bf16 %v3730_v21, %v3726_v52  ;;  %v24249_v25 = vpack.c.bf16 %v3732_v24, %v3728_v16  ;;  %11235 = vmatprep.subr.bf16.mxu1 %v21427_v23 }
 0x27b   : > { %v24251_v39 = vpack.c.bf16 %v3731_v51, %v3727_v10  ;;  %v24253_v22 = vpack.c.bf16 %v3733_v6, %v3729_v62  ;;  %7869 = vmatmul.mubr.bf16.gmra.mrb[252].mxu0 %v23422_v54  ;;  %10999 = vmatmul.mubr.bf16.gmra.mrb[252].mxu1 %v23422_v54 }
 0x27c   : > { %29280 = vst [vmem:[#allocation71_spill] sm:$0xff] %v24247_v38  ;;  %7878 = vmatprep.mubr.bf16.mxu0 %v23490_v40  ;;  %11008 = vmatprep.mubr.bf16.mxu1 %v23490_v40 }
 0x27d   : > { %29281 = vst [vmem:[#allocation72_spill] sm:$0xff] %v24251_v39  ;;  %v24271_v52 = vpop.f32.mrb[148].mxu0  ;;  %v24273_v16 = vpop.f32.mrb[148].mxu1  ;;  %8106 = vmatpush1.bf16.msra.mxu0 %v21422_v12  ;;  %11236 = vmatpush1.bf16.msra.mxu1 %v21425_v30 }
 0x27e   : > { %v24277_v61 = vpop.f32.mrb[149].mxu0  ;;  %v24279_v10 = vpop.f32.mrb[149].mxu1 }
 0x27f   : > { %v24283_v53 = vpop.f32.mrb[150].mxu0  ;;  %v24285_v34 = vpop.f32.mrb[150].mxu1 }
 0x280   : > { %v24289_v60 = vpop.f32.mrb[151].mxu0  ;;  %v24291_v21 = vpop.f32.mrb[151].mxu1 }
 0x283   : > { %7879 = vmatmul.mubr.bf16.gmra.mrb[0].mxu0 %v23480_v26  ;;  %11009 = vmatmul.mubr.bf16.gmra.mrb[0].mxu1 %v23480_v26 }
 0x284   : > { %7888 = vmatprep.mubr.bf16.mxu0 %v23522_v19  ;;  %11018 = vmatprep.mubr.bf16.mxu1 %v23522_v19 }
 0x285   : > { %v2236_v17 = vpop.f32.mrb[152].mxu0 }
 0x286   : > { %v2829_v4 = vpop.f32.mrb[152].mxu1  ;;  %v2238_v6 = vpop.f32.mrb[153].mxu0 }
 0x287   : > { %v3160_v51 = vmax.f32 %v2236_v17, %v2829_v4  ;;  %v2831_v41 = vpop.f32.mrb[153].mxu1  ;;  %v2240_v13 = vpop.f32.mrb[154].mxu0 }
 0x288   : > { %v3161_v57 = vmax.f32 %v2238_v6, %v2831_v41  ;;  %v2833_v8 = vpop.f32.mrb[154].mxu1  ;;  %v2242_v30 = vpop.f32.mrb[155].mxu0 }
 0x289   : > { %v3304_v12 = vmax.f32 %v3152_v31, %v3160_v51  ;;  %v3162_v35 = vmax.f32 %v2240_v13, %v2833_v8  ;;  %v2835_v23 = vpop.f32.mrb[155].mxu1 }
 0x28a   : > { %v3305_v24 = vmax.f32 %v3153_v42, %v3161_v57  ;;  %v3163_v46 = vmax.f32 %v2242_v30, %v2835_v23 }
 0x28b   : > { %v3510_v62 = vadd.f32 %v23234_v43, %v3304_v12  ;;  %v3512_v32 = vadd.f32 %v23238_v44, %v3304_v12  ;;  %v3306_v26 = vmax.f32 %v3154_v18, %v3162_v35  ;;  %7889 = vmatmul.mubr.bf16.gmra.mrb[4].mxu0 %v23518_v3  ;;  %11019 = vmatmul.mubr.bf16.gmra.mrb[4].mxu1 %v23518_v3  ;;  %v21431_v3 = vld [vmem:[%s28883_s3 + $0x3c8] ss:$16 sps:$4 sm:$0xff]  }
 0x28c   : > { %v3511_v17 = vadd.f32 %v23243_v49, %v3305_v24  ;;  %v3513_v4 = vadd.f32 %v23247_v50, %v3305_v24  ;;  %v3307_v6 = vmax.f32 %v3155_v36, %v3163_v46  ;;  %7898 = vmatprep.mubr.bf16.mxu0 %v23583_v45  ;;  %11028 = vmatprep.mubr.bf16.mxu1 %v23583_v45  ;;  %v21428_v36 = vld [vmem:[%s28883_s3 + $0x3c0] ss:$16 sps:$4 sm:$0xff]  }
 0x28d   : > { %v3734_v31 = vmax.f32 %v3510_v62, 0.0  ;;  %v3736_v42 = vmax.f32 %v3512_v32, 0.0  ;;  %v3514_v51 = vadd.f32 %v23234_v43, %v3306_v26  ;;  %v3516_v41 = vadd.f32 %v23238_v44, %v3306_v26  ;;  %v2246_v12 = vpop.f32.mrb[156].mxu0  ;;  %v21430_v26 = vld [vmem:[%s28883_s3 + $0x3c4] ss:$16 sps:$4 sm:$0xff]  }
 0x28e   : > { %v3735_v18 = vmax.f32 %v3511_v17, 0.0  ;;  %v3737_v57 = vmax.f32 %v3513_v4, 0.0  ;;  %v3515_v13 = vadd.f32 %v23243_v49, %v3307_v6  ;;  %v3517_v8 = vadd.f32 %v23247_v50, %v3307_v6  ;;  %v2839_v35 = vpop.f32.mrb[156].mxu1  ;;  %v2248_v32 = vpop.f32.mrb[157].mxu0  ;;  %8107 = vmatprep.subr.bf16.mxu0 %v21430_v26 }
 0x28f   : > { %v3738_v46 = vmax.f32 %v3514_v51, 0.0  ;;  %v3740_v24 = vmax.f32 %v3516_v41, 0.0  ;;  %v3164_v62 = vmax.f32 %v2246_v12, %v2839_v35  ;;  %v2841_v30 = vpop.f32.mrb[157].mxu1  ;;  %v2250_v45 = vpop.f32.mrb[158].mxu0  ;;  %v29283_v41 = vmax.f32 %v24271_v52, %v24273_v16  ;;  %8108 = vmatpush1.bf16.msra.mxu0 %v21428_v36 }
 0x290   : > { %v3739_v23 = vmax.f32 %v3515_v13, 0.0  ;;  %v3741_v17 = vmax.f32 %v3517_v8, 0.0  ;;  %v3165_v4 = vmax.f32 %v2248_v32, %v2841_v30  ;;  %v2843_v6 = vpop.f32.mrb[158].mxu1  ;;  %v2252_v40 = vpop.f32.mrb[159].mxu0  ;;  %v21433_v13 = vld [vmem:[%s28883_s3 + $0x3cc] ss:$16 sps:$4 sm:$0xff]   ;;  %v29286_v16 = vmax.f32 %v24283_v53, %v24285_v34 }
 0x291   : > { %v24320_v19 = vpack.c.bf16 %v3738_v46, %v3734_v31  ;;  %v24322_v51 = vpack.c.bf16 %v3740_v24, %v3736_v42  ;;  %v3308_v12 = vmax.f32 %v29283_v41, %v3164_v62  ;;  %v3166_v35 = vmax.f32 %v2250_v45, %v2843_v6  ;;  %v2845_v54 = vpop.f32.mrb[159].mxu1  ;;  %11237 = vmatprep.subr.bf16.mxu1 %v21433_v13 }
 0x292   : > { %v24330_v8 = vpack.c.bf16 %v3739_v23, %v3735_v18  ;;  %v24332_v32 = vpack.c.bf16 %v3741_v17, %v3737_v57  ;;  %v29285_v31 = vmax.f32 %v24277_v61, %v24279_v10  ;;  %v3167_v46 = vmax.f32 %v2252_v40, %v2845_v54  ;;  %11238 = vmatpush1.bf16.msra.mxu1 %v21431_v3 }
 0x293   : > { %29282 = vst [vmem:[#allocation73_spill] sm:$0xff] %v24320_v19  ;;  %v3518_v52 = vadd.f32 %v23234_v43, %v3308_v12  ;;  %v3520_v45 = vadd.f32 %v23238_v44, %v3308_v12  ;;  %v3310_v24 = vmax.f32 %v29286_v16, %v3166_v35  ;;  %7899 = vmatmul.mubr.bf16.gmra.mrb[8].mxu0 %v23576_v1 }
 0x294   : > { %29284 = vst [vmem:[#allocation74_spill] sm:$0xff] %v24330_v8  ;;  %v3309_v42 = vmax.f32 %v29285_v31, %v3165_v4  ;;  %11029 = vmatmul.mubr.bf16.gmra.mrb[8].mxu1 %v23576_v1  ;;  %v29287_v54 = vmax.f32 %v24289_v60, %v24291_v21  ;;  %7908 = vmatprep.mubr.bf16.mxu0 %v23612_v0 }
 0x295   : > { %11038 = vmatprep.mubr.bf16.mxu1 %v23612_v0  ;;  %v3522_v61 = vadd.f32 %v23234_v43, %v3310_v24  ;;  %v3524_v10 = vadd.f32 %v23238_v44, %v3310_v24  ;;  %v3742_v53 = vmax.f32 %v3518_v52, 0.0  ;;  %v3744_v34 = vmax.f32 %v3520_v45, 0.0  ;;  %v24355_v30 = vpop.f32.mrb[160].mxu0 }
 0x296   : > { %v3519_v18 = vadd.f32 %v23243_v49, %v3309_v42  ;;  %v3521_v57 = vadd.f32 %v23247_v50, %v3309_v42  ;;  %v3311_v40 = vmax.f32 %v29287_v54, %v3167_v46  ;;  %v24357_v26 = vpop.f32.mrb[160].mxu1  ;;  %v2258_v4 = vpop.f32.mrb[161].mxu0 }
 0x297   : > { %v3746_v21 = vmax.f32 %v3522_v61, 0.0  ;;  %v3748_v23 = vmax.f32 %v3524_v10, 0.0  ;;  %v3168_v17 = vmax.f32 %v24355_v30, %v24357_v26  ;;  %v2851_v6 = vpop.f32.mrb[161].mxu1  ;;  %v2260_v31 = vpop.f32.mrb[162].mxu0  ;;  %v21437_v61 = vld [vmem:[%s28883_s3 + $0x3e8] ss:$16 sps:$4 sm:$0xff]  }
 0x298   : > { %v3523_v36 = vadd.f32 %v23243_v49, %v3311_v40  ;;  %v3525_v62 = vadd.f32 %v23247_v50, %v3311_v40  ;;  %v3743_v60 = vmax.f32 %v3519_v18, 0.0  ;;  %v3745_v41 = vmax.f32 %v3521_v57, 0.0  ;;  %v2853_v42 = vpop.f32.mrb[162].mxu1  ;;  %v2262_v3 = vpop.f32.mrb[163].mxu0  ;;  %v21434_v57 = vld [vmem:[%s28883_s3 + $0x3e0] ss:$16 sps:$4 sm:$0xff]  }
 0x299   : > { %v3169_v13 = vmax.f32 %v2258_v4, %v2851_v6  ;;  %v24361_v46 = vpack.c.bf16 %v3746_v21, %v3742_v53  ;;  %v24363_v52 = vpack.c.bf16 %v3748_v23, %v3744_v34  ;;  %v3170_v45 = vmax.f32 %v2260_v31, %v2853_v42  ;;  %v2855_v16 = vpop.f32.mrb[163].mxu1  ;;  %v21436_v40 = vld [vmem:[%s28883_s3 + $0x3e4] ss:$16 sps:$4 sm:$0xff]   ;;  %v21439_v10 = vld [vmem:[%s28883_s3 + $0x3ec] ss:$16 sps:$4 sm:$0xff]  }
 0x29a   : > { %v3747_v12 = vmax.f32 %v3523_v36, 0.0  ;;  %v3749_v35 = vmax.f32 %v3525_v62, 0.0  ;;  %v3171_v54 = vmax.f32 %v2262_v3, %v2855_v16  ;;  %8109 = vmatprep.subr.bf16.mxu0 %v21436_v40  ;;  %11239 = vmatprep.subr.bf16.mxu1 %v21439_v10 }
 0x29b   : > { %29288 = vst [vmem:[#allocation75_spill] sm:$0xff] %v24361_v46  ;;  %7909 = vmatmul.mubr.bf16.gmra.mrb[12].mxu0 %v23608_v28  ;;  %11240 = vmatpush1.bf16.msra.mxu1 %v21437_v61 }
 0x29c   : > { %v24365_v24 = vpack.c.bf16 %v3747_v12, %v3743_v60  ;;  %v24367_v18 = vpack.c.bf16 %v3749_v35, %v3745_v41  ;;  %11039 = vmatmul.mubr.bf16.gmra.mrb[12].mxu1 %v23608_v28  ;;  %7918 = vmatprep.mubr.bf16.mxu0 %v23667_v7  ;;  %v21442_v12 = vld [vmem:[%s28883_s3 + $0x404] ss:$16 sps:$4 sm:$0xff]   ;;  %v21445_v35 = vld [vmem:[%s28883_s3 + $0x40c] ss:$16 sps:$4 sm:$0xff]  }
 0x29d   : > { %11048 = vmatprep.mubr.bf16.mxu1 %v23667_v7  ;;  %v24385_v53 = vpop.f32.mrb[164].mxu0  ;;  %8110 = vmatpush1.bf16.msra.mxu0 %v21434_v57 }
 0x29e   : > { %29289 = vst [vmem:[#allocation76_spill] sm:$0xff] %v24365_v24  ;;  %v24387_v34 = vpop.f32.mrb[164].mxu1  ;;  %v24391_v62 = vpop.f32.mrb[165].mxu0  ;;  %8392 = vmatprep.subr.bf16.mxu0 %v21442_v12  ;;  %11522 = vmatprep.subr.bf16.mxu1 %v21445_v35 }
 0x29f   : > { %v24393_v30 = vpop.f32.mrb[165].mxu1  ;;  %v24397_v60 = vpop.f32.mrb[166].mxu0 }
 0x2a0   : > { %v24399_v21 = vpop.f32.mrb[166].mxu1  ;;  %v24403_v4 = vpop.f32.mrb[167].mxu0 }
 0x2a1   : > { %v24405_v6 = vpop.f32.mrb[167].mxu1 }
 0x2a3   : > { %7919 = vmatmul.mubr.bf16.gmra.mrb[16].mxu0 %v23660_v59 }
 0x2a4   : > { %11049 = vmatmul.mubr.bf16.gmra.mrb[16].mxu1 %v23660_v59  ;;  %7928 = vmatprep.mubr.bf16.mxu0 %v23696_v5 }
 0x2a5   : > { %11058 = vmatprep.mubr.bf16.mxu1 %v23696_v5  ;;  %v2276_v31 = vpop.f32.mrb[168].mxu0 }
 0x2a6   : > { %v2869_v42 = vpop.f32.mrb[168].mxu1  ;;  %v2278_v16 = vpop.f32.mrb[169].mxu0 }
 0x2a7   : > { %v3176_v3 = vmax.f32 %v2276_v31, %v2869_v42  ;;  %v2871_v57 = vpop.f32.mrb[169].mxu1  ;;  %v2280_v61 = vpop.f32.mrb[170].mxu0 }
 0x2a8   : > { %v3177_v40 = vmax.f32 %v2278_v16, %v2871_v57  ;;  %v2873_v10 = vpop.f32.mrb[170].mxu1  ;;  %v2282_v26 = vpop.f32.mrb[171].mxu0 }
 0x2a9   : > { %v3312_v41 = vmax.f32 %v3168_v17, %v3176_v3  ;;  %v3178_v23 = vmax.f32 %v2280_v61, %v2873_v10  ;;  %v2875_v36 = vpop.f32.mrb[171].mxu1 }
 0x2aa   : > { %v3313_v59 = vmax.f32 %v3169_v13, %v3177_v40  ;;  %v3179_v5 = vmax.f32 %v2282_v26, %v2875_v36 }
 0x2ab   : > { %v3526_v7 = vadd.f32 %v23234_v43, %v3312_v41  ;;  %v3528_v28 = vadd.f32 %v23238_v44, %v3312_v41  ;;  %v3314_v12 = vmax.f32 %v3170_v45, %v3178_v23  ;;  %7929 = vmatmul.mubr.bf16.gmra.mrb[20].mxu0 %v23692_v9 }
 0x2ac   : > { %11059 = vmatmul.mubr.bf16.gmra.mrb[20].mxu1 %v23692_v9  ;;  %v3527_v35 = vadd.f32 %v23243_v49, %v3313_v59  ;;  %v3529_v31 = vadd.f32 %v23247_v50, %v3313_v59  ;;  %v3315_v42 = vmax.f32 %v3171_v54, %v3179_v5  ;;  %7938 = vmatprep.mubr.bf16.mxu0 %v23751_v20 }
 0x2ad   : > { %11068 = vmatprep.mubr.bf16.mxu1 %v23751_v20  ;;  %v3530_v17 = vadd.f32 %v23234_v43, %v3314_v12  ;;  %v3532_v13 = vadd.f32 %v23238_v44, %v3314_v12  ;;  %v3750_v36 = vmax.f32 %v3526_v7, 0.0  ;;  %v3752_v26 = vmax.f32 %v3528_v28, 0.0  ;;  %v2286_v41 = vpop.f32.mrb[172].mxu0 }
 0x2ae   : > { %v3531_v45 = vadd.f32 %v23243_v49, %v3315_v42  ;;  %v3533_v23 = vadd.f32 %v23247_v50, %v3315_v42  ;;  %v2879_v3 = vpop.f32.mrb[172].mxu1  ;;  %v3751_v16 = vmax.f32 %v3527_v35, 0.0  ;;  %v2288_v54 = vpop.f32.mrb[173].mxu0  ;;  %v3753_v61 = vmax.f32 %v3529_v31, 0.0 }
 0x2af   : > { %v3754_v57 = vmax.f32 %v3530_v17, 0.0  ;;  %v3756_v59 = vmax.f32 %v3532_v13, 0.0  ;;  %v3180_v5 = vmax.f32 %v2286_v41, %v2879_v3  ;;  %v2881_v40 = vpop.f32.mrb[173].mxu1  ;;  %v2290_v0 = vpop.f32.mrb[174].mxu0  ;;  %v29292_v42 = vmax.f32 %v24385_v53, %v24387_v34 }
 0x2b0   : > { %v3755_v10 = vmax.f32 %v3531_v45, 0.0  ;;  %v3757_v20 = vmax.f32 %v3533_v23, 0.0  ;;  %v3181_v9 = vmax.f32 %v2288_v54, %v2881_v40  ;;  %v2883_v12 = vpop.f32.mrb[174].mxu1  ;;  %v2292_v17 = vpop.f32.mrb[175].mxu0  ;;  %v29294_v31 = vmax.f32 %v24391_v62, %v24393_v30  ;;  %v29297_v30 = vld [vmem:[#allocation51_spill] sm:$0xff] }
 0x2b1   : > { %v24431_v7 = vpack.c.bf16 %v3754_v57, %v3750_v36  ;;  %v24433_v28 = vpack.c.bf16 %v3756_v59, %v3752_v26  ;;  %v3316_v1 = vmax.f32 %v29292_v42, %v3180_v5  ;;  %v3182_v35 = vmax.f32 %v2290_v0, %v2883_v12  ;;  %v2885_v13 = vpop.f32.mrb[175].mxu1 }
 0x2b2   : > { %v24438_v41 = vpack.c.bf16 %v3755_v10, %v3751_v16  ;;  %v24440_v3 = vpack.c.bf16 %v3757_v20, %v3753_v61  ;;  %v3317_v45 = vmax.f32 %v29294_v31, %v3181_v9  ;;  %v3183_v23 = vmax.f32 %v2292_v17, %v2885_v13 }
 0x2b3   : > { %29290 = vst [vmem:[#allocation77_spill] sm:$0xff] %v24431_v7  ;;  %29291 = vst [vmem:[#allocation78_spill] sm:$0xff] %v24433_v28  ;;  %v3534_v36 = vadd.f32 %v23234_v43, %v3316_v1  ;;  %v3536_v26 = vadd.f32 %v23238_v44, %v3316_v1  ;;  %v29295_v53 = vmax.f32 %v24397_v60, %v24399_v21  ;;  %7939 = vmatmul.mubr.bf16.gmra.mrb[24].mxu0 %v23744_v56 }
 0x2b4   : > { %29293 = vst [vmem:[#allocation79_spill] sm:$0xff] %v24438_v41  ;;  %11069 = vmatmul.mubr.bf16.gmra.mrb[24].mxu1 %v23744_v56  ;;  %v3535_v0 = vadd.f32 %v23243_v49, %v3317_v45  ;;  %v3537_v20 = vadd.f32 %v23247_v50, %v3317_v45  ;;  %v29296_v9 = vmax.f32 %v24403_v4, %v24405_v6 }
 0x2b5   : > { %v3318_v34 = vmax.f32 %v29295_v53, %v3182_v35  ;;  %7948 = vmatprep.mubr.bf16.mxu0 %v29297_v30  ;;  %11078 = vmatprep.mubr.bf16.mxu1 %v29297_v30  ;;  %v3758_v21 = vmax.f32 %v3534_v36, 0.0  ;;  %v3760_v16 = vmax.f32 %v3536_v26, 0.0  ;;  %v2296_v5 = vpop.f32.mrb[176].mxu0 }
 0x2b6   : > { %v3319_v62 = vmax.f32 %v29296_v9, %v3183_v23  ;;  %v2889_v54 = vpop.f32.mrb[176].mxu1  ;;  %v3759_v40 = vmax.f32 %v3535_v0, 0.0  ;;  %v2298_v10 = vpop.f32.mrb[177].mxu0  ;;  %v3761_v42 = vmax.f32 %v3537_v20, 0.0  ;;  %v29303_v20 = vld [vmem:[#allocation55_spill] sm:$0xff] }
 0x2b7   : > { %v3538_v1 = vadd.f32 %v23234_v43, %v3318_v34  ;;  %v3540_v60 = vadd.f32 %v23238_v44, %v3318_v34  ;;  %v3184_v6 = vmax.f32 %v2296_v5, %v2889_v54  ;;  %v2891_v12 = vpop.f32.mrb[177].mxu1  ;;  %v2300_v31 = vpop.f32.mrb[178].mxu0 }
 0x2b8   : > { %v3539_v57 = vadd.f32 %v23243_v49, %v3319_v62  ;;  %v3541_v59 = vadd.f32 %v23247_v50, %v3319_v62  ;;  %v3185_v13 = vmax.f32 %v2298_v10, %v2891_v12  ;;  %v2893_v45 = vpop.f32.mrb[178].mxu1  ;;  %v2302_v53 = vpop.f32.mrb[179].mxu0 }
 0x2b9   : > { %v3762_v61 = vmax.f32 %v3538_v1, 0.0  ;;  %v3764_v4 = vmax.f32 %v3540_v60, 0.0  ;;  %v3186_v26 = vmax.f32 %v2300_v31, %v2893_v45  ;;  %v2895_v34 = vpop.f32.mrb[179].mxu1  ;;  %v29302_v1 = vld [vmem:[#allocation49_spill] sm:$0xff] }
 0x2ba   : > { %v3763_v35 = vmax.f32 %v3539_v57, 0.0  ;;  %v3765_v17 = vmax.f32 %v3541_v59, 0.0  ;;  %v3187_v62 = vmax.f32 %v2302_v53, %v2895_v34 }
 0x2bb   : > { %v24463_v23 = vpack.c.bf16 %v3762_v61, %v3758_v21  ;;  %v24465_v36 = vpack.c.bf16 %v3764_v4, %v3760_v16  ;;  %7949 = vmatmul.mubr.bf16.gmra.mrb[28].mxu0 %v29302_v1 }
 0x2bc   : > { %v24467_v9 = vpack.c.bf16 %v3763_v35, %v3759_v40  ;;  %v24469_v0 = vpack.c.bf16 %v3765_v17, %v3761_v42  ;;  %11079 = vmatmul.mubr.bf16.gmra.mrb[28].mxu1 %v29302_v1  ;;  %7958 = vmatprep.mubr.bf16.mxu0 %v29303_v20  ;;  %v29304_v42 = vld [vmem:[#allocation53_spill] sm:$0xff]  ;;  %v29305_v35 = vld [vmem:[#allocation59_spill] sm:$0xff] }
 0x2bd   : > { %29298 = vst [vmem:[#allocation80_spill] sm:$0xff] %v24463_v23  ;;  %29299 = vst [vmem:[#allocation81_spill] sm:$0xff] %v24465_v36  ;;  %11088 = vmatprep.mubr.bf16.mxu1 %v29303_v20  ;;  %v24475_v60 = vpop.f32.mrb[180].mxu0 }
 0x2be   : > { %29300 = vst [vmem:[#allocation82_spill] sm:$0xff] %v24467_v9  ;;  %29301 = vst [vmem:[#allocation83_spill] sm:$0xff] %v24469_v0  ;;  %v2899_v21 = vpop.f32.mrb[180].mxu1  ;;  %v24478_v57 = vpop.f32.mrb[181].mxu0 }
 0x2bf   : > { %v3188_v16 = vmax.f32 %v24475_v60, %v2899_v21  ;;  %v24480_v59 = vpop.f32.mrb[181].mxu1  ;;  %v24484_v54 = vpop.f32.mrb[182].mxu0 }
 0x2c0   : > { %v24486_v40 = vpop.f32.mrb[182].mxu1  ;;  %v24490_v4 = vpop.f32.mrb[183].mxu0 }
 0x2c1   : > { %v24492_v10 = vpop.f32.mrb[183].mxu1 }
 0x2c3   : > { %7959 = vmatmul.mubr.bf16.gmra.mrb[32].mxu0 %v29304_v42 }
 0x2c4   : > { %11089 = vmatmul.mubr.bf16.gmra.mrb[32].mxu1 %v29304_v42  ;;  %7968 = vmatprep.mubr.bf16.mxu0 %v29305_v35 }
 0x2c5   : > { %11098 = vmatprep.mubr.bf16.mxu1 %v29305_v35  ;;  %v2316_v17 = vpop.f32.mrb[184].mxu0  ;;  %v29306_v35 = vld [vmem:[#allocation57_spill] sm:$0xff] }
 0x2c6   : > { %v2909_v31 = vpop.f32.mrb[184].mxu1  ;;  %v2318_v53 = vpop.f32.mrb[185].mxu0 }
 0x2c7   : > { %v3192_v45 = vmax.f32 %v2316_v17, %v2909_v31  ;;  %v2911_v34 = vpop.f32.mrb[185].mxu1  ;;  %v2320_v21 = vpop.f32.mrb[186].mxu0 }
 0x2c8   : > { %v3193_v60 = vmax.f32 %v2318_v53, %v2911_v34  ;;  %v2913_v61 = vpop.f32.mrb[186].mxu1  ;;  %v2322_v1 = vpop.f32.mrb[187].mxu0 }
 0x2c9   : > { %v3320_v5 = vmax.f32 %v3184_v6, %v3192_v45  ;;  %v3194_v20 = vmax.f32 %v2320_v21, %v2913_v61  ;;  %v2915_v12 = vpop.f32.mrb[187].mxu1 }
 0x2ca   : > { %v3321_v30 = vmax.f32 %v3185_v13, %v3193_v60  ;;  %v3195_v56 = vmax.f32 %v2322_v1, %v2915_v12 }
 0x2cb   : > { %v3542_v42 = vadd.f32 %v23234_v43, %v3320_v5  ;;  %v3544_v33 = vadd.f32 %v23238_v44, %v3320_v5  ;;  %v3322_v55 = vmax.f32 %v3186_v26, %v3194_v20  ;;  %7969 = vmatmul.mubr.bf16.gmra.mrb[36].mxu0 %v29306_v35 }
 0x2cc   : > { %11099 = vmatmul.mubr.bf16.gmra.mrb[36].mxu1 %v29306_v35  ;;  %v3543_v17 = vadd.f32 %v23243_v49, %v3321_v30  ;;  %v3545_v31 = vadd.f32 %v23247_v50, %v3321_v30  ;;  %v3323_v53 = vmax.f32 %v3187_v62, %v3195_v56  ;;  %7978 = vmatprep.mubr.bf16.mxu0 %v24012_v37 }
 0x2cd   : > { %11108 = vmatprep.mubr.bf16.mxu1 %v24012_v37  ;;  %v3546_v6 = vadd.f32 %v23234_v43, %v3322_v55  ;;  %v3548_v13 = vadd.f32 %v23238_v44, %v3322_v55  ;;  %v3766_v1 = vmax.f32 %v3542_v42, 0.0  ;;  %v3768_v5 = vmax.f32 %v3544_v33, 0.0  ;;  %v2326_v61 = vpop.f32.mrb[188].mxu0 }
 0x2ce   : > { %v3547_v26 = vadd.f32 %v23243_v49, %v3323_v53  ;;  %v3549_v20 = vadd.f32 %v23247_v50, %v3323_v53  ;;  %v2919_v12 = vpop.f32.mrb[188].mxu1  ;;  %v3767_v45 = vmax.f32 %v3543_v17, 0.0  ;;  %v2328_v62 = vpop.f32.mrb[189].mxu0  ;;  %v3769_v21 = vmax.f32 %v3545_v31, 0.0 }
 0x2cf   : > { %v3770_v34 = vmax.f32 %v3546_v6, 0.0  ;;  %v3772_v30 = vmax.f32 %v3548_v13, 0.0  ;;  %v3196_v56 = vmax.f32 %v2326_v61, %v2919_v12  ;;  %v2921_v60 = vpop.f32.mrb[189].mxu1  ;;  %v2330_v14 = vpop.f32.mrb[190].mxu0  ;;  %v29311_v31 = vmax.f32 %v24478_v57, %v24480_v59 }
 0x2d0   : > { %v3771_v37 = vmax.f32 %v3547_v26, 0.0  ;;  %v3773_v35 = vmax.f32 %v3549_v20, 0.0  ;;  %v3197_v63 = vmax.f32 %v2328_v62, %v2921_v60  ;;  %v2923_v55 = vpop.f32.mrb[190].mxu1  ;;  %v2332_v0 = vpop.f32.mrb[191].mxu0 }
 0x2d1   : > { %v24512_v42 = vpack.c.bf16 %v3770_v34, %v3766_v1  ;;  %v24514_v33 = vpack.c.bf16 %v3772_v30, %v3768_v5  ;;  %v3324_v36 = vmax.f32 %v3188_v16, %v3196_v56  ;;  %v3198_v53 = vmax.f32 %v2330_v14, %v2923_v55  ;;  %v2925_v28 = vpop.f32.mrb[191].mxu1 }
 0x2d2   : > { %v24516_v17 = vpack.c.bf16 %v3771_v37, %v3767_v45  ;;  %v24518_v6 = vpack.c.bf16 %v3773_v35, %v3769_v21  ;;  %v3325_v13 = vmax.f32 %v29311_v31, %v3197_v63  ;;  %v3199_v26 = vmax.f32 %v2332_v0, %v2925_v28 }
 0x2d3   : > { %29307 = vst [vmem:[#allocation84_spill] sm:$0xff] %v24512_v42  ;;  %29308 = vst [vmem:[#allocation85_spill] sm:$0xff] %v24514_v33  ;;  %v3550_v20 = vadd.f32 %v23234_v43, %v3324_v36  ;;  %v3552_v1 = vadd.f32 %v23238_v44, %v3324_v36  ;;  %v29312_v5 = vmax.f32 %v24484_v54, %v24486_v40  ;;  %7979 = vmatmul.mubr.bf16.gmra.mrb[40].mxu0 %v23999_v15 }
 0x2d4   : > { %29309 = vst [vmem:[#allocation86_spill] sm:$0xff] %v24516_v17  ;;  %29310 = vst [vmem:[#allocation87_spill] sm:$0xff] %v24518_v6  ;;  %11109 = vmatmul.mubr.bf16.gmra.mrb[40].mxu1 %v23999_v15  ;;  %v3551_v14 = vadd.f32 %v23243_v49, %v3325_v13  ;;  %v3553_v37 = vadd.f32 %v23247_v50, %v3325_v13  ;;  %v29313_v63 = vmax.f32 %v24490_v4, %v24492_v10 }
 0x2d5   : > { %v3326_v16 = vmax.f32 %v29312_v5, %v3198_v53  ;;  %7988 = vmatprep.mubr.bf16.mxu0 %v24087_v48  ;;  %11118 = vmatprep.mubr.bf16.mxu1 %v24087_v48  ;;  %v3774_v57 = vmax.f32 %v3550_v20, 0.0  ;;  %v3776_v59 = vmax.f32 %v3552_v1, 0.0  ;;  %v2336_v35 = vpop.f32.mrb[192].mxu0 }
 0x2d6   : > { %v3327_v28 = vmax.f32 %v29313_v63, %v3199_v26  ;;  %v2929_v61 = vpop.f32.mrb[192].mxu1  ;;  %v3775_v12 = vmax.f32 %v3551_v14, 0.0  ;;  %v2338_v34 = vpop.f32.mrb[193].mxu0  ;;  %v3777_v56 = vmax.f32 %v3553_v37, 0.0 }
 0x2d7   : > { %v3554_v36 = vadd.f32 %v23234_v43, %v3326_v16  ;;  %v3556_v0 = vadd.f32 %v23238_v44, %v3326_v16  ;;  %v3200_v10 = vmax.f32 %v2336_v35, %v2929_v61  ;;  %v2931_v30 = vpop.f32.mrb[193].mxu1  ;;  %v2340_v55 = vpop.f32.mrb[194].mxu0 }
 0x2d8   : > { %v3555_v54 = vadd.f32 %v23243_v49, %v3327_v28  ;;  %v3557_v40 = vadd.f32 %v23247_v50, %v3327_v28  ;;  %v3201_v21 = vmax.f32 %v2338_v34, %v2931_v30  ;;  %v2933_v53 = vpop.f32.mrb[194].mxu1  ;;  %v2342_v20 = vpop.f32.mrb[195].mxu0 }
 0x2d9   : > { %v3778_v45 = vmax.f32 %v3554_v36, 0.0  ;;  %v3780_v4 = vmax.f32 %v3556_v0, 0.0  ;;  %v3202_v26 = vmax.f32 %v2340_v55, %v2933_v53  ;;  %v2935_v1 = vpop.f32.mrb[195].mxu1 }
 0x2da   : > { %v3779_v62 = vmax.f32 %v3555_v54, 0.0  ;;  %v3781_v60 = vmax.f32 %v3557_v40, 0.0  ;;  %v3203_v14 = vmax.f32 %v2342_v20, %v2935_v1 }
 0x2db   : > { %v24541_v31 = vpack.c.bf16 %v3778_v45, %v3774_v57  ;;  %v24543_v13 = vpack.c.bf16 %v3780_v4, %v3776_v59  ;;  %7989 = vmatmul.mubr.bf16.gmra.mrb[44].mxu0 %v24071_v11 }
 0x2dc   : > { %v24545_v5 = vpack.c.bf16 %v3779_v62, %v3775_v12  ;;  %v24547_v16 = vpack.c.bf16 %v3781_v60, %v3777_v56  ;;  %11119 = vmatmul.mubr.bf16.gmra.mrb[44].mxu1 %v24071_v11  ;;  %7998 = vmatprep.mubr.bf16.mxu0 %v24210_v27 }
 0x2dd   : > { %29314 = vst [vmem:[#allocation88_spill] sm:$0xff] %v24541_v31  ;;  %29315 = vst [vmem:[#allocation89_spill] sm:$0xff] %v24543_v13  ;;  %11128 = vmatprep.mubr.bf16.mxu1 %v24210_v27  ;;  %v24553_v37 = vpop.f32.mrb[196].mxu0 }
 0x2de   : > { %29316 = vst [vmem:[#allocation90_spill] sm:$0xff] %v24545_v5  ;;  %29317 = vst [vmem:[#allocation91_spill] sm:$0xff] %v24547_v16  ;;  %v2939_v63 = vpop.f32.mrb[196].mxu1  ;;  %v24556_v36 = vpop.f32.mrb[197].mxu0 }
 0x2df   : > { %v3204_v28 = vmax.f32 %v24553_v37, %v2939_v63  ;;  %v24558_v0 = vpop.f32.mrb[197].mxu1  ;;  %v24562_v59 = vpop.f32.mrb[198].mxu0 }
 0x2e0   : > { %v24564_v54 = vpop.f32.mrb[198].mxu1  ;;  %v24568_v35 = vpop.f32.mrb[199].mxu0 }
 0x2e1   : > { %v24570_v61 = vpop.f32.mrb[199].mxu1 }
 0x2e3   : > { %7999 = vmatmul.mubr.bf16.gmra.mrb[48].mxu0 %v24203_v47 }
 0x2e4   : > { %11129 = vmatmul.mubr.bf16.gmra.mrb[48].mxu1 %v24203_v47  ;;  %8008 = vmatprep.mubr.bf16.mxu0 %v24251_v39 }
 0x2e5   : > { %11138 = vmatprep.mubr.bf16.mxu1 %v24251_v39  ;;  %v2356_v45 = vpop.f32.mrb[200].mxu0 }
 0x2e6   : > { %v2949_v4 = vpop.f32.mrb[200].mxu1  ;;  %v2358_v30 = vpop.f32.mrb[201].mxu0 }
 0x2e7   : > { %v3208_v34 = vmax.f32 %v2356_v45, %v2949_v4  ;;  %v2951_v56 = vpop.f32.mrb[201].mxu1  ;;  %v2360_v60 = vpop.f32.mrb[202].mxu0 }
 0x2e8   : > { %v3209_v62 = vmax.f32 %v2358_v30, %v2951_v56  ;;  %v2953_v55 = vpop.f32.mrb[202].mxu1  ;;  %v2362_v1 = vpop.f32.mrb[203].mxu0 }
 0x2e9   : > { %v3328_v53 = vmax.f32 %v3200_v10, %v3208_v34  ;;  %v3210_v20 = vmax.f32 %v2360_v60, %v2953_v55  ;;  %v2955_v37 = vpop.f32.mrb[203].mxu1 }
 0x2ea   : > { %v3329_v63 = vmax.f32 %v3201_v21, %v3209_v62  ;;  %v3211_v12 = vmax.f32 %v2362_v1, %v2955_v37 }
 0x2eb   : > { %v3558_v40 = vadd.f32 %v23234_v43, %v3328_v53  ;;  %v3560_v57 = vadd.f32 %v23238_v44, %v3328_v53  ;;  %v3330_v47 = vmax.f32 %v3202_v26, %v3210_v20  ;;  %8009 = vmatmul.mubr.bf16.gmra.mrb[52].mxu0 %v24247_v38 }
 0x2ec   : > { %11139 = vmatmul.mubr.bf16.gmra.mrb[52].mxu1 %v24247_v38  ;;  %v3559_v45 = vadd.f32 %v23243_v49, %v3329_v63  ;;  %v3561_v4 = vadd.f32 %v23247_v50, %v3329_v63  ;;  %v3331_v30 = vmax.f32 %v3203_v14, %v3211_v12  ;;  %8018 = vmatprep.mubr.bf16.mxu0 %v24330_v8 }
 0x2ed   : > { %11148 = vmatprep.mubr.bf16.mxu1 %v24330_v8  ;;  %v3562_v10 = vadd.f32 %v23234_v43, %v3330_v47  ;;  %v3564_v21 = vadd.f32 %v23238_v44, %v3330_v47  ;;  %v3782_v34 = vmax.f32 %v3558_v40, 0.0  ;;  %v3784_v56 = vmax.f32 %v3560_v57, 0.0  ;;  %v2366_v60 = vpop.f32.mrb[204].mxu0 }
 0x2ee   : > { %v3563_v26 = vadd.f32 %v23243_v49, %v3331_v30  ;;  %v3565_v62 = vadd.f32 %v23247_v50, %v3331_v30  ;;  %v2959_v55 = vpop.f32.mrb[204].mxu1  ;;  %v3783_v53 = vmax.f32 %v3559_v45, 0.0  ;;  %v2368_v12 = vpop.f32.mrb[205].mxu0  ;;  %v3785_v63 = vmax.f32 %v3561_v4, 0.0 }
 0x2ef   : > { %v3786_v20 = vmax.f32 %v3562_v10, 0.0  ;;  %v3788_v1 = vmax.f32 %v3564_v21, 0.0  ;;  %v3212_v14 = vmax.f32 %v2366_v60, %v2959_v55  ;;  %v2961_v37 = vpop.f32.mrb[205].mxu1  ;;  %v2370_v27 = vpop.f32.mrb[206].mxu0  ;;  %v29322_v4 = vmax.f32 %v24556_v36, %v24558_v0 }
 0x2f0   : > { %v3787_v8 = vmax.f32 %v3563_v26, 0.0  ;;  %v3789_v38 = vmax.f32 %v3565_v62, 0.0  ;;  %v3213_v39 = vmax.f32 %v2368_v12, %v2961_v37  ;;  %v2963_v47 = vpop.f32.mrb[206].mxu1  ;;  %v2372_v48 = vpop.f32.mrb[207].mxu0 }
 0x2f1   : > { %v24590_v40 = vpack.c.bf16 %v3786_v20, %v3782_v34  ;;  %v24592_v57 = vpack.c.bf16 %v3788_v1, %v3784_v56  ;;  %v3332_v11 = vmax.f32 %v3204_v28, %v3212_v14  ;;  %v3214_v30 = vmax.f32 %v2370_v27, %v2963_v47  ;;  %v2965_v15 = vpop.f32.mrb[207].mxu1 }
 0x2f2   : > { %v24594_v45 = vpack.c.bf16 %v3787_v8, %v3783_v53  ;;  %v24596_v10 = vpack.c.bf16 %v3789_v38, %v3785_v63  ;;  %v3333_v21 = vmax.f32 %v29322_v4, %v3213_v39  ;;  %v3215_v26 = vmax.f32 %v2372_v48, %v2965_v15 }
 0x2f3   : > { %29318 = vst [vmem:[#allocation92_spill] sm:$0xff] %v24590_v40  ;;  %29319 = vst [vmem:[#allocation93_spill] sm:$0xff] %v24592_v57  ;;  %v3566_v62 = vadd.f32 %v23234_v43, %v3332_v11  ;;  %v3568_v34 = vadd.f32 %v23238_v44, %v3332_v11  ;;  %v29323_v56 = vmax.f32 %v24562_v59, %v24564_v54  ;;  %8019 = vmatmul.mubr.bf16.gmra.mrb[56].mxu0 %v24320_v19 }
 0x2f4   : > { %29320 = vst [vmem:[#allocation94_spill] sm:$0xff] %v24594_v45  ;;  %29321 = vst [vmem:[#allocation95_spill] sm:$0xff] %v24596_v10  ;;  %11149 = vmatmul.mubr.bf16.gmra.mrb[56].mxu1 %v24320_v19  ;;  %v3567_v27 = vadd.f32 %v23243_v49, %v3333_v21  ;;  %v3569_v38 = vadd.f32 %v23247_v50, %v3333_v21  ;;  %v29324_v39 = vmax.f32 %v24568_v35, %v24570_v61 }
 0x2f5   : > { %v3334_v28 = vmax.f32 %v29323_v56, %v3214_v30  ;;  %8028 = vmatprep.mubr.bf16.mxu0 %v24365_v24  ;;  %11158 = vmatprep.mubr.bf16.mxu1 %v24365_v24  ;;  %v3790_v8 = vmax.f32 %v3566_v62, 0.0  ;;  %v3792_v36 = vmax.f32 %v3568_v34, 0.0  ;;  %v2376_v54 = vpop.f32.mrb[208].mxu0 }
 0x2f6   : > { %v3335_v15 = vmax.f32 %v29324_v39, %v3215_v26  ;;  %v2969_v60 = vpop.f32.mrb[208].mxu1  ;;  %v3791_v55 = vmax.f32 %v3567_v27, 0.0  ;;  %v2378_v20 = vpop.f32.mrb[209].mxu0  ;;  %v3793_v14 = vmax.f32 %v3569_v38, 0.0 }
 0x2f7   : > { %v3570_v11 = vadd.f32 %v23234_v43, %v3334_v28  ;;  %v3572_v48 = vadd.f32 %v23238_v44, %v3334_v28  ;;  %v3216_v61 = vmax.f32 %v2376_v54, %v2969_v60  ;;  %v2971_v1 = vpop.f32.mrb[209].mxu1  ;;  %v2380_v47 = vpop.f32.mrb[210].mxu0 }
 0x2f8   : > { %v3571_v0 = vadd.f32 %v23243_v49, %v3335_v15  ;;  %v3573_v59 = vadd.f32 %v23247_v50, %v3335_v15  ;;  %v3217_v63 = vmax.f32 %v2378_v20, %v2971_v1  ;;  %v2973_v30 = vpop.f32.mrb[210].mxu1  ;;  %v2382_v62 = vpop.f32.mrb[211].mxu0 }
 0x2f9   : > { %v3794_v53 = vmax.f32 %v3570_v11, 0.0  ;;  %v3796_v35 = vmax.f32 %v3572_v48, 0.0  ;;  %v3218_v26 = vmax.f32 %v2380_v47, %v2973_v30  ;;  %v2975_v34 = vpop.f32.mrb[211].mxu1 }
 0x2fa   : > { %v3795_v12 = vmax.f32 %v3571_v0, 0.0  ;;  %v3797_v37 = vmax.f32 %v3573_v59, 0.0  ;;  %v3219_v27 = vmax.f32 %v2382_v62, %v2975_v34 }
 0x2fb   : > { %v24619_v4 = vpack.c.bf16 %v3794_v53, %v3790_v8  ;;  %v24621_v21 = vpack.c.bf16 %v3796_v35, %v3792_v36  ;;  %8029 = vmatmul.mubr.bf16.gmra.mrb[60].mxu0 %v24361_v46 }
 0x2fc   : > { %v24623_v56 = vpack.c.bf16 %v3795_v12, %v3791_v55  ;;  %v24625_v28 = vpack.c.bf16 %v3797_v37, %v3793_v14  ;;  %11159 = vmatmul.mubr.bf16.gmra.mrb[60].mxu1 %v24361_v46  ;;  %8038 = vmatprep.mubr.bf16.mxu0 %v24438_v41 }
 0x2fd   : > { %29325 = vst [vmem:[#allocation96_spill] sm:$0xff] %v24619_v4  ;;  %29326 = vst [vmem:[#allocation97_spill] sm:$0xff] %v24621_v21  ;;  %11168 = vmatprep.mubr.bf16.mxu1 %v24438_v41  ;;  %v24631_v38 = vpop.f32.mrb[212].mxu0 }
 0x2fe   : > { %29327 = vst [vmem:[#allocation98_spill] sm:$0xff] %v24623_v56  ;;  %29328 = vst [vmem:[#allocation99_spill] sm:$0xff] %v24625_v28  ;;  %v2979_v39 = vpop.f32.mrb[212].mxu1  ;;  %v24634_v11 = vpop.f32.mrb[213].mxu0 }
 0x2ff   : > { %v3220_v15 = vmax.f32 %v24631_v38, %v2979_v39  ;;  %v24636_v48 = vpop.f32.mrb[213].mxu1  ;;  %v24640_v36 = vpop.f32.mrb[214].mxu0 }
 0x300   : > { %v24642_v0 = vpop.f32.mrb[214].mxu1  ;;  %v24646_v54 = vpop.f32.mrb[215].mxu0 }
 0x301   : > { %v24648_v60 = vpop.f32.mrb[215].mxu1 }
 0x303   : > { %8039 = vmatmul.mubr.bf16.gmra.mrb[64].mxu0 %v24431_v7 }
 0x304   : > { %11169 = vmatmul.mubr.bf16.gmra.mrb[64].mxu1 %v24431_v7  ;;  %8048 = vmatprep.mubr.bf16.mxu0 %v24467_v9 }
 0x305   : > { %11178 = vmatprep.mubr.bf16.mxu1 %v24467_v9  ;;  %v2396_v53 = vpop.f32.mrb[216].mxu0 }
 0x306   : > { %v2989_v35 = vpop.f32.mrb[216].mxu1  ;;  %v2398_v1 = vpop.f32.mrb[217].mxu0 }
 0x307   : > { %v3224_v20 = vmax.f32 %v2396_v53, %v2989_v35  ;;  %v2991_v14 = vpop.f32.mrb[217].mxu1  ;;  %v2400_v37 = vpop.f32.mrb[218].mxu0 }
 0x308   : > { %v3225_v12 = vmax.f32 %v2398_v1, %v2991_v14  ;;  %v2993_v47 = vpop.f32.mrb[218].mxu1  ;;  %v2402_v34 = vpop.f32.mrb[219].mxu0 }
 0x309   : > { %v3336_v30 = vmax.f32 %v3216_v61, %v3224_v20  ;;  %v3226_v62 = vmax.f32 %v2400_v37, %v2993_v47  ;;  %v2995_v38 = vpop.f32.mrb[219].mxu1 }
 0x30a   : > { %v3337_v39 = vmax.f32 %v3217_v63, %v3225_v12  ;;  %v3227_v55 = vmax.f32 %v2402_v34, %v2995_v38 }
 0x30b   : > { %v3574_v59 = vadd.f32 %v23234_v43, %v3336_v30  ;;  %v3576_v8 = vadd.f32 %v23238_v44, %v3336_v30  ;;  %v3338_v21 = vmax.f32 %v3218_v26, %v3226_v62  ;;  %8049 = vmatmul.mubr.bf16.gmra.mrb[68].mxu0 %v24463_v23 }
 0x30c   : > { %11179 = vmatmul.mubr.bf16.gmra.mrb[68].mxu1 %v24463_v23  ;;  %v3575_v53 = vadd.f32 %v23243_v49, %v3337_v39  ;;  %v3577_v35 = vadd.f32 %v23247_v50, %v3337_v39  ;;  %v3339_v1 = vmax.f32 %v3219_v27, %v3227_v55  ;;  %8058 = vmatprep.mubr.bf16.mxu0 %v24516_v17 }
 0x30d   : > { %11188 = vmatprep.mubr.bf16.mxu1 %v24516_v17  ;;  %v3578_v61 = vadd.f32 %v23234_v43, %v3338_v21  ;;  %v3580_v63 = vadd.f32 %v23238_v44, %v3338_v21  ;;  %v3798_v20 = vmax.f32 %v3574_v59, 0.0  ;;  %v3800_v14 = vmax.f32 %v3576_v8, 0.0  ;;  %v2406_v37 = vpop.f32.mrb[220].mxu0 }
 0x30e   : > { %v3579_v26 = vadd.f32 %v23243_v49, %v3339_v1  ;;  %v3581_v12 = vadd.f32 %v23247_v50, %v3339_v1  ;;  %v2999_v47 = vpop.f32.mrb[220].mxu1  ;;  %v3799_v30 = vmax.f32 %v3575_v53, 0.0  ;;  %v2408_v55 = vpop.f32.mrb[221].mxu0  ;;  %v3801_v39 = vmax.f32 %v3577_v35, 0.0 }
 0x30f   : > { %v3802_v62 = vmax.f32 %v3578_v61, 0.0  ;;  %v3804_v34 = vmax.f32 %v3580_v63, 0.0  ;;  %v3228_v27 = vmax.f32 %v2406_v37, %v2999_v47  ;;  %v3001_v38 = vpop.f32.mrb[221].mxu1  ;;  %v2410_v4 = vpop.f32.mrb[222].mxu0  ;;  %v29333_v35 = vmax.f32 %v24634_v11, %v24636_v48 }
 0x310   : > { %v3803_v28 = vmax.f32 %v3579_v26, 0.0  ;;  %v3805_v57 = vmax.f32 %v3581_v12, 0.0  ;;  %v3229_v10 = vmax.f32 %v2408_v55, %v3001_v38  ;;  %v3003_v21 = vpop.f32.mrb[222].mxu1  ;;  %v2412_v40 = vpop.f32.mrb[223].mxu0  ;;  %v21451_v55 = vld [vmem:[%s28883_s3 + $0x42c] ss:$16 sps:$4 sm:$0xff]  }
 0x311   : > { %v24668_v59 = vpack.c.bf16 %v3802_v62, %v3798_v20  ;;  %v24670_v8 = vpack.c.bf16 %v3804_v34, %v3800_v14  ;;  %v3340_v56 = vmax.f32 %v3220_v15, %v3228_v27  ;;  %v3230_v1 = vmax.f32 %v2410_v4, %v3003_v21  ;;  %v3005_v45 = vpop.f32.mrb[223].mxu1  ;;  %v21446_v38 = vld [vmem:[%s28883_s3 + $0x420] ss:$16 sps:$4 sm:$0xff]   ;;  %v21454_v21 = vld [vmem:[%s28883_s3 + $0x444] ss:$16 sps:$4 sm:$0xff]  }
 0x312   : > { %v24672_v53 = vpack.c.bf16 %v3803_v28, %v3799_v30  ;;  %v24674_v61 = vpack.c.bf16 %v3805_v57, %v3801_v39  ;;  %v3341_v63 = vmax.f32 %v29333_v35, %v3229_v10  ;;  %v3231_v26 = vmax.f32 %v2412_v40, %v3005_v45  ;;  %v21449_v39 = vld [vmem:[%s28883_s3 + $0x428] ss:$16 sps:$4 sm:$0xff]   ;;  %v21452_v35 = vld [vmem:[%s28883_s3 + $0x440] ss:$16 sps:$4 sm:$0xff]  }
 0x313   : > { %29329 = vst [vmem:[#allocation100_spill] sm:$0xff] %v24668_v59  ;;  %29330 = vst [vmem:[#allocation101_spill] sm:$0xff] %v24670_v8  ;;  %v3582_v12 = vadd.f32 %v23234_v43, %v3340_v56  ;;  %v3584_v20 = vadd.f32 %v23238_v44, %v3340_v56  ;;  %v29334_v14 = vmax.f32 %v24640_v36, %v24642_v0  ;;  %8059 = vmatmul.mubr.bf16.gmra.mrb[72].mxu0 %v24512_v42  ;;  %v29373_v8 = vld [vmem:[#allocation83_spill] sm:$0xff]  ;;  %v21544_v59 = vld [vmem:[%s28883_s3 + $0x624] ss:$16 sps:$4 sm:$0xff]  }
 0x314   : > { %29331 = vst [vmem:[#allocation102_spill] sm:$0xff] %v24672_v53  ;;  %29332 = vst [vmem:[#allocation103_spill] sm:$0xff] %v24674_v61  ;;  %11189 = vmatmul.mubr.bf16.gmra.mrb[72].mxu1 %v24512_v42  ;;  %v3583_v57 = vadd.f32 %v23243_v49, %v3341_v63  ;;  %v3585_v4 = vadd.f32 %v23247_v50, %v3341_v63  ;;  %v29335_v10 = vmax.f32 %v24646_v54, %v24648_v60  ;;  %v21455_v63 = vld [vmem:[%s28883_s3 + $0x448] ss:$16 sps:$4 sm:$0xff]   ;;  %v21547_v53 = vld [vmem:[%s28883_s3 + $0x62c] ss:$16 sps:$4 sm:$0xff]  }
 0x315   : > { %v3342_v15 = vmax.f32 %v29334_v14, %v3230_v1  ;;  %8068 = vmatprep.mubr.bf16.mxu0 %v24545_v5  ;;  %11198 = vmatprep.mubr.bf16.mxu1 %v24545_v5  ;;  %v3806_v48 = vmax.f32 %v3582_v12, 0.0  ;;  %v3808_v36 = vmax.f32 %v3584_v20, 0.0  ;;  %v21457_v1 = vld [vmem:[%s28883_s3 + $0x44c] ss:$16 sps:$4 sm:$0xff]   ;;  %v21458_v20 = vld [vmem:[%s28883_s3 + $0x460] ss:$16 sps:$4 sm:$0xff]  }
 0x316   : > { %v3343_v40 = vmax.f32 %v29335_v10, %v3231_v26  ;;  %v3807_v47 = vmax.f32 %v3583_v57, 0.0  ;;  %v3809_v30 = vmax.f32 %v3585_v4, 0.0  ;;  %v21460_v26 = vld [vmem:[%s28883_s3 + $0x464] ss:$16 sps:$4 sm:$0xff]   ;;  %v21463_v12 = vld [vmem:[%s28883_s3 + $0x46c] ss:$16 sps:$4 sm:$0xff]  }
 0x317   : > { %v3586_v45 = vadd.f32 %v23234_v43, %v3342_v15  ;;  %v3588_v56 = vadd.f32 %v23238_v44, %v3342_v15  ;;  %v21440_v44 = vld [vmem:[%s28883_s3 + $0x400] ss:$16 sps:$4 sm:$0xff]   ;;  %v21461_v14 = vld [vmem:[%s28883_s3 + $0x468] ss:$16 sps:$4 sm:$0xff]   ;;  %v21466_v15 = vld [vmem:[%s28883_s3 + $0x484] ss:$16 sps:$4 sm:$0xff]  }
 0x318   : > { %v3587_v28 = vadd.f32 %v23243_v49, %v3343_v40  ;;  %v3589_v11 = vadd.f32 %v23247_v50, %v3343_v40  ;;  %v21443_v49 = vld [vmem:[%s28883_s3 + $0x408] ss:$16 sps:$4 sm:$0xff]   ;;  %v21448_v50 = vld [vmem:[%s28883_s3 + $0x424] ss:$16 sps:$4 sm:$0xff]   ;;  %v21469_v57 = vld [vmem:[%s28883_s3 + $0x48c] ss:$16 sps:$4 sm:$0xff]  }
 0x319   : > { %v3810_v0 = vmax.f32 %v3586_v45, 0.0  ;;  %v3812_v37 = vmax.f32 %v3588_v56, 0.0  ;;  %v21464_v4 = vld [vmem:[%s28883_s3 + $0x480] ss:$16 sps:$4 sm:$0xff]   ;;  %v21467_v10 = vld [vmem:[%s28883_s3 + $0x488] ss:$16 sps:$4 sm:$0xff]  }
 0x31a   : > { %v3811_v54 = vmax.f32 %v3587_v28, 0.0  ;;  %v3813_v60 = vmax.f32 %v3589_v11, 0.0  ;;  %v21472_v40 = vld [vmem:[%s28883_s3 + $0x4a4] ss:$16 sps:$4 sm:$0xff]   ;;  %v21475_v45 = vld [vmem:[%s28883_s3 + $0x4ac] ss:$16 sps:$4 sm:$0xff]  }
 0x31b   : > { %v24697_v62 = vpack.c.bf16 %v3810_v0, %v3806_v48  ;;  %v24699_v34 = vpack.c.bf16 %v3812_v37, %v3808_v36  ;;  %8069 = vmatmul.mubr.bf16.gmra.mrb[76].mxu0 %v24541_v31  ;;  %v21470_v56 = vld [vmem:[%s28883_s3 + $0x4a0] ss:$16 sps:$4 sm:$0xff]   ;;  %v21473_v28 = vld [vmem:[%s28883_s3 + $0x4a8] ss:$16 sps:$4 sm:$0xff]   ;;  %v21478_v11 = vld [vmem:[%s28883_s3 + $0x4c4] ss:$16 sps:$4 sm:$0xff]  }
 0x31c   : > { %v24701_v27 = vpack.c.bf16 %v3811_v54, %v3807_v47  ;;  %v24703_v43 = vpack.c.bf16 %v3813_v60, %v3809_v30  ;;  %11199 = vmatmul.mubr.bf16.gmra.mrb[76].mxu1 %v24541_v31  ;;  %8111 = vmatprep.mubr.bf16.mxu0 %v29256_v2  ;;  %v21481_v48 = vld [vmem:[%s28883_s3 + $0x4cc] ss:$16 sps:$4 sm:$0xff]   ;;  %v21476_v36 = vld [vmem:[%s28883_s3 + $0x4c0] ss:$16 sps:$4 sm:$0xff]   ;;  %v21479_v0 = vld [vmem:[%s28883_s3 + $0x4c8] ss:$16 sps:$4 sm:$0xff]  }
 0x31d   : > { %29336 = vst [vmem:[#allocation104_spill] sm:$0xff] %v24697_v62  ;;  %29337 = vst [vmem:[#allocation105_spill] sm:$0xff] %v24699_v34  ;;  %11241 = vmatprep.mubr.bf16.mxu1 %v29256_v2  ;;  %v21484_v37 = vld [vmem:[%s28883_s3 + $0x4e4] ss:$16 sps:$4 sm:$0xff]   ;;  %v21487_v47 = vld [vmem:[%s28883_s3 + $0x4ec] ss:$16 sps:$4 sm:$0xff]  }
 0x31e   : > { %29338 = vst [vmem:[#allocation106_spill] sm:$0xff] %v24701_v27  ;;  %29339 = vst [vmem:[#allocation107_spill] sm:$0xff] %v24703_v43  ;;  %v29340_v30 = vld [vmem:[#allocation8_spill] sm:$0xff]  ;;  %v21485_v60 = vld [vmem:[%s28883_s3 + $0x4e8] ss:$16 sps:$4 sm:$0xff]  }
 0x31f   : > { %v21482_v54 = vld [vmem:[%s28883_s3 + $0x4e0] ss:$16 sps:$4 sm:$0xff]   ;;  %v29374_v61 = vld [vmem:[#allocation81_spill] sm:$0xff] }
 0x320   : > { %v29371_v34 = vld [vmem:[#allocation66_spill] sm:$0xff]  ;;  %v21539_v27 = vld [vmem:[%s28883_s3 + $0x608] ss:$16 sps:$4 sm:$0xff]  }
 0x321   : > { %v29372_v43 = vld [vmem:[#allocation78_spill] sm:$0xff] }
 0x322   : > { %v21536_v62 = vld [vmem:[%s28883_s3 + $0x600] ss:$16 sps:$4 sm:$0xff]  }
 0x323   : > { %8112 = vmatmul.mubr.bf16.vlgmr.msra.gmra.mrb[224].mxu0 %v29256_v2 }
 0x324   : > { %11242 = vmatmul.mubr.bf16.vlgmr.msra.gmra.mrb[224].mxu1 %v29256_v2  ;;  %8393 = vmatpush1.bf16.msra.mxu0 %v21440_v44  ;;  %v21490_v44 = vld [vmem:[%s28883_s3 + $0x504] ss:$16 sps:$4 sm:$0xff]  }
 0x325   : > { %11523 = vmatpush1.bf16.msra.mxu1 %v21443_v49  ;;  %8121 = vmatprep.mubr.bf16.mxu0 %v29256_v2  ;;  %v21493_v49 = vld [vmem:[%s28883_s3 + $0x50c] ss:$16 sps:$4 sm:$0xff]  }
 0x326   : > { %11251 = vmatprep.mubr.bf16.mxu1 %v29256_v2  ;;  %8394 = vmatprep.subr.bf16.mxu0 %v21448_v50  ;;  %v21488_v50 = vld [vmem:[%s28883_s3 + $0x500] ss:$16 sps:$4 sm:$0xff]  }
 0x327   : > { %11524 = vmatprep.subr.bf16.mxu1 %v21451_v55  ;;  %v21491_v55 = vld [vmem:[%s28883_s3 + $0x508] ss:$16 sps:$4 sm:$0xff]  }
 0x328   : > { %8395 = vmatpush1.bf16.msra.mxu0 %v21446_v38  ;;  %v21496_v38 = vld [vmem:[%s28883_s3 + $0x524] ss:$16 sps:$4 sm:$0xff]  }
 0x329   : > { %11525 = vmatpush1.bf16.msra.mxu1 %v21449_v39  ;;  %8396 = vmatprep.subr.bf16.mxu0 %v21454_v21  ;;  %v21499_v39 = vld [vmem:[%s28883_s3 + $0x52c] ss:$16 sps:$4 sm:$0xff]   ;;  %v29341_v21 = vld [vmem:[#allocation6_spill] sm:$0xff] }
 0x32a   : > { %11526 = vmatprep.subr.bf16.mxu1 %v21457_v1  ;;  %v29342_v1 = vld [vmem:[#allocation11_spill] sm:$0xff] }
 0x32b   : > { %8122 = vmatmul.mubr.bf16.gmra.mrb[228].mxu0 %v29256_v2 }
 0x32c   : > { %11252 = vmatmul.mubr.bf16.gmra.mrb[228].mxu1 %v29256_v2  ;;  %8131 = vmatprep.mubr.bf16.mxu0 %v29256_v2 }
 0x32d   : > { %11261 = vmatprep.mubr.bf16.mxu1 %v29256_v2  ;;  %8397 = vmatpush1.bf16.msra.mxu0 %v21452_v35  ;;  %v21494_v35 = vld [vmem:[%s28883_s3 + $0x520] ss:$16 sps:$4 sm:$0xff]  }
 0x32e   : > { %11527 = vmatpush1.bf16.msra.mxu1 %v21455_v63  ;;  %8398 = vmatprep.subr.bf16.mxu0 %v21460_v26  ;;  %v21497_v63 = vld [vmem:[%s28883_s3 + $0x528] ss:$16 sps:$4 sm:$0xff]   ;;  %v21502_v26 = vld [vmem:[%s28883_s3 + $0x544] ss:$16 sps:$4 sm:$0xff]  }
 0x32f   : > { %11528 = vmatprep.subr.bf16.mxu1 %v21463_v12  ;;  %v21505_v12 = vld [vmem:[%s28883_s3 + $0x54c] ss:$16 sps:$4 sm:$0xff]  }
 0x331   : > { %8399 = vmatpush1.bf16.msra.mxu0 %v21458_v20  ;;  %v21500_v20 = vld [vmem:[%s28883_s3 + $0x540] ss:$16 sps:$4 sm:$0xff]  }
 0x332   : > { %11529 = vmatpush1.bf16.msra.mxu1 %v21461_v14  ;;  %8400 = vmatprep.subr.bf16.mxu0 %v21466_v15  ;;  %v21503_v14 = vld [vmem:[%s28883_s3 + $0x548] ss:$16 sps:$4 sm:$0xff]   ;;  %v21508_v15 = vld [vmem:[%s28883_s3 + $0x564] ss:$16 sps:$4 sm:$0xff]  }
 0x333   : > { %11530 = vmatprep.subr.bf16.mxu1 %v21469_v57  ;;  %8132 = vmatmul.mubr.bf16.gmra.mrb[232].mxu0 %v29256_v2  ;;  %v21511_v57 = vld [vmem:[%s28883_s3 + $0x56c] ss:$16 sps:$4 sm:$0xff]  }
 0x334   : > { %11262 = vmatmul.mubr.bf16.gmra.mrb[232].mxu1 %v29256_v2  ;;  %8141 = vmatprep.mubr.bf16.mxu0 %v29256_v2 }
 0x335   : > { %11271 = vmatprep.mubr.bf16.mxu1 %v29256_v2  ;;  %8401 = vmatpush1.bf16.msra.mxu0 %v21464_v4  ;;  %v29343_v4 = vld [vmem:[#allocation12_spill] sm:$0xff] }
 0x336   : > { %11531 = vmatpush1.bf16.msra.mxu1 %v21467_v10  ;;  %8402 = vmatprep.subr.bf16.mxu0 %v21472_v40  ;;  %v29344_v10 = vld [vmem:[#allocation16_spill] sm:$0xff] }
 0x337   : > { %11532 = vmatprep.subr.bf16.mxu1 %v21475_v45  ;;  %v21506_v40 = vld [vmem:[%s28883_s3 + $0x560] ss:$16 sps:$4 sm:$0xff]   ;;  %v21509_v45 = vld [vmem:[%s28883_s3 + $0x568] ss:$16 sps:$4 sm:$0xff]  }
 0x339   : > { %8403 = vmatpush1.bf16.msra.mxu0 %v21470_v56  ;;  %v21514_v56 = vld [vmem:[%s28883_s3 + $0x584] ss:$16 sps:$4 sm:$0xff]  }
 0x33a   : > { %11533 = vmatpush1.bf16.msra.mxu1 %v21473_v28  ;;  %8404 = vmatprep.subr.bf16.mxu0 %v21478_v11  ;;  %v21517_v28 = vld [vmem:[%s28883_s3 + $0x58c] ss:$16 sps:$4 sm:$0xff]   ;;  %v21512_v11 = vld [vmem:[%s28883_s3 + $0x580] ss:$16 sps:$4 sm:$0xff]  }
 0x33b   : > { %11534 = vmatprep.subr.bf16.mxu1 %v21481_v48  ;;  %8142 = vmatmul.mubr.bf16.gmra.mrb[236].mxu0 %v29256_v2  ;;  %v21515_v48 = vld [vmem:[%s28883_s3 + $0x588] ss:$16 sps:$4 sm:$0xff]  }
 0x33c   : > { %11272 = vmatmul.mubr.bf16.gmra.mrb[236].mxu1 %v29256_v2  ;;  %8151 = vmatprep.mubr.bf16.mxu0 %v29340_v30 }
 0x33d   : > { %11281 = vmatprep.mubr.bf16.mxu1 %v29340_v30  ;;  %8405 = vmatpush1.bf16.msra.mxu0 %v21476_v36  ;;  %v29345_v36 = vld [vmem:[#allocation14_spill] sm:$0xff] }
 0x33e   : > { %11535 = vmatpush1.bf16.msra.mxu1 %v21479_v0  ;;  %8406 = vmatprep.subr.bf16.mxu0 %v21484_v37  ;;  %v29346_v0 = vld [vmem:[#allocation20_spill] sm:$0xff] }
 0x33f   : > { %11536 = vmatprep.subr.bf16.mxu1 %v21487_v47  ;;  %v21520_v37 = vld [vmem:[%s28883_s3 + $0x5a4] ss:$16 sps:$4 sm:$0xff]   ;;  %v21518_v47 = vld [vmem:[%s28883_s3 + $0x5a0] ss:$16 sps:$4 sm:$0xff]  }
 0x341   : > { %8407 = vmatpush1.bf16.msra.mxu0 %v21482_v54  ;;  %v21521_v54 = vld [vmem:[%s28883_s3 + $0x5a8] ss:$16 sps:$4 sm:$0xff]  }
 0x342   : > { %11537 = vmatpush1.bf16.msra.mxu1 %v21485_v60  ;;  %8408 = vmatprep.subr.bf16.mxu0 %v21490_v44  ;;  %v21523_v60 = vld [vmem:[%s28883_s3 + $0x5ac] ss:$16 sps:$4 sm:$0xff]   ;;  %v29347_v44 = vld [vmem:[#allocation18_spill] sm:$0xff] }
 0x343   : > { %11538 = vmatprep.subr.bf16.mxu1 %v21493_v49  ;;  %8152 = vmatmul.mubr.bf16.gmra.mrb[240].mxu0 %v29341_v21  ;;  %v29348_v49 = vld [vmem:[#allocation24_spill] sm:$0xff] }
 0x344   : > { %11282 = vmatmul.mubr.bf16.gmra.mrb[240].mxu1 %v29341_v21  ;;  %8161 = vmatprep.mubr.bf16.mxu0 %v29342_v1 }
 0x345   : > { %11291 = vmatprep.mubr.bf16.mxu1 %v29342_v1  ;;  %8409 = vmatpush1.bf16.msra.mxu0 %v21488_v50  ;;  %v29349_v50 = vld [vmem:[#allocation22_spill] sm:$0xff] }
 0x346   : > { %11539 = vmatpush1.bf16.msra.mxu1 %v21491_v55  ;;  %8410 = vmatprep.subr.bf16.mxu0 %v21496_v38  ;;  %v29350_v55 = vld [vmem:[#allocation28_spill] sm:$0xff] }
 0x347   : > { %11540 = vmatprep.subr.bf16.mxu1 %v21499_v39  ;;  %v21524_v38 = vld [vmem:[%s28883_s3 + $0x5c0] ss:$16 sps:$4 sm:$0xff]   ;;  %v21526_v39 = vld [vmem:[%s28883_s3 + $0x5c4] ss:$16 sps:$4 sm:$0xff]  }
 0x349   : > { %8411 = vmatpush1.bf16.msra.mxu0 %v21494_v35  ;;  %v21527_v35 = vld [vmem:[%s28883_s3 + $0x5c8] ss:$16 sps:$4 sm:$0xff]  }
 0x34a   : > { %11541 = vmatpush1.bf16.msra.mxu1 %v21497_v63  ;;  %8412 = vmatprep.subr.bf16.mxu0 %v21502_v26  ;;  %v21529_v63 = vld [vmem:[%s28883_s3 + $0x5cc] ss:$16 sps:$4 sm:$0xff]   ;;  %v29351_v26 = vld [vmem:[#allocation26_spill] sm:$0xff] }
 0x34b   : > { %11542 = vmatprep.subr.bf16.mxu1 %v21505_v12  ;;  %8162 = vmatmul.mubr.bf16.gmra.mrb[244].mxu0 %v29343_v4  ;;  %v29352_v12 = vld [vmem:[#allocation32_spill] sm:$0xff] }
 0x34c   : > { %11292 = vmatmul.mubr.bf16.gmra.mrb[244].mxu1 %v29343_v4  ;;  %8171 = vmatprep.mubr.bf16.mxu0 %v29344_v10 }
 0x34d   : > { %11301 = vmatprep.mubr.bf16.mxu1 %v29344_v10  ;;  %8413 = vmatpush1.bf16.msra.mxu0 %v21500_v20  ;;  %v29353_v20 = vld [vmem:[#allocation30_spill] sm:$0xff] }
 0x34e   : > { %11543 = vmatpush1.bf16.msra.mxu1 %v21503_v14  ;;  %8414 = vmatprep.subr.bf16.mxu0 %v21508_v15  ;;  %v29354_v14 = vld [vmem:[#allocation36_spill] sm:$0xff] }
 0x34f   : > { %11544 = vmatprep.subr.bf16.mxu1 %v21511_v57  ;;  %v21530_v15 = vld [vmem:[%s28883_s3 + $0x5e0] ss:$16 sps:$4 sm:$0xff]   ;;  %v21532_v57 = vld [vmem:[%s28883_s3 + $0x5e4] ss:$16 sps:$4 sm:$0xff]  }
 0x351   : > { %8415 = vmatpush1.bf16.msra.mxu0 %v21506_v40  ;;  %v21533_v40 = vld [vmem:[%s28883_s3 + $0x5e8] ss:$16 sps:$4 sm:$0xff]  }
 0x352   : > { %11545 = vmatpush1.bf16.msra.mxu1 %v21509_v45  ;;  %8416 = vmatprep.subr.bf16.mxu0 %v21514_v56  ;;  %v21535_v45 = vld [vmem:[%s28883_s3 + $0x5ec] ss:$16 sps:$4 sm:$0xff]   ;;  %v29355_v56 = vld [vmem:[#allocation34_spill] sm:$0xff] }
 0x353   : > { %11546 = vmatprep.subr.bf16.mxu1 %v21517_v28  ;;  %8172 = vmatmul.mubr.bf16.gmra.mrb[248].mxu0 %v29345_v36  ;;  %v29356_v28 = vld [vmem:[#allocation40_spill] sm:$0xff] }
 0x354   : > { %11302 = vmatmul.mubr.bf16.gmra.mrb[248].mxu1 %v29345_v36  ;;  %8181 = vmatprep.mubr.bf16.mxu0 %v29346_v0 }
 0x355   : > { %11311 = vmatprep.mubr.bf16.mxu1 %v29346_v0  ;;  %8417 = vmatpush1.bf16.msra.mxu0 %v21512_v11  ;;  %v29357_v11 = vld [vmem:[#allocation38_spill] sm:$0xff] }
 0x356   : > { %11547 = vmatpush1.bf16.msra.mxu1 %v21515_v48  ;;  %8418 = vmatprep.subr.bf16.mxu0 %v21520_v37  ;;  %v21538_v48 = vld [vmem:[%s28883_s3 + $0x604] ss:$16 sps:$4 sm:$0xff]  }
 0x357   : > { %11548 = vmatprep.subr.bf16.mxu1 %v21523_v60  ;;  %v29358_v37 = vld [vmem:[#allocation44_spill] sm:$0xff] }
 0x358   : > { %v29360_v60 = vld [vmem:[#allocation48_spill] sm:$0xff] }
 0x359   : > { %8419 = vmatpush1.bf16.msra.mxu0 %v21518_v47  ;;  %v21541_v47 = vld [vmem:[%s28883_s3 + $0x60c] ss:$16 sps:$4 sm:$0xff]  }
 0x35a   : > { %11549 = vmatpush1.bf16.msra.mxu1 %v21521_v54  ;;  %8420 = vmatprep.subr.bf16.mxu0 %v21526_v39  ;;  %v29359_v54 = vld [vmem:[#allocation42_spill] sm:$0xff]  ;;  %v29362_v39 = vld [vmem:[#allocation52_spill] sm:$0xff] }
 0x35b   : > { %8182 = vmatmul.mubr.bf16.gmra.mrb[252].mxu0 %v29347_v44  ;;  %11550 = vmatprep.subr.bf16.mxu1 %v21529_v63  ;;  %v29364_v63 = vld [vmem:[#allocation56_spill] sm:$0xff] }
 0x35c   : > { %11312 = vmatmul.mubr.bf16.gmra.mrb[252].mxu1 %v29347_v44  ;;  %8191 = vmatprep.mubr.bf16.mxu0 %v29348_v49 }
 0x35d   : > { %11321 = vmatprep.mubr.bf16.mxu1 %v29348_v49  ;;  %8421 = vmatpush1.bf16.msra.mxu0 %v21524_v38  ;;  %v29361_v38 = vld [vmem:[#allocation46_spill] sm:$0xff] }
 0x35e   : > { %11551 = vmatpush1.bf16.msra.mxu1 %v21527_v35  ;;  %8422 = vmatprep.subr.bf16.mxu0 %v21532_v57  ;;  %v29363_v35 = vld [vmem:[#allocation50_spill] sm:$0xff]  ;;  %v29366_v57 = vld [vmem:[#allocation60_spill] sm:$0xff] }
 0x35f   : > { %11552 = vmatprep.subr.bf16.mxu1 %v21535_v45  ;;  %v29368_v45 = vld [vmem:[#allocation64_spill] sm:$0xff] }
 0x361   : > { %8423 = vmatpush1.bf16.msra.mxu0 %v21530_v15  ;;  %v29365_v15 = vld [vmem:[#allocation54_spill] sm:$0xff] }
 0x362   : > { %11553 = vmatpush1.bf16.msra.mxu1 %v21533_v40  ;;  %8705 = vmatprep.subr.bf16.mxu0 %v21538_v48  ;;  %v29367_v40 = vld [vmem:[#allocation58_spill] sm:$0xff] }
 0x363   : > { %8192 = vmatmul.mubr.bf16.gmra.mrb[0].mxu0 %v29349_v50  ;;  %11835 = vmatprep.subr.bf16.mxu1 %v21541_v47  ;;  %v29369_v48 = vld [vmem:[#allocation62_spill] sm:$0xff]  ;;  %v29370_v47 = vld [vmem:[#allocation68_spill] sm:$0xff] }
 0x364   : > { %11322 = vmatmul.mubr.bf16.gmra.mrb[0].mxu1 %v29349_v50  ;;  %8201 = vmatprep.mubr.bf16.mxu0 %v29350_v55 }
 0x365   : > { %11331 = vmatprep.mubr.bf16.mxu1 %v29350_v55 }
 0x36b   : > { %8202 = vmatmul.mubr.bf16.gmra.mrb[4].mxu0 %v29351_v26 }
 0x36c   : > { %11332 = vmatmul.mubr.bf16.gmra.mrb[4].mxu1 %v29351_v26  ;;  %8211 = vmatprep.mubr.bf16.mxu0 %v29352_v12 }
 0x36d   : > { %11341 = vmatprep.mubr.bf16.mxu1 %v29352_v12 }
 0x373   : > { %8212 = vmatmul.mubr.bf16.gmra.mrb[8].mxu0 %v29353_v20 }
 0x374   : > { %11342 = vmatmul.mubr.bf16.gmra.mrb[8].mxu1 %v29353_v20  ;;  %8221 = vmatprep.mubr.bf16.mxu0 %v29354_v14 }
 0x375   : > { %11351 = vmatprep.mubr.bf16.mxu1 %v29354_v14 }
 0x37b   : > { %8222 = vmatmul.mubr.bf16.gmra.mrb[12].mxu0 %v29355_v56 }
 0x37c   : > { %11352 = vmatmul.mubr.bf16.gmra.mrb[12].mxu1 %v29355_v56  ;;  %8231 = vmatprep.mubr.bf16.mxu0 %v29356_v28 }
 0x37d   : > { %11361 = vmatprep.mubr.bf16.mxu1 %v29356_v28 }
 0x383   : > { %8232 = vmatmul.mubr.bf16.gmra.mrb[16].mxu0 %v29357_v11 }
 0x384   : > { %11362 = vmatmul.mubr.bf16.gmra.mrb[16].mxu1 %v29357_v11  ;;  %8241 = vmatprep.mubr.bf16.mxu0 %v29358_v37 }
 0x385   : > { %11371 = vmatprep.mubr.bf16.mxu1 %v29358_v37 }
 0x38b   : > { %8242 = vmatmul.mubr.bf16.gmra.mrb[20].mxu0 %v29359_v54 }
 0x38c   : > { %11372 = vmatmul.mubr.bf16.gmra.mrb[20].mxu1 %v29359_v54  ;;  %8251 = vmatprep.mubr.bf16.mxu0 %v29360_v60 }
 0x38d   : > { %11381 = vmatprep.mubr.bf16.mxu1 %v29360_v60 }
 0x393   : > { %8252 = vmatmul.mubr.bf16.gmra.mrb[24].mxu0 %v29361_v38 }
 0x394   : > { %11382 = vmatmul.mubr.bf16.gmra.mrb[24].mxu1 %v29361_v38  ;;  %8261 = vmatprep.mubr.bf16.mxu0 %v29362_v39 }
 0x395   : > { %11391 = vmatprep.mubr.bf16.mxu1 %v29362_v39 }
 0x39b   : > { %8262 = vmatmul.mubr.bf16.gmra.mrb[28].mxu0 %v29363_v35 }
 0x39c   : > { %11392 = vmatmul.mubr.bf16.gmra.mrb[28].mxu1 %v29363_v35  ;;  %8271 = vmatprep.mubr.bf16.mxu0 %v29364_v63 }
 0x39d   : > { %11401 = vmatprep.mubr.bf16.mxu1 %v29364_v63 }
 0x3a3   : > { %8272 = vmatmul.mubr.bf16.gmra.mrb[32].mxu0 %v29365_v15 }
 0x3a4   : > { %11402 = vmatmul.mubr.bf16.gmra.mrb[32].mxu1 %v29365_v15  ;;  %8281 = vmatprep.mubr.bf16.mxu0 %v29366_v57 }
 0x3a5   : > { %11411 = vmatprep.mubr.bf16.mxu1 %v29366_v57 }
 0x3ab   : > { %8282 = vmatmul.mubr.bf16.gmra.mrb[36].mxu0 %v29367_v40 }
 0x3ac   : > { %11412 = vmatmul.mubr.bf16.gmra.mrb[36].mxu1 %v29367_v40  ;;  %8291 = vmatprep.mubr.bf16.mxu0 %v29368_v45 }
 0x3ad   : > { %11421 = vmatprep.mubr.bf16.mxu1 %v29368_v45 }
 0x3b3   : > { %8292 = vmatmul.mubr.bf16.gmra.mrb[40].mxu0 %v29369_v48 }
 0x3b4   : > { %11422 = vmatmul.mubr.bf16.gmra.mrb[40].mxu1 %v29369_v48  ;;  %8301 = vmatprep.mubr.bf16.mxu0 %v29370_v47 }
 0x3b5   : > { %11431 = vmatprep.mubr.bf16.mxu1 %v29370_v47 }
 0x3bb   : > { %8302 = vmatmul.mubr.bf16.gmra.mrb[44].mxu0 %v29371_v34 }
 0x3bc   : > { %11432 = vmatmul.mubr.bf16.gmra.mrb[44].mxu1 %v29371_v34  ;;  %8311 = vmatprep.mubr.bf16.mxu0 %v24212_v29 }
 0x3bd   : > { %11441 = vmatprep.mubr.bf16.mxu1 %v24212_v29 }
 0x3c3   : > { %8312 = vmatmul.mubr.bf16.gmra.mrb[48].mxu0 %v24205_v58 }
 0x3c4   : > { %11442 = vmatmul.mubr.bf16.gmra.mrb[48].mxu1 %v24205_v58  ;;  %8321 = vmatprep.mubr.bf16.mxu0 %v24253_v22 }
 0x3c5   : > { %11451 = vmatprep.mubr.bf16.mxu1 %v24253_v22 }
 0x3cb   : > { %8322 = vmatmul.mubr.bf16.gmra.mrb[52].mxu0 %v24249_v25 }
 0x3cc   : > { %11452 = vmatmul.mubr.bf16.gmra.mrb[52].mxu1 %v24249_v25  ;;  %8331 = vmatprep.mubr.bf16.mxu0 %v24332_v32 }
 0x3cd   : > { %11461 = vmatprep.mubr.bf16.mxu1 %v24332_v32 }
 0x3d3   : > { %8332 = vmatmul.mubr.bf16.gmra.mrb[56].mxu0 %v24322_v51 }
 0x3d4   : > { %11462 = vmatmul.mubr.bf16.gmra.mrb[56].mxu1 %v24322_v51  ;;  %8341 = vmatprep.mubr.bf16.mxu0 %v24367_v18 }
 0x3d5   : > { %11471 = vmatprep.mubr.bf16.mxu1 %v24367_v18 }
 0x3db   : > { %8342 = vmatmul.mubr.bf16.gmra.mrb[60].mxu0 %v24363_v52 }
 0x3dc   : > { %11472 = vmatmul.mubr.bf16.gmra.mrb[60].mxu1 %v24363_v52  ;;  %8351 = vmatprep.mubr.bf16.mxu0 %v24440_v3 }
 0x3dd   : > { %11481 = vmatprep.mubr.bf16.mxu1 %v24440_v3 }
 0x3e3   : > { %8352 = vmatmul.mubr.bf16.gmra.mrb[64].mxu0 %v29372_v43 }
 0x3e4   : > { %11482 = vmatmul.mubr.bf16.gmra.mrb[64].mxu1 %v29372_v43  ;;  %8361 = vmatprep.mubr.bf16.mxu0 %v29373_v8 }
 0x3e5   : > { %11491 = vmatprep.mubr.bf16.mxu1 %v29373_v8 }
 0x3eb   : > { %8362 = vmatmul.mubr.bf16.gmra.mrb[68].mxu0 %v29374_v61 }
 0x3ec   : > { %11492 = vmatmul.mubr.bf16.gmra.mrb[68].mxu1 %v29374_v61  ;;  %8371 = vmatprep.mubr.bf16.mxu0 %v24518_v6  ;;  %v21556_v61 = vld [vmem:[%s28883_s3 + $0x664] ss:$16 sps:$4 sm:$0xff]  }
 0x3ed   : > { %11501 = vmatprep.mubr.bf16.mxu1 %v24518_v6  ;;  %v21551_v6 = vld [vmem:[%s28883_s3 + $0x648] ss:$16 sps:$4 sm:$0xff]  }
 0x3f3   : > { %8372 = vmatmul.mubr.bf16.gmra.mrb[72].mxu0 %v24514_v33 }
 0x3f4   : > { %11502 = vmatmul.mubr.bf16.gmra.mrb[72].mxu1 %v24514_v33  ;;  %8381 = vmatprep.mubr.bf16.mxu0 %v24547_v16  ;;  %v21550_v33 = vld [vmem:[%s28883_s3 + $0x644] ss:$16 sps:$4 sm:$0xff]  }
 0x3f5   : > { %11511 = vmatprep.mubr.bf16.mxu1 %v24547_v16  ;;  %v21545_v16 = vld [vmem:[%s28883_s3 + $0x628] ss:$16 sps:$4 sm:$0xff]  }
 0x3fb   : > { %8382 = vmatmul.mubr.bf16.gmra.mrb[76].mxu0 %v24543_v13 }
 0x3fc   : > { %11512 = vmatmul.mubr.bf16.gmra.mrb[76].mxu1 %v24543_v13  ;;  %8424 = vmatprep.mubr.bf16.mxu0 %v29256_v2  ;;  %v21542_v13 = vld [vmem:[%s28883_s3 + $0x620] ss:$16 sps:$4 sm:$0xff]  }
 0x3fd   : > { %11554 = vmatprep.mubr.bf16.mxu1 %v29256_v2 }
 0x403   : > { %8425 = vmatmul.mubr.bf16.vlgmr.msra.gmra.mrb[224].mxu0 %v29256_v2 }
 0x404   : > { %11555 = vmatmul.mubr.bf16.vlgmr.msra.gmra.mrb[224].mxu1 %v29256_v2  ;;  %8706 = vmatpush1.bf16.msra.mxu0 %v21536_v62  ;;  %v21553_v62 = vld [vmem:[%s28883_s3 + $0x64c] ss:$16 sps:$4 sm:$0xff]  }
 0x405   : > { %11836 = vmatpush1.bf16.msra.mxu1 %v21539_v27  ;;  %8434 = vmatprep.mubr.bf16.mxu0 %v29256_v2  ;;  %v21548_v27 = vld [vmem:[%s28883_s3 + $0x640] ss:$16 sps:$4 sm:$0xff]  }
 0x406   : > { %11564 = vmatprep.mubr.bf16.mxu1 %v29256_v2  ;;  %8707 = vmatprep.subr.bf16.mxu0 %v21544_v59  ;;  %v21559_v59 = vld [vmem:[%s28883_s3 + $0x66c] ss:$16 sps:$4 sm:$0xff]  }
 0x407   : > { %11837 = vmatprep.subr.bf16.mxu1 %v21547_v53  ;;  %v21562_v53 = vld [vmem:[%s28883_s3 + $0x684] ss:$16 sps:$4 sm:$0xff]  }
 0x408   : > { %8708 = vmatpush1.bf16.msra.mxu0 %v21542_v13  ;;  %v29375_v13 = vld [vmem:[#allocation7_spill] sm:$0xff] }
 0x409   : > { %11838 = vmatpush1.bf16.msra.mxu1 %v21545_v16  ;;  %8709 = vmatprep.subr.bf16.mxu0 %v21550_v33  ;;  %v21554_v33 = vld [vmem:[%s28883_s3 + $0x660] ss:$16 sps:$4 sm:$0xff]   ;;  %v21557_v16 = vld [vmem:[%s28883_s3 + $0x668] ss:$16 sps:$4 sm:$0xff]  }
 0x40a   : > { %11839 = vmatprep.subr.bf16.mxu1 %v21553_v62  ;;  %v21565_v62 = vld [vmem:[%s28883_s3 + $0x68c] ss:$16 sps:$4 sm:$0xff]  }
 0x40b   : > { %8435 = vmatmul.mubr.bf16.gmra.mrb[228].mxu0 %v29256_v2 }
 0x40c   : > { %11565 = vmatmul.mubr.bf16.gmra.mrb[228].mxu1 %v29256_v2  ;;  %8444 = vmatprep.mubr.bf16.mxu0 %v29375_v13 }
 0x40d   : > { %11574 = vmatprep.mubr.bf16.mxu1 %v29375_v13  ;;  %8710 = vmatpush1.bf16.msra.mxu0 %v21548_v27  ;;  %v21563_v27 = vld [vmem:[%s28883_s3 + $0x688] ss:$16 sps:$4 sm:$0xff]  }
 0x40e   : > { %11840 = vmatpush1.bf16.msra.mxu1 %v21551_v6  ;;  %8711 = vmatprep.subr.bf16.mxu0 %v21556_v61  ;;  %v21560_v6 = vld [vmem:[%s28883_s3 + $0x680] ss:$16 sps:$4 sm:$0xff]   ;;  %v21568_v61 = vld [vmem:[%s28883_s3 + $0x6a4] ss:$16 sps:$4 sm:$0xff]  }
 0x40f   : > { %11841 = vmatprep.subr.bf16.mxu1 %v21559_v59  ;;  %v21571_v59 = vld [vmem:[%s28883_s3 + $0x6ac] ss:$16 sps:$4 sm:$0xff]  }
 0x411   : > { %8712 = vmatpush1.bf16.msra.mxu0 %v21554_v33  ;;  %v29376_v33 = vld [vmem:[#allocation5_spill] sm:$0xff] }
 0x412   : > { %11842 = vmatpush1.bf16.msra.mxu1 %v21557_v16  ;;  %8713 = vmatprep.subr.bf16.mxu0 %v21562_v53  ;;  %v29377_v16 = vld [vmem:[#allocation9_spill] sm:$0xff]  ;;  %v21566_v53 = vld [vmem:[%s28883_s3 + $0x6a0] ss:$16 sps:$4 sm:$0xff]  }
 0x413   : > { %11843 = vmatprep.subr.bf16.mxu1 %v21565_v62  ;;  %8445 = vmatmul.mubr.bf16.gmra.mrb[232].mxu0 %v29376_v33  ;;  %v21569_v62 = vld [vmem:[%s28883_s3 + $0x6a8] ss:$16 sps:$4 sm:$0xff]  }
 0x414   : > { %11575 = vmatmul.mubr.bf16.gmra.mrb[232].mxu1 %v29376_v33  ;;  %8454 = vmatprep.mubr.bf16.mxu0 %v29377_v16  ;;  %v21574_v33 = vld [vmem:[%s28883_s3 + $0x6c4] ss:$16 sps:$4 sm:$0xff]  }
 0x415   : > { %11584 = vmatprep.mubr.bf16.mxu1 %v29377_v16  ;;  %8714 = vmatpush1.bf16.msra.mxu0 %v21560_v6  ;;  %v21577_v16 = vld [vmem:[%s28883_s3 + $0x6cc] ss:$16 sps:$4 sm:$0xff]   ;;  %v21572_v6 = vld [vmem:[%s28883_s3 + $0x6c0] ss:$16 sps:$4 sm:$0xff]  }
 0x416   : > { %11844 = vmatpush1.bf16.msra.mxu1 %v21563_v27  ;;  %8715 = vmatprep.subr.bf16.mxu0 %v21568_v61  ;;  %v21575_v27 = vld [vmem:[%s28883_s3 + $0x6c8] ss:$16 sps:$4 sm:$0xff]   ;;  %v21580_v61 = vld [vmem:[%s28883_s3 + $0x6e4] ss:$16 sps:$4 sm:$0xff]  }
 0x417   : > { %11845 = vmatprep.subr.bf16.mxu1 %v21571_v59  ;;  %v21583_v59 = vld [vmem:[%s28883_s3 + $0x6ec] ss:$16 sps:$4 sm:$0xff]  }
 0x419   : > { %8716 = vmatpush1.bf16.msra.mxu0 %v21566_v53  ;;  %v29378_v53 = vld [vmem:[#allocation10_spill] sm:$0xff] }
 0x41a   : > { %11846 = vmatpush1.bf16.msra.mxu1 %v21569_v62  ;;  %8717 = vmatprep.subr.bf16.mxu0 %v21574_v33  ;;  %v29379_v62 = vld [vmem:[#allocation15_spill] sm:$0xff]  ;;  %v21578_v33 = vld [vmem:[%s28883_s3 + $0x6e0] ss:$16 sps:$4 sm:$0xff]  }
 0x41b   : > { %11847 = vmatprep.subr.bf16.mxu1 %v21577_v16  ;;  %8455 = vmatmul.mubr.bf16.gmra.mrb[236].mxu0 %v29378_v53  ;;  %v21581_v16 = vld [vmem:[%s28883_s3 + $0x6e8] ss:$16 sps:$4 sm:$0xff]  }
 0x41c   : > { %11585 = vmatmul.mubr.bf16.gmra.mrb[236].mxu1 %v29378_v53  ;;  %8464 = vmatprep.mubr.bf16.mxu0 %v29379_v62  ;;  %v21586_v53 = vld [vmem:[%s28883_s3 + $0x704] ss:$16 sps:$4 sm:$0xff]  }
 0x41d   : > { %11594 = vmatprep.mubr.bf16.mxu1 %v29379_v62  ;;  %8718 = vmatpush1.bf16.msra.mxu0 %v21572_v6  ;;  %v21589_v62 = vld [vmem:[%s28883_s3 + $0x70c] ss:$16 sps:$4 sm:$0xff]   ;;  %v21584_v6 = vld [vmem:[%s28883_s3 + $0x700] ss:$16 sps:$4 sm:$0xff]  }
 0x41e   : > { %11848 = vmatpush1.bf16.msra.mxu1 %v21575_v27  ;;  %8719 = vmatprep.subr.bf16.mxu0 %v21580_v61  ;;  %v21587_v27 = vld [vmem:[%s28883_s3 + $0x708] ss:$16 sps:$4 sm:$0xff]   ;;  %v21592_v61 = vld [vmem:[%s28883_s3 + $0x724] ss:$16 sps:$4 sm:$0xff]  }
 0x41f   : > { %11849 = vmatprep.subr.bf16.mxu1 %v21583_v59  ;;  %v21595_v59 = vld [vmem:[%s28883_s3 + $0x72c] ss:$16 sps:$4 sm:$0xff]  }
 0x421   : > { %8720 = vmatpush1.bf16.msra.mxu0 %v21578_v33  ;;  %v29380_v33 = vld [vmem:[#allocation13_spill] sm:$0xff] }
 0x422   : > { %11850 = vmatpush1.bf16.msra.mxu1 %v21581_v16  ;;  %8721 = vmatprep.subr.bf16.mxu0 %v21586_v53  ;;  %v29381_v16 = vld [vmem:[#allocation19_spill] sm:$0xff]  ;;  %v21590_v53 = vld [vmem:[%s28883_s3 + $0x720] ss:$16 sps:$4 sm:$0xff]  }
 0x423   : > { %11851 = vmatprep.subr.bf16.mxu1 %v21589_v62  ;;  %8465 = vmatmul.mubr.bf16.gmra.mrb[240].mxu0 %v29380_v33  ;;  %v21593_v62 = vld [vmem:[%s28883_s3 + $0x728] ss:$16 sps:$4 sm:$0xff]  }
 0x424   : > { %11595 = vmatmul.mubr.bf16.gmra.mrb[240].mxu1 %v29380_v33  ;;  %8474 = vmatprep.mubr.bf16.mxu0 %v29381_v16  ;;  %v21598_v33 = vld [vmem:[%s28883_s3 + $0x744] ss:$16 sps:$4 sm:$0xff]  }
 0x425   : > { %11604 = vmatprep.mubr.bf16.mxu1 %v29381_v16  ;;  %8722 = vmatpush1.bf16.msra.mxu0 %v21584_v6  ;;  %v21601_v16 = vld [vmem:[%s28883_s3 + $0x74c] ss:$16 sps:$4 sm:$0xff]   ;;  %v21596_v6 = vld [vmem:[%s28883_s3 + $0x740] ss:$16 sps:$4 sm:$0xff]  }
 0x426   : > { %11852 = vmatpush1.bf16.msra.mxu1 %v21587_v27  ;;  %8723 = vmatprep.subr.bf16.mxu0 %v21592_v61  ;;  %v21599_v27 = vld [vmem:[%s28883_s3 + $0x748] ss:$16 sps:$4 sm:$0xff]   ;;  %v21604_v61 = vld [vmem:[%s28883_s3 + $0x764] ss:$16 sps:$4 sm:$0xff]  }
 0x427   : > { %11853 = vmatprep.subr.bf16.mxu1 %v21595_v59  ;;  %v21607_v59 = vld [vmem:[%s28883_s3 + $0x76c] ss:$16 sps:$4 sm:$0xff]  }
 0x429   : > { %8724 = vmatpush1.bf16.msra.mxu0 %v21590_v53  ;;  %v29382_v53 = vld [vmem:[#allocation17_spill] sm:$0xff] }
 0x42a   : > { %11854 = vmatpush1.bf16.msra.mxu1 %v21593_v62  ;;  %8725 = vmatprep.subr.bf16.mxu0 %v21598_v33  ;;  %v29383_v62 = vld [vmem:[#allocation23_spill] sm:$0xff]  ;;  %v21602_v33 = vld [vmem:[%s28883_s3 + $0x760] ss:$16 sps:$4 sm:$0xff]  }
 0x42b   : > { %11855 = vmatprep.subr.bf16.mxu1 %v21601_v16  ;;  %8475 = vmatmul.mubr.bf16.gmra.mrb[244].mxu0 %v29382_v53  ;;  %v21605_v16 = vld [vmem:[%s28883_s3 + $0x768] ss:$16 sps:$4 sm:$0xff]  }
 0x42c   : > { %11605 = vmatmul.mubr.bf16.gmra.mrb[244].mxu1 %v29382_v53  ;;  %8484 = vmatprep.mubr.bf16.mxu0 %v29383_v62  ;;  %v21610_v53 = vld [vmem:[%s28883_s3 + $0x784] ss:$16 sps:$4 sm:$0xff]  }
 0x42d   : > { %11614 = vmatprep.mubr.bf16.mxu1 %v29383_v62  ;;  %8726 = vmatpush1.bf16.msra.mxu0 %v21596_v6  ;;  %v21613_v62 = vld [vmem:[%s28883_s3 + $0x78c] ss:$16 sps:$4 sm:$0xff]   ;;  %v21608_v6 = vld [vmem:[%s28883_s3 + $0x780] ss:$16 sps:$4 sm:$0xff]  }
 0x42e   : > { %11856 = vmatpush1.bf16.msra.mxu1 %v21599_v27  ;;  %8727 = vmatprep.subr.bf16.mxu0 %v21604_v61  ;;  %v21611_v27 = vld [vmem:[%s28883_s3 + $0x788] ss:$16 sps:$4 sm:$0xff]  }
 0x42f   : > { %11857 = vmatprep.subr.bf16.mxu1 %v21607_v59  ;;  %v29384_v61 = vld [vmem:[#allocation21_spill] sm:$0xff]  ;;  %v29385_v59 = vld [vmem:[#allocation27_spill] sm:$0xff] }
 0x431   : > { %8728 = vmatpush1.bf16.msra.mxu0 %v21602_v33  ;;  %v21616_v33 = vld [vmem:[%s28883_s3 + $0x7a4] ss:$16 sps:$4 sm:$0xff]  }
 0x432   : > { %11858 = vmatpush1.bf16.msra.mxu1 %v21605_v16  ;;  %8729 = vmatprep.subr.bf16.mxu0 %v21610_v53  ;;  %v21614_v16 = vld [vmem:[%s28883_s3 + $0x7a0] ss:$16 sps:$4 sm:$0xff]   ;;  %v21617_v53 = vld [vmem:[%s28883_s3 + $0x7a8] ss:$16 sps:$4 sm:$0xff]  }
 0x433   : > { %11859 = vmatprep.subr.bf16.mxu1 %v21613_v62  ;;  %8485 = vmatmul.mubr.bf16.gmra.mrb[248].mxu0 %v29384_v61  ;;  %v21619_v62 = vld [vmem:[%s28883_s3 + $0x7ac] ss:$16 sps:$4 sm:$0xff]  }
 0x434   : > { %11615 = vmatmul.mubr.bf16.gmra.mrb[248].mxu1 %v29384_v61  ;;  %8494 = vmatprep.mubr.bf16.mxu0 %v29385_v59  ;;  %v29389_v61 = vld [vmem:[#allocation35_spill] sm:$0xff] }
 0x435   : > { %11624 = vmatprep.mubr.bf16.mxu1 %v29385_v59  ;;  %8730 = vmatpush1.bf16.msra.mxu0 %v21608_v6  ;;  %v29386_v59 = vld [vmem:[#allocation25_spill] sm:$0xff]  ;;  %v29387_v6 = vld [vmem:[#allocation31_spill] sm:$0xff] }
 0x436   : > { %11860 = vmatpush1.bf16.msra.mxu1 %v21611_v27  ;;  %8731 = vmatprep.subr.bf16.mxu0 %v21616_v33  ;;  %v29388_v27 = vld [vmem:[#allocation29_spill] sm:$0xff]  ;;  %v21620_v33 = vld [vmem:[%s28883_s3 + $0x7c0] ss:$16 sps:$4 sm:$0xff]  }
 0x437   : > { %11861 = vmatprep.subr.bf16.mxu1 %v21619_v62  ;;  %v21625_v62 = vld [vmem:[%s28883_s3 + $0x7cc] ss:$16 sps:$4 sm:$0xff]  }
 0x439   : > { %8732 = vmatpush1.bf16.msra.mxu0 %v21614_v16  ;;  %v21622_v16 = vld [vmem:[%s28883_s3 + $0x7c4] ss:$16 sps:$4 sm:$0xff]  }
 0x43a   : > { %11862 = vmatpush1.bf16.msra.mxu1 %v21617_v53  ;;  %v21623_v53 = vld [vmem:[%s28883_s3 + $0x7c8] ss:$16 sps:$4 sm:$0xff]   ;;  %8733 = vmatprep.subr.bf16.mxu0 %v21622_v16  ;;  %v21628_v16 = vld [vmem:[%s28883_s3 + $0x7e4] ss:$16 sps:$4 sm:$0xff]  }
 0x43b   : > { %8495 = vmatmul.mubr.bf16.gmra.mrb[252].mxu0 %v29386_v59  ;;  %11863 = vmatprep.subr.bf16.mxu1 %v21625_v62  ;;  %v21631_v62 = vld [vmem:[%s28883_s3 + $0x7ec] ss:$16 sps:$4 sm:$0xff]  }
 0x43c   : > { %11625 = vmatmul.mubr.bf16.gmra.mrb[252].mxu1 %v29386_v59  ;;  %8504 = vmatprep.mubr.bf16.mxu0 %v29387_v6  ;;  %v29393_v59 = vld [vmem:[#allocation43_spill] sm:$0xff] }
 0x43d   : > { %11634 = vmatprep.mubr.bf16.mxu1 %v29387_v6  ;;  %8734 = vmatpush1.bf16.msra.mxu0 %v21620_v33  ;;  %v29392_v6 = vld [vmem:[#allocation37_spill] sm:$0xff]  ;;  %v21626_v33 = vld [vmem:[%s28883_s3 + $0x7e0] ss:$16 sps:$4 sm:$0xff]  }
 0x43e   : > { %11864 = vmatpush1.bf16.msra.mxu1 %v21623_v53  ;;  %v21629_v53 = vld [vmem:[%s28883_s3 + $0x7e8] ss:$16 sps:$4 sm:$0xff]   ;;  %8735 = vmatprep.subr.bf16.mxu0 %v21628_v16 }
 0x43f   : > { %11865 = vmatprep.subr.bf16.mxu1 %v21631_v62  ;;  %v29397_v16 = vld [vmem:[#allocation51_spill] sm:$0xff] }
 0x440   : > { %v29399_v62 = vld [vmem:[#allocation55_spill] sm:$0xff] }
 0x441   : > { %8736 = vmatpush1.bf16.msra.mxu0 %v21626_v33  ;;  %v21637_v33 = vld [vmem:[%s28883_s3 + $0x80c] ss:$16 sps:$4 sm:$0xff]  }
 0x442   : > { %11866 = vmatpush1.bf16.msra.mxu1 %v21629_v53  ;;  %v29398_v53 = vld [vmem:[#allocation49_spill] sm:$0xff] }
 0x443   : > { %8505 = vmatmul.mubr.bf16.gmra.mrb[0].mxu0 %v29388_v27  ;;  %12148 = vmatprep.subr.bf16.mxu1 %v21637_v33  ;;  %v29404_v33 = vld [vmem:[#allocation61_spill] sm:$0xff] }
 0x444   : > { %11635 = vmatmul.mubr.bf16.gmra.mrb[0].mxu1 %v29388_v27  ;;  %8514 = vmatprep.mubr.bf16.mxu0 %v29389_v61  ;;  %v29391_v27 = vld [vmem:[#allocation39_spill] sm:$0xff] }
 0x445   : > { %11644 = vmatprep.mubr.bf16.mxu1 %v29389_v61  ;;  %v29390_v61 = vld [vmem:[#allocation33_spill] sm:$0xff] }
 0x44b   : > { %8515 = vmatmul.mubr.bf16.gmra.mrb[4].mxu0 %v29390_v61 }
 0x44c   : > { %11645 = vmatmul.mubr.bf16.gmra.mrb[4].mxu1 %v29390_v61  ;;  %8524 = vmatprep.mubr.bf16.mxu0 %v29391_v27  ;;  %v21634_v61 = vld [vmem:[%s28883_s3 + $0x804] ss:$16 sps:$4 sm:$0xff]  }
 0x44d   : > { %11654 = vmatprep.mubr.bf16.mxu1 %v29391_v27  ;;  %v29396_v27 = vld [vmem:[#allocation45_spill] sm:$0xff]  ;;  %9018 = vmatprep.subr.bf16.mxu0 %v21634_v61  ;;  %v29403_v61 = vld [vmem:[#allocation63_spill] sm:$0xff] }
 0x453   : > { %8525 = vmatmul.mubr.bf16.gmra.mrb[8].mxu0 %v29392_v6 }
 0x454   : > { %11655 = vmatmul.mubr.bf16.gmra.mrb[8].mxu1 %v29392_v6  ;;  %8534 = vmatprep.mubr.bf16.mxu0 %v29393_v59  ;;  %v29395_v6 = vld [vmem:[#allocation47_spill] sm:$0xff] }
 0x455   : > { %11664 = vmatprep.mubr.bf16.mxu1 %v29393_v59  ;;  %v29394_v59 = vld [vmem:[#allocation41_spill] sm:$0xff] }
 0x45b   : > { %8535 = vmatmul.mubr.bf16.gmra.mrb[12].mxu0 %v29394_v59 }
 0x45c   : > { %11665 = vmatmul.mubr.bf16.gmra.mrb[12].mxu1 %v29394_v59  ;;  %8544 = vmatprep.mubr.bf16.mxu0 %v29395_v6 }
 0x45d   : > { %11674 = vmatprep.mubr.bf16.mxu1 %v29395_v6  ;;  %v29401_v6 = vld [vmem:[#allocation59_spill] sm:$0xff] }
 0x463   : > { %8545 = vmatmul.mubr.bf16.gmra.mrb[16].mxu0 %v29396_v27 }
 0x464   : > { %11675 = vmatmul.mubr.bf16.gmra.mrb[16].mxu1 %v29396_v27  ;;  %8554 = vmatprep.mubr.bf16.mxu0 %v29397_v16  ;;  %v29400_v27 = vld [vmem:[#allocation53_spill] sm:$0xff] }
 0x465   : > { %11684 = vmatprep.mubr.bf16.mxu1 %v29397_v16  ;;  %v29402_v16 = vld [vmem:[#allocation57_spill] sm:$0xff] }
 0x46b   : > { %8555 = vmatmul.mubr.bf16.gmra.mrb[20].mxu0 %v29398_v53 }
 0x46c   : > { %11685 = vmatmul.mubr.bf16.gmra.mrb[20].mxu1 %v29398_v53  ;;  %8564 = vmatprep.mubr.bf16.mxu0 %v29399_v62 }
 0x46d   : > { %11694 = vmatprep.mubr.bf16.mxu1 %v29399_v62  ;;  %v29405_v62 = vld [vmem:[#allocation67_spill] sm:$0xff] }
 0x473   : > { %8565 = vmatmul.mubr.bf16.gmra.mrb[24].mxu0 %v29400_v27 }
 0x474   : > { %11695 = vmatmul.mubr.bf16.gmra.mrb[24].mxu1 %v29400_v27  ;;  %8574 = vmatprep.mubr.bf16.mxu0 %v29401_v6  ;;  %v29406_v27 = vld [vmem:[#allocation65_spill] sm:$0xff] }
 0x475   : > { %11704 = vmatprep.mubr.bf16.mxu1 %v29401_v6  ;;  %v29407_v6 = vld [vmem:[#allocation70_spill] sm:$0xff] }
 0x47b   : > { %8575 = vmatmul.mubr.bf16.gmra.mrb[28].mxu0 %v29402_v16 }
 0x47c   : > { %11705 = vmatmul.mubr.bf16.gmra.mrb[28].mxu1 %v29402_v16  ;;  %8584 = vmatprep.mubr.bf16.mxu0 %v29403_v61  ;;  %v29408_v16 = vld [vmem:[#allocation69_spill] sm:$0xff] }
 0x47d   : > { %11714 = vmatprep.mubr.bf16.mxu1 %v29403_v61  ;;  %v29409_v61 = vld [vmem:[#allocation72_spill] sm:$0xff] }
 0x483   : > { %8585 = vmatmul.mubr.bf16.gmra.mrb[32].mxu0 %v29404_v33 }
 0x484   : > { %11715 = vmatmul.mubr.bf16.gmra.mrb[32].mxu1 %v29404_v33  ;;  %8594 = vmatprep.mubr.bf16.mxu0 %v29405_v62  ;;  %v29410_v33 = vld [vmem:[#allocation71_spill] sm:$0xff] }
 0x485   : > { %11724 = vmatprep.mubr.bf16.mxu1 %v29405_v62  ;;  %v29411_v62 = vld [vmem:[#allocation74_spill] sm:$0xff] }
 0x48b   : > { %8595 = vmatmul.mubr.bf16.gmra.mrb[36].mxu0 %v29406_v27 }
 0x48c   : > { %11725 = vmatmul.mubr.bf16.gmra.mrb[36].mxu1 %v29406_v27  ;;  %8604 = vmatprep.mubr.bf16.mxu0 %v29407_v6 }
 0x48d   : > { %11734 = vmatprep.mubr.bf16.mxu1 %v29407_v6 }
 0x493   : > { %8605 = vmatmul.mubr.bf16.gmra.mrb[40].mxu0 %v29408_v16 }
 0x494   : > { %11735 = vmatmul.mubr.bf16.gmra.mrb[40].mxu1 %v29408_v16  ;;  %8614 = vmatprep.mubr.bf16.mxu0 %v29409_v61 }
 0x495   : > { %11744 = vmatprep.mubr.bf16.mxu1 %v29409_v61 }
 0x49b   : > { %8615 = vmatmul.mubr.bf16.gmra.mrb[44].mxu0 %v29410_v33 }
 0x49c   : > { %11745 = vmatmul.mubr.bf16.gmra.mrb[44].mxu1 %v29410_v33  ;;  %8624 = vmatprep.mubr.bf16.mxu0 %v29411_v62 }
 0x49d   : > { %11754 = vmatprep.mubr.bf16.mxu1 %v29411_v62 }
 0x4a3   : > { %8625 = vmatmul.mubr.bf16.gmra.mrb[48].mxu0 %v24320_v19 }
 0x4a4   : > { %11755 = vmatmul.mubr.bf16.gmra.mrb[48].mxu1 %v24320_v19  ;;  %8634 = vmatprep.mubr.bf16.mxu0 %v24365_v24 }
 0x4a5   : > { %11764 = vmatprep.mubr.bf16.mxu1 %v24365_v24 }
 0x4ab   : > { %8635 = vmatmul.mubr.bf16.gmra.mrb[52].mxu0 %v24361_v46 }
 0x4ac   : > { %11765 = vmatmul.mubr.bf16.gmra.mrb[52].mxu1 %v24361_v46  ;;  %8644 = vmatprep.mubr.bf16.mxu0 %v24438_v41  ;;  %v21652_v46 = vld [vmem:[%s28883_s3 + $0x864] ss:$16 sps:$4 sm:$0xff]  }
 0x4ad   : > { %11774 = vmatprep.mubr.bf16.mxu1 %v24438_v41  ;;  %v21647_v41 = vld [vmem:[%s28883_s3 + $0x848] ss:$16 sps:$4 sm:$0xff]  }
 0x4b3   : > { %8645 = vmatmul.mubr.bf16.gmra.mrb[56].mxu0 %v24431_v7 }
 0x4b4   : > { %11775 = vmatmul.mubr.bf16.gmra.mrb[56].mxu1 %v24431_v7  ;;  %8654 = vmatprep.mubr.bf16.mxu0 %v24467_v9  ;;  %v21646_v7 = vld [vmem:[%s28883_s3 + $0x844] ss:$16 sps:$4 sm:$0xff]  }
 0x4b5   : > { %11784 = vmatprep.mubr.bf16.mxu1 %v24467_v9  ;;  %v29412_v9 = vld [vmem:[#allocation94_spill] sm:$0xff] }
 0x4bb   : > { %8655 = vmatmul.mubr.bf16.gmra.mrb[60].mxu0 %v24463_v23 }
 0x4bc   : > { %11785 = vmatmul.mubr.bf16.gmra.mrb[60].mxu1 %v24463_v23  ;;  %8664 = vmatprep.mubr.bf16.mxu0 %v24516_v17  ;;  %v29413_v23 = vld [vmem:[#allocation92_spill] sm:$0xff] }
 0x4bd   : > { %11794 = vmatprep.mubr.bf16.mxu1 %v24516_v17  ;;  %v29414_v17 = vld [vmem:[#allocation98_spill] sm:$0xff] }
 0x4c3   : > { %8665 = vmatmul.mubr.bf16.gmra.mrb[64].mxu0 %v24512_v42 }
 0x4c4   : > { %11795 = vmatmul.mubr.bf16.gmra.mrb[64].mxu1 %v24512_v42  ;;  %8674 = vmatprep.mubr.bf16.mxu0 %v24545_v5  ;;  %v29415_v42 = vld [vmem:[#allocation96_spill] sm:$0xff] }
 0x4c5   : > { %11804 = vmatprep.mubr.bf16.mxu1 %v24545_v5  ;;  %v21641_v5 = vld [vmem:[%s28883_s3 + $0x828] ss:$16 sps:$4 sm:$0xff]  }
 0x4cb   : > { %8675 = vmatmul.mubr.bf16.gmra.mrb[68].mxu0 %v24541_v31 }
 0x4cc   : > { %11805 = vmatmul.mubr.bf16.gmra.mrb[68].mxu1 %v24541_v31  ;;  %8684 = vmatprep.mubr.bf16.mxu0 %v29412_v9  ;;  %v21638_v31 = vld [vmem:[%s28883_s3 + $0x820] ss:$16 sps:$4 sm:$0xff]  }
 0x4cd   : > { %11814 = vmatprep.mubr.bf16.mxu1 %v29412_v9  ;;  %v21632_v9 = vld [vmem:[%s28883_s3 + $0x800] ss:$16 sps:$4 sm:$0xff]  }
 0x4d3   : > { %8685 = vmatmul.mubr.bf16.gmra.mrb[72].mxu0 %v29413_v23 }
 0x4d4   : > { %11815 = vmatmul.mubr.bf16.gmra.mrb[72].mxu1 %v29413_v23  ;;  %8694 = vmatprep.mubr.bf16.mxu0 %v29414_v17  ;;  %v21635_v23 = vld [vmem:[%s28883_s3 + $0x808] ss:$16 sps:$4 sm:$0xff]  }
 0x4d5   : > { %11824 = vmatprep.mubr.bf16.mxu1 %v29414_v17  ;;  %v21640_v17 = vld [vmem:[%s28883_s3 + $0x824] ss:$16 sps:$4 sm:$0xff]  }
 0x4db   : > { %8695 = vmatmul.mubr.bf16.gmra.mrb[76].mxu0 %v29415_v42 }
 0x4dc   : > { %11825 = vmatmul.mubr.bf16.gmra.mrb[76].mxu1 %v29415_v42  ;;  %8737 = vmatprep.mubr.bf16.mxu0 %v29256_v2  ;;  %v21643_v42 = vld [vmem:[%s28883_s3 + $0x82c] ss:$16 sps:$4 sm:$0xff]  }
 0x4dd   : > { %11867 = vmatprep.mubr.bf16.mxu1 %v29256_v2 }
 0x4e3   : > { %8738 = vmatmul.mubr.bf16.vlgmr.msra.gmra.mrb[224].mxu0 %v29256_v2 }
 0x4e4   : > { %11868 = vmatmul.mubr.bf16.vlgmr.msra.gmra.mrb[224].mxu1 %v29256_v2  ;;  %9019 = vmatpush1.bf16.msra.mxu0 %v21632_v9  ;;  %v21644_v9 = vld [vmem:[%s28883_s3 + $0x840] ss:$16 sps:$4 sm:$0xff]  }
 0x4e5   : > { %12149 = vmatpush1.bf16.msra.mxu1 %v21635_v23  ;;  %8747 = vmatprep.mubr.bf16.mxu0 %v29256_v2  ;;  %v21649_v23 = vld [vmem:[%s28883_s3 + $0x84c] ss:$16 sps:$4 sm:$0xff]  }
 0x4e6   : > { %11877 = vmatprep.mubr.bf16.mxu1 %v29256_v2  ;;  %9020 = vmatprep.subr.bf16.mxu0 %v21640_v17  ;;  %v21653_v17 = vld [vmem:[%s28883_s3 + $0x868] ss:$16 sps:$4 sm:$0xff]  }
 0x4e7   : > { %12150 = vmatprep.subr.bf16.mxu1 %v21643_v42  ;;  %v21655_v42 = vld [vmem:[%s28883_s3 + $0x86c] ss:$16 sps:$4 sm:$0xff]  }
 0x4e8   : > { %9021 = vmatpush1.bf16.msra.mxu0 %v21638_v31  ;;  %v21658_v31 = vld [vmem:[%s28883_s3 + $0x884] ss:$16 sps:$4 sm:$0xff]  }
 0x4e9   : > { %12151 = vmatpush1.bf16.msra.mxu1 %v21641_v5  ;;  %9022 = vmatprep.subr.bf16.mxu0 %v21646_v7  ;;  %v21650_v7 = vld [vmem:[%s28883_s3 + $0x860] ss:$16 sps:$4 sm:$0xff]   ;;  %v21661_v5 = vld [vmem:[%s28883_s3 + $0x88c] ss:$16 sps:$4 sm:$0xff]  }
 0x4ea   : > { %12152 = vmatprep.subr.bf16.mxu1 %v21649_v23  ;;  %v21659_v23 = vld [vmem:[%s28883_s3 + $0x888] ss:$16 sps:$4 sm:$0xff]  }
 0x4eb   : > { %8748 = vmatmul.mubr.bf16.gmra.mrb[228].mxu0 %v29256_v2 }
 0x4ec   : > { %11878 = vmatmul.mubr.bf16.gmra.mrb[228].mxu1 %v29256_v2  ;;  %8757 = vmatprep.mubr.bf16.mxu0 %v29340_v30  ;;  %v21728_v2 = vld [vmem:[%s28883_s3 + $0xa00] ss:$16 sps:$4 sm:$0xff]  }
 0x4ed   : > { %11887 = vmatprep.mubr.bf16.mxu1 %v29340_v30  ;;  %9023 = vmatpush1.bf16.msra.mxu0 %v21644_v9  ;;  %v21667_v9 = vld [vmem:[%s28883_s3 + $0x8ac] ss:$16 sps:$4 sm:$0xff]  }
 0x4ee   : > { %12153 = vmatpush1.bf16.msra.mxu1 %v21647_v41  ;;  %9024 = vmatprep.subr.bf16.mxu0 %v21652_v46  ;;  %v21656_v41 = vld [vmem:[%s28883_s3 + $0x880] ss:$16 sps:$4 sm:$0xff]   ;;  %v21664_v46 = vld [vmem:[%s28883_s3 + $0x8a4] ss:$16 sps:$4 sm:$0xff]  }
 0x4ef   : > { %12154 = vmatprep.subr.bf16.mxu1 %v21655_v42  ;;  %v21662_v42 = vld [vmem:[%s28883_s3 + $0x8a0] ss:$16 sps:$4 sm:$0xff]  }
 0x4f1   : > { %9025 = vmatpush1.bf16.msra.mxu0 %v21650_v7  ;;  %v21665_v7 = vld [vmem:[%s28883_s3 + $0x8a8] ss:$16 sps:$4 sm:$0xff]  }
 0x4f2   : > { %12155 = vmatpush1.bf16.msra.mxu1 %v21653_v17  ;;  %9026 = vmatprep.subr.bf16.mxu0 %v21658_v31  ;;  %v21670_v17 = vld [vmem:[%s28883_s3 + $0x8c4] ss:$16 sps:$4 sm:$0xff]   ;;  %v21673_v31 = vld [vmem:[%s28883_s3 + $0x8cc] ss:$16 sps:$4 sm:$0xff]  }
 0x4f3   : > { %12156 = vmatprep.subr.bf16.mxu1 %v21661_v5  ;;  %8758 = vmatmul.mubr.bf16.gmra.mrb[232].mxu0 %v29341_v21  ;;  %v21668_v5 = vld [vmem:[%s28883_s3 + $0x8c0] ss:$16 sps:$4 sm:$0xff]  }
 0x4f4   : > { %11888 = vmatmul.mubr.bf16.gmra.mrb[232].mxu1 %v29341_v21  ;;  %8767 = vmatprep.mubr.bf16.mxu0 %v29342_v1 }
 0x4f5   : > { %11897 = vmatprep.mubr.bf16.mxu1 %v29342_v1  ;;  %9027 = vmatpush1.bf16.msra.mxu0 %v21656_v41  ;;  %v21671_v41 = vld [vmem:[%s28883_s3 + $0x8c8] ss:$16 sps:$4 sm:$0xff]  }
 0x4f6   : > { %12157 = vmatpush1.bf16.msra.mxu1 %v21659_v23  ;;  %9028 = vmatprep.subr.bf16.mxu0 %v21664_v46  ;;  %v21676_v23 = vld [vmem:[%s28883_s3 + $0x8e4] ss:$16 sps:$4 sm:$0xff]   ;;  %v21679_v46 = vld [vmem:[%s28883_s3 + $0x8ec] ss:$16 sps:$4 sm:$0xff]  }
 0x4f7   : > { %12158 = vmatprep.subr.bf16.mxu1 %v21667_v9  ;;  %v21674_v9 = vld [vmem:[%s28883_s3 + $0x8e0] ss:$16 sps:$4 sm:$0xff]  }
 0x4f9   : > { %9029 = vmatpush1.bf16.msra.mxu0 %v21662_v42  ;;  %v21677_v42 = vld [vmem:[%s28883_s3 + $0x8e8] ss:$16 sps:$4 sm:$0xff]  }
 0x4fa   : > { %12159 = vmatpush1.bf16.msra.mxu1 %v21665_v7  ;;  %9030 = vmatprep.subr.bf16.mxu0 %v21670_v17  ;;  %v21682_v7 = vld [vmem:[%s28883_s3 + $0x904] ss:$16 sps:$4 sm:$0xff]   ;;  %v21685_v17 = vld [vmem:[%s28883_s3 + $0x90c] ss:$16 sps:$4 sm:$0xff]  }
 0x4fb   : > { %12160 = vmatprep.subr.bf16.mxu1 %v21673_v31  ;;  %8768 = vmatmul.mubr.bf16.gmra.mrb[236].mxu0 %v29343_v4  ;;  %v21680_v31 = vld [vmem:[%s28883_s3 + $0x900] ss:$16 sps:$4 sm:$0xff]  }
 0x4fc   : > { %11898 = vmatmul.mubr.bf16.gmra.mrb[236].mxu1 %v29343_v4  ;;  %8777 = vmatprep.mubr.bf16.mxu0 %v29344_v10 }
 0x4fd   : > { %11907 = vmatprep.mubr.bf16.mxu1 %v29344_v10  ;;  %9031 = vmatpush1.bf16.msra.mxu0 %v21668_v5  ;;  %v21683_v5 = vld [vmem:[%s28883_s3 + $0x908] ss:$16 sps:$4 sm:$0xff]  }
 0x4fe   : > { %12161 = vmatpush1.bf16.msra.mxu1 %v21671_v41  ;;  %9032 = vmatprep.subr.bf16.mxu0 %v21676_v23  ;;  %v21688_v41 = vld [vmem:[%s28883_s3 + $0x924] ss:$16 sps:$4 sm:$0xff]   ;;  %v21691_v23 = vld [vmem:[%s28883_s3 + $0x92c] ss:$16 sps:$4 sm:$0xff]  }
 0x4ff   : > { %12162 = vmatprep.subr.bf16.mxu1 %v21679_v46  ;;  %v21686_v46 = vld [vmem:[%s28883_s3 + $0x920] ss:$16 sps:$4 sm:$0xff]  }
 0x501   : > { %9033 = vmatpush1.bf16.msra.mxu0 %v21674_v9  ;;  %v21689_v9 = vld [vmem:[%s28883_s3 + $0x928] ss:$16 sps:$4 sm:$0xff]  }
 0x502   : > { %12163 = vmatpush1.bf16.msra.mxu1 %v21677_v42  ;;  %9034 = vmatprep.subr.bf16.mxu0 %v21682_v7  ;;  %v21694_v42 = vld [vmem:[%s28883_s3 + $0x944] ss:$16 sps:$4 sm:$0xff]   ;;  %v21697_v7 = vld [vmem:[%s28883_s3 + $0x94c] ss:$16 sps:$4 sm:$0xff]  }
 0x503   : > { %12164 = vmatprep.subr.bf16.mxu1 %v21685_v17  ;;  %8778 = vmatmul.mubr.bf16.gmra.mrb[240].mxu0 %v29345_v36  ;;  %v21692_v17 = vld [vmem:[%s28883_s3 + $0x940] ss:$16 sps:$4 sm:$0xff]  }
 0x504   : > { %11908 = vmatmul.mubr.bf16.gmra.mrb[240].mxu1 %v29345_v36  ;;  %8787 = vmatprep.mubr.bf16.mxu0 %v29346_v0 }
 0x505   : > { %11917 = vmatprep.mubr.bf16.mxu1 %v29346_v0  ;;  %9035 = vmatpush1.bf16.msra.mxu0 %v21680_v31  ;;  %v21695_v31 = vld [vmem:[%s28883_s3 + $0x948] ss:$16 sps:$4 sm:$0xff]  }
 0x506   : > { %12165 = vmatpush1.bf16.msra.mxu1 %v21683_v5  ;;  %9036 = vmatprep.subr.bf16.mxu0 %v21688_v41  ;;  %v21700_v5 = vld [vmem:[%s28883_s3 + $0x964] ss:$16 sps:$4 sm:$0xff]   ;;  %v21703_v41 = vld [vmem:[%s28883_s3 + $0x96c] ss:$16 sps:$4 sm:$0xff]  }
 0x507   : > { %12166 = vmatprep.subr.bf16.mxu1 %v21691_v23  ;;  %v21698_v23 = vld [vmem:[%s28883_s3 + $0x960] ss:$16 sps:$4 sm:$0xff]  }
 0x509   : > { %9037 = vmatpush1.bf16.msra.mxu0 %v21686_v46  ;;  %v21701_v46 = vld [vmem:[%s28883_s3 + $0x968] ss:$16 sps:$4 sm:$0xff]  }
 0x50a   : > { %12167 = vmatpush1.bf16.msra.mxu1 %v21689_v9  ;;  %9038 = vmatprep.subr.bf16.mxu0 %v21694_v42  ;;  %v21706_v9 = vld [vmem:[%s28883_s3 + $0x984] ss:$16 sps:$4 sm:$0xff]   ;;  %v21709_v42 = vld [vmem:[%s28883_s3 + $0x98c] ss:$16 sps:$4 sm:$0xff]  }
 0x50b   : > { %12168 = vmatprep.subr.bf16.mxu1 %v21697_v7  ;;  %8788 = vmatmul.mubr.bf16.gmra.mrb[244].mxu0 %v29347_v44  ;;  %v21704_v7 = vld [vmem:[%s28883_s3 + $0x980] ss:$16 sps:$4 sm:$0xff]  }
 0x50c   : > { %11918 = vmatmul.mubr.bf16.gmra.mrb[244].mxu1 %v29347_v44  ;;  %8797 = vmatprep.mubr.bf16.mxu0 %v29348_v49 }
 0x50d   : > { %11927 = vmatprep.mubr.bf16.mxu1 %v29348_v49  ;;  %9039 = vmatpush1.bf16.msra.mxu0 %v21692_v17  ;;  %v21707_v17 = vld [vmem:[%s28883_s3 + $0x988] ss:$16 sps:$4 sm:$0xff]  }
 0x50e   : > { %12169 = vmatpush1.bf16.msra.mxu1 %v21695_v31  ;;  %9040 = vmatprep.subr.bf16.mxu0 %v21700_v5  ;;  %v21712_v31 = vld [vmem:[%s28883_s3 + $0x9a4] ss:$16 sps:$4 sm:$0xff]   ;;  %v21710_v5 = vld [vmem:[%s28883_s3 + $0x9a0] ss:$16 sps:$4 sm:$0xff]  }
 0x50f   : > { %12170 = vmatprep.subr.bf16.mxu1 %v21703_v41  ;;  %v21713_v41 = vld [vmem:[%s28883_s3 + $0x9a8] ss:$16 sps:$4 sm:$0xff]  }
 0x511   : > { %9041 = vmatpush1.bf16.msra.mxu0 %v21698_v23  ;;  %v21715_v23 = vld [vmem:[%s28883_s3 + $0x9ac] ss:$16 sps:$4 sm:$0xff]  }
 0x512   : > { %12171 = vmatpush1.bf16.msra.mxu1 %v21701_v46  ;;  %9042 = vmatprep.subr.bf16.mxu0 %v21706_v9  ;;  %v21716_v46 = vld [vmem:[%s28883_s3 + $0x9c0] ss:$16 sps:$4 sm:$0xff]   ;;  %v21718_v9 = vld [vmem:[%s28883_s3 + $0x9c4] ss:$16 sps:$4 sm:$0xff]  }
 0x513   : > { %12172 = vmatprep.subr.bf16.mxu1 %v21709_v42  ;;  %8798 = vmatmul.mubr.bf16.gmra.mrb[248].mxu0 %v29349_v50  ;;  %v21719_v42 = vld [vmem:[%s28883_s3 + $0x9c8] ss:$16 sps:$4 sm:$0xff]  }
 0x514   : > { %11928 = vmatmul.mubr.bf16.gmra.mrb[248].mxu1 %v29349_v50  ;;  %8807 = vmatprep.mubr.bf16.mxu0 %v29350_v55 }
 0x515   : > { %11937 = vmatprep.mubr.bf16.mxu1 %v29350_v55  ;;  %9043 = vmatpush1.bf16.msra.mxu0 %v21704_v7  ;;  %v21721_v7 = vld [vmem:[%s28883_s3 + $0x9cc] ss:$16 sps:$4 sm:$0xff]  }
 0x516   : > { %12173 = vmatpush1.bf16.msra.mxu1 %v21707_v17  ;;  %9044 = vmatprep.subr.bf16.mxu0 %v21712_v31  ;;  %v21722_v17 = vld [vmem:[%s28883_s3 + $0x9e0] ss:$16 sps:$4 sm:$0xff]   ;;  %v21724_v31 = vld [vmem:[%s28883_s3 + $0x9e4] ss:$16 sps:$4 sm:$0xff]  }
 0x517   : > { %12174 = vmatprep.subr.bf16.mxu1 %v21715_v23  ;;  %v21730_v23 = vld [vmem:[%s28883_s3 + $0xa04] ss:$16 sps:$4 sm:$0xff]  }
 0x519   : > { %9045 = vmatpush1.bf16.msra.mxu0 %v21710_v5  ;;  %v21725_v5 = vld [vmem:[%s28883_s3 + $0x9e8] ss:$16 sps:$4 sm:$0xff]  }
 0x51a   : > { %12175 = vmatpush1.bf16.msra.mxu1 %v21713_v41  ;;  %9046 = vmatprep.subr.bf16.mxu0 %v21718_v9  ;;  %v21727_v41 = vld [vmem:[%s28883_s3 + $0x9ec] ss:$16 sps:$4 sm:$0xff]  }
 0x51b   : > { %8808 = vmatmul.mubr.bf16.gmra.mrb[252].mxu0 %v29351_v26  ;;  %12176 = vmatprep.subr.bf16.mxu1 %v21721_v7  ;;  %v29416_v9 = vld [vmem:[#allocation81_spill] sm:$0xff] }
 0x51c   : > { %11938 = vmatmul.mubr.bf16.gmra.mrb[252].mxu1 %v29351_v26  ;;  %8817 = vmatprep.mubr.bf16.mxu0 %v29352_v12  ;;  %v29418_v7 = vld [vmem:[#allocation85_spill] sm:$0xff] }
 0x51d   : > { %11947 = vmatprep.mubr.bf16.mxu1 %v29352_v12  ;;  %9047 = vmatpush1.bf16.msra.mxu0 %v21716_v46  ;;  %v21733_v46 = vld [vmem:[%s28883_s3 + $0xa0c] ss:$16 sps:$4 sm:$0xff]  }
 0x51e   : > { %12177 = vmatpush1.bf16.msra.mxu1 %v21719_v42  ;;  %9048 = vmatprep.subr.bf16.mxu0 %v21724_v31  ;;  %v29417_v42 = vld [vmem:[#allocation87_spill] sm:$0xff]  ;;  %v29420_v31 = vld [vmem:[#allocation89_spill] sm:$0xff] }
 0x51f   : > { %12178 = vmatprep.subr.bf16.mxu1 %v21727_v41  ;;  %v29422_v41 = vld [vmem:[#allocation93_spill] sm:$0xff] }
 0x521   : > { %9049 = vmatpush1.bf16.msra.mxu0 %v21722_v17  ;;  %v29419_v17 = vld [vmem:[#allocation91_spill] sm:$0xff] }
 0x522   : > { %12179 = vmatpush1.bf16.msra.mxu1 %v21725_v5  ;;  %9331 = vmatprep.subr.bf16.mxu0 %v21730_v23  ;;  %v29421_v5 = vld [vmem:[#allocation95_spill] sm:$0xff] }
 0x523   : > { %8818 = vmatmul.mubr.bf16.gmra.mrb[0].mxu0 %v29353_v20  ;;  %12461 = vmatprep.subr.bf16.mxu1 %v21733_v46  ;;  %v29423_v23 = vld [vmem:[#allocation99_spill] sm:$0xff]  ;;  %v29424_v46 = vld [vmem:[#allocation97_spill] sm:$0xff] }
 0x524   : > { %11948 = vmatmul.mubr.bf16.gmra.mrb[0].mxu1 %v29353_v20  ;;  %8827 = vmatprep.mubr.bf16.mxu0 %v29354_v14 }
 0x525   : > { %11957 = vmatprep.mubr.bf16.mxu1 %v29354_v14 }
 0x52b   : > { %8828 = vmatmul.mubr.bf16.gmra.mrb[4].mxu0 %v29355_v56 }
 0x52c   : > { %11958 = vmatmul.mubr.bf16.gmra.mrb[4].mxu1 %v29355_v56  ;;  %8837 = vmatprep.mubr.bf16.mxu0 %v29356_v28 }
 0x52d   : > { %11967 = vmatprep.mubr.bf16.mxu1 %v29356_v28 }
 0x533   : > { %8838 = vmatmul.mubr.bf16.gmra.mrb[8].mxu0 %v29357_v11 }
 0x534   : > { %11968 = vmatmul.mubr.bf16.gmra.mrb[8].mxu1 %v29357_v11  ;;  %8847 = vmatprep.mubr.bf16.mxu0 %v29358_v37 }
 0x535   : > { %11977 = vmatprep.mubr.bf16.mxu1 %v29358_v37 }
 0x53b   : > { %8848 = vmatmul.mubr.bf16.gmra.mrb[12].mxu0 %v29359_v54 }
 0x53c   : > { %11978 = vmatmul.mubr.bf16.gmra.mrb[12].mxu1 %v29359_v54  ;;  %8857 = vmatprep.mubr.bf16.mxu0 %v29360_v60 }
 0x53d   : > { %11987 = vmatprep.mubr.bf16.mxu1 %v29360_v60 }
 0x543   : > { %8858 = vmatmul.mubr.bf16.gmra.mrb[16].mxu0 %v29361_v38 }
 0x544   : > { %11988 = vmatmul.mubr.bf16.gmra.mrb[16].mxu1 %v29361_v38  ;;  %8867 = vmatprep.mubr.bf16.mxu0 %v29362_v39 }
 0x545   : > { %11997 = vmatprep.mubr.bf16.mxu1 %v29362_v39 }
 0x54b   : > { %8868 = vmatmul.mubr.bf16.gmra.mrb[20].mxu0 %v29363_v35 }
 0x54c   : > { %11998 = vmatmul.mubr.bf16.gmra.mrb[20].mxu1 %v29363_v35  ;;  %8877 = vmatprep.mubr.bf16.mxu0 %v29364_v63 }
 0x54d   : > { %12007 = vmatprep.mubr.bf16.mxu1 %v29364_v63 }
 0x553   : > { %8878 = vmatmul.mubr.bf16.gmra.mrb[24].mxu0 %v29365_v15 }
 0x554   : > { %12008 = vmatmul.mubr.bf16.gmra.mrb[24].mxu1 %v29365_v15  ;;  %8887 = vmatprep.mubr.bf16.mxu0 %v29366_v57 }
 0x555   : > { %12017 = vmatprep.mubr.bf16.mxu1 %v29366_v57 }
 0x55b   : > { %8888 = vmatmul.mubr.bf16.gmra.mrb[28].mxu0 %v29367_v40 }
 0x55c   : > { %12018 = vmatmul.mubr.bf16.gmra.mrb[28].mxu1 %v29367_v40  ;;  %8897 = vmatprep.mubr.bf16.mxu0 %v29368_v45 }
 0x55d   : > { %12027 = vmatprep.mubr.bf16.mxu1 %v29368_v45 }
 0x563   : > { %8898 = vmatmul.mubr.bf16.gmra.mrb[32].mxu0 %v29369_v48 }
 0x564   : > { %12028 = vmatmul.mubr.bf16.gmra.mrb[32].mxu1 %v29369_v48  ;;  %8907 = vmatprep.mubr.bf16.mxu0 %v29370_v47 }
 0x565   : > { %12037 = vmatprep.mubr.bf16.mxu1 %v29370_v47 }
 0x56b   : > { %8908 = vmatmul.mubr.bf16.gmra.mrb[36].mxu0 %v29371_v34 }
 0x56c   : > { %12038 = vmatmul.mubr.bf16.gmra.mrb[36].mxu1 %v29371_v34  ;;  %8917 = vmatprep.mubr.bf16.mxu0 %v24212_v29 }
 0x56d   : > { %12047 = vmatprep.mubr.bf16.mxu1 %v24212_v29 }
 0x573   : > { %8918 = vmatmul.mubr.bf16.gmra.mrb[40].mxu0 %v24205_v58 }
 0x574   : > { %12048 = vmatmul.mubr.bf16.gmra.mrb[40].mxu1 %v24205_v58  ;;  %8927 = vmatprep.mubr.bf16.mxu0 %v24253_v22 }
 0x575   : > { %12057 = vmatprep.mubr.bf16.mxu1 %v24253_v22 }
 0x57b   : > { %8928 = vmatmul.mubr.bf16.gmra.mrb[44].mxu0 %v24249_v25 }
 0x57c   : > { %12058 = vmatmul.mubr.bf16.gmra.mrb[44].mxu1 %v24249_v25  ;;  %8937 = vmatprep.mubr.bf16.mxu0 %v24332_v32 }
 0x57d   : > { %12067 = vmatprep.mubr.bf16.mxu1 %v24332_v32 }
 0x583   : > { %8938 = vmatmul.mubr.bf16.gmra.mrb[48].mxu0 %v24322_v51 }
 0x584   : > { %12068 = vmatmul.mubr.bf16.gmra.mrb[48].mxu1 %v24322_v51  ;;  %8947 = vmatprep.mubr.bf16.mxu0 %v24367_v18 }
 0x585   : > { %12077 = vmatprep.mubr.bf16.mxu1 %v24367_v18 }
 0x58b   : > { %8948 = vmatmul.mubr.bf16.gmra.mrb[52].mxu0 %v24363_v52 }
 0x58c   : > { %12078 = vmatmul.mubr.bf16.gmra.mrb[52].mxu1 %v24363_v52  ;;  %8957 = vmatprep.mubr.bf16.mxu0 %v24440_v3 }
 0x58d   : > { %12087 = vmatprep.mubr.bf16.mxu1 %v24440_v3 }
 0x593   : > { %8958 = vmatmul.mubr.bf16.gmra.mrb[56].mxu0 %v29372_v43 }
 0x594   : > { %12088 = vmatmul.mubr.bf16.gmra.mrb[56].mxu1 %v29372_v43  ;;  %8967 = vmatprep.mubr.bf16.mxu0 %v29373_v8 }
 0x595   : > { %12097 = vmatprep.mubr.bf16.mxu1 %v29373_v8 }
 0x59b   : > { %8968 = vmatmul.mubr.bf16.gmra.mrb[60].mxu0 %v29416_v9 }
 0x59c   : > { %12098 = vmatmul.mubr.bf16.gmra.mrb[60].mxu1 %v29416_v9  ;;  %8977 = vmatprep.mubr.bf16.mxu0 %v29417_v42 }
 0x59d   : > { %12107 = vmatprep.mubr.bf16.mxu1 %v29417_v42 }
 0x5a3   : > { %8978 = vmatmul.mubr.bf16.gmra.mrb[64].mxu0 %v29418_v7 }
 0x5a4   : > { %12108 = vmatmul.mubr.bf16.gmra.mrb[64].mxu1 %v29418_v7  ;;  %8987 = vmatprep.mubr.bf16.mxu0 %v29419_v17  ;;  %v21742_v7 = vld [vmem:[%s28883_s3 + $0xa44] ss:$16 sps:$4 sm:$0xff]  }
 0x5a5   : > { %12117 = vmatprep.mubr.bf16.mxu1 %v29419_v17  ;;  %v21737_v17 = vld [vmem:[%s28883_s3 + $0xa28] ss:$16 sps:$4 sm:$0xff]  }
 0x5ab   : > { %8988 = vmatmul.mubr.bf16.gmra.mrb[68].mxu0 %v29420_v31 }
 0x5ac   : > { %12118 = vmatmul.mubr.bf16.gmra.mrb[68].mxu1 %v29420_v31  ;;  %8997 = vmatprep.mubr.bf16.mxu0 %v29421_v5  ;;  %v21734_v31 = vld [vmem:[%s28883_s3 + $0xa20] ss:$16 sps:$4 sm:$0xff]  }
 0x5ad   : > { %12127 = vmatprep.mubr.bf16.mxu1 %v29421_v5  ;;  %v29425_v5 = vld [vmem:[#allocation5_spill] sm:$0xff] }
 0x5b3   : > { %8998 = vmatmul.mubr.bf16.gmra.mrb[72].mxu0 %v29422_v41 }
 0x5b4   : > { %12128 = vmatmul.mubr.bf16.gmra.mrb[72].mxu1 %v29422_v41  ;;  %9007 = vmatprep.mubr.bf16.mxu0 %v29423_v23  ;;  %v21731_v41 = vld [vmem:[%s28883_s3 + $0xa08] ss:$16 sps:$4 sm:$0xff]  }
 0x5b5   : > { %12137 = vmatprep.mubr.bf16.mxu1 %v29423_v23  ;;  %v21736_v23 = vld [vmem:[%s28883_s3 + $0xa24] ss:$16 sps:$4 sm:$0xff]  }
 0x5bb   : > { %9008 = vmatmul.mubr.bf16.gmra.mrb[76].mxu0 %v29424_v46 }
 0x5bc   : > { %12138 = vmatmul.mubr.bf16.gmra.mrb[76].mxu1 %v29424_v46  ;;  %9050 = vmatprep.mubr.bf16.mxu0 %v29375_v13  ;;  %v21739_v46 = vld [vmem:[%s28883_s3 + $0xa2c] ss:$16 sps:$4 sm:$0xff]  }
 0x5bd   : > { %12180 = vmatprep.mubr.bf16.mxu1 %v29375_v13  ;;  %v29426_v13 = vld [vmem:[#allocation9_spill] sm:$0xff] }
 0x5c3   : > { %9051 = vmatmul.mubr.bf16.vlgmr.msra.gmra.mrb[224].mxu0 %v29425_v5 }
 0x5c4   : > { %12181 = vmatmul.mubr.bf16.vlgmr.msra.gmra.mrb[224].mxu1 %v29425_v5  ;;  %9060 = vmatprep.mubr.bf16.mxu0 %v29426_v13  ;;  %v21740_v5 = vld [vmem:[%s28883_s3 + $0xa40] ss:$16 sps:$4 sm:$0xff]  }
 0x5c5   : > { %9332 = vmatpush1.bf16.msra.mxu0 %v21728_v2  ;;  %12190 = vmatprep.mubr.bf16.mxu1 %v29426_v13  ;;  %v21745_v2 = vld [vmem:[%s28883_s3 + $0xa4c] ss:$16 sps:$4 sm:$0xff]   ;;  %v21749_v13 = vld [vmem:[%s28883_s3 + $0xa68] ss:$16 sps:$4 sm:$0xff]  }
 0x5c6   : > { %12462 = vmatpush1.bf16.msra.mxu1 %v21731_v41  ;;  %9333 = vmatprep.subr.bf16.mxu0 %v21736_v23  ;;  %v21743_v41 = vld [vmem:[%s28883_s3 + $0xa48] ss:$16 sps:$4 sm:$0xff]   ;;  %v21748_v23 = vld [vmem:[%s28883_s3 + $0xa64] ss:$16 sps:$4 sm:$0xff]  }
 0x5c7   : > { %12463 = vmatprep.subr.bf16.mxu1 %v21739_v46  ;;  %v21751_v46 = vld [vmem:[%s28883_s3 + $0xa6c] ss:$16 sps:$4 sm:$0xff]  }
 0x5c9   : > { %9334 = vmatpush1.bf16.msra.mxu0 %v21734_v31  ;;  %v29427_v31 = vld [vmem:[#allocation10_spill] sm:$0xff] }
 0x5ca   : > { %12464 = vmatpush1.bf16.msra.mxu1 %v21737_v17  ;;  %9335 = vmatprep.subr.bf16.mxu0 %v21742_v7  ;;  %v29428_v17 = vld [vmem:[#allocation15_spill] sm:$0xff]  ;;  %v21746_v7 = vld [vmem:[%s28883_s3 + $0xa60] ss:$16 sps:$4 sm:$0xff]  }
 0x5cb   : > { %12465 = vmatprep.subr.bf16.mxu1 %v21745_v2  ;;  %9061 = vmatmul.mubr.bf16.gmra.mrb[228].mxu0 %v29427_v31  ;;  %v21754_v2 = vld [vmem:[%s28883_s3 + $0xa84] ss:$16 sps:$4 sm:$0xff]  }
 0x5cc   : > { %12191 = vmatmul.mubr.bf16.gmra.mrb[228].mxu1 %v29427_v31  ;;  %9070 = vmatprep.mubr.bf16.mxu0 %v29428_v17  ;;  %v21757_v31 = vld [vmem:[%s28883_s3 + $0xa8c] ss:$16 sps:$4 sm:$0xff]  }
 0x5cd   : > { %12200 = vmatprep.mubr.bf16.mxu1 %v29428_v17  ;;  %9336 = vmatpush1.bf16.msra.mxu0 %v21740_v5  ;;  %v21752_v5 = vld [vmem:[%s28883_s3 + $0xa80] ss:$16 sps:$4 sm:$0xff]  }
 0x5ce   : > { %12466 = vmatpush1.bf16.msra.mxu1 %v21743_v41  ;;  %9337 = vmatprep.subr.bf16.mxu0 %v21748_v23  ;;  %v21755_v41 = vld [vmem:[%s28883_s3 + $0xa88] ss:$16 sps:$4 sm:$0xff]   ;;  %v21760_v23 = vld [vmem:[%s28883_s3 + $0xaa4] ss:$16 sps:$4 sm:$0xff]  }
 0x5cf   : > { %12467 = vmatprep.subr.bf16.mxu1 %v21751_v46  ;;  %v21763_v46 = vld [vmem:[%s28883_s3 + $0xaac] ss:$16 sps:$4 sm:$0xff]  }
 0x5d1   : > { %9338 = vmatpush1.bf16.msra.mxu0 %v21746_v7  ;;  %v29429_v7 = vld [vmem:[#allocation13_spill] sm:$0xff] }
 0x5d2   : > { %12468 = vmatpush1.bf16.msra.mxu1 %v21749_v13  ;;  %9339 = vmatprep.subr.bf16.mxu0 %v21754_v2  ;;  %v29430_v13 = vld [vmem:[#allocation19_spill] sm:$0xff]  ;;  %v21758_v2 = vld [vmem:[%s28883_s3 + $0xaa0] ss:$16 sps:$4 sm:$0xff]  }
 0x5d3   : > { %12469 = vmatprep.subr.bf16.mxu1 %v21757_v31  ;;  %9071 = vmatmul.mubr.bf16.gmra.mrb[232].mxu0 %v29429_v7  ;;  %v21761_v31 = vld [vmem:[%s28883_s3 + $0xaa8] ss:$16 sps:$4 sm:$0xff]  }
 0x5d4   : > { %12201 = vmatmul.mubr.bf16.gmra.mrb[232].mxu1 %v29429_v7  ;;  %9080 = vmatprep.mubr.bf16.mxu0 %v29430_v13  ;;  %v21766_v7 = vld [vmem:[%s28883_s3 + $0xac4] ss:$16 sps:$4 sm:$0xff]  }
 0x5d5   : > { %12210 = vmatprep.mubr.bf16.mxu1 %v29430_v13  ;;  %9340 = vmatpush1.bf16.msra.mxu0 %v21752_v5  ;;  %v21769_v13 = vld [vmem:[%s28883_s3 + $0xacc] ss:$16 sps:$4 sm:$0xff]   ;;  %v21764_v5 = vld [vmem:[%s28883_s3 + $0xac0] ss:$16 sps:$4 sm:$0xff]  }
 0x5d6   : > { %12470 = vmatpush1.bf16.msra.mxu1 %v21755_v41  ;;  %9341 = vmatprep.subr.bf16.mxu0 %v21760_v23  ;;  %v21767_v41 = vld [vmem:[%s28883_s3 + $0xac8] ss:$16 sps:$4 sm:$0xff]   ;;  %v21772_v23 = vld [vmem:[%s28883_s3 + $0xae4] ss:$16 sps:$4 sm:$0xff]  }
 0x5d7   : > { %12471 = vmatprep.subr.bf16.mxu1 %v21763_v46  ;;  %v21775_v46 = vld [vmem:[%s28883_s3 + $0xaec] ss:$16 sps:$4 sm:$0xff]  }
 0x5d9   : > { %9342 = vmatpush1.bf16.msra.mxu0 %v21758_v2  ;;  %v29431_v2 = vld [vmem:[#allocation17_spill] sm:$0xff] }
 0x5da   : > { %12472 = vmatpush1.bf16.msra.mxu1 %v21761_v31  ;;  %9343 = vmatprep.subr.bf16.mxu0 %v21766_v7  ;;  %v29432_v31 = vld [vmem:[#allocation23_spill] sm:$0xff]  ;;  %v21770_v7 = vld [vmem:[%s28883_s3 + $0xae0] ss:$16 sps:$4 sm:$0xff]  }
 0x5db   : > { %12473 = vmatprep.subr.bf16.mxu1 %v21769_v13  ;;  %9081 = vmatmul.mubr.bf16.gmra.mrb[236].mxu0 %v29431_v2  ;;  %v21773_v13 = vld [vmem:[%s28883_s3 + $0xae8] ss:$16 sps:$4 sm:$0xff]  }
 0x5dc   : > { %12211 = vmatmul.mubr.bf16.gmra.mrb[236].mxu1 %v29431_v2  ;;  %9090 = vmatprep.mubr.bf16.mxu0 %v29432_v31  ;;  %v21778_v2 = vld [vmem:[%s28883_s3 + $0xb04] ss:$16 sps:$4 sm:$0xff]  }
 0x5dd   : > { %12220 = vmatprep.mubr.bf16.mxu1 %v29432_v31  ;;  %9344 = vmatpush1.bf16.msra.mxu0 %v21764_v5  ;;  %v21781_v31 = vld [vmem:[%s28883_s3 + $0xb0c] ss:$16 sps:$4 sm:$0xff]   ;;  %v21776_v5 = vld [vmem:[%s28883_s3 + $0xb00] ss:$16 sps:$4 sm:$0xff]  }
 0x5de   : > { %12474 = vmatpush1.bf16.msra.mxu1 %v21767_v41  ;;  %9345 = vmatprep.subr.bf16.mxu0 %v21772_v23  ;;  %v21779_v41 = vld [vmem:[%s28883_s3 + $0xb08] ss:$16 sps:$4 sm:$0xff]   ;;  %v21784_v23 = vld [vmem:[%s28883_s3 + $0xb24] ss:$16 sps:$4 sm:$0xff]  }
 0x5df   : > { %12475 = vmatprep.subr.bf16.mxu1 %v21775_v46  ;;  %v21787_v46 = vld [vmem:[%s28883_s3 + $0xb2c] ss:$16 sps:$4 sm:$0xff]  }
 0x5e1   : > { %9346 = vmatpush1.bf16.msra.mxu0 %v21770_v7  ;;  %v29433_v7 = vld [vmem:[#allocation21_spill] sm:$0xff] }
 0x5e2   : > { %12476 = vmatpush1.bf16.msra.mxu1 %v21773_v13  ;;  %9347 = vmatprep.subr.bf16.mxu0 %v21778_v2  ;;  %v29434_v13 = vld [vmem:[#allocation27_spill] sm:$0xff]  ;;  %v21782_v2 = vld [vmem:[%s28883_s3 + $0xb20] ss:$16 sps:$4 sm:$0xff]  }
 0x5e3   : > { %12477 = vmatprep.subr.bf16.mxu1 %v21781_v31  ;;  %9091 = vmatmul.mubr.bf16.gmra.mrb[240].mxu0 %v29433_v7  ;;  %v21785_v31 = vld [vmem:[%s28883_s3 + $0xb28] ss:$16 sps:$4 sm:$0xff]  }
 0x5e4   : > { %12221 = vmatmul.mubr.bf16.gmra.mrb[240].mxu1 %v29433_v7  ;;  %9100 = vmatprep.mubr.bf16.mxu0 %v29434_v13  ;;  %v21790_v7 = vld [vmem:[%s28883_s3 + $0xb44] ss:$16 sps:$4 sm:$0xff]  }
 0x5e5   : > { %12230 = vmatprep.mubr.bf16.mxu1 %v29434_v13  ;;  %9348 = vmatpush1.bf16.msra.mxu0 %v21776_v5  ;;  %v21793_v13 = vld [vmem:[%s28883_s3 + $0xb4c] ss:$16 sps:$4 sm:$0xff]   ;;  %v21788_v5 = vld [vmem:[%s28883_s3 + $0xb40] ss:$16 sps:$4 sm:$0xff]  }
 0x5e6   : > { %12478 = vmatpush1.bf16.msra.mxu1 %v21779_v41  ;;  %9349 = vmatprep.subr.bf16.mxu0 %v21784_v23  ;;  %v21791_v41 = vld [vmem:[%s28883_s3 + $0xb48] ss:$16 sps:$4 sm:$0xff]   ;;  %v21796_v23 = vld [vmem:[%s28883_s3 + $0xb64] ss:$16 sps:$4 sm:$0xff]  }
 0x5e7   : > { %12479 = vmatprep.subr.bf16.mxu1 %v21787_v46  ;;  %v21799_v46 = vld [vmem:[%s28883_s3 + $0xb6c] ss:$16 sps:$4 sm:$0xff]  }
 0x5e9   : > { %9350 = vmatpush1.bf16.msra.mxu0 %v21782_v2  ;;  %v29435_v2 = vld [vmem:[#allocation25_spill] sm:$0xff] }
 0x5ea   : > { %12480 = vmatpush1.bf16.msra.mxu1 %v21785_v31  ;;  %9351 = vmatprep.subr.bf16.mxu0 %v21790_v7  ;;  %v29436_v31 = vld [vmem:[#allocation31_spill] sm:$0xff]  ;;  %v21794_v7 = vld [vmem:[%s28883_s3 + $0xb60] ss:$16 sps:$4 sm:$0xff]  }
 0x5eb   : > { %12481 = vmatprep.subr.bf16.mxu1 %v21793_v13  ;;  %9101 = vmatmul.mubr.bf16.gmra.mrb[244].mxu0 %v29435_v2  ;;  %v21797_v13 = vld [vmem:[%s28883_s3 + $0xb68] ss:$16 sps:$4 sm:$0xff]  }
 0x5ec   : > { %12231 = vmatmul.mubr.bf16.gmra.mrb[244].mxu1 %v29435_v2  ;;  %9110 = vmatprep.mubr.bf16.mxu0 %v29436_v31  ;;  %v21802_v2 = vld [vmem:[%s28883_s3 + $0xb84] ss:$16 sps:$4 sm:$0xff]  }
 0x5ed   : > { %12240 = vmatprep.mubr.bf16.mxu1 %v29436_v31  ;;  %9352 = vmatpush1.bf16.msra.mxu0 %v21788_v5  ;;  %v21805_v31 = vld [vmem:[%s28883_s3 + $0xb8c] ss:$16 sps:$4 sm:$0xff]   ;;  %v21800_v5 = vld [vmem:[%s28883_s3 + $0xb80] ss:$16 sps:$4 sm:$0xff]  }
 0x5ee   : > { %12482 = vmatpush1.bf16.msra.mxu1 %v21791_v41  ;;  %9353 = vmatprep.subr.bf16.mxu0 %v21796_v23  ;;  %v21803_v41 = vld [vmem:[%s28883_s3 + $0xb88] ss:$16 sps:$4 sm:$0xff]  }
 0x5ef   : > { %12483 = vmatprep.subr.bf16.mxu1 %v21799_v46  ;;  %v29437_v23 = vld [vmem:[#allocation29_spill] sm:$0xff]  ;;  %v29438_v46 = vld [vmem:[#allocation35_spill] sm:$0xff] }
 0x5f1   : > { %9354 = vmatpush1.bf16.msra.mxu0 %v21794_v7  ;;  %v21808_v7 = vld [vmem:[%s28883_s3 + $0xba4] ss:$16 sps:$4 sm:$0xff]  }
 0x5f2   : > { %12484 = vmatpush1.bf16.msra.mxu1 %v21797_v13  ;;  %9355 = vmatprep.subr.bf16.mxu0 %v21802_v2  ;;  %v21806_v13 = vld [vmem:[%s28883_s3 + $0xba0] ss:$16 sps:$4 sm:$0xff]   ;;  %v21809_v2 = vld [vmem:[%s28883_s3 + $0xba8] ss:$16 sps:$4 sm:$0xff]  }
 0x5f3   : > { %12485 = vmatprep.subr.bf16.mxu1 %v21805_v31  ;;  %9111 = vmatmul.mubr.bf16.gmra.mrb[248].mxu0 %v29437_v23  ;;  %v21811_v31 = vld [vmem:[%s28883_s3 + $0xbac] ss:$16 sps:$4 sm:$0xff]  }
 0x5f4   : > { %12241 = vmatmul.mubr.bf16.gmra.mrb[248].mxu1 %v29437_v23  ;;  %9120 = vmatprep.mubr.bf16.mxu0 %v29438_v46  ;;  %v29442_v23 = vld [vmem:[#allocation43_spill] sm:$0xff] }
 0x5f5   : > { %12250 = vmatprep.mubr.bf16.mxu1 %v29438_v46  ;;  %9356 = vmatpush1.bf16.msra.mxu0 %v21800_v5  ;;  %v29439_v46 = vld [vmem:[#allocation33_spill] sm:$0xff]  ;;  %v29440_v5 = vld [vmem:[#allocation39_spill] sm:$0xff] }
 0x5f6   : > { %12486 = vmatpush1.bf16.msra.mxu1 %v21803_v41  ;;  %9357 = vmatprep.subr.bf16.mxu0 %v21808_v7  ;;  %v29441_v41 = vld [vmem:[#allocation37_spill] sm:$0xff]  ;;  %v21812_v7 = vld [vmem:[%s28883_s3 + $0xbc0] ss:$16 sps:$4 sm:$0xff]  }
 0x5f7   : > { %12487 = vmatprep.subr.bf16.mxu1 %v21811_v31  ;;  %v21817_v31 = vld [vmem:[%s28883_s3 + $0xbcc] ss:$16 sps:$4 sm:$0xff]  }
 0x5f9   : > { %9358 = vmatpush1.bf16.msra.mxu0 %v21806_v13  ;;  %v21814_v13 = vld [vmem:[%s28883_s3 + $0xbc4] ss:$16 sps:$4 sm:$0xff]  }
 0x5fa   : > { %12488 = vmatpush1.bf16.msra.mxu1 %v21809_v2  ;;  %v21815_v2 = vld [vmem:[%s28883_s3 + $0xbc8] ss:$16 sps:$4 sm:$0xff]   ;;  %9359 = vmatprep.subr.bf16.mxu0 %v21814_v13  ;;  %v21820_v13 = vld [vmem:[%s28883_s3 + $0xbe4] ss:$16 sps:$4 sm:$0xff]  }
 0x5fb   : > { %9121 = vmatmul.mubr.bf16.gmra.mrb[252].mxu0 %v29439_v46  ;;  %12489 = vmatprep.subr.bf16.mxu1 %v21817_v31  ;;  %v21823_v31 = vld [vmem:[%s28883_s3 + $0xbec] ss:$16 sps:$4 sm:$0xff]  }
 0x5fc   : > { %12251 = vmatmul.mubr.bf16.gmra.mrb[252].mxu1 %v29439_v46  ;;  %9130 = vmatprep.mubr.bf16.mxu0 %v29440_v5 }
 0x5fd   : > { %12260 = vmatprep.mubr.bf16.mxu1 %v29440_v5  ;;  %9360 = vmatpush1.bf16.msra.mxu0 %v21812_v7  ;;  %v29445_v5 = vld [vmem:[#allocation51_spill] sm:$0xff]  ;;  %v21818_v7 = vld [vmem:[%s28883_s3 + $0xbe0] ss:$16 sps:$4 sm:$0xff]  }
 0x5fe   : > { %12490 = vmatpush1.bf16.msra.mxu1 %v21815_v2  ;;  %v21821_v2 = vld [vmem:[%s28883_s3 + $0xbe8] ss:$16 sps:$4 sm:$0xff]   ;;  %9361 = vmatprep.subr.bf16.mxu0 %v21820_v13 }
 0x5ff   : > { %12491 = vmatprep.subr.bf16.mxu1 %v21823_v31  ;;  %v29448_v13 = vld [vmem:[#allocation59_spill] sm:$0xff] }
 0x600   : > { %v29450_v31 = vld [vmem:[#allocation63_spill] sm:$0xff] }
 0x601   : > { %9362 = vmatpush1.bf16.msra.mxu0 %v21818_v7  ;;  %v21829_v7 = vld [vmem:[%s28883_s3 + $0xc0c] ss:$16 sps:$4 sm:$0xff]  }
 0x602   : > { %12492 = vmatpush1.bf16.msra.mxu1 %v21821_v2  ;;  %v29449_v2 = vld [vmem:[#allocation57_spill] sm:$0xff] }
 0x603   : > { %9131 = vmatmul.mubr.bf16.gmra.mrb[0].mxu0 %v29441_v41  ;;  %12774 = vmatprep.subr.bf16.mxu1 %v21829_v7  ;;  %v29454_v7 = vld [vmem:[#allocation79_spill] sm:$0xff] }
 0x604   : > { %12261 = vmatmul.mubr.bf16.gmra.mrb[0].mxu1 %v29441_v41  ;;  %9140 = vmatprep.mubr.bf16.mxu0 %v29442_v23  ;;  %v29444_v41 = vld [vmem:[#allocation45_spill] sm:$0xff] }
 0x605   : > { %12270 = vmatprep.mubr.bf16.mxu1 %v29442_v23  ;;  %v29443_v23 = vld [vmem:[#allocation47_spill] sm:$0xff] }
 0x60b   : > { %9141 = vmatmul.mubr.bf16.gmra.mrb[4].mxu0 %v29394_v59 }
 0x60c   : > { %12271 = vmatmul.mubr.bf16.gmra.mrb[4].mxu1 %v29394_v59  ;;  %9150 = vmatprep.mubr.bf16.mxu0 %v29443_v23 }
 0x60d   : > { %12280 = vmatprep.mubr.bf16.mxu1 %v29443_v23  ;;  %v21826_v23 = vld [vmem:[%s28883_s3 + $0xc04] ss:$16 sps:$4 sm:$0xff]  }
 0x60e   : > { %9644 = vmatprep.subr.bf16.mxu0 %v21826_v23  ;;  %v29453_v23 = vld [vmem:[#allocation75_spill] sm:$0xff] }
 0x613   : > { %9151 = vmatmul.mubr.bf16.gmra.mrb[8].mxu0 %v29444_v41 }
 0x614   : > { %12281 = vmatmul.mubr.bf16.gmra.mrb[8].mxu1 %v29444_v41  ;;  %9160 = vmatprep.mubr.bf16.mxu0 %v29445_v5  ;;  %v29447_v41 = vld [vmem:[#allocation53_spill] sm:$0xff] }
 0x615   : > { %12290 = vmatprep.mubr.bf16.mxu1 %v29445_v5  ;;  %v29446_v5 = vld [vmem:[#allocation55_spill] sm:$0xff] }
 0x61b   : > { %9161 = vmatmul.mubr.bf16.gmra.mrb[12].mxu0 %v29398_v53 }
 0x61c   : > { %12291 = vmatmul.mubr.bf16.gmra.mrb[12].mxu1 %v29398_v53  ;;  %9170 = vmatprep.mubr.bf16.mxu0 %v29446_v5 }
 0x61d   : > { %12300 = vmatprep.mubr.bf16.mxu1 %v29446_v5  ;;  %v29452_v5 = vld [vmem:[#allocation67_spill] sm:$0xff] }
 0x623   : > { %9171 = vmatmul.mubr.bf16.gmra.mrb[16].mxu0 %v29447_v41 }
 0x624   : > { %12301 = vmatmul.mubr.bf16.gmra.mrb[16].mxu1 %v29447_v41  ;;  %9180 = vmatprep.mubr.bf16.mxu0 %v29448_v13  ;;  %v29451_v41 = vld [vmem:[#allocation61_spill] sm:$0xff] }
 0x625   : > { %12310 = vmatprep.mubr.bf16.mxu1 %v29448_v13 }
 0x62b   : > { %9181 = vmatmul.mubr.bf16.gmra.mrb[20].mxu0 %v29449_v2 }
 0x62c   : > { %12311 = vmatmul.mubr.bf16.gmra.mrb[20].mxu1 %v29449_v2  ;;  %9190 = vmatprep.mubr.bf16.mxu0 %v29450_v31 }
 0x62d   : > { %12320 = vmatprep.mubr.bf16.mxu1 %v29450_v31 }
 0x633   : > { %9191 = vmatmul.mubr.bf16.gmra.mrb[24].mxu0 %v29451_v41 }
 0x634   : > { %12321 = vmatmul.mubr.bf16.gmra.mrb[24].mxu1 %v29451_v41  ;;  %9200 = vmatprep.mubr.bf16.mxu0 %v29452_v5 }
 0x635   : > { %12330 = vmatprep.mubr.bf16.mxu1 %v29452_v5 }
 0x63b   : > { %9201 = vmatmul.mubr.bf16.gmra.mrb[28].mxu0 %v29406_v27 }
 0x63c   : > { %12331 = vmatmul.mubr.bf16.gmra.mrb[28].mxu1 %v29406_v27  ;;  %9210 = vmatprep.mubr.bf16.mxu0 %v29407_v6 }
 0x63d   : > { %12340 = vmatprep.mubr.bf16.mxu1 %v29407_v6 }
 0x643   : > { %9211 = vmatmul.mubr.bf16.gmra.mrb[32].mxu0 %v29408_v16 }
 0x644   : > { %12341 = vmatmul.mubr.bf16.gmra.mrb[32].mxu1 %v29408_v16  ;;  %9220 = vmatprep.mubr.bf16.mxu0 %v29409_v61 }
 0x645   : > { %12350 = vmatprep.mubr.bf16.mxu1 %v29409_v61 }
 0x64b   : > { %9221 = vmatmul.mubr.bf16.gmra.mrb[36].mxu0 %v29410_v33 }
 0x64c   : > { %12351 = vmatmul.mubr.bf16.gmra.mrb[36].mxu1 %v29410_v33  ;;  %9230 = vmatprep.mubr.bf16.mxu0 %v29411_v62  ;;  %v29455_v33 = vld [vmem:[#allocation77_spill] sm:$0xff] }
 0x64d   : > { %12360 = vmatprep.mubr.bf16.mxu1 %v29411_v62  ;;  %v29456_v62 = vld [vmem:[#allocation82_spill] sm:$0xff] }
 0x653   : > { %9231 = vmatmul.mubr.bf16.gmra.mrb[40].mxu0 %v24320_v19 }
 0x654   : > { %12361 = vmatmul.mubr.bf16.gmra.mrb[40].mxu1 %v24320_v19  ;;  %9240 = vmatprep.mubr.bf16.mxu0 %v24365_v24  ;;  %v29457_v19 = vld [vmem:[#allocation80_spill] sm:$0xff] }
 0x655   : > { %12370 = vmatprep.mubr.bf16.mxu1 %v24365_v24  ;;  %v29458_v24 = vld [vmem:[#allocation86_spill] sm:$0xff] }
 0x65b   : > { %9241 = vmatmul.mubr.bf16.gmra.mrb[44].mxu0 %v29453_v23 }
 0x65c   : > { %12371 = vmatmul.mubr.bf16.gmra.mrb[44].mxu1 %v29453_v23  ;;  %9250 = vmatprep.mubr.bf16.mxu0 %v29454_v7  ;;  %v29459_v23 = vld [vmem:[#allocation84_spill] sm:$0xff] }
 0x65d   : > { %12380 = vmatprep.mubr.bf16.mxu1 %v29454_v7  ;;  %v29460_v7 = vld [vmem:[#allocation90_spill] sm:$0xff] }
 0x663   : > { %9251 = vmatmul.mubr.bf16.gmra.mrb[48].mxu0 %v29455_v33 }
 0x664   : > { %12381 = vmatmul.mubr.bf16.gmra.mrb[48].mxu1 %v29455_v33  ;;  %9260 = vmatprep.mubr.bf16.mxu0 %v29456_v62  ;;  %v29461_v33 = vld [vmem:[#allocation88_spill] sm:$0xff] }
 0x665   : > { %12390 = vmatprep.mubr.bf16.mxu1 %v29456_v62  ;;  %v29462_v62 = vld [vmem:[#allocation94_spill] sm:$0xff] }
 0x66b   : > { %9261 = vmatmul.mubr.bf16.gmra.mrb[52].mxu0 %v29457_v19 }
 0x66c   : > { %12391 = vmatmul.mubr.bf16.gmra.mrb[52].mxu1 %v29457_v19  ;;  %9270 = vmatprep.mubr.bf16.mxu0 %v29458_v24  ;;  %v29463_v19 = vld [vmem:[#allocation92_spill] sm:$0xff] }
 0x66d   : > { %12400 = vmatprep.mubr.bf16.mxu1 %v29458_v24  ;;  %v29464_v24 = vld [vmem:[#allocation98_spill] sm:$0xff] }
 0x673   : > { %9271 = vmatmul.mubr.bf16.gmra.mrb[56].mxu0 %v29459_v23 }
 0x674   : > { %12401 = vmatmul.mubr.bf16.gmra.mrb[56].mxu1 %v29459_v23  ;;  %9280 = vmatprep.mubr.bf16.mxu0 %v29460_v7  ;;  %v29465_v23 = vld [vmem:[#allocation96_spill] sm:$0xff] }
 0x675   : > { %12410 = vmatprep.mubr.bf16.mxu1 %v29460_v7  ;;  %v29466_v7 = vld [vmem:[#allocation102_spill] sm:$0xff] }
 0x67b   : > { %9281 = vmatmul.mubr.bf16.gmra.mrb[60].mxu0 %v29461_v33 }
 0x67c   : > { %12411 = vmatmul.mubr.bf16.gmra.mrb[60].mxu1 %v29461_v33  ;;  %9290 = vmatprep.mubr.bf16.mxu0 %v29462_v62  ;;  %v29467_v33 = vld [vmem:[#allocation100_spill] sm:$0xff] }
 0x67d   : > { %12420 = vmatprep.mubr.bf16.mxu1 %v29462_v62  ;;  %v29468_v62 = vld [vmem:[#allocation106_spill] sm:$0xff] }
 0x683   : > { %9291 = vmatmul.mubr.bf16.gmra.mrb[64].mxu0 %v29463_v19 }
 0x684   : > { %12421 = vmatmul.mubr.bf16.gmra.mrb[64].mxu1 %v29463_v19  ;;  %9300 = vmatprep.mubr.bf16.mxu0 %v29464_v24  ;;  %v29469_v19 = vld [vmem:[#allocation104_spill] sm:$0xff] }
 0x685   : > { %12430 = vmatprep.mubr.bf16.mxu1 %v29464_v24  ;;  %v21838_v24 = vld [vmem:[%s28883_s3 + $0xc44] ss:$16 sps:$4 sm:$0xff]  }
 0x68b   : > { %9301 = vmatmul.mubr.bf16.gmra.mrb[68].mxu0 %v29465_v23 }
 0x68c   : > { %12431 = vmatmul.mubr.bf16.gmra.mrb[68].mxu1 %v29465_v23  ;;  %9310 = vmatprep.mubr.bf16.mxu0 %v29466_v7  ;;  %v21833_v23 = vld [vmem:[%s28883_s3 + $0xc28] ss:$16 sps:$4 sm:$0xff]  }
 0x68d   : > { %12440 = vmatprep.mubr.bf16.mxu1 %v29466_v7  ;;  %v21824_v7 = vld [vmem:[%s28883_s3 + $0xc00] ss:$16 sps:$4 sm:$0xff]  }
 0x693   : > { %9311 = vmatmul.mubr.bf16.gmra.mrb[72].mxu0 %v29467_v33 }
 0x694   : > { %12441 = vmatmul.mubr.bf16.gmra.mrb[72].mxu1 %v29467_v33  ;;  %9320 = vmatprep.mubr.bf16.mxu0 %v29468_v62  ;;  %v21827_v33 = vld [vmem:[%s28883_s3 + $0xc08] ss:$16 sps:$4 sm:$0xff]  }
 0x695   : > { %12450 = vmatprep.mubr.bf16.mxu1 %v29468_v62  ;;  %v21832_v62 = vld [vmem:[%s28883_s3 + $0xc24] ss:$16 sps:$4 sm:$0xff]  }
 0x69b   : > { %9321 = vmatmul.mubr.bf16.gmra.mrb[76].mxu0 %v29469_v19 }
 0x69c   : > { %12451 = vmatmul.mubr.bf16.gmra.mrb[76].mxu1 %v29469_v19  ;;  %9363 = vmatprep.mubr.bf16.mxu0 %v29340_v30  ;;  %v21835_v19 = vld [vmem:[%s28883_s3 + $0xc2c] ss:$16 sps:$4 sm:$0xff]  }
 0x69d   : > { %12493 = vmatprep.mubr.bf16.mxu1 %v29340_v30  ;;  %v21830_v30 = vld [vmem:[%s28883_s3 + $0xc20] ss:$16 sps:$4 sm:$0xff]  }
 0x6a3   : > { %9364 = vmatmul.mubr.bf16.vlgmr.msra.gmra.mrb[224].mxu0 %v29341_v21 }
 0x6a4   : > { %12494 = vmatmul.mubr.bf16.vlgmr.msra.gmra.mrb[224].mxu1 %v29341_v21  ;;  %9373 = vmatprep.mubr.bf16.mxu0 %v29342_v1  ;;  %v21841_v21 = vld [vmem:[%s28883_s3 + $0xc4c] ss:$16 sps:$4 sm:$0xff]  }
 0x6a5   : > { %9645 = vmatpush1.bf16.msra.mxu0 %v21824_v7  ;;  %12503 = vmatprep.mubr.bf16.mxu1 %v29342_v1  ;;  %v21836_v1 = vld [vmem:[%s28883_s3 + $0xc40] ss:$16 sps:$4 sm:$0xff]   ;;  %v21853_v7 = vld [vmem:[%s28883_s3 + $0xc8c] ss:$16 sps:$4 sm:$0xff]  }
 0x6a6   : > { %12775 = vmatpush1.bf16.msra.mxu1 %v21827_v33  ;;  %9646 = vmatprep.subr.bf16.mxu0 %v21832_v62  ;;  %v21839_v33 = vld [vmem:[%s28883_s3 + $0xc48] ss:$16 sps:$4 sm:$0xff]   ;;  %v21847_v62 = vld [vmem:[%s28883_s3 + $0xc6c] ss:$16 sps:$4 sm:$0xff]  }
 0x6a7   : > { %12776 = vmatprep.subr.bf16.mxu1 %v21835_v19  ;;  %v21844_v19 = vld [vmem:[%s28883_s3 + $0xc64] ss:$16 sps:$4 sm:$0xff]  }
 0x6a9   : > { %9647 = vmatpush1.bf16.msra.mxu0 %v21830_v30  ;;  %v21848_v30 = vld [vmem:[%s28883_s3 + $0xc80] ss:$16 sps:$4 sm:$0xff]  }
 0x6aa   : > { %12777 = vmatpush1.bf16.msra.mxu1 %v21833_v23  ;;  %9648 = vmatprep.subr.bf16.mxu0 %v21838_v24  ;;  %v21842_v24 = vld [vmem:[%s28883_s3 + $0xc60] ss:$16 sps:$4 sm:$0xff]   ;;  %v21845_v23 = vld [vmem:[%s28883_s3 + $0xc68] ss:$16 sps:$4 sm:$0xff]  }
 0x6ab   : > { %12778 = vmatprep.subr.bf16.mxu1 %v21841_v21  ;;  %9374 = vmatmul.mubr.bf16.gmra.mrb[228].mxu0 %v29343_v4  ;;  %v21851_v21 = vld [vmem:[%s28883_s3 + $0xc88] ss:$16 sps:$4 sm:$0xff]  }
 0x6ac   : > { %12504 = vmatmul.mubr.bf16.gmra.mrb[228].mxu1 %v29343_v4  ;;  %9383 = vmatprep.mubr.bf16.mxu0 %v29344_v10  ;;  %v21850_v4 = vld [vmem:[%s28883_s3 + $0xc84] ss:$16 sps:$4 sm:$0xff]  }
 0x6ad   : > { %12513 = vmatprep.mubr.bf16.mxu1 %v29344_v10  ;;  %9649 = vmatpush1.bf16.msra.mxu0 %v21836_v1  ;;  %v21856_v1 = vld [vmem:[%s28883_s3 + $0xca4] ss:$16 sps:$4 sm:$0xff]  }
 0x6ae   : > { %12779 = vmatpush1.bf16.msra.mxu1 %v21839_v33  ;;  %9650 = vmatprep.subr.bf16.mxu0 %v21844_v19  ;;  %v21859_v33 = vld [vmem:[%s28883_s3 + $0xcac] ss:$16 sps:$4 sm:$0xff]   ;;  %v21854_v19 = vld [vmem:[%s28883_s3 + $0xca0] ss:$16 sps:$4 sm:$0xff]  }
 0x6af   : > { %12780 = vmatprep.subr.bf16.mxu1 %v21847_v62  ;;  %v21857_v62 = vld [vmem:[%s28883_s3 + $0xca8] ss:$16 sps:$4 sm:$0xff]  }
 0x6b1   : > { %9651 = vmatpush1.bf16.msra.mxu0 %v21842_v24  ;;  %v21862_v24 = vld [vmem:[%s28883_s3 + $0xcc4] ss:$16 sps:$4 sm:$0xff]  }
 0x6b2   : > { %12781 = vmatpush1.bf16.msra.mxu1 %v21845_v23  ;;  %9652 = vmatprep.subr.bf16.mxu0 %v21850_v4  ;;  %v21865_v23 = vld [vmem:[%s28883_s3 + $0xccc] ss:$16 sps:$4 sm:$0xff]   ;;  %v21860_v4 = vld [vmem:[%s28883_s3 + $0xcc0] ss:$16 sps:$4 sm:$0xff]  }
 0x6b3   : > { %12782 = vmatprep.subr.bf16.mxu1 %v21853_v7  ;;  %9384 = vmatmul.mubr.bf16.gmra.mrb[232].mxu0 %v29345_v36  ;;  %v21863_v7 = vld [vmem:[%s28883_s3 + $0xcc8] ss:$16 sps:$4 sm:$0xff]  }
 0x6b4   : > { %12514 = vmatmul.mubr.bf16.gmra.mrb[232].mxu1 %v29345_v36  ;;  %9393 = vmatprep.mubr.bf16.mxu0 %v29346_v0 }
 0x6b5   : > { %12523 = vmatprep.mubr.bf16.mxu1 %v29346_v0  ;;  %9653 = vmatpush1.bf16.msra.mxu0 %v21848_v30  ;;  %v21868_v30 = vld [vmem:[%s28883_s3 + $0xce4] ss:$16 sps:$4 sm:$0xff]  }
 0x6b6   : > { %12783 = vmatpush1.bf16.msra.mxu1 %v21851_v21  ;;  %9654 = vmatprep.subr.bf16.mxu0 %v21856_v1  ;;  %v21871_v21 = vld [vmem:[%s28883_s3 + $0xcec] ss:$16 sps:$4 sm:$0xff]   ;;  %v21866_v1 = vld [vmem:[%s28883_s3 + $0xce0] ss:$16 sps:$4 sm:$0xff]  }
 0x6b7   : > { %12784 = vmatprep.subr.bf16.mxu1 %v21859_v33  ;;  %v21869_v33 = vld [vmem:[%s28883_s3 + $0xce8] ss:$16 sps:$4 sm:$0xff]  }
 0x6b9   : > { %9655 = vmatpush1.bf16.msra.mxu0 %v21854_v19  ;;  %v21874_v19 = vld [vmem:[%s28883_s3 + $0xd04] ss:$16 sps:$4 sm:$0xff]  }
 0x6ba   : > { %12785 = vmatpush1.bf16.msra.mxu1 %v21857_v62  ;;  %9656 = vmatprep.subr.bf16.mxu0 %v21862_v24  ;;  %v21877_v62 = vld [vmem:[%s28883_s3 + $0xd0c] ss:$16 sps:$4 sm:$0xff]   ;;  %v21872_v24 = vld [vmem:[%s28883_s3 + $0xd00] ss:$16 sps:$4 sm:$0xff]  }
 0x6bb   : > { %12786 = vmatprep.subr.bf16.mxu1 %v21865_v23  ;;  %9394 = vmatmul.mubr.bf16.gmra.mrb[236].mxu0 %v29347_v44  ;;  %v21875_v23 = vld [vmem:[%s28883_s3 + $0xd08] ss:$16 sps:$4 sm:$0xff]  }
 0x6bc   : > { %12524 = vmatmul.mubr.bf16.gmra.mrb[236].mxu1 %v29347_v44  ;;  %9403 = vmatprep.mubr.bf16.mxu0 %v29348_v49 }
 0x6bd   : > { %12533 = vmatprep.mubr.bf16.mxu1 %v29348_v49  ;;  %9657 = vmatpush1.bf16.msra.mxu0 %v21860_v4  ;;  %v21880_v4 = vld [vmem:[%s28883_s3 + $0xd24] ss:$16 sps:$4 sm:$0xff]  }
 0x6be   : > { %12787 = vmatpush1.bf16.msra.mxu1 %v21863_v7  ;;  %9658 = vmatprep.subr.bf16.mxu0 %v21868_v30  ;;  %v21883_v7 = vld [vmem:[%s28883_s3 + $0xd2c] ss:$16 sps:$4 sm:$0xff]   ;;  %v21878_v30 = vld [vmem:[%s28883_s3 + $0xd20] ss:$16 sps:$4 sm:$0xff]  }
 0x6bf   : > { %12788 = vmatprep.subr.bf16.mxu1 %v21871_v21  ;;  %v21881_v21 = vld [vmem:[%s28883_s3 + $0xd28] ss:$16 sps:$4 sm:$0xff]  }
 0x6c1   : > { %9659 = vmatpush1.bf16.msra.mxu0 %v21866_v1  ;;  %v21886_v1 = vld [vmem:[%s28883_s3 + $0xd44] ss:$16 sps:$4 sm:$0xff]  }
 0x6c2   : > { %12789 = vmatpush1.bf16.msra.mxu1 %v21869_v33  ;;  %9660 = vmatprep.subr.bf16.mxu0 %v21874_v19  ;;  %v21889_v33 = vld [vmem:[%s28883_s3 + $0xd4c] ss:$16 sps:$4 sm:$0xff]   ;;  %v21884_v19 = vld [vmem:[%s28883_s3 + $0xd40] ss:$16 sps:$4 sm:$0xff]  }
 0x6c3   : > { %12790 = vmatprep.subr.bf16.mxu1 %v21877_v62  ;;  %9404 = vmatmul.mubr.bf16.gmra.mrb[240].mxu0 %v29349_v50  ;;  %v21887_v62 = vld [vmem:[%s28883_s3 + $0xd48] ss:$16 sps:$4 sm:$0xff]  }
 0x6c4   : > { %12534 = vmatmul.mubr.bf16.gmra.mrb[240].mxu1 %v29349_v50  ;;  %9413 = vmatprep.mubr.bf16.mxu0 %v29350_v55 }
 0x6c5   : > { %12543 = vmatprep.mubr.bf16.mxu1 %v29350_v55  ;;  %9661 = vmatpush1.bf16.msra.mxu0 %v21872_v24  ;;  %v21892_v24 = vld [vmem:[%s28883_s3 + $0xd64] ss:$16 sps:$4 sm:$0xff]  }
 0x6c6   : > { %12791 = vmatpush1.bf16.msra.mxu1 %v21875_v23  ;;  %9662 = vmatprep.subr.bf16.mxu0 %v21880_v4  ;;  %v21895_v23 = vld [vmem:[%s28883_s3 + $0xd6c] ss:$16 sps:$4 sm:$0xff]   ;;  %v21890_v4 = vld [vmem:[%s28883_s3 + $0xd60] ss:$16 sps:$4 sm:$0xff]  }
 0x6c7   : > { %12792 = vmatprep.subr.bf16.mxu1 %v21883_v7  ;;  %v21893_v7 = vld [vmem:[%s28883_s3 + $0xd68] ss:$16 sps:$4 sm:$0xff]  }
 0x6c9   : > { %9663 = vmatpush1.bf16.msra.mxu0 %v21878_v30  ;;  %v21898_v30 = vld [vmem:[%s28883_s3 + $0xd84] ss:$16 sps:$4 sm:$0xff]  }
 0x6ca   : > { %12793 = vmatpush1.bf16.msra.mxu1 %v21881_v21  ;;  %9664 = vmatprep.subr.bf16.mxu0 %v21886_v1  ;;  %v21901_v21 = vld [vmem:[%s28883_s3 + $0xd8c] ss:$16 sps:$4 sm:$0xff]   ;;  %v21896_v1 = vld [vmem:[%s28883_s3 + $0xd80] ss:$16 sps:$4 sm:$0xff]  }
 0x6cb   : > { %12794 = vmatprep.subr.bf16.mxu1 %v21889_v33  ;;  %9414 = vmatmul.mubr.bf16.gmra.mrb[244].mxu0 %v29351_v26  ;;  %v21899_v33 = vld [vmem:[%s28883_s3 + $0xd88] ss:$16 sps:$4 sm:$0xff]  }
 0x6cc   : > { %12544 = vmatmul.mubr.bf16.gmra.mrb[244].mxu1 %v29351_v26  ;;  %9423 = vmatprep.mubr.bf16.mxu0 %v29352_v12 }
 0x6cd   : > { %12553 = vmatprep.mubr.bf16.mxu1 %v29352_v12  ;;  %9665 = vmatpush1.bf16.msra.mxu0 %v21884_v19  ;;  %v21904_v19 = vld [vmem:[%s28883_s3 + $0xda4] ss:$16 sps:$4 sm:$0xff]  }
 0x6ce   : > { %12795 = vmatpush1.bf16.msra.mxu1 %v21887_v62  ;;  %9666 = vmatprep.subr.bf16.mxu0 %v21892_v24  ;;  %v21902_v62 = vld [vmem:[%s28883_s3 + $0xda0] ss:$16 sps:$4 sm:$0xff]   ;;  %v21905_v24 = vld [vmem:[%s28883_s3 + $0xda8] ss:$16 sps:$4 sm:$0xff]  }
 0x6cf   : > { %12796 = vmatprep.subr.bf16.mxu1 %v21895_v23  ;;  %v21907_v23 = vld [vmem:[%s28883_s3 + $0xdac] ss:$16 sps:$4 sm:$0xff]  }
 0x6d1   : > { %9667 = vmatpush1.bf16.msra.mxu0 %v21890_v4  ;;  %v21908_v4 = vld [vmem:[%s28883_s3 + $0xdc0] ss:$16 sps:$4 sm:$0xff]  }
 0x6d2   : > { %12797 = vmatpush1.bf16.msra.mxu1 %v21893_v7  ;;  %9668 = vmatprep.subr.bf16.mxu0 %v21898_v30  ;;  %v21910_v7 = vld [vmem:[%s28883_s3 + $0xdc4] ss:$16 sps:$4 sm:$0xff]   ;;  %v21911_v30 = vld [vmem:[%s28883_s3 + $0xdc8] ss:$16 sps:$4 sm:$0xff]  }
 0x6d3   : > { %12798 = vmatprep.subr.bf16.mxu1 %v21901_v21  ;;  %9424 = vmatmul.mubr.bf16.gmra.mrb[248].mxu0 %v29353_v20  ;;  %v21913_v21 = vld [vmem:[%s28883_s3 + $0xdcc] ss:$16 sps:$4 sm:$0xff]  }
 0x6d4   : > { %12554 = vmatmul.mubr.bf16.gmra.mrb[248].mxu1 %v29353_v20  ;;  %9433 = vmatprep.mubr.bf16.mxu0 %v29354_v14 }
 0x6d5   : > { %12563 = vmatprep.mubr.bf16.mxu1 %v29354_v14  ;;  %9669 = vmatpush1.bf16.msra.mxu0 %v21896_v1  ;;  %v21914_v1 = vld [vmem:[%s28883_s3 + $0xde0] ss:$16 sps:$4 sm:$0xff]  }
 0x6d6   : > { %12799 = vmatpush1.bf16.msra.mxu1 %v21899_v33  ;;  %9670 = vmatprep.subr.bf16.mxu0 %v21904_v19  ;;  %v21916_v33 = vld [vmem:[%s28883_s3 + $0xde4] ss:$16 sps:$4 sm:$0xff]   ;;  %v21917_v19 = vld [vmem:[%s28883_s3 + $0xde8] ss:$16 sps:$4 sm:$0xff]  }
 0x6d7   : > { %12800 = vmatprep.subr.bf16.mxu1 %v21907_v23  ;;  %v21925_v23 = vld [vmem:[%s28883_s3 + $0xe0c] ss:$16 sps:$4 sm:$0xff]  }
 0x6d9   : > { %9671 = vmatpush1.bf16.msra.mxu0 %v21902_v62  ;;  %v21919_v62 = vld [vmem:[%s28883_s3 + $0xdec] ss:$16 sps:$4 sm:$0xff]  }
 0x6da   : > { %12801 = vmatpush1.bf16.msra.mxu1 %v21905_v24  ;;  %9672 = vmatprep.subr.bf16.mxu0 %v21910_v7  ;;  %v21922_v24 = vld [vmem:[%s28883_s3 + $0xe04] ss:$16 sps:$4 sm:$0xff]   ;;  %v29471_v7 = vld [vmem:[#allocation91_spill] sm:$0xff] }
 0x6db   : > { %9434 = vmatmul.mubr.bf16.gmra.mrb[252].mxu0 %v29355_v56  ;;  %12802 = vmatprep.subr.bf16.mxu1 %v21913_v21  ;;  %v29473_v21 = vld [vmem:[#allocation95_spill] sm:$0xff] }
 0x6dc   : > { %12564 = vmatmul.mubr.bf16.gmra.mrb[252].mxu1 %v29355_v56  ;;  %9443 = vmatprep.mubr.bf16.mxu0 %v29356_v28 }
 0x6dd   : > { %12573 = vmatprep.mubr.bf16.mxu1 %v29356_v28  ;;  %9673 = vmatpush1.bf16.msra.mxu0 %v21908_v4  ;;  %v29470_v4 = vld [vmem:[#allocation85_spill] sm:$0xff] }
 0x6de   : > { %12803 = vmatpush1.bf16.msra.mxu1 %v21911_v30  ;;  %9674 = vmatprep.subr.bf16.mxu0 %v21916_v33  ;;  %v29472_v30 = vld [vmem:[#allocation89_spill] sm:$0xff]  ;;  %v29475_v33 = vld [vmem:[#allocation99_spill] sm:$0xff] }
 0x6df   : > { %12804 = vmatprep.subr.bf16.mxu1 %v21919_v62  ;;  %v29477_v62 = vld [vmem:[#allocation103_spill] sm:$0xff] }
 0x6e1   : > { %9675 = vmatpush1.bf16.msra.mxu0 %v21914_v1  ;;  %v29474_v1 = vld [vmem:[#allocation93_spill] sm:$0xff] }
 0x6e2   : > { %12805 = vmatpush1.bf16.msra.mxu1 %v21917_v19  ;;  %9957 = vmatprep.subr.bf16.mxu0 %v21922_v24  ;;  %v29476_v19 = vld [vmem:[#allocation97_spill] sm:$0xff] }
 0x6e3   : > { %9444 = vmatmul.mubr.bf16.gmra.mrb[0].mxu0 %v29357_v11  ;;  %13087 = vmatprep.subr.bf16.mxu1 %v21925_v23  ;;  %v29478_v24 = vld [vmem:[#allocation101_spill] sm:$0xff]  ;;  %v29479_v23 = vld [vmem:[#allocation107_spill] sm:$0xff] }
 0x6e4   : > { %12574 = vmatmul.mubr.bf16.gmra.mrb[0].mxu1 %v29357_v11  ;;  %9453 = vmatprep.mubr.bf16.mxu0 %v29358_v37 }
 0x6e5   : > { %12583 = vmatprep.mubr.bf16.mxu1 %v29358_v37 }
 0x6eb   : > { %9454 = vmatmul.mubr.bf16.gmra.mrb[4].mxu0 %v29359_v54 }
 0x6ec   : > { %12584 = vmatmul.mubr.bf16.gmra.mrb[4].mxu1 %v29359_v54  ;;  %9463 = vmatprep.mubr.bf16.mxu0 %v29360_v60 }
 0x6ed   : > { %12593 = vmatprep.mubr.bf16.mxu1 %v29360_v60 }
 0x6f3   : > { %9464 = vmatmul.mubr.bf16.gmra.mrb[8].mxu0 %v29361_v38 }
 0x6f4   : > { %12594 = vmatmul.mubr.bf16.gmra.mrb[8].mxu1 %v29361_v38  ;;  %9473 = vmatprep.mubr.bf16.mxu0 %v29362_v39 }
 0x6f5   : > { %12603 = vmatprep.mubr.bf16.mxu1 %v29362_v39 }
 0x6fb   : > { %9474 = vmatmul.mubr.bf16.gmra.mrb[12].mxu0 %v29363_v35 }
 0x6fc   : > { %12604 = vmatmul.mubr.bf16.gmra.mrb[12].mxu1 %v29363_v35  ;;  %9483 = vmatprep.mubr.bf16.mxu0 %v29364_v63 }
 0x6fd   : > { %12613 = vmatprep.mubr.bf16.mxu1 %v29364_v63 }
 0x703   : > { %9484 = vmatmul.mubr.bf16.gmra.mrb[16].mxu0 %v29365_v15 }
 0x704   : > { %12614 = vmatmul.mubr.bf16.gmra.mrb[16].mxu1 %v29365_v15  ;;  %9493 = vmatprep.mubr.bf16.mxu0 %v29366_v57 }
 0x705   : > { %12623 = vmatprep.mubr.bf16.mxu1 %v29366_v57 }
 0x70b   : > { %9494 = vmatmul.mubr.bf16.gmra.mrb[20].mxu0 %v29367_v40 }
 0x70c   : > { %12624 = vmatmul.mubr.bf16.gmra.mrb[20].mxu1 %v29367_v40  ;;  %9503 = vmatprep.mubr.bf16.mxu0 %v29368_v45 }
 0x70d   : > { %12633 = vmatprep.mubr.bf16.mxu1 %v29368_v45 }
 0x713   : > { %9504 = vmatmul.mubr.bf16.gmra.mrb[24].mxu0 %v29369_v48 }
 0x714   : > { %12634 = vmatmul.mubr.bf16.gmra.mrb[24].mxu1 %v29369_v48  ;;  %9513 = vmatprep.mubr.bf16.mxu0 %v29370_v47 }
 0x715   : > { %12643 = vmatprep.mubr.bf16.mxu1 %v29370_v47 }
 0x71b   : > { %9514 = vmatmul.mubr.bf16.gmra.mrb[28].mxu0 %v29371_v34 }
 0x71c   : > { %12644 = vmatmul.mubr.bf16.gmra.mrb[28].mxu1 %v29371_v34  ;;  %9523 = vmatprep.mubr.bf16.mxu0 %v24212_v29 }
 0x71d   : > { %12653 = vmatprep.mubr.bf16.mxu1 %v24212_v29 }
 0x723   : > { %9524 = vmatmul.mubr.bf16.gmra.mrb[32].mxu0 %v24205_v58 }
 0x724   : > { %12654 = vmatmul.mubr.bf16.gmra.mrb[32].mxu1 %v24205_v58  ;;  %9533 = vmatprep.mubr.bf16.mxu0 %v24253_v22 }
 0x725   : > { %12663 = vmatprep.mubr.bf16.mxu1 %v24253_v22 }
 0x72b   : > { %9534 = vmatmul.mubr.bf16.gmra.mrb[36].mxu0 %v24249_v25 }
 0x72c   : > { %12664 = vmatmul.mubr.bf16.gmra.mrb[36].mxu1 %v24249_v25  ;;  %9543 = vmatprep.mubr.bf16.mxu0 %v24332_v32 }
 0x72d   : > { %12673 = vmatprep.mubr.bf16.mxu1 %v24332_v32 }
 0x733   : > { %9544 = vmatmul.mubr.bf16.gmra.mrb[40].mxu0 %v24322_v51 }
 0x734   : > { %12674 = vmatmul.mubr.bf16.gmra.mrb[40].mxu1 %v24322_v51  ;;  %9553 = vmatprep.mubr.bf16.mxu0 %v24367_v18 }
 0x735   : > { %12683 = vmatprep.mubr.bf16.mxu1 %v24367_v18 }
 0x73b   : > { %9554 = vmatmul.mubr.bf16.gmra.mrb[44].mxu0 %v24363_v52 }
 0x73c   : > { %12684 = vmatmul.mubr.bf16.gmra.mrb[44].mxu1 %v24363_v52  ;;  %9563 = vmatprep.mubr.bf16.mxu0 %v24440_v3 }
 0x73d   : > { %12693 = vmatprep.mubr.bf16.mxu1 %v24440_v3 }
 0x743   : > { %9564 = vmatmul.mubr.bf16.gmra.mrb[48].mxu0 %v29372_v43 }
 0x744   : > { %12694 = vmatmul.mubr.bf16.gmra.mrb[48].mxu1 %v29372_v43  ;;  %9573 = vmatprep.mubr.bf16.mxu0 %v29373_v8 }
 0x745   : > { %12703 = vmatprep.mubr.bf16.mxu1 %v29373_v8 }
 0x74b   : > { %9574 = vmatmul.mubr.bf16.gmra.mrb[52].mxu0 %v29416_v9 }
 0x74c   : > { %12704 = vmatmul.mubr.bf16.gmra.mrb[52].mxu1 %v29416_v9  ;;  %9583 = vmatprep.mubr.bf16.mxu0 %v29417_v42 }
 0x74d   : > { %12713 = vmatprep.mubr.bf16.mxu1 %v29417_v42 }
 0x753   : > { %9584 = vmatmul.mubr.bf16.gmra.mrb[56].mxu0 %v29470_v4 }
 0x754   : > { %12714 = vmatmul.mubr.bf16.gmra.mrb[56].mxu1 %v29470_v4  ;;  %9593 = vmatprep.mubr.bf16.mxu0 %v29471_v7 }
 0x755   : > { %12723 = vmatprep.mubr.bf16.mxu1 %v29471_v7 }
 0x75b   : > { %9594 = vmatmul.mubr.bf16.gmra.mrb[60].mxu0 %v29472_v30 }
 0x75c   : > { %12724 = vmatmul.mubr.bf16.gmra.mrb[60].mxu1 %v29472_v30  ;;  %9603 = vmatprep.mubr.bf16.mxu0 %v29473_v21  ;;  %v21934_v30 = vld [vmem:[%s28883_s3 + $0xe44] ss:$16 sps:$4 sm:$0xff]  }
 0x75d   : > { %12733 = vmatprep.mubr.bf16.mxu1 %v29473_v21  ;;  %v21929_v21 = vld [vmem:[%s28883_s3 + $0xe28] ss:$16 sps:$4 sm:$0xff]  }
 0x763   : > { %9604 = vmatmul.mubr.bf16.gmra.mrb[64].mxu0 %v29474_v1 }
 0x764   : > { %12734 = vmatmul.mubr.bf16.gmra.mrb[64].mxu1 %v29474_v1  ;;  %9613 = vmatprep.mubr.bf16.mxu0 %v29475_v33  ;;  %v29480_v1 = vld [vmem:[#allocation105_spill] sm:$0xff] }
 0x765   : > { %12743 = vmatprep.mubr.bf16.mxu1 %v29475_v33  ;;  %v21926_v33 = vld [vmem:[%s28883_s3 + $0xe20] ss:$16 sps:$4 sm:$0xff]  }
 0x76b   : > { %9614 = vmatmul.mubr.bf16.gmra.mrb[68].mxu0 %v29476_v19 }
 0x76c   : > { %12744 = vmatmul.mubr.bf16.gmra.mrb[68].mxu1 %v29476_v19  ;;  %9623 = vmatprep.mubr.bf16.mxu0 %v29477_v62  ;;  %v29481_v19 = vld [vmem:[#allocation13_spill] sm:$0xff] }
 0x76d   : > { %12753 = vmatprep.mubr.bf16.mxu1 %v29477_v62  ;;  %v21920_v62 = vld [vmem:[%s28883_s3 + $0xe00] ss:$16 sps:$4 sm:$0xff]  }
 0x773   : > { %9624 = vmatmul.mubr.bf16.gmra.mrb[72].mxu0 %v29478_v24 }
 0x774   : > { %12754 = vmatmul.mubr.bf16.gmra.mrb[72].mxu1 %v29478_v24  ;;  %9633 = vmatprep.mubr.bf16.mxu0 %v29479_v23  ;;  %v21923_v24 = vld [vmem:[%s28883_s3 + $0xe08] ss:$16 sps:$4 sm:$0xff]  }
 0x775   : > { %12763 = vmatprep.mubr.bf16.mxu1 %v29479_v23  ;;  %v21928_v23 = vld [vmem:[%s28883_s3 + $0xe24] ss:$16 sps:$4 sm:$0xff]  }
 0x77b   : > { %9634 = vmatmul.mubr.bf16.gmra.mrb[76].mxu0 %v29480_v1 }
 0x77c   : > { %12764 = vmatmul.mubr.bf16.gmra.mrb[76].mxu1 %v29480_v1  ;;  %9676 = vmatprep.mubr.bf16.mxu0 %v29428_v17  ;;  %v21931_v1 = vld [vmem:[%s28883_s3 + $0xe2c] ss:$16 sps:$4 sm:$0xff]  }
 0x77d   : > { %12806 = vmatprep.mubr.bf16.mxu1 %v29428_v17  ;;  %v29482_v17 = vld [vmem:[#allocation19_spill] sm:$0xff] }
 0x783   : > { %9677 = vmatmul.mubr.bf16.vlgmr.msra.gmra.mrb[224].mxu0 %v29481_v19 }
 0x784   : > { %12807 = vmatmul.mubr.bf16.vlgmr.msra.gmra.mrb[224].mxu1 %v29481_v19  ;;  %9686 = vmatprep.mubr.bf16.mxu0 %v29482_v17  ;;  %v21937_v19 = vld [vmem:[%s28883_s3 + $0xe4c] ss:$16 sps:$4 sm:$0xff]  }
 0x785   : > { %9958 = vmatpush1.bf16.msra.mxu0 %v21920_v62  ;;  %12816 = vmatprep.mubr.bf16.mxu1 %v29482_v17  ;;  %v21932_v62 = vld [vmem:[%s28883_s3 + $0xe40] ss:$16 sps:$4 sm:$0xff]   ;;  %v21941_v17 = vld [vmem:[%s28883_s3 + $0xe68] ss:$16 sps:$4 sm:$0xff]  }
 0x786   : > { %13088 = vmatpush1.bf16.msra.mxu1 %v21923_v24  ;;  %9959 = vmatprep.subr.bf16.mxu0 %v21928_v23  ;;  %v21935_v24 = vld [vmem:[%s28883_s3 + $0xe48] ss:$16 sps:$4 sm:$0xff]   ;;  %v21943_v23 = vld [vmem:[%s28883_s3 + $0xe6c] ss:$16 sps:$4 sm:$0xff]  }
 0x787   : > { %13089 = vmatprep.subr.bf16.mxu1 %v21931_v1  ;;  %v21940_v1 = vld [vmem:[%s28883_s3 + $0xe64] ss:$16 sps:$4 sm:$0xff]  }
 0x789   : > { %9960 = vmatpush1.bf16.msra.mxu0 %v21926_v33  ;;  %v29483_v33 = vld [vmem:[#allocation17_spill] sm:$0xff] }
 0x78a   : > { %13090 = vmatpush1.bf16.msra.mxu1 %v21929_v21  ;;  %9961 = vmatprep.subr.bf16.mxu0 %v21934_v30  ;;  %v29484_v21 = vld [vmem:[#allocation23_spill] sm:$0xff]  ;;  %v21938_v30 = vld [vmem:[%s28883_s3 + $0xe60] ss:$16 sps:$4 sm:$0xff]  }
 0x78b   : > { %13091 = vmatprep.subr.bf16.mxu1 %v21937_v19  ;;  %9687 = vmatmul.mubr.bf16.gmra.mrb[228].mxu0 %v29483_v33  ;;  %v21946_v19 = vld [vmem:[%s28883_s3 + $0xe84] ss:$16 sps:$4 sm:$0xff]  }
 0x78c   : > { %12817 = vmatmul.mubr.bf16.gmra.mrb[228].mxu1 %v29483_v33  ;;  %9696 = vmatprep.mubr.bf16.mxu0 %v29484_v21  ;;  %v21949_v33 = vld [vmem:[%s28883_s3 + $0xe8c] ss:$16 sps:$4 sm:$0xff]  }
 0x78d   : > { %12826 = vmatprep.mubr.bf16.mxu1 %v29484_v21  ;;  %9962 = vmatpush1.bf16.msra.mxu0 %v21932_v62  ;;  %v21944_v62 = vld [vmem:[%s28883_s3 + $0xe80] ss:$16 sps:$4 sm:$0xff]  }
 0x78e   : > { %13092 = vmatpush1.bf16.msra.mxu1 %v21935_v24  ;;  %9963 = vmatprep.subr.bf16.mxu0 %v21940_v1  ;;  %v21947_v24 = vld [vmem:[%s28883_s3 + $0xe88] ss:$16 sps:$4 sm:$0xff]   ;;  %v21952_v1 = vld [vmem:[%s28883_s3 + $0xea4] ss:$16 sps:$4 sm:$0xff]  }
 0x78f   : > { %13093 = vmatprep.subr.bf16.mxu1 %v21943_v23  ;;  %v21955_v23 = vld [vmem:[%s28883_s3 + $0xeac] ss:$16 sps:$4 sm:$0xff]  }
 0x791   : > { %9964 = vmatpush1.bf16.msra.mxu0 %v21938_v30  ;;  %v29485_v30 = vld [vmem:[#allocation21_spill] sm:$0xff] }
 0x792   : > { %13094 = vmatpush1.bf16.msra.mxu1 %v21941_v17  ;;  %9965 = vmatprep.subr.bf16.mxu0 %v21946_v19  ;;  %v29486_v17 = vld [vmem:[#allocation27_spill] sm:$0xff]  ;;  %v21950_v19 = vld [vmem:[%s28883_s3 + $0xea0] ss:$16 sps:$4 sm:$0xff]  }
 0x793   : > { %13095 = vmatprep.subr.bf16.mxu1 %v21949_v33  ;;  %9697 = vmatmul.mubr.bf16.gmra.mrb[232].mxu0 %v29485_v30  ;;  %v21953_v33 = vld [vmem:[%s28883_s3 + $0xea8] ss:$16 sps:$4 sm:$0xff]  }
 0x794   : > { %12827 = vmatmul.mubr.bf16.gmra.mrb[232].mxu1 %v29485_v30  ;;  %9706 = vmatprep.mubr.bf16.mxu0 %v29486_v17  ;;  %v21958_v30 = vld [vmem:[%s28883_s3 + $0xec4] ss:$16 sps:$4 sm:$0xff]  }
 0x795   : > { %12836 = vmatprep.mubr.bf16.mxu1 %v29486_v17  ;;  %9966 = vmatpush1.bf16.msra.mxu0 %v21944_v62  ;;  %v21961_v17 = vld [vmem:[%s28883_s3 + $0xecc] ss:$16 sps:$4 sm:$0xff]   ;;  %v21956_v62 = vld [vmem:[%s28883_s3 + $0xec0] ss:$16 sps:$4 sm:$0xff]  }
 0x796   : > { %13096 = vmatpush1.bf16.msra.mxu1 %v21947_v24  ;;  %9967 = vmatprep.subr.bf16.mxu0 %v21952_v1  ;;  %v21959_v24 = vld [vmem:[%s28883_s3 + $0xec8] ss:$16 sps:$4 sm:$0xff]   ;;  %v21964_v1 = vld [vmem:[%s28883_s3 + $0xee4] ss:$16 sps:$4 sm:$0xff]  }
 0x797   : > { %13097 = vmatprep.subr.bf16.mxu1 %v21955_v23  ;;  %v21967_v23 = vld [vmem:[%s28883_s3 + $0xeec] ss:$16 sps:$4 sm:$0xff]  }
 0x799   : > { %9968 = vmatpush1.bf16.msra.mxu0 %v21950_v19  ;;  %v29487_v19 = vld [vmem:[#allocation25_spill] sm:$0xff] }
 0x79a   : > { %13098 = vmatpush1.bf16.msra.mxu1 %v21953_v33  ;;  %9969 = vmatprep.subr.bf16.mxu0 %v21958_v30  ;;  %v29488_v33 = vld [vmem:[#allocation31_spill] sm:$0xff]  ;;  %v21962_v30 = vld [vmem:[%s28883_s3 + $0xee0] ss:$16 sps:$4 sm:$0xff]  }
 0x79b   : > { %13099 = vmatprep.subr.bf16.mxu1 %v21961_v17  ;;  %9707 = vmatmul.mubr.bf16.gmra.mrb[236].mxu0 %v29487_v19  ;;  %v21965_v17 = vld [vmem:[%s28883_s3 + $0xee8] ss:$16 sps:$4 sm:$0xff]  }
 0x79c   : > { %12837 = vmatmul.mubr.bf16.gmra.mrb[236].mxu1 %v29487_v19  ;;  %9716 = vmatprep.mubr.bf16.mxu0 %v29488_v33  ;;  %v21970_v19 = vld [vmem:[%s28883_s3 + $0xf04] ss:$16 sps:$4 sm:$0xff]  }
 0x79d   : > { %12846 = vmatprep.mubr.bf16.mxu1 %v29488_v33  ;;  %9970 = vmatpush1.bf16.msra.mxu0 %v21956_v62  ;;  %v21973_v33 = vld [vmem:[%s28883_s3 + $0xf0c] ss:$16 sps:$4 sm:$0xff]   ;;  %v21968_v62 = vld [vmem:[%s28883_s3 + $0xf00] ss:$16 sps:$4 sm:$0xff]  }
 0x79e   : > { %13100 = vmatpush1.bf16.msra.mxu1 %v21959_v24  ;;  %9971 = vmatprep.subr.bf16.mxu0 %v21964_v1  ;;  %v21971_v24 = vld [vmem:[%s28883_s3 + $0xf08] ss:$16 sps:$4 sm:$0xff]   ;;  %v21976_v1 = vld [vmem:[%s28883_s3 + $0xf24] ss:$16 sps:$4 sm:$0xff]  }
 0x79f   : > { %13101 = vmatprep.subr.bf16.mxu1 %v21967_v23  ;;  %v21979_v23 = vld [vmem:[%s28883_s3 + $0xf2c] ss:$16 sps:$4 sm:$0xff]  }
 0x7a1   : > { %9972 = vmatpush1.bf16.msra.mxu0 %v21962_v30  ;;  %v29489_v30 = vld [vmem:[#allocation29_spill] sm:$0xff] }
 0x7a2   : > { %13102 = vmatpush1.bf16.msra.mxu1 %v21965_v17  ;;  %9973 = vmatprep.subr.bf16.mxu0 %v21970_v19  ;;  %v29490_v17 = vld [vmem:[#allocation35_spill] sm:$0xff]  ;;  %v21974_v19 = vld [vmem:[%s28883_s3 + $0xf20] ss:$16 sps:$4 sm:$0xff]  }
 0x7a3   : > { %13103 = vmatprep.subr.bf16.mxu1 %v21973_v33  ;;  %9717 = vmatmul.mubr.bf16.gmra.mrb[240].mxu0 %v29489_v30  ;;  %v21977_v33 = vld [vmem:[%s28883_s3 + $0xf28] ss:$16 sps:$4 sm:$0xff]  }
 0x7a4   : > { %12847 = vmatmul.mubr.bf16.gmra.mrb[240].mxu1 %v29489_v30  ;;  %9726 = vmatprep.mubr.bf16.mxu0 %v29490_v17  ;;  %v21982_v30 = vld [vmem:[%s28883_s3 + $0xf44] ss:$16 sps:$4 sm:$0xff]  }
 0x7a5   : > { %12856 = vmatprep.mubr.bf16.mxu1 %v29490_v17  ;;  %9974 = vmatpush1.bf16.msra.mxu0 %v21968_v62  ;;  %v21985_v17 = vld [vmem:[%s28883_s3 + $0xf4c] ss:$16 sps:$4 sm:$0xff]   ;;  %v21980_v62 = vld [vmem:[%s28883_s3 + $0xf40] ss:$16 sps:$4 sm:$0xff]  }
 0x7a6   : > { %13104 = vmatpush1.bf16.msra.mxu1 %v21971_v24  ;;  %9975 = vmatprep.subr.bf16.mxu0 %v21976_v1  ;;  %v21983_v24 = vld [vmem:[%s28883_s3 + $0xf48] ss:$16 sps:$4 sm:$0xff]   ;;  %v21988_v1 = vld [vmem:[%s28883_s3 + $0xf64] ss:$16 sps:$4 sm:$0xff]  }
 0x7a7   : > { %13105 = vmatprep.subr.bf16.mxu1 %v21979_v23  ;;  %v21991_v23 = vld [vmem:[%s28883_s3 + $0xf6c] ss:$16 sps:$4 sm:$0xff]  }
 0x7a9   : > { %9976 = vmatpush1.bf16.msra.mxu0 %v21974_v19  ;;  %v29491_v19 = vld [vmem:[#allocation39_spill] sm:$0xff] }
 0x7aa   : > { %13106 = vmatpush1.bf16.msra.mxu1 %v21977_v33  ;;  %9977 = vmatprep.subr.bf16.mxu0 %v21982_v30  ;;  %v21986_v30 = vld [vmem:[%s28883_s3 + $0xf60] ss:$16 sps:$4 sm:$0xff]   ;;  %v21994_v33 = vld [vmem:[%s28883_s3 + $0xf84] ss:$16 sps:$4 sm:$0xff]  }
 0x7ab   : > { %13107 = vmatprep.subr.bf16.mxu1 %v21985_v17  ;;  %9727 = vmatmul.mubr.bf16.gmra.mrb[244].mxu0 %v29439_v46  ;;  %v21989_v17 = vld [vmem:[%s28883_s3 + $0xf68] ss:$16 sps:$4 sm:$0xff]  }
 0x7ac   : > { %12857 = vmatmul.mubr.bf16.gmra.mrb[244].mxu1 %v29439_v46  ;;  %9736 = vmatprep.mubr.bf16.mxu0 %v29491_v19 }
 0x7ad   : > { %12866 = vmatprep.mubr.bf16.mxu1 %v29491_v19  ;;  %9978 = vmatpush1.bf16.msra.mxu0 %v21980_v62  ;;  %v21997_v19 = vld [vmem:[%s28883_s3 + $0xf8c] ss:$16 sps:$4 sm:$0xff]   ;;  %v21992_v62 = vld [vmem:[%s28883_s3 + $0xf80] ss:$16 sps:$4 sm:$0xff]  }
 0x7ae   : > { %13108 = vmatpush1.bf16.msra.mxu1 %v21983_v24  ;;  %9979 = vmatprep.subr.bf16.mxu0 %v21988_v1  ;;  %v21995_v24 = vld [vmem:[%s28883_s3 + $0xf88] ss:$16 sps:$4 sm:$0xff]  }
 0x7af   : > { %13109 = vmatprep.subr.bf16.mxu1 %v21991_v23  ;;  %v29492_v1 = vld [vmem:[#allocation37_spill] sm:$0xff]  ;;  %v29493_v23 = vld [vmem:[#allocation43_spill] sm:$0xff] }
 0x7b1   : > { %9980 = vmatpush1.bf16.msra.mxu0 %v21986_v30  ;;  %v22000_v30 = vld [vmem:[%s28883_s3 + $0xfa4] ss:$16 sps:$4 sm:$0xff]  }
 0x7b2   : > { %13110 = vmatpush1.bf16.msra.mxu1 %v21989_v17  ;;  %9981 = vmatprep.subr.bf16.mxu0 %v21994_v33  ;;  %v21998_v17 = vld [vmem:[%s28883_s3 + $0xfa0] ss:$16 sps:$4 sm:$0xff]   ;;  %v22003_v33 = vld [vmem:[%s28883_s3 + $0xfac] ss:$16 sps:$4 sm:$0xff]  }
 0x7b3   : > { %13111 = vmatprep.subr.bf16.mxu1 %v21997_v19  ;;  %9737 = vmatmul.mubr.bf16.gmra.mrb[248].mxu0 %v29492_v1  ;;  %v22001_v19 = vld [vmem:[%s28883_s3 + $0xfa8] ss:$16 sps:$4 sm:$0xff]  }
 0x7b4   : > { %12867 = vmatmul.mubr.bf16.gmra.mrb[248].mxu1 %v29492_v1  ;;  %9746 = vmatprep.mubr.bf16.mxu0 %v29493_v23 }
 0x7b5   : > { %12876 = vmatprep.mubr.bf16.mxu1 %v29493_v23  ;;  %9982 = vmatpush1.bf16.msra.mxu0 %v21992_v62  ;;  %v29494_v62 = vld [vmem:[#allocation47_spill] sm:$0xff] }
 0x7b6   : > { %13112 = vmatpush1.bf16.msra.mxu1 %v21995_v24  ;;  %9983 = vmatprep.subr.bf16.mxu0 %v22000_v30  ;;  %v29495_v24 = vld [vmem:[#allocation45_spill] sm:$0xff]  ;;  %v29496_v23 = vld [vmem:[#allocation51_spill] sm:$0xff]  ;;  %v22004_v30 = vld [vmem:[%s28883_s3 + $0xfc0] ss:$16 sps:$4 sm:$0xff]  }
 0x7b7   : > { %13113 = vmatprep.subr.bf16.mxu1 %v22003_v33  ;;  %v22009_v33 = vld [vmem:[%s28883_s3 + $0xfcc] ss:$16 sps:$4 sm:$0xff]  }
 0x7b9   : > { %9984 = vmatpush1.bf16.msra.mxu0 %v21998_v17  ;;  %v22006_v17 = vld [vmem:[%s28883_s3 + $0xfc4] ss:$16 sps:$4 sm:$0xff]  }
 0x7ba   : > { %13114 = vmatpush1.bf16.msra.mxu1 %v22001_v19  ;;  %v22007_v19 = vld [vmem:[%s28883_s3 + $0xfc8] ss:$16 sps:$4 sm:$0xff]   ;;  %9985 = vmatprep.subr.bf16.mxu0 %v22006_v17 }
 0x7bb   : > { %9747 = vmatmul.mubr.bf16.gmra.mrb[252].mxu0 %v29394_v59  ;;  %13115 = vmatprep.subr.bf16.mxu1 %v22009_v33  ;;  %v22013_v17 = vld [vmem:[%s28883_s3 + $0xfe8] ss:$16 sps:$4 sm:$0xff]   ;;  %v22018_v33 = vld [vmem:[%s28883_s3 + $0x1004] ss:$16 sps:$4 sm:$0xff]  }
 0x7bc   : > { %12877 = vmatmul.mubr.bf16.gmra.mrb[252].mxu1 %v29394_v59  ;;  %9756 = vmatprep.mubr.bf16.mxu0 %v29494_v62 }
 0x7bd   : > { %12886 = vmatprep.mubr.bf16.mxu1 %v29494_v62  ;;  %9986 = vmatpush1.bf16.msra.mxu0 %v22004_v30  ;;  %v22010_v62 = vld [vmem:[%s28883_s3 + $0xfe0] ss:$16 sps:$4 sm:$0xff]   ;;  %v22012_v30 = vld [vmem:[%s28883_s3 + $0xfe4] ss:$16 sps:$4 sm:$0xff]  }
 0x7be   : > { %13116 = vmatpush1.bf16.msra.mxu1 %v22007_v19  ;;  %v22015_v19 = vld [vmem:[%s28883_s3 + $0xfec] ss:$16 sps:$4 sm:$0xff]   ;;  %9987 = vmatprep.subr.bf16.mxu0 %v22012_v30 }
 0x7bf   : > { %13117 = vmatprep.subr.bf16.mxu1 %v22015_v19  ;;  %v29499_v30 = vld [vmem:[#allocation71_spill] sm:$0xff]  ;;  %v29501_v19 = vld [vmem:[#allocation73_spill] sm:$0xff] }
 0x7c1   : > { %9988 = vmatpush1.bf16.msra.mxu0 %v22010_v62  ;;  %v22021_v62 = vld [vmem:[%s28883_s3 + $0x100c] ss:$16 sps:$4 sm:$0xff]  }
 0x7c2   : > { %13118 = vmatpush1.bf16.msra.mxu1 %v22013_v17  ;;  %10270 = vmatprep.subr.bf16.mxu0 %v22018_v33  ;;  %v29500_v17 = vld [vmem:[#allocation74_spill] sm:$0xff]  ;;  %v29502_v33 = vld [vmem:[#allocation76_spill] sm:$0xff] }
 0x7c3   : > { %9757 = vmatmul.mubr.bf16.gmra.mrb[0].mxu0 %v29495_v24  ;;  %13400 = vmatprep.subr.bf16.mxu1 %v22021_v62  ;;  %v29503_v62 = vld [vmem:[#allocation75_spill] sm:$0xff] }
 0x7c4   : > { %12887 = vmatmul.mubr.bf16.gmra.mrb[0].mxu1 %v29495_v24  ;;  %9766 = vmatprep.mubr.bf16.mxu0 %v29496_v23  ;;  %v29498_v24 = vld [vmem:[#allocation53_spill] sm:$0xff] }
 0x7c5   : > { %12896 = vmatprep.mubr.bf16.mxu1 %v29496_v23  ;;  %v29497_v23 = vld [vmem:[#allocation55_spill] sm:$0xff] }
 0x7cb   : > { %9767 = vmatmul.mubr.bf16.gmra.mrb[4].mxu0 %v29398_v53 }
 0x7cc   : > { %12897 = vmatmul.mubr.bf16.gmra.mrb[4].mxu1 %v29398_v53  ;;  %9776 = vmatprep.mubr.bf16.mxu0 %v29497_v23 }
 0x7cd   : > { %12906 = vmatprep.mubr.bf16.mxu1 %v29497_v23 }
 0x7d3   : > { %9777 = vmatmul.mubr.bf16.gmra.mrb[8].mxu0 %v29498_v24 }
 0x7d4   : > { %12907 = vmatmul.mubr.bf16.gmra.mrb[8].mxu1 %v29498_v24  ;;  %9786 = vmatprep.mubr.bf16.mxu0 %v29448_v13 }
 0x7d5   : > { %12916 = vmatprep.mubr.bf16.mxu1 %v29448_v13 }
 0x7db   : > { %9787 = vmatmul.mubr.bf16.gmra.mrb[12].mxu0 %v29449_v2 }
 0x7dc   : > { %12917 = vmatmul.mubr.bf16.gmra.mrb[12].mxu1 %v29449_v2  ;;  %9796 = vmatprep.mubr.bf16.mxu0 %v29450_v31 }
 0x7dd   : > { %12926 = vmatprep.mubr.bf16.mxu1 %v29450_v31 }
 0x7e3   : > { %9797 = vmatmul.mubr.bf16.gmra.mrb[16].mxu0 %v29451_v41 }
 0x7e4   : > { %12927 = vmatmul.mubr.bf16.gmra.mrb[16].mxu1 %v29451_v41  ;;  %9806 = vmatprep.mubr.bf16.mxu0 %v29452_v5 }
 0x7e5   : > { %12936 = vmatprep.mubr.bf16.mxu1 %v29452_v5 }
 0x7eb   : > { %9807 = vmatmul.mubr.bf16.gmra.mrb[20].mxu0 %v29406_v27 }
 0x7ec   : > { %12937 = vmatmul.mubr.bf16.gmra.mrb[20].mxu1 %v29406_v27  ;;  %9816 = vmatprep.mubr.bf16.mxu0 %v29407_v6 }
 0x7ed   : > { %12946 = vmatprep.mubr.bf16.mxu1 %v29407_v6 }
 0x7f3   : > { %9817 = vmatmul.mubr.bf16.gmra.mrb[24].mxu0 %v29408_v16 }
 0x7f4   : > { %12947 = vmatmul.mubr.bf16.gmra.mrb[24].mxu1 %v29408_v16  ;;  %9826 = vmatprep.mubr.bf16.mxu0 %v29409_v61  ;;  %v22030_v16 = vld [vmem:[%s28883_s3 + $0x1044] ss:$16 sps:$4 sm:$0xff]  }
 0x7f5   : > { %12956 = vmatprep.mubr.bf16.mxu1 %v29409_v61  ;;  %v29504_v61 = vld [vmem:[#allocation79_spill] sm:$0xff] }
 0x7fb   : > { %9827 = vmatmul.mubr.bf16.gmra.mrb[28].mxu0 %v29499_v30 }
 0x7fc   : > { %12957 = vmatmul.mubr.bf16.gmra.mrb[28].mxu1 %v29499_v30  ;;  %9836 = vmatprep.mubr.bf16.mxu0 %v29500_v17  ;;  %v29505_v30 = vld [vmem:[#allocation77_spill] sm:$0xff] }
 0x7fd   : > { %12966 = vmatprep.mubr.bf16.mxu1 %v29500_v17  ;;  %v29506_v17 = vld [vmem:[#allocation82_spill] sm:$0xff] }
 0x803   : > { %9837 = vmatmul.mubr.bf16.gmra.mrb[32].mxu0 %v29501_v19 }
 0x804   : > { %12967 = vmatmul.mubr.bf16.gmra.mrb[32].mxu1 %v29501_v19  ;;  %9846 = vmatprep.mubr.bf16.mxu0 %v29502_v33  ;;  %v29507_v19 = vld [vmem:[#allocation80_spill] sm:$0xff] }
 0x805   : > { %12976 = vmatprep.mubr.bf16.mxu1 %v29502_v33  ;;  %v29508_v33 = vld [vmem:[#allocation86_spill] sm:$0xff] }
 0x80b   : > { %9847 = vmatmul.mubr.bf16.gmra.mrb[36].mxu0 %v29503_v62 }
 0x80c   : > { %12977 = vmatmul.mubr.bf16.gmra.mrb[36].mxu1 %v29503_v62  ;;  %9856 = vmatprep.mubr.bf16.mxu0 %v29504_v61  ;;  %v29509_v62 = vld [vmem:[#allocation84_spill] sm:$0xff] }
 0x80d   : > { %12986 = vmatprep.mubr.bf16.mxu1 %v29504_v61  ;;  %v29510_v61 = vld [vmem:[#allocation90_spill] sm:$0xff] }
 0x813   : > { %9857 = vmatmul.mubr.bf16.gmra.mrb[40].mxu0 %v29505_v30 }
 0x814   : > { %12987 = vmatmul.mubr.bf16.gmra.mrb[40].mxu1 %v29505_v30  ;;  %9866 = vmatprep.mubr.bf16.mxu0 %v29506_v17  ;;  %v29511_v30 = vld [vmem:[#allocation88_spill] sm:$0xff] }
 0x815   : > { %12996 = vmatprep.mubr.bf16.mxu1 %v29506_v17  ;;  %v29512_v17 = vld [vmem:[#allocation94_spill] sm:$0xff] }
 0x81b   : > { %9867 = vmatmul.mubr.bf16.gmra.mrb[44].mxu0 %v29507_v19 }
 0x81c   : > { %12997 = vmatmul.mubr.bf16.gmra.mrb[44].mxu1 %v29507_v19  ;;  %9876 = vmatprep.mubr.bf16.mxu0 %v29508_v33  ;;  %v29513_v19 = vld [vmem:[#allocation92_spill] sm:$0xff] }
 0x81d   : > { %13006 = vmatprep.mubr.bf16.mxu1 %v29508_v33  ;;  %v29514_v33 = vld [vmem:[#allocation98_spill] sm:$0xff] }
 0x823   : > { %9877 = vmatmul.mubr.bf16.gmra.mrb[48].mxu0 %v29509_v62 }
 0x824   : > { %13007 = vmatmul.mubr.bf16.gmra.mrb[48].mxu1 %v29509_v62  ;;  %9886 = vmatprep.mubr.bf16.mxu0 %v29510_v61  ;;  %v29515_v62 = vld [vmem:[#allocation96_spill] sm:$0xff] }
 0x825   : > { %13016 = vmatprep.mubr.bf16.mxu1 %v29510_v61  ;;  %v29516_v61 = vld [vmem:[#allocation102_spill] sm:$0xff] }
 0x82b   : > { %9887 = vmatmul.mubr.bf16.gmra.mrb[52].mxu0 %v29511_v30 }
 0x82c   : > { %13017 = vmatmul.mubr.bf16.gmra.mrb[52].mxu1 %v29511_v30  ;;  %9896 = vmatprep.mubr.bf16.mxu0 %v29512_v17  ;;  %v29517_v30 = vld [vmem:[#allocation100_spill] sm:$0xff] }
 0x82d   : > { %13026 = vmatprep.mubr.bf16.mxu1 %v29512_v17  ;;  %v29518_v17 = vld [vmem:[#allocation106_spill] sm:$0xff] }
 0x833   : > { %9897 = vmatmul.mubr.bf16.gmra.mrb[56].mxu0 %v29513_v19 }
 0x834   : > { %13027 = vmatmul.mubr.bf16.gmra.mrb[56].mxu1 %v29513_v19  ;;  %9906 = vmatprep.mubr.bf16.mxu0 %v29514_v33  ;;  %v29519_v19 = vld [vmem:[#allocation104_spill] sm:$0xff] }
 0x835   : > { %13036 = vmatprep.mubr.bf16.mxu1 %v29514_v33  ;;  %v29520_v33 = vmov 0  }
 0x83b   : > { %9907 = vmatmul.mubr.bf16.gmra.mrb[60].mxu0 %v29515_v62 }
 0x83c   : > { %13037 = vmatmul.mubr.bf16.gmra.mrb[60].mxu1 %v29515_v62  ;;  %9916 = vmatprep.mubr.bf16.mxu0 %v29516_v61  ;;  %v22025_v62 = vld [vmem:[%s28883_s3 + $0x1028] ss:$16 sps:$4 sm:$0xff]  }
 0x83d   : > { %13046 = vmatprep.mubr.bf16.mxu1 %v29516_v61  ;;  %v22027_v61 = vld [vmem:[%s28883_s3 + $0x102c] ss:$16 sps:$4 sm:$0xff]  }
 0x843   : > { %9917 = vmatmul.mubr.bf16.gmra.mrb[64].mxu0 %v29517_v30 }
 0x844   : > { %13047 = vmatmul.mubr.bf16.gmra.mrb[64].mxu1 %v29517_v30  ;;  %9926 = vmatprep.mubr.bf16.mxu0 %v29518_v17  ;;  %v22024_v30 = vld [vmem:[%s28883_s3 + $0x1024] ss:$16 sps:$4 sm:$0xff]  }
 0x845   : > { %13056 = vmatprep.mubr.bf16.mxu1 %v29518_v17  ;;  %v22019_v17 = vld [vmem:[%s28883_s3 + $0x1008] ss:$16 sps:$4 sm:$0xff]  }
 0x84b   : > { %9927 = vmatmul.mubr.bf16.gmra.mrb[68].mxu0 %v29519_v19 }
 0x84c   : > { %13057 = vmatmul.mubr.bf16.gmra.mrb[68].mxu1 %v29519_v19  ;;  %9936 = vmatprep.mubr.bf16.mxu0 %v29520_v33  ;;  %v22016_v19 = vld [vmem:[%s28883_s3 + $0x1000] ss:$16 sps:$4 sm:$0xff]  }
 0x84d   : > { %13066 = vmatprep.mubr.bf16.mxu1 %v29520_v33 }
 0x853   : > { %9937 = vmatmul.mubr.bf16.gmra.mrb[72].mxu0 %v29520_v33 }
 0x854   : > { %13067 = vmatmul.mubr.bf16.gmra.mrb[72].mxu1 %v29520_v33  ;;  %9946 = vmatprep.mubr.bf16.mxu0 %v29520_v33 }
 0x855   : > { %13076 = vmatprep.mubr.bf16.mxu1 %v29520_v33 }
 0x85b   : > { %9947 = vmatmul.mubr.bf16.gmra.mrb[76].mxu0 %v29520_v33 }
 0x85c   : > { %13077 = vmatmul.mubr.bf16.gmra.mrb[76].mxu1 %v29520_v33  ;;  %9989 = vmatprep.mubr.bf16.mxu0 %v29344_v10 }
 0x85d   : > { %13119 = vmatprep.mubr.bf16.mxu1 %v29344_v10  ;;  %v22022_v10 = vld [vmem:[%s28883_s3 + $0x1020] ss:$16 sps:$4 sm:$0xff]  }
 0x863   : > { %9990 = vmatmul.mubr.bf16.vlgmr.msra.gmra.mrb[224].mxu0 %v29345_v36 }
 0x864   : > { %13120 = vmatmul.mubr.bf16.vlgmr.msra.gmra.mrb[224].mxu1 %v29345_v36  ;;  %9999 = vmatprep.mubr.bf16.mxu0 %v29346_v0  ;;  %v22033_v36 = vld [vmem:[%s28883_s3 + $0x104c] ss:$16 sps:$4 sm:$0xff]  }
 0x865   : > { %10271 = vmatpush1.bf16.msra.mxu0 %v22016_v19  ;;  %13129 = vmatprep.mubr.bf16.mxu1 %v29346_v0  ;;  %v22028_v0 = vld [vmem:[%s28883_s3 + $0x1040] ss:$16 sps:$4 sm:$0xff]   ;;  %v22037_v19 = vld [vmem:[%s28883_s3 + $0x1068] ss:$16 sps:$4 sm:$0xff]  }
 0x866   : > { %13401 = vmatpush1.bf16.msra.mxu1 %v22019_v17  ;;  %10272 = vmatprep.subr.bf16.mxu0 %v22024_v30  ;;  %v22031_v17 = vld [vmem:[%s28883_s3 + $0x1048] ss:$16 sps:$4 sm:$0xff]   ;;  %v22039_v30 = vld [vmem:[%s28883_s3 + $0x106c] ss:$16 sps:$4 sm:$0xff]  }
 0x867   : > { %13402 = vmatprep.subr.bf16.mxu1 %v22027_v61  ;;  %v22036_v61 = vld [vmem:[%s28883_s3 + $0x1064] ss:$16 sps:$4 sm:$0xff]  }
 0x869   : > { %10273 = vmatpush1.bf16.msra.mxu0 %v22022_v10  ;;  %v22040_v10 = vld [vmem:[%s28883_s3 + $0x1080] ss:$16 sps:$4 sm:$0xff]  }
 0x86a   : > { %13403 = vmatpush1.bf16.msra.mxu1 %v22025_v62  ;;  %10274 = vmatprep.subr.bf16.mxu0 %v22030_v16  ;;  %v22034_v16 = vld [vmem:[%s28883_s3 + $0x1060] ss:$16 sps:$4 sm:$0xff]   ;;  %v22045_v62 = vld [vmem:[%s28883_s3 + $0x108c] ss:$16 sps:$4 sm:$0xff]  }
 0x86b   : > { %13404 = vmatprep.subr.bf16.mxu1 %v22033_v36  ;;  %10000 = vmatmul.mubr.bf16.gmra.mrb[228].mxu0 %v29347_v44  ;;  %v22043_v36 = vld [vmem:[%s28883_s3 + $0x1088] ss:$16 sps:$4 sm:$0xff]  }
 0x86c   : > { %13130 = vmatmul.mubr.bf16.gmra.mrb[228].mxu1 %v29347_v44  ;;  %10009 = vmatprep.mubr.bf16.mxu0 %v29348_v49  ;;  %v22042_v44 = vld [vmem:[%s28883_s3 + $0x1084] ss:$16 sps:$4 sm:$0xff]  }
 0x86d   : > { %13139 = vmatprep.mubr.bf16.mxu1 %v29348_v49  ;;  %10275 = vmatpush1.bf16.msra.mxu0 %v22028_v0  ;;  %v22048_v0 = vld [vmem:[%s28883_s3 + $0x10a4] ss:$16 sps:$4 sm:$0xff]  }
 0x86e   : > { %13405 = vmatpush1.bf16.msra.mxu1 %v22031_v17  ;;  %10276 = vmatprep.subr.bf16.mxu0 %v22036_v61  ;;  %v22051_v17 = vld [vmem:[%s28883_s3 + $0x10ac] ss:$16 sps:$4 sm:$0xff]   ;;  %v22046_v61 = vld [vmem:[%s28883_s3 + $0x10a0] ss:$16 sps:$4 sm:$0xff]  }
 0x86f   : > { %13406 = vmatprep.subr.bf16.mxu1 %v22039_v30  ;;  %v22049_v30 = vld [vmem:[%s28883_s3 + $0x10a8] ss:$16 sps:$4 sm:$0xff]  }
 0x871   : > { %10277 = vmatpush1.bf16.msra.mxu0 %v22034_v16  ;;  %v22054_v16 = vld [vmem:[%s28883_s3 + $0x10c4] ss:$16 sps:$4 sm:$0xff]  }
 0x872   : > { %13407 = vmatpush1.bf16.msra.mxu1 %v22037_v19  ;;  %10278 = vmatprep.subr.bf16.mxu0 %v22042_v44  ;;  %v22057_v19 = vld [vmem:[%s28883_s3 + $0x10cc] ss:$16 sps:$4 sm:$0xff]   ;;  %v22052_v44 = vld [vmem:[%s28883_s3 + $0x10c0] ss:$16 sps:$4 sm:$0xff]  }
 0x873   : > { %13408 = vmatprep.subr.bf16.mxu1 %v22045_v62  ;;  %10010 = vmatmul.mubr.bf16.gmra.mrb[232].mxu0 %v29349_v50  ;;  %v22055_v62 = vld [vmem:[%s28883_s3 + $0x10c8] ss:$16 sps:$4 sm:$0xff]  }
 0x874   : > { %13140 = vmatmul.mubr.bf16.gmra.mrb[232].mxu1 %v29349_v50  ;;  %10019 = vmatprep.mubr.bf16.mxu0 %v29350_v55 }
 0x875   : > { %13149 = vmatprep.mubr.bf16.mxu1 %v29350_v55  ;;  %10279 = vmatpush1.bf16.msra.mxu0 %v22040_v10  ;;  %v22060_v10 = vld [vmem:[%s28883_s3 + $0x10e4] ss:$16 sps:$4 sm:$0xff]  }
 0x876   : > { %13409 = vmatpush1.bf16.msra.mxu1 %v22043_v36  ;;  %10280 = vmatprep.subr.bf16.mxu0 %v22048_v0  ;;  %v22063_v36 = vld [vmem:[%s28883_s3 + $0x10ec] ss:$16 sps:$4 sm:$0xff]   ;;  %v22058_v0 = vld [vmem:[%s28883_s3 + $0x10e0] ss:$16 sps:$4 sm:$0xff]  }
 0x877   : > { %13410 = vmatprep.subr.bf16.mxu1 %v22051_v17  ;;  %v22061_v17 = vld [vmem:[%s28883_s3 + $0x10e8] ss:$16 sps:$4 sm:$0xff]  }
 0x879   : > { %10281 = vmatpush1.bf16.msra.mxu0 %v22046_v61  ;;  %v22066_v61 = vld [vmem:[%s28883_s3 + $0x1104] ss:$16 sps:$4 sm:$0xff]  }
 0x87a   : > { %13411 = vmatpush1.bf16.msra.mxu1 %v22049_v30  ;;  %10282 = vmatprep.subr.bf16.mxu0 %v22054_v16  ;;  %v22069_v30 = vld [vmem:[%s28883_s3 + $0x110c] ss:$16 sps:$4 sm:$0xff]   ;;  %v22064_v16 = vld [vmem:[%s28883_s3 + $0x1100] ss:$16 sps:$4 sm:$0xff]  }
 0x87b   : > { %13412 = vmatprep.subr.bf16.mxu1 %v22057_v19  ;;  %10020 = vmatmul.mubr.bf16.gmra.mrb[236].mxu0 %v29351_v26  ;;  %v22067_v19 = vld [vmem:[%s28883_s3 + $0x1108] ss:$16 sps:$4 sm:$0xff]  }
 0x87c   : > { %13150 = vmatmul.mubr.bf16.gmra.mrb[236].mxu1 %v29351_v26  ;;  %10029 = vmatprep.mubr.bf16.mxu0 %v29352_v12 }
 0x87d   : > { %13159 = vmatprep.mubr.bf16.mxu1 %v29352_v12  ;;  %10283 = vmatpush1.bf16.msra.mxu0 %v22052_v44  ;;  %v22072_v44 = vld [vmem:[%s28883_s3 + $0x1124] ss:$16 sps:$4 sm:$0xff]  }
 0x87e   : > { %13413 = vmatpush1.bf16.msra.mxu1 %v22055_v62  ;;  %10284 = vmatprep.subr.bf16.mxu0 %v22060_v10  ;;  %v22075_v62 = vld [vmem:[%s28883_s3 + $0x112c] ss:$16 sps:$4 sm:$0xff]   ;;  %v22070_v10 = vld [vmem:[%s28883_s3 + $0x1120] ss:$16 sps:$4 sm:$0xff]  }
 0x87f   : > { %13414 = vmatprep.subr.bf16.mxu1 %v22063_v36  ;;  %v22073_v36 = vld [vmem:[%s28883_s3 + $0x1128] ss:$16 sps:$4 sm:$0xff]  }
 0x881   : > { %10285 = vmatpush1.bf16.msra.mxu0 %v22058_v0  ;;  %v22078_v0 = vld [vmem:[%s28883_s3 + $0x1144] ss:$16 sps:$4 sm:$0xff]  }
 0x882   : > { %13415 = vmatpush1.bf16.msra.mxu1 %v22061_v17  ;;  %10286 = vmatprep.subr.bf16.mxu0 %v22066_v61  ;;  %v22081_v17 = vld [vmem:[%s28883_s3 + $0x114c] ss:$16 sps:$4 sm:$0xff]   ;;  %v22076_v61 = vld [vmem:[%s28883_s3 + $0x1140] ss:$16 sps:$4 sm:$0xff]  }
 0x883   : > { %13416 = vmatprep.subr.bf16.mxu1 %v22069_v30  ;;  %10030 = vmatmul.mubr.bf16.gmra.mrb[240].mxu0 %v29353_v20  ;;  %v22079_v30 = vld [vmem:[%s28883_s3 + $0x1148] ss:$16 sps:$4 sm:$0xff]  }
 0x884   : > { %13160 = vmatmul.mubr.bf16.gmra.mrb[240].mxu1 %v29353_v20  ;;  %10039 = vmatprep.mubr.bf16.mxu0 %v29354_v14 }
 0x885   : > { %13169 = vmatprep.mubr.bf16.mxu1 %v29354_v14  ;;  %10287 = vmatpush1.bf16.msra.mxu0 %v22064_v16  ;;  %v22084_v16 = vld [vmem:[%s28883_s3 + $0x1164] ss:$16 sps:$4 sm:$0xff]  }
 0x886   : > { %13417 = vmatpush1.bf16.msra.mxu1 %v22067_v19  ;;  %10288 = vmatprep.subr.bf16.mxu0 %v22072_v44  ;;  %v22087_v19 = vld [vmem:[%s28883_s3 + $0x116c] ss:$16 sps:$4 sm:$0xff]   ;;  %v22082_v44 = vld [vmem:[%s28883_s3 + $0x1160] ss:$16 sps:$4 sm:$0xff]  }
 0x887   : > { %13418 = vmatprep.subr.bf16.mxu1 %v22075_v62  ;;  %v22085_v62 = vld [vmem:[%s28883_s3 + $0x1168] ss:$16 sps:$4 sm:$0xff]  }
 0x889   : > { %10289 = vmatpush1.bf16.msra.mxu0 %v22070_v10  ;;  %v22090_v10 = vld [vmem:[%s28883_s3 + $0x1184] ss:$16 sps:$4 sm:$0xff]  }
 0x88a   : > { %13419 = vmatpush1.bf16.msra.mxu1 %v22073_v36  ;;  %10290 = vmatprep.subr.bf16.mxu0 %v22078_v0  ;;  %v22093_v36 = vld [vmem:[%s28883_s3 + $0x118c] ss:$16 sps:$4 sm:$0xff]   ;;  %v22088_v0 = vld [vmem:[%s28883_s3 + $0x1180] ss:$16 sps:$4 sm:$0xff]  }
 0x88b   : > { %13420 = vmatprep.subr.bf16.mxu1 %v22081_v17  ;;  %10040 = vmatmul.mubr.bf16.gmra.mrb[244].mxu0 %v29355_v56  ;;  %v22091_v17 = vld [vmem:[%s28883_s3 + $0x1188] ss:$16 sps:$4 sm:$0xff]  }
 0x88c   : > { %13170 = vmatmul.mubr.bf16.gmra.mrb[244].mxu1 %v29355_v56  ;;  %10049 = vmatprep.mubr.bf16.mxu0 %v29356_v28 }
 0x88d   : > { %13179 = vmatprep.mubr.bf16.mxu1 %v29356_v28  ;;  %10291 = vmatpush1.bf16.msra.mxu0 %v22076_v61  ;;  %v22096_v61 = vld [vmem:[%s28883_s3 + $0x11a4] ss:$16 sps:$4 sm:$0xff]  }
 0x88e   : > { %13421 = vmatpush1.bf16.msra.mxu1 %v22079_v30  ;;  %10292 = vmatprep.subr.bf16.mxu0 %v22084_v16  ;;  %v22094_v30 = vld [vmem:[%s28883_s3 + $0x11a0] ss:$16 sps:$4 sm:$0xff]   ;;  %v22097_v16 = vld [vmem:[%s28883_s3 + $0x11a8] ss:$16 sps:$4 sm:$0xff]  }
 0x88f   : > { %13422 = vmatprep.subr.bf16.mxu1 %v22087_v19  ;;  %v22099_v19 = vld [vmem:[%s28883_s3 + $0x11ac] ss:$16 sps:$4 sm:$0xff]  }
 0x891   : > { %10293 = vmatpush1.bf16.msra.mxu0 %v22082_v44  ;;  %v22100_v44 = vld [vmem:[%s28883_s3 + $0x11c0] ss:$16 sps:$4 sm:$0xff]  }
 0x892   : > { %13423 = vmatpush1.bf16.msra.mxu1 %v22085_v62  ;;  %10294 = vmatprep.subr.bf16.mxu0 %v22090_v10  ;;  %v22102_v62 = vld [vmem:[%s28883_s3 + $0x11c4] ss:$16 sps:$4 sm:$0xff]   ;;  %v22103_v10 = vld [vmem:[%s28883_s3 + $0x11c8] ss:$16 sps:$4 sm:$0xff]  }
 0x893   : > { %13424 = vmatprep.subr.bf16.mxu1 %v22093_v36  ;;  %10050 = vmatmul.mubr.bf16.gmra.mrb[248].mxu0 %v29357_v11  ;;  %v22105_v36 = vld [vmem:[%s28883_s3 + $0x11cc] ss:$16 sps:$4 sm:$0xff]  }
 0x894   : > { %13180 = vmatmul.mubr.bf16.gmra.mrb[248].mxu1 %v29357_v11  ;;  %10059 = vmatprep.mubr.bf16.mxu0 %v29358_v37 }
 0x895   : > { %13189 = vmatprep.mubr.bf16.mxu1 %v29358_v37  ;;  %10295 = vmatpush1.bf16.msra.mxu0 %v22088_v0  ;;  %v22106_v0 = vld [vmem:[%s28883_s3 + $0x11e0] ss:$16 sps:$4 sm:$0xff]  }
 0x896   : > { %13425 = vmatpush1.bf16.msra.mxu1 %v22091_v17  ;;  %10296 = vmatprep.subr.bf16.mxu0 %v22096_v61  ;;  %v22108_v17 = vld [vmem:[%s28883_s3 + $0x11e4] ss:$16 sps:$4 sm:$0xff]   ;;  %v22109_v61 = vld [vmem:[%s28883_s3 + $0x11e8] ss:$16 sps:$4 sm:$0xff]  }
 0x897   : > { %13426 = vmatprep.subr.bf16.mxu1 %v22099_v19  ;;  %v22117_v19 = vld [vmem:[%s28883_s3 + $0x120c] ss:$16 sps:$4 sm:$0xff]  }
 0x899   : > { %10297 = vmatpush1.bf16.msra.mxu0 %v22094_v30  ;;  %v22111_v30 = vld [vmem:[%s28883_s3 + $0x11ec] ss:$16 sps:$4 sm:$0xff]  }
 0x89a   : > { %13427 = vmatpush1.bf16.msra.mxu1 %v22097_v16  ;;  %10298 = vmatprep.subr.bf16.mxu0 %v22102_v62  ;;  %v22114_v16 = vld [vmem:[%s28883_s3 + $0x1204] ss:$16 sps:$4 sm:$0xff]   ;;  %v29522_v62 = vld [vmem:[#allocation95_spill] sm:$0xff] }
 0x89b   : > { %10060 = vmatmul.mubr.bf16.gmra.mrb[252].mxu0 %v29359_v54  ;;  %13428 = vmatprep.subr.bf16.mxu1 %v22105_v36  ;;  %v29524_v36 = vld [vmem:[#allocation99_spill] sm:$0xff] }
 0x89c   : > { %13190 = vmatmul.mubr.bf16.gmra.mrb[252].mxu1 %v29359_v54  ;;  %10069 = vmatprep.mubr.bf16.mxu0 %v29360_v60 }
 0x89d   : > { %13199 = vmatprep.mubr.bf16.mxu1 %v29360_v60  ;;  %10299 = vmatpush1.bf16.msra.mxu0 %v22100_v44  ;;  %v29521_v44 = vld [vmem:[#allocation89_spill] sm:$0xff] }
 0x89e   : > { %13429 = vmatpush1.bf16.msra.mxu1 %v22103_v10  ;;  %10300 = vmatprep.subr.bf16.mxu0 %v22108_v17  ;;  %v29523_v10 = vld [vmem:[#allocation93_spill] sm:$0xff]  ;;  %v29526_v17 = vld [vmem:[#allocation103_spill] sm:$0xff] }
 0x89f   : > { %13430 = vmatprep.subr.bf16.mxu1 %v22111_v30  ;;  %v29528_v30 = vld [vmem:[#allocation107_spill] sm:$0xff] }
 0x8a1   : > { %10301 = vmatpush1.bf16.msra.mxu0 %v22106_v0  ;;  %v29525_v0 = vld [vmem:[#allocation97_spill] sm:$0xff] }
 0x8a2   : > { %13431 = vmatpush1.bf16.msra.mxu1 %v22109_v61  ;;  %10583 = vmatprep.subr.bf16.mxu0 %v22114_v16  ;;  %v29527_v61 = vld [vmem:[#allocation101_spill] sm:$0xff] }
 0x8a3   : > { %10070 = vmatmul.mubr.bf16.gmra.mrb[0].mxu0 %v29361_v38  ;;  %13713 = vmatprep.subr.bf16.mxu1 %v22117_v19  ;;  %v29529_v16 = vld [vmem:[#allocation105_spill] sm:$0xff]  ;;  %v22112_v19 = vld [vmem:[%s28883_s3 + $0x1200] ss:$16 sps:$4 sm:$0xff]  }
 0x8a4   : > { %13200 = vmatmul.mubr.bf16.gmra.mrb[0].mxu1 %v29361_v38  ;;  %10079 = vmatprep.mubr.bf16.mxu0 %v29362_v39 }
 0x8a5   : > { %13209 = vmatprep.mubr.bf16.mxu1 %v29362_v39 }
 0x8ab   : > { %10080 = vmatmul.mubr.bf16.gmra.mrb[4].mxu0 %v29363_v35 }
 0x8ac   : > { %13210 = vmatmul.mubr.bf16.gmra.mrb[4].mxu1 %v29363_v35  ;;  %10089 = vmatprep.mubr.bf16.mxu0 %v29364_v63 }
 0x8ad   : > { %13219 = vmatprep.mubr.bf16.mxu1 %v29364_v63 }
 0x8b3   : > { %10090 = vmatmul.mubr.bf16.gmra.mrb[8].mxu0 %v29365_v15 }
 0x8b4   : > { %13220 = vmatmul.mubr.bf16.gmra.mrb[8].mxu1 %v29365_v15  ;;  %10099 = vmatprep.mubr.bf16.mxu0 %v29366_v57 }
 0x8b5   : > { %13229 = vmatprep.mubr.bf16.mxu1 %v29366_v57 }
 0x8bb   : > { %10100 = vmatmul.mubr.bf16.gmra.mrb[12].mxu0 %v29367_v40 }
 0x8bc   : > { %13230 = vmatmul.mubr.bf16.gmra.mrb[12].mxu1 %v29367_v40  ;;  %10109 = vmatprep.mubr.bf16.mxu0 %v29368_v45 }
 0x8bd   : > { %13239 = vmatprep.mubr.bf16.mxu1 %v29368_v45 }
 0x8c3   : > { %10110 = vmatmul.mubr.bf16.gmra.mrb[16].mxu0 %v29369_v48 }
 0x8c4   : > { %13240 = vmatmul.mubr.bf16.gmra.mrb[16].mxu1 %v29369_v48  ;;  %10119 = vmatprep.mubr.bf16.mxu0 %v29370_v47 }
 0x8c5   : > { %13249 = vmatprep.mubr.bf16.mxu1 %v29370_v47 }
 0x8cb   : > { %10120 = vmatmul.mubr.bf16.gmra.mrb[20].mxu0 %v29371_v34 }
 0x8cc   : > { %13250 = vmatmul.mubr.bf16.gmra.mrb[20].mxu1 %v29371_v34  ;;  %10129 = vmatprep.mubr.bf16.mxu0 %v24212_v29 }
 0x8cd   : > { %13259 = vmatprep.mubr.bf16.mxu1 %v24212_v29 }
 0x8d3   : > { %10130 = vmatmul.mubr.bf16.gmra.mrb[24].mxu0 %v24205_v58 }
 0x8d4   : > { %13260 = vmatmul.mubr.bf16.gmra.mrb[24].mxu1 %v24205_v58  ;;  %10139 = vmatprep.mubr.bf16.mxu0 %v24253_v22 }
 0x8d5   : > { %13269 = vmatprep.mubr.bf16.mxu1 %v24253_v22 }
 0x8db   : > { %10140 = vmatmul.mubr.bf16.gmra.mrb[28].mxu0 %v24249_v25 }
 0x8dc   : > { %13270 = vmatmul.mubr.bf16.gmra.mrb[28].mxu1 %v24249_v25  ;;  %10149 = vmatprep.mubr.bf16.mxu0 %v24332_v32 }
 0x8dd   : > { %13279 = vmatprep.mubr.bf16.mxu1 %v24332_v32 }
 0x8e3   : > { %10150 = vmatmul.mubr.bf16.gmra.mrb[32].mxu0 %v24322_v51 }
 0x8e4   : > { %13280 = vmatmul.mubr.bf16.gmra.mrb[32].mxu1 %v24322_v51  ;;  %10159 = vmatprep.mubr.bf16.mxu0 %v24367_v18 }
 0x8e5   : > { %13289 = vmatprep.mubr.bf16.mxu1 %v24367_v18 }
 0x8eb   : > { %10160 = vmatmul.mubr.bf16.gmra.mrb[36].mxu0 %v24363_v52 }
 0x8ec   : > { %13290 = vmatmul.mubr.bf16.gmra.mrb[36].mxu1 %v24363_v52  ;;  %10169 = vmatprep.mubr.bf16.mxu0 %v24440_v3 }
 0x8ed   : > { %13299 = vmatprep.mubr.bf16.mxu1 %v24440_v3 }
 0x8f3   : > { %10170 = vmatmul.mubr.bf16.gmra.mrb[40].mxu0 %v29372_v43 }
 0x8f4   : > { %13300 = vmatmul.mubr.bf16.gmra.mrb[40].mxu1 %v29372_v43  ;;  %10179 = vmatprep.mubr.bf16.mxu0 %v29373_v8 }
 0x8f5   : > { %13309 = vmatprep.mubr.bf16.mxu1 %v29373_v8 }
 0x8fb   : > { %10180 = vmatmul.mubr.bf16.gmra.mrb[44].mxu0 %v29416_v9 }
 0x8fc   : > { %13310 = vmatmul.mubr.bf16.gmra.mrb[44].mxu1 %v29416_v9  ;;  %10189 = vmatprep.mubr.bf16.mxu0 %v29417_v42 }
 0x8fd   : > { %13319 = vmatprep.mubr.bf16.mxu1 %v29417_v42 }
 0x903   : > { %10190 = vmatmul.mubr.bf16.gmra.mrb[48].mxu0 %v29470_v4 }
 0x904   : > { %13320 = vmatmul.mubr.bf16.gmra.mrb[48].mxu1 %v29470_v4  ;;  %10199 = vmatprep.mubr.bf16.mxu0 %v29471_v7 }
 0x905   : > { %13329 = vmatprep.mubr.bf16.mxu1 %v29471_v7 }
 0x90b   : > { %10200 = vmatmul.mubr.bf16.gmra.mrb[52].mxu0 %v29521_v44 }
 0x90c   : > { %13330 = vmatmul.mubr.bf16.gmra.mrb[52].mxu1 %v29521_v44  ;;  %10209 = vmatprep.mubr.bf16.mxu0 %v29522_v62 }
 0x90d   : > { %13339 = vmatprep.mubr.bf16.mxu1 %v29522_v62 }
 0x913   : > { %10210 = vmatmul.mubr.bf16.gmra.mrb[56].mxu0 %v29523_v10 }
 0x914   : > { %13340 = vmatmul.mubr.bf16.gmra.mrb[56].mxu1 %v29523_v10  ;;  %10219 = vmatprep.mubr.bf16.mxu0 %v29524_v36  ;;  %v22126_v10 = vld [vmem:[%s28883_s3 + $0x1244] ss:$16 sps:$4 sm:$0xff]  }
 0x915   : > { %13349 = vmatprep.mubr.bf16.mxu1 %v29524_v36  ;;  %v22121_v36 = vld [vmem:[%s28883_s3 + $0x1228] ss:$16 sps:$4 sm:$0xff]  }
 0x91b   : > { %10220 = vmatmul.mubr.bf16.gmra.mrb[60].mxu0 %v29525_v0 }
 0x91c   : > { %13350 = vmatmul.mubr.bf16.gmra.mrb[60].mxu1 %v29525_v0  ;;  %10229 = vmatprep.mubr.bf16.mxu0 %v29526_v17  ;;  %v22118_v0 = vld [vmem:[%s28883_s3 + $0x1220] ss:$16 sps:$4 sm:$0xff]  }
 0x91d   : > { %13359 = vmatprep.mubr.bf16.mxu1 %v29526_v17  ;;  %v29530_v17 = vld [vmem:[#allocation21_spill] sm:$0xff] }
 0x923   : > { %10230 = vmatmul.mubr.bf16.gmra.mrb[64].mxu0 %v29527_v61 }
 0x924   : > { %13360 = vmatmul.mubr.bf16.gmra.mrb[64].mxu1 %v29527_v61  ;;  %10239 = vmatprep.mubr.bf16.mxu0 %v29528_v30  ;;  %v22123_v61 = vld [vmem:[%s28883_s3 + $0x122c] ss:$16 sps:$4 sm:$0xff]  }
 0x925   : > { %13369 = vmatprep.mubr.bf16.mxu1 %v29528_v30  ;;  %v22120_v30 = vld [vmem:[%s28883_s3 + $0x1224] ss:$16 sps:$4 sm:$0xff]  }
 0x92b   : > { %10240 = vmatmul.mubr.bf16.gmra.mrb[68].mxu0 %v29529_v16 }
 0x92c   : > { %13370 = vmatmul.mubr.bf16.gmra.mrb[68].mxu1 %v29529_v16  ;;  %10249 = vmatprep.mubr.bf16.mxu0 %v29520_v33  ;;  %v22115_v16 = vld [vmem:[%s28883_s3 + $0x1208] ss:$16 sps:$4 sm:$0xff]  }
 0x92d   : > { %13379 = vmatprep.mubr.bf16.mxu1 %v29520_v33 }
 0x933   : > { %10250 = vmatmul.mubr.bf16.gmra.mrb[72].mxu0 %v29520_v33 }
 0x934   : > { %13380 = vmatmul.mubr.bf16.gmra.mrb[72].mxu1 %v29520_v33  ;;  %10259 = vmatprep.mubr.bf16.mxu0 %v29520_v33 }
 0x935   : > { %13389 = vmatprep.mubr.bf16.mxu1 %v29520_v33 }
 0x93b   : > { %10260 = vmatmul.mubr.bf16.gmra.mrb[76].mxu0 %v29520_v33 }
 0x93c   : > { %13390 = vmatmul.mubr.bf16.gmra.mrb[76].mxu1 %v29520_v33  ;;  %10302 = vmatprep.mubr.bf16.mxu0 %v29484_v21 }
 0x93d   : > { %13432 = vmatprep.mubr.bf16.mxu1 %v29484_v21  ;;  %v29531_v21 = vld [vmem:[#allocation27_spill] sm:$0xff] }
 0x943   : > { %10303 = vmatmul.mubr.bf16.vlgmr.msra.gmra.mrb[224].mxu0 %v29530_v17 }
 0x944   : > { %13433 = vmatmul.mubr.bf16.vlgmr.msra.gmra.mrb[224].mxu1 %v29530_v17  ;;  %10312 = vmatprep.mubr.bf16.mxu0 %v29531_v21  ;;  %v22129_v17 = vld [vmem:[%s28883_s3 + $0x124c] ss:$16 sps:$4 sm:$0xff]  }
 0x945   : > { %10584 = vmatpush1.bf16.msra.mxu0 %v22112_v19  ;;  %13442 = vmatprep.mubr.bf16.mxu1 %v29531_v21  ;;  %v22127_v19 = vld [vmem:[%s28883_s3 + $0x1248] ss:$16 sps:$4 sm:$0xff]  }
 0x946   : > { %13714 = vmatpush1.bf16.msra.mxu1 %v22115_v16  ;;  %10585 = vmatprep.subr.bf16.mxu0 %v22120_v30  ;;  %v22124_v16 = vld [vmem:[%s28883_s3 + $0x1240] ss:$16 sps:$4 sm:$0xff]   ;;  %v22135_v30 = vld [vmem:[%s28883_s3 + $0x126c] ss:$16 sps:$4 sm:$0xff]   ;;  %v22133_v21 = vld [vmem:[%s28883_s3 + $0x1268] ss:$16 sps:$4 sm:$0xff]  }
 0x947   : > { %13715 = vmatprep.subr.bf16.mxu1 %v22123_v61  ;;  %v22132_v61 = vld [vmem:[%s28883_s3 + $0x1264] ss:$16 sps:$4 sm:$0xff]  }
 0x949   : > { %10586 = vmatpush1.bf16.msra.mxu0 %v22118_v0  ;;  %v29532_v0 = vld [vmem:[#allocation25_spill] sm:$0xff] }
 0x94a   : > { %13716 = vmatpush1.bf16.msra.mxu1 %v22121_v36  ;;  %10587 = vmatprep.subr.bf16.mxu0 %v22126_v10  ;;  %v29533_v36 = vld [vmem:[#allocation31_spill] sm:$0xff]  ;;  %v22130_v10 = vld [vmem:[%s28883_s3 + $0x1260] ss:$16 sps:$4 sm:$0xff]  }
 0x94b   : > { %13717 = vmatprep.subr.bf16.mxu1 %v22129_v17  ;;  %10313 = vmatmul.mubr.bf16.gmra.mrb[228].mxu0 %v29532_v0  ;;  %v22138_v17 = vld [vmem:[%s28883_s3 + $0x1284] ss:$16 sps:$4 sm:$0xff]  }
 0x94c   : > { %13443 = vmatmul.mubr.bf16.gmra.mrb[228].mxu1 %v29532_v0  ;;  %10322 = vmatprep.mubr.bf16.mxu0 %v29533_v36  ;;  %v22141_v0 = vld [vmem:[%s28883_s3 + $0x128c] ss:$16 sps:$4 sm:$0xff]  }
 0x94d   : > { %13452 = vmatprep.mubr.bf16.mxu1 %v29533_v36  ;;  %10588 = vmatpush1.bf16.msra.mxu0 %v22124_v16  ;;  %v22136_v16 = vld [vmem:[%s28883_s3 + $0x1280] ss:$16 sps:$4 sm:$0xff]   ;;  %v29534_v36 = vld [vmem:[#allocation29_spill] sm:$0xff] }
 0x94e   : > { %13718 = vmatpush1.bf16.msra.mxu1 %v22127_v19  ;;  %10589 = vmatprep.subr.bf16.mxu0 %v22132_v61  ;;  %v22139_v19 = vld [vmem:[%s28883_s3 + $0x1288] ss:$16 sps:$4 sm:$0xff]   ;;  %v22144_v61 = vld [vmem:[%s28883_s3 + $0x12a4] ss:$16 sps:$4 sm:$0xff]  }
 0x94f   : > { %13719 = vmatprep.subr.bf16.mxu1 %v22135_v30  ;;  %v22147_v30 = vld [vmem:[%s28883_s3 + $0x12ac] ss:$16 sps:$4 sm:$0xff]  }
 0x951   : > { %10590 = vmatpush1.bf16.msra.mxu0 %v22130_v10  ;;  %v29535_v10 = vld [vmem:[#allocation35_spill] sm:$0xff] }
 0x952   : > { %13720 = vmatpush1.bf16.msra.mxu1 %v22133_v21  ;;  %10591 = vmatprep.subr.bf16.mxu0 %v22138_v17  ;;  %v22142_v21 = vld [vmem:[%s28883_s3 + $0x12a0] ss:$16 sps:$4 sm:$0xff]   ;;  %v22145_v17 = vld [vmem:[%s28883_s3 + $0x12a8] ss:$16 sps:$4 sm:$0xff]  }
 0x953   : > { %13721 = vmatprep.subr.bf16.mxu1 %v22141_v0  ;;  %10323 = vmatmul.mubr.bf16.gmra.mrb[232].mxu0 %v29534_v36  ;;  %v22150_v0 = vld [vmem:[%s28883_s3 + $0x12c4] ss:$16 sps:$4 sm:$0xff]  }
 0x954   : > { %13453 = vmatmul.mubr.bf16.gmra.mrb[232].mxu1 %v29534_v36  ;;  %10332 = vmatprep.mubr.bf16.mxu0 %v29535_v10  ;;  %v22153_v36 = vld [vmem:[%s28883_s3 + $0x12cc] ss:$16 sps:$4 sm:$0xff]  }
 0x955   : > { %13462 = vmatprep.mubr.bf16.mxu1 %v29535_v10  ;;  %10592 = vmatpush1.bf16.msra.mxu0 %v22136_v16  ;;  %v22148_v16 = vld [vmem:[%s28883_s3 + $0x12c0] ss:$16 sps:$4 sm:$0xff]   ;;  %v29536_v10 = vld [vmem:[#allocation39_spill] sm:$0xff] }
 0x956   : > { %13722 = vmatpush1.bf16.msra.mxu1 %v22139_v19  ;;  %10593 = vmatprep.subr.bf16.mxu0 %v22144_v61  ;;  %v22151_v19 = vld [vmem:[%s28883_s3 + $0x12c8] ss:$16 sps:$4 sm:$0xff]   ;;  %v22156_v61 = vld [vmem:[%s28883_s3 + $0x12e4] ss:$16 sps:$4 sm:$0xff]  }
 0x957   : > { %13723 = vmatprep.subr.bf16.mxu1 %v22147_v30  ;;  %v22159_v30 = vld [vmem:[%s28883_s3 + $0x12ec] ss:$16 sps:$4 sm:$0xff]  }
 0x959   : > { %10594 = vmatpush1.bf16.msra.mxu0 %v22142_v21  ;;  %v22154_v21 = vld [vmem:[%s28883_s3 + $0x12e0] ss:$16 sps:$4 sm:$0xff]  }
 0x95a   : > { %13724 = vmatpush1.bf16.msra.mxu1 %v22145_v17  ;;  %10595 = vmatprep.subr.bf16.mxu0 %v22150_v0  ;;  %v22157_v17 = vld [vmem:[%s28883_s3 + $0x12e8] ss:$16 sps:$4 sm:$0xff]   ;;  %v22165_v0 = vld [vmem:[%s28883_s3 + $0x130c] ss:$16 sps:$4 sm:$0xff]  }
 0x95b   : > { %13725 = vmatprep.subr.bf16.mxu1 %v22153_v36  ;;  %10333 = vmatmul.mubr.bf16.gmra.mrb[236].mxu0 %v29439_v46  ;;  %v22160_v36 = vld [vmem:[%s28883_s3 + $0x1300] ss:$16 sps:$4 sm:$0xff]  }
 0x95c   : > { %13463 = vmatmul.mubr.bf16.gmra.mrb[236].mxu1 %v29439_v46  ;;  %10342 = vmatprep.mubr.bf16.mxu0 %v29536_v10  ;;  %v22162_v46 = vld [vmem:[%s28883_s3 + $0x1304] ss:$16 sps:$4 sm:$0xff]  }
 0x95d   : > { %13472 = vmatprep.mubr.bf16.mxu1 %v29536_v10  ;;  %10596 = vmatpush1.bf16.msra.mxu0 %v22148_v16  ;;  %v22163_v16 = vld [vmem:[%s28883_s3 + $0x1308] ss:$16 sps:$4 sm:$0xff]   ;;  %v22166_v10 = vld [vmem:[%s28883_s3 + $0x1320] ss:$16 sps:$4 sm:$0xff]  }
 0x95e   : > { %13726 = vmatpush1.bf16.msra.mxu1 %v22151_v19  ;;  %10597 = vmatprep.subr.bf16.mxu0 %v22156_v61  ;;  %v22168_v19 = vld [vmem:[%s28883_s3 + $0x1324] ss:$16 sps:$4 sm:$0xff]   ;;  %v22171_v61 = vld [vmem:[%s28883_s3 + $0x132c] ss:$16 sps:$4 sm:$0xff]  }
 0x95f   : > { %13727 = vmatprep.subr.bf16.mxu1 %v22159_v30  ;;  %v29537_v30 = vld [vmem:[#allocation43_spill] sm:$0xff] }
 0x961   : > { %10598 = vmatpush1.bf16.msra.mxu0 %v22154_v21  ;;  %v22169_v21 = vld [vmem:[%s28883_s3 + $0x1328] ss:$16 sps:$4 sm:$0xff]  }
 0x962   : > { %13728 = vmatpush1.bf16.msra.mxu1 %v22157_v17  ;;  %10599 = vmatprep.subr.bf16.mxu0 %v22162_v46  ;;  %v22177_v17 = vld [vmem:[%s28883_s3 + $0x134c] ss:$16 sps:$4 sm:$0xff]   ;;  %v22172_v46 = vld [vmem:[%s28883_s3 + $0x1340] ss:$16 sps:$4 sm:$0xff]  }
 0x963   : > { %13729 = vmatprep.subr.bf16.mxu1 %v22165_v0  ;;  %10343 = vmatmul.mubr.bf16.gmra.mrb[240].mxu0 %v29492_v1  ;;  %v22175_v0 = vld [vmem:[%s28883_s3 + $0x1348] ss:$16 sps:$4 sm:$0xff]  }
 0x964   : > { %13473 = vmatmul.mubr.bf16.gmra.mrb[240].mxu1 %v29492_v1  ;;  %10352 = vmatprep.mubr.bf16.mxu0 %v29537_v30  ;;  %v22174_v1 = vld [vmem:[%s28883_s3 + $0x1344] ss:$16 sps:$4 sm:$0xff]  }
 0x965   : > { %13482 = vmatprep.mubr.bf16.mxu1 %v29537_v30  ;;  %10600 = vmatpush1.bf16.msra.mxu0 %v22160_v36  ;;  %v22180_v36 = vld [vmem:[%s28883_s3 + $0x1364] ss:$16 sps:$4 sm:$0xff]   ;;  %v22181_v30 = vld [vmem:[%s28883_s3 + $0x1368] ss:$16 sps:$4 sm:$0xff]  }
 0x966   : > { %13730 = vmatpush1.bf16.msra.mxu1 %v22163_v16  ;;  %10601 = vmatprep.subr.bf16.mxu0 %v22168_v19  ;;  %v22183_v16 = vld [vmem:[%s28883_s3 + $0x136c] ss:$16 sps:$4 sm:$0xff]  }
 0x967   : > { %13731 = vmatprep.subr.bf16.mxu1 %v22171_v61  ;;  %v29538_v19 = vld [vmem:[#allocation47_spill] sm:$0xff]  ;;  %v22178_v61 = vld [vmem:[%s28883_s3 + $0x1360] ss:$16 sps:$4 sm:$0xff]  }
 0x969   : > { %10602 = vmatpush1.bf16.msra.mxu0 %v22166_v10  ;;  %v22189_v10 = vld [vmem:[%s28883_s3 + $0x138c] ss:$16 sps:$4 sm:$0xff]  }
 0x96a   : > { %13732 = vmatpush1.bf16.msra.mxu1 %v22169_v21  ;;  %10603 = vmatprep.subr.bf16.mxu0 %v22174_v1  ;;  %v22184_v21 = vld [vmem:[%s28883_s3 + $0x1380] ss:$16 sps:$4 sm:$0xff]   ;;  %v22187_v1 = vld [vmem:[%s28883_s3 + $0x1388] ss:$16 sps:$4 sm:$0xff]  }
 0x96b   : > { %13733 = vmatprep.subr.bf16.mxu1 %v22177_v17  ;;  %10353 = vmatmul.mubr.bf16.gmra.mrb[244].mxu0 %v29394_v59  ;;  %v29539_v17 = vld [vmem:[#allocation45_spill] sm:$0xff] }
 0x96c   : > { %13483 = vmatmul.mubr.bf16.gmra.mrb[244].mxu1 %v29394_v59  ;;  %10362 = vmatprep.mubr.bf16.mxu0 %v29538_v19  ;;  %v22186_v59 = vld [vmem:[%s28883_s3 + $0x1384] ss:$16 sps:$4 sm:$0xff]  }
 0x96d   : > { %13492 = vmatprep.mubr.bf16.mxu1 %v29538_v19  ;;  %10604 = vmatpush1.bf16.msra.mxu0 %v22172_v46  ;;  %v29540_v46 = vld [vmem:[#allocation51_spill] sm:$0xff] }
 0x96e   : > { %13734 = vmatpush1.bf16.msra.mxu1 %v22175_v0  ;;  %10605 = vmatprep.subr.bf16.mxu0 %v22180_v36  ;;  %v22192_v0 = vld [vmem:[%s28883_s3 + $0x13a4] ss:$16 sps:$4 sm:$0xff]   ;;  %v22190_v36 = vld [vmem:[%s28883_s3 + $0x13a0] ss:$16 sps:$4 sm:$0xff]   ;;  %v22195_v19 = vld [vmem:[%s28883_s3 + $0x13ac] ss:$16 sps:$4 sm:$0xff]  }
 0x96f   : > { %13735 = vmatprep.subr.bf16.mxu1 %v22183_v16  ;;  %v22193_v16 = vld [vmem:[%s28883_s3 + $0x13a8] ss:$16 sps:$4 sm:$0xff]  }
 0x971   : > { %10606 = vmatpush1.bf16.msra.mxu0 %v22178_v61  ;;  %v22196_v61 = vld [vmem:[%s28883_s3 + $0x13c0] ss:$16 sps:$4 sm:$0xff]  }
 0x972   : > { %13736 = vmatpush1.bf16.msra.mxu1 %v22181_v30  ;;  %10607 = vmatprep.subr.bf16.mxu0 %v22186_v59  ;;  %v22198_v30 = vld [vmem:[%s28883_s3 + $0x13c4] ss:$16 sps:$4 sm:$0xff]   ;;  %v29543_v59 = vld [vmem:[#allocation71_spill] sm:$0xff] }
 0x973   : > { %13737 = vmatprep.subr.bf16.mxu1 %v22189_v10  ;;  %10363 = vmatmul.mubr.bf16.gmra.mrb[248].mxu0 %v29539_v17  ;;  %v29544_v10 = vld [vmem:[#allocation74_spill] sm:$0xff] }
 0x974   : > { %13493 = vmatmul.mubr.bf16.gmra.mrb[248].mxu1 %v29539_v17  ;;  %10372 = vmatprep.mubr.bf16.mxu0 %v29540_v46  ;;  %v29547_v17 = vld [vmem:[#allocation75_spill] sm:$0xff] }
 0x975   : > { %13502 = vmatprep.mubr.bf16.mxu1 %v29540_v46  ;;  %10608 = vmatpush1.bf16.msra.mxu0 %v22184_v21  ;;  %v22208_v21 = vld [vmem:[%s28885_s5 + $0x40] sm:$0xff]   ;;  %v29548_v46 = vld [vmem:[#allocation79_spill] sm:$0xff] }
 0x976   : > { %13738 = vmatpush1.bf16.msra.mxu1 %v22187_v1  ;;  %10609 = vmatprep.subr.bf16.mxu0 %v22192_v0  ;;  %v22210_v1 = vld [vmem:[%s28885_s5 + $0xc0] sm:$0xff]   ;;  %v29549_v0 = vld [vmem:[#allocation77_spill] sm:$0xff] }
 0x977   : > { %13739 = vmatprep.subr.bf16.mxu1 %v22195_v19  ;;  %v29552_v19 = vld [vmem:[#allocation86_spill] sm:$0xff] }
 0x979   : > { %10610 = vmatpush1.bf16.msra.mxu0 %v22190_v36  ;;  %v29550_v36 = vld [vmem:[#allocation82_spill] sm:$0xff] }
 0x97a   : > { %13740 = vmatpush1.bf16.msra.mxu1 %v22193_v16  ;;  %10611 = vmatprep.subr.bf16.mxu0 %v22198_v30  ;;  %v29551_v16 = vld [vmem:[#allocation80_spill] sm:$0xff]  ;;  %v29554_v30 = vld [vmem:[#allocation90_spill] sm:$0xff] }
 0x97b   : > { %10373 = vmatmul.mubr.bf16.gmra.mrb[252].mxu0 %v29398_v53 }
 0x97c   : > { %13503 = vmatmul.mubr.bf16.gmra.mrb[252].mxu1 %v29398_v53  ;;  %10382 = vmatprep.mubr.bf16.mxu0 %v29497_v23  ;;  %v22199_v53 = vld [vmem:[%s28883_s3 + $0x13c8] ss:$16 sps:$4 sm:$0xff]  }
 0x97d   : > { %13512 = vmatprep.mubr.bf16.mxu1 %v29497_v23  ;;  %v22201_v23 = vld [vmem:[%s28883_s3 + $0x13cc] ss:$16 sps:$4 sm:$0xff]   ;;  %10612 = vmatpush1.bf16.msra.mxu0 %v22196_v61  ;;  %v29553_v61 = vld [vmem:[#allocation84_spill] sm:$0xff] }
 0x97e   : > { %13741 = vmatprep.subr.bf16.mxu1 %v22201_v23  ;;  %v29556_v23 = vld [vmem:[#allocation94_spill] sm:$0xff] }
 0x97f   : > { %13742 = vmatpush1.bf16.msra.mxu1 %v22199_v53  ;;  %v29555_v53 = vld [vmem:[#allocation88_spill] sm:$0xff] }
 0x983   : > { %10383 = vmatmul.mubr.bf16.gmra.mrb[0].mxu0 %v29498_v24 }
 0x984   : > { %13513 = vmatmul.mubr.bf16.gmra.mrb[0].mxu1 %v29498_v24  ;;  %10392 = vmatprep.mubr.bf16.mxu0 %v29448_v13  ;;  %v22204_v24 = vld [vmem:[%s28883_s3 + $0x13e4] ss:$16 sps:$4 sm:$0xff]  }
 0x985   : > { %13522 = vmatprep.mubr.bf16.mxu1 %v29448_v13  ;;  %v22202_v13 = vld [vmem:[%s28883_s3 + $0x13e0] ss:$16 sps:$4 sm:$0xff]   ;;  %10613 = vmatprep.subr.bf16.mxu0 %v22204_v24 }
 0x986   : > { %10614 = vmatpush1.bf16.msra.mxu0 %v22202_v13  ;;  %v29557_v13 = vld [vmem:[#allocation92_spill] sm:$0xff]  ;;  %v29558_v24 = vld [vmem:[#allocation98_spill] sm:$0xff] }
 0x987   : > { %18585 = vmatprep.subr.bf16.mxu0 %v22208_v21  ;;  %v22214_v21 = vld [vmem:[%s28885_s5 + $0xc8] sm:$0xff]  }
 0x98b   : > { %10393 = vmatmul.mubr.bf16.gmra.mrb[4].mxu0 %v29449_v2 }
 0x98c   : > { %13523 = vmatmul.mubr.bf16.gmra.mrb[4].mxu1 %v29449_v2  ;;  %10402 = vmatprep.mubr.bf16.mxu0 %v29450_v31  ;;  %v22205_v2 = vld [vmem:[%s28883_s3 + $0x13e8] ss:$16 sps:$4 sm:$0xff]  }
 0x98d   : > { %13532 = vmatprep.mubr.bf16.mxu1 %v29450_v31  ;;  %v29541_v31 = vld [vmem:[#allocation69_spill] sm:$0xff] }
 0x993   : > { %10403 = vmatmul.mubr.bf16.gmra.mrb[8].mxu0 %v29451_v41 }
 0x994   : > { %13533 = vmatmul.mubr.bf16.gmra.mrb[8].mxu1 %v29451_v41  ;;  %10412 = vmatprep.mubr.bf16.mxu0 %v29452_v5  ;;  %v22207_v41 = vld [vmem:[%s28883_s3 + $0x13ec] ss:$16 sps:$4 sm:$0xff]  }
 0x995   : > { %13542 = vmatprep.mubr.bf16.mxu1 %v29452_v5  ;;  %13743 = vmatprep.subr.bf16.mxu1 %v22207_v41  ;;  %v29542_v5 = vld [vmem:[#allocation72_spill] sm:$0xff]  ;;  %v29560_v41 = vld [vmem:[#allocation102_spill] sm:$0xff] }
 0x996   : > { %13744 = vmatpush1.bf16.msra.mxu1 %v22205_v2  ;;  %v29559_v2 = vld [vmem:[#allocation96_spill] sm:$0xff] }
 0x997   : > { %18613 = vmatprep.subr.bf16.mxu1 %v22210_v1  ;;  %v22215_v1 = vld [vmem:[%s28885_s5 + $0x88] sm:$0xff]  }
 0x99b   : > { %10413 = vmatmul.mubr.bf16.gmra.mrb[12].mxu0 %v29406_v27 }
 0x99c   : > { %13543 = vmatmul.mubr.bf16.gmra.mrb[12].mxu1 %v29406_v27  ;;  %10422 = vmatprep.mubr.bf16.mxu0 %v29407_v6  ;;  %v29545_v27 = vld [vmem:[#allocation73_spill] sm:$0xff] }
 0x99d   : > { %13552 = vmatprep.mubr.bf16.mxu1 %v29407_v6  ;;  %v29546_v6 = vld [vmem:[#allocation76_spill] sm:$0xff] }
 0x9a3   : > { %10423 = vmatmul.mubr.bf16.gmra.mrb[16].mxu0 %v29541_v31 }
 0x9a4   : > { %13553 = vmatmul.mubr.bf16.gmra.mrb[16].mxu1 %v29541_v31  ;;  %10432 = vmatprep.mubr.bf16.mxu0 %v29542_v5  ;;  %v29561_v31 = vld [vmem:[#allocation100_spill] sm:$0xff] }
 0x9a5   : > { %13562 = vmatprep.mubr.bf16.mxu1 %v29542_v5  ;;  %v29562_v5 = vld [vmem:[#allocation106_spill] sm:$0xff] }
 0x9ab   : > { %10433 = vmatmul.mubr.bf16.gmra.mrb[20].mxu0 %v29543_v59 }
 0x9ac   : > { %13563 = vmatmul.mubr.bf16.gmra.mrb[20].mxu1 %v29543_v59  ;;  %10442 = vmatprep.mubr.bf16.mxu0 %v29544_v10  ;;  %v29563_v59 = vld [vmem:[#allocation104_spill] sm:$0xff] }
 0x9ad   : > { %13572 = vmatprep.mubr.bf16.mxu1 %v29544_v10  ;;  %v22209_v10 = vld [vmem:[%s28885_s5] sm:$0xff]  }
 0x9b3   : > { %10443 = vmatmul.mubr.bf16.gmra.mrb[24].mxu0 %v29545_v27 }
 0x9b4   : > { %13573 = vmatmul.mubr.bf16.gmra.mrb[24].mxu1 %v29545_v27  ;;  %10452 = vmatprep.mubr.bf16.mxu0 %v29546_v6  ;;  %v22211_v27 = vld [vmem:[%s28885_s5 + $0x80] sm:$0xff]  }
 0x9b5   : > { %13582 = vmatprep.mubr.bf16.mxu1 %v29546_v6  ;;  %v22212_v6 = vld [vmem:[%s28885_s5 + $0x48] sm:$0xff]  }
 0x9bb   : > { %10453 = vmatmul.mubr.bf16.gmra.mrb[28].mxu0 %v29547_v17 }
 0x9bc   : > { %13583 = vmatmul.mubr.bf16.gmra.mrb[28].mxu1 %v29547_v17  ;;  %10462 = vmatprep.mubr.bf16.mxu0 %v29548_v46  ;;  %v22217_v17 = vld [vmem:[%s28885_s5 + $0x10] sm:$0xff]  }
 0x9bd   : > { %13592 = vmatprep.mubr.bf16.mxu1 %v29548_v46  ;;  %v22219_v46 = vld [vmem:[%s28885_s5 + $0x90] sm:$0xff]  }
 0x9c3   : > { %10463 = vmatmul.mubr.bf16.gmra.mrb[32].mxu0 %v29549_v0 }
 0x9c4   : > { %13593 = vmatmul.mubr.bf16.gmra.mrb[32].mxu1 %v29549_v0  ;;  %10472 = vmatprep.mubr.bf16.mxu0 %v29550_v36  ;;  %v22220_v0 = vld [vmem:[%s28885_s5 + $0x58] sm:$0xff]  }
 0x9c5   : > { %13602 = vmatprep.mubr.bf16.mxu1 %v29550_v36  ;;  %v22222_v36 = vld [vmem:[%s28885_s5 + $0xd8] sm:$0xff]  }
 0x9cb   : > { %10473 = vmatmul.mubr.bf16.gmra.mrb[36].mxu0 %v29551_v16 }
 0x9cc   : > { %13603 = vmatmul.mubr.bf16.gmra.mrb[36].mxu1 %v29551_v16  ;;  %10482 = vmatprep.mubr.bf16.mxu0 %v29552_v19  ;;  %v22221_v16 = vld [vmem:[%s28885_s5 + $0x18] sm:$0xff]  }
 0x9cd   : > { %13612 = vmatprep.mubr.bf16.mxu1 %v29552_v19  ;;  %v22223_v19 = vld [vmem:[%s28885_s5 + $0x98] sm:$0xff]  }
 0x9d3   : > { %10483 = vmatmul.mubr.bf16.gmra.mrb[40].mxu0 %v29553_v61 }
 0x9d4   : > { %13613 = vmatmul.mubr.bf16.gmra.mrb[40].mxu1 %v29553_v61  ;;  %10492 = vmatprep.mubr.bf16.mxu0 %v29554_v30  ;;  %v22225_v61 = vld [vmem:[%s28885_s5 + $0x20] sm:$0xff]  }
 0x9d5   : > { %13622 = vmatprep.mubr.bf16.mxu1 %v29554_v30  ;;  %v22227_v30 = vld [vmem:[%s28885_s5 + $0xa0] sm:$0xff]  }
 0x9db   : > { %10493 = vmatmul.mubr.bf16.gmra.mrb[44].mxu0 %v29555_v53 }
 0x9dc   : > { %13623 = vmatmul.mubr.bf16.gmra.mrb[44].mxu1 %v29555_v53  ;;  %10502 = vmatprep.mubr.bf16.mxu0 %v29556_v23  ;;  %v22228_v53 = vld [vmem:[%s28885_s5 + $0x68] sm:$0xff]  }
 0x9dd   : > { %13632 = vmatprep.mubr.bf16.mxu1 %v29556_v23 }
 0x9e3   : > { %10503 = vmatmul.mubr.bf16.gmra.mrb[48].mxu0 %v29557_v13 }
 0x9e4   : > { %13633 = vmatmul.mubr.bf16.gmra.mrb[48].mxu1 %v29557_v13  ;;  %10512 = vmatprep.mubr.bf16.mxu0 %v29558_v24 }
 0x9e5   : > { %13642 = vmatprep.mubr.bf16.mxu1 %v29558_v24 }
 0x9eb   : > { %10513 = vmatmul.mubr.bf16.gmra.mrb[52].mxu0 %v29559_v2 }
 0x9ec   : > { %13643 = vmatmul.mubr.bf16.gmra.mrb[52].mxu1 %v29559_v2  ;;  %10522 = vmatprep.mubr.bf16.mxu0 %v29560_v41 }
 0x9ed   : > { %13652 = vmatprep.mubr.bf16.mxu1 %v29560_v41 }
 0x9f3   : > { %10523 = vmatmul.mubr.bf16.gmra.mrb[56].mxu0 %v29561_v31 }
 0x9f4   : > { %13653 = vmatmul.mubr.bf16.gmra.mrb[56].mxu1 %v29561_v31  ;;  %10532 = vmatprep.mubr.bf16.mxu0 %v29562_v5 }
 0x9f5   : > { %13662 = vmatprep.mubr.bf16.mxu1 %v29562_v5 }
 0x9fb   : > { %10533 = vmatmul.mubr.bf16.gmra.mrb[60].mxu0 %v29563_v59 }
 0x9fc   : > { %13663 = vmatmul.mubr.bf16.gmra.mrb[60].mxu1 %v29563_v59  ;;  %10542 = vmatprep.mubr.bf16.mxu0 %v29520_v33  ;;  %v14194_v59 = vld [vmem:[%s28884_s4] sm:$0xf] }
 0x9fd   : > { %13672 = vmatprep.mubr.bf16.mxu1 %v29520_v33 }
 0xa03   : > { %10543 = vmatmul.mubr.bf16.gmra.mrb[64].mxu0 %v29520_v33 }
 0xa04   : > { %13673 = vmatmul.mubr.bf16.gmra.mrb[64].mxu1 %v29520_v33  ;;  %10552 = vmatprep.mubr.bf16.mxu0 %v29520_v33 }
 0xa05   : > { %13682 = vmatprep.mubr.bf16.mxu1 %v29520_v33 }
 0xa0b   : > { %10553 = vmatmul.mubr.bf16.gmra.mrb[68].mxu0 %v29520_v33 }
 0xa0c   : > { %13683 = vmatmul.mubr.bf16.gmra.mrb[68].mxu1 %v29520_v33  ;;  %10562 = vmatprep.mubr.bf16.mxu0 %v29520_v33 }
 0xa0d   : > { %13692 = vmatprep.mubr.bf16.mxu1 %v29520_v33 }
 0xa13   : > { %10563 = vmatmul.mubr.bf16.gmra.mrb[72].mxu0 %v29520_v33 }
 0xa14   : > { %13693 = vmatmul.mubr.bf16.gmra.mrb[72].mxu1 %v29520_v33  ;;  %10572 = vmatprep.mubr.bf16.mxu0 %v29520_v33 }
 0xa15   : > { %13702 = vmatprep.mubr.bf16.mxu1 %v29520_v33 }
 0xa1b   : > { %10573 = vmatmul.mubr.bf16.gmra.mrb[76].mxu0 %v29520_v33 }
 0xa1c   : > { %13703 = vmatmul.mubr.bf16.gmra.mrb[76].mxu1 %v29520_v33  ;;  %10615 = vmatprep.mubr.bf16.mxu0 %v29348_v49 }
 0xa1d   : > { %13745 = vmatprep.mubr.bf16.mxu1 %v29348_v49  ;;  %v22213_v49 = vld [vmem:[%s28885_s5 + $0x8] sm:$0xff]  }
 0xa23   : > { %10616 = vmatmul.mubr.bf16.vlgmr.msra.gmra.mrb[224].mxu0 %v29349_v50 }
 0xa24   : > { %13746 = vmatmul.mubr.bf16.vlgmr.msra.gmra.mrb[224].mxu1 %v29349_v50  ;;  %10625 = vmatprep.mubr.bf16.mxu0 %v29350_v55  ;;  %v22216_v50 = vld [vmem:[%s28885_s5 + $0x50] sm:$0xff]  }
 0xa25   : > { %13755 = vmatprep.mubr.bf16.mxu1 %v29350_v55  ;;  %18586 = vmatpush3.bf16.msra.mxu0 %v22209_v10  ;;  %v22218_v55 = vld [vmem:[%s28885_s5 + $0xd0] sm:$0xff]  }
 0xa26   : > { %18614 = vmatpush3.bf16.msra.mxu1 %v22211_v27  ;;  %18587 = vmatprep.subr.bf16.mxu0 %v22212_v6 }
 0xa27   : > { %18615 = vmatprep.subr.bf16.mxu1 %v22214_v21  ;;  %v29571_v21 = vld [vmem:[#allocation4_spill] sm:$0xff] }
 0xa29   : > { %18588 = vmatpush3.bf16.msra.mxu0 %v22213_v49  ;;  %v29572_v49 = vsub.s32 0, %v29571_v21 }
 0xa2a   : > { %18616 = vmatpush3.bf16.msra.mxu1 %v22215_v1  ;;  %18589 = vmatprep.subr.bf16.mxu0 %v22216_v50  ;;  %v29573_v50 = vsub.s32 2, %v29571_v21 }
 0xa2b   : > { %18617 = vmatprep.subr.bf16.mxu1 %v22218_v55  ;;  %10626 = vmatmul.mubr.bf16.gmra.mrb[228].mxu0 %v29351_v26  ;;  %v27376_v1 = vrot.slane %v14194_v59, %v29572_v49 }
 0xa2c   : > { %13756 = vmatmul.mubr.bf16.gmra.mrb[228].mxu1 %v29351_v26  ;;  %10635 = vmatprep.mubr.bf16.mxu0 %v29352_v12  ;;  %v22224_v26 = vld [vmem:[%s28885_s5 + $0x60] sm:$0xff]   ;;  %v27380_v55 = vrot.slane %v14194_v59, %v29573_v50 }
 0xa2d   : > { %13765 = vmatprep.mubr.bf16.mxu1 %v29352_v12  ;;  %18590 = vmatpush3.bf16.msra.mxu0 %v22217_v17  ;;  %v22226_v12 = vld [vmem:[%s28885_s5 + $0xe0] sm:$0xff]  }
 0xa2e   : > { %18618 = vmatpush3.bf16.msra.mxu1 %v22219_v46  ;;  %18591 = vmatprep.subr.bf16.mxu0 %v22220_v0 }
 0xa2f   : > { %18619 = vmatprep.subr.bf16.mxu1 %v22222_v36  ;;  %v29574_v36 = vsub.s32 1, %v29571_v21 }
 0xa31   : > { %18592 = vmatpush3.bf16.msra.mxu0 %v22221_v16  ;;  %v27384_v16 = vrot.slane %v14194_v59, %v29574_v36 }
 0xa32   : > { %18620 = vmatpush3.bf16.msra.mxu1 %v22223_v19  ;;  %18593 = vmatprep.subr.bf16.mxu0 %v22224_v26  ;;  %v29575_v19 = vsub.s32 3, %v29571_v21 }
 0xa33   : > { %18621 = vmatprep.subr.bf16.mxu1 %v22226_v12  ;;  %10636 = vmatmul.mubr.bf16.gmra.mrb[232].mxu0 %v29353_v20 }
 0xa34   : > { %13766 = vmatmul.mubr.bf16.gmra.mrb[232].mxu1 %v29353_v20  ;;  %10645 = vmatprep.mubr.bf16.mxu0 %v29354_v14  ;;  %v22229_v20 = vld [vmem:[%s28885_s5 + $0x28] sm:$0xff]   ;;  %v27388_v26 = vrot.slane %v14194_v59, %v29575_v19 }
 0xa35   : > { %13775 = vmatprep.mubr.bf16.mxu1 %v29354_v14  ;;  %18594 = vmatpush3.bf16.msra.mxu0 %v22225_v61  ;;  %v22230_v14 = vld [vmem:[%s28885_s5 + $0xe8] sm:$0xff]  }
 0xa36   : > { %18622 = vmatpush3.bf16.msra.mxu1 %v22227_v30  ;;  %18595 = vmatprep.subr.bf16.mxu0 %v22228_v53 }
 0xa37   : > { %18623 = vmatprep.subr.bf16.mxu1 %v22230_v14 }
 0xa39   : > { %18596 = vmatpush3.bf16.msra.mxu0 %v22229_v20 }
 0xa3b   : > { %10646 = vmatmul.mubr.bf16.gmra.mrb[236].mxu0 %v29355_v56 }
 0xa3c   : > { %13776 = vmatmul.mubr.bf16.gmra.mrb[236].mxu1 %v29355_v56  ;;  %10655 = vmatprep.mubr.bf16.mxu0 %v29356_v28  ;;  %v22231_v56 = vld [vmem:[%s28885_s5 + $0xa8] sm:$0xff]  }
 0xa3d   : > { %13785 = vmatprep.mubr.bf16.mxu1 %v29356_v28  ;;  %18624 = vmatpush3.bf16.msra.mxu1 %v22231_v56  ;;  %v22232_v28 = vld [vmem:[%s28885_s5 + $0x70] sm:$0xff]  }
 0xa3e   : > { %18597 = vmatprep.subr.bf16.mxu0 %v22232_v28 }
 0xa43   : > { %10656 = vmatmul.mubr.bf16.gmra.mrb[240].mxu0 %v29357_v11 }
 0xa44   : > { %13786 = vmatmul.mubr.bf16.gmra.mrb[240].mxu1 %v29357_v11  ;;  %10665 = vmatprep.mubr.bf16.mxu0 %v29358_v37  ;;  %v22233_v11 = vld [vmem:[%s28885_s5 + $0x30] sm:$0xff]  }
 0xa45   : > { %13795 = vmatprep.mubr.bf16.mxu1 %v29358_v37  ;;  %v22234_v37 = vld [vmem:[%s28885_s5 + $0xf0] sm:$0xff]   ;;  %18598 = vmatpush3.bf16.msra.mxu0 %v22233_v11 }
 0xa46   : > { %18625 = vmatprep.subr.bf16.mxu1 %v22234_v37 }
 0xa4b   : > { %10666 = vmatmul.mubr.bf16.gmra.mrb[244].mxu0 %v29359_v54 }
 0xa4c   : > { %13796 = vmatmul.mubr.bf16.gmra.mrb[244].mxu1 %v29359_v54  ;;  %10675 = vmatprep.mubr.bf16.mxu0 %v29360_v60  ;;  %v22235_v54 = vld [vmem:[%s28885_s5 + $0xb0] sm:$0xff]  }
 0xa4d   : > { %13805 = vmatprep.mubr.bf16.mxu1 %v29360_v60  ;;  %18626 = vmatpush3.bf16.msra.mxu1 %v22235_v54  ;;  %v22236_v60 = vld [vmem:[%s28885_s5 + $0x78] sm:$0xff]  }
 0xa4e   : > { %18599 = vmatprep.subr.bf16.mxu0 %v22236_v60 }
 0xa53   : > { %10676 = vmatmul.mubr.bf16.gmra.mrb[248].mxu0 %v29361_v38 }
 0xa54   : > { %13806 = vmatmul.mubr.bf16.gmra.mrb[248].mxu1 %v29361_v38  ;;  %10685 = vmatprep.mubr.bf16.mxu0 %v29362_v39  ;;  %v22237_v38 = vld [vmem:[%s28885_s5 + $0x38] sm:$0xff]  }
 0xa55   : > { %13815 = vmatprep.mubr.bf16.mxu1 %v29362_v39  ;;  %v22238_v39 = vld [vmem:[%s28885_s5 + $0xf8] sm:$0xff]   ;;  %18600 = vmatpush3.bf16.msra.mxu0 %v22237_v38 }
 0xa56   : > { %18627 = vmatprep.subr.bf16.mxu1 %v22238_v39 }
 0xa5b   : > { %10686 = vmatmul.mubr.bf16.gmra.mrb[252].mxu0 %v29363_v35 }
 0xa5c   : > { %13816 = vmatmul.mubr.bf16.gmra.mrb[252].mxu1 %v29363_v35  ;;  %10695 = vmatprep.mubr.bf16.mxu0 %v29364_v63  ;;  %v22239_v35 = vld [vmem:[%s28885_s5 + $0xb8] sm:$0xff]  }
 0xa5d   : > { %13825 = vmatprep.mubr.bf16.mxu1 %v29364_v63  ;;  %18628 = vmatpush3.bf16.msra.mxu1 %v22239_v35 }
 0xa63   : > { %10696 = vmatmul.mubr.bf16.gmra.mrb[0].mxu0 %v29365_v15 }
 0xa64   : > { %13826 = vmatmul.mubr.bf16.gmra.mrb[0].mxu1 %v29365_v15  ;;  %10705 = vmatprep.mubr.bf16.mxu0 %v29366_v57 }
 0xa65   : > { %13835 = vmatprep.mubr.bf16.mxu1 %v29366_v57 }
 0xa6b   : > { %10706 = vmatmul.mubr.bf16.gmra.mrb[4].mxu0 %v29367_v40 }
 0xa6c   : > { %13836 = vmatmul.mubr.bf16.gmra.mrb[4].mxu1 %v29367_v40  ;;  %10715 = vmatprep.mubr.bf16.mxu0 %v29368_v45 }
 0xa6d   : > { %13845 = vmatprep.mubr.bf16.mxu1 %v29368_v45 }
 0xa73   : > { %10716 = vmatmul.mubr.bf16.gmra.mrb[8].mxu0 %v29369_v48 }
 0xa74   : > { %13846 = vmatmul.mubr.bf16.gmra.mrb[8].mxu1 %v29369_v48  ;;  %10725 = vmatprep.mubr.bf16.mxu0 %v29370_v47 }
 0xa75   : > { %13855 = vmatprep.mubr.bf16.mxu1 %v29370_v47 }
 0xa7b   : > { %10726 = vmatmul.mubr.bf16.gmra.mrb[12].mxu0 %v29371_v34 }
 0xa7c   : > { %13856 = vmatmul.mubr.bf16.gmra.mrb[12].mxu1 %v29371_v34  ;;  %10735 = vmatprep.mubr.bf16.mxu0 %v24212_v29 }
 0xa7d   : > { %13865 = vmatprep.mubr.bf16.mxu1 %v24212_v29  ;;  %v22241_v29 = vld [vmem:[%s28885_s5 + $0x1c0] sm:$0xff]  }
 0xa7e   : > { %18669 = vmatprep.subr.bf16.mxu1 %v22241_v29 }
 0xa83   : > { %10736 = vmatmul.mubr.bf16.gmra.mrb[16].mxu0 %v24205_v58 }
 0xa84   : > { %13866 = vmatmul.mubr.bf16.gmra.mrb[16].mxu1 %v24205_v58  ;;  %10745 = vmatprep.mubr.bf16.mxu0 %v24253_v22  ;;  %v22240_v58 = vld [vmem:[%s28885_s5 + $0x140] sm:$0xff]  }
 0xa85   : > { %13875 = vmatprep.mubr.bf16.mxu1 %v24253_v22  ;;  %18641 = vmatprep.subr.bf16.mxu0 %v22240_v58  ;;  %v29565_v22 = vld [vmem:[#allocation99_spill] sm:$0xff] }
 0xa8b   : > { %10746 = vmatmul.mubr.bf16.gmra.mrb[20].mxu0 %v24249_v25 }
 0xa8c   : > { %13876 = vmatmul.mubr.bf16.gmra.mrb[20].mxu1 %v24249_v25  ;;  %10755 = vmatprep.mubr.bf16.mxu0 %v24332_v32  ;;  %v29564_v25 = vld [vmem:[#allocation93_spill] sm:$0xff] }
 0xa8d   : > { %13885 = vmatprep.mubr.bf16.mxu1 %v24332_v32  ;;  %v29567_v32 = vld [vmem:[#allocation103_spill] sm:$0xff] }
 0xa93   : > { %10756 = vmatmul.mubr.bf16.gmra.mrb[24].mxu0 %v24322_v51 }
 0xa94   : > { %13886 = vmatmul.mubr.bf16.gmra.mrb[24].mxu1 %v24322_v51  ;;  %10765 = vmatprep.mubr.bf16.mxu0 %v24367_v18  ;;  %v29566_v51 = vld [vmem:[#allocation97_spill] sm:$0xff] }
 0xa95   : > { %13895 = vmatprep.mubr.bf16.mxu1 %v24367_v18  ;;  %v29569_v18 = vld [vmem:[#allocation107_spill] sm:$0xff] }
 0xa9b   : > { %10766 = vmatmul.mubr.bf16.gmra.mrb[28].mxu0 %v24363_v52 }
 0xa9c   : > { %13896 = vmatmul.mubr.bf16.gmra.mrb[28].mxu1 %v24363_v52  ;;  %10775 = vmatprep.mubr.bf16.mxu0 %v24440_v3  ;;  %v29568_v52 = vld [vmem:[#allocation101_spill] sm:$0xff] }
 0xa9d   : > { %13905 = vmatprep.mubr.bf16.mxu1 %v24440_v3  ;;  %v29570_v3 = vld [vmem:[#allocation105_spill] sm:$0xff] }
 0xaa3   : > { %10776 = vmatmul.mubr.bf16.gmra.mrb[32].mxu0 %v29372_v43 }
 0xaa4   : > { %13906 = vmatmul.mubr.bf16.gmra.mrb[32].mxu1 %v29372_v43  ;;  %10785 = vmatprep.mubr.bf16.mxu0 %v29373_v8 }
 0xaa5   : > { %13915 = vmatprep.mubr.bf16.mxu1 %v29373_v8 }
 0xaab   : > { %10786 = vmatmul.mubr.bf16.gmra.mrb[36].mxu0 %v29416_v9 }
 0xaac   : > { %13916 = vmatmul.mubr.bf16.gmra.mrb[36].mxu1 %v29416_v9  ;;  %10795 = vmatprep.mubr.bf16.mxu0 %v29417_v42 }
 0xaad   : > { %13925 = vmatprep.mubr.bf16.mxu1 %v29417_v42 }
 0xab3   : > { %10796 = vmatmul.mubr.bf16.gmra.mrb[40].mxu0 %v29470_v4 }
 0xab4   : > { %13926 = vmatmul.mubr.bf16.gmra.mrb[40].mxu1 %v29470_v4  ;;  %10805 = vmatprep.mubr.bf16.mxu0 %v29471_v7 }
 0xab5   : > { %13935 = vmatprep.mubr.bf16.mxu1 %v29471_v7 }
 0xabb   : > { %10806 = vmatmul.mubr.bf16.gmra.mrb[44].mxu0 %v29521_v44 }
 0xabc   : > { %13936 = vmatmul.mubr.bf16.gmra.mrb[44].mxu1 %v29521_v44  ;;  %10815 = vmatprep.mubr.bf16.mxu0 %v29522_v62 }
 0xabd   : > { %13945 = vmatprep.mubr.bf16.mxu1 %v29522_v62 }
 0xac3   : > { %10816 = vmatmul.mubr.bf16.gmra.mrb[48].mxu0 %v29564_v25 }
 0xac4   : > { %13946 = vmatmul.mubr.bf16.gmra.mrb[48].mxu1 %v29564_v25  ;;  %10825 = vmatprep.mubr.bf16.mxu0 %v29565_v22 }
 0xac5   : > { %13955 = vmatprep.mubr.bf16.mxu1 %v29565_v22 }
 0xacb   : > { %10826 = vmatmul.mubr.bf16.gmra.mrb[52].mxu0 %v29566_v51 }
 0xacc   : > { %13956 = vmatmul.mubr.bf16.gmra.mrb[52].mxu1 %v29566_v51  ;;  %10835 = vmatprep.mubr.bf16.mxu0 %v29567_v32 }
 0xacd   : > { %13965 = vmatprep.mubr.bf16.mxu1 %v29567_v32 }
 0xad3   : > { %10836 = vmatmul.mubr.bf16.gmra.mrb[56].mxu0 %v29568_v52 }
 0xad4   : > { %13966 = vmatmul.mubr.bf16.gmra.mrb[56].mxu1 %v29568_v52  ;;  %10845 = vmatprep.mubr.bf16.mxu0 %v29569_v18 }
 0xad5   : > { %13975 = vmatprep.mubr.bf16.mxu1 %v29569_v18 }
 0xadb   : > { %10846 = vmatmul.mubr.bf16.gmra.mrb[60].mxu0 %v29570_v3 }
 0xadc   : > { %13976 = vmatmul.mubr.bf16.gmra.mrb[60].mxu1 %v29570_v3  ;;  %10855 = vmatprep.mubr.bf16.mxu0 %v29520_v33 }
 0xadd   : > { %13985 = vmatprep.mubr.bf16.mxu1 %v29520_v33 }
 0xae3   : > { %10856 = vmatmul.mubr.bf16.gmra.mrb[64].mxu0 %v29520_v33 }
 0xae4   : > { %13986 = vmatmul.mubr.bf16.gmra.mrb[64].mxu1 %v29520_v33  ;;  %10865 = vmatprep.mubr.bf16.mxu0 %v29520_v33 }
 0xae5   : > { %13995 = vmatprep.mubr.bf16.mxu1 %v29520_v33 }
 0xaeb   : > { %10866 = vmatmul.mubr.bf16.gmra.mrb[68].mxu0 %v29520_v33 }
 0xaec   : > { %13996 = vmatmul.mubr.bf16.gmra.mrb[68].mxu1 %v29520_v33  ;;  %10875 = vmatprep.mubr.bf16.mxu0 %v29520_v33 }
 0xaed   : > { %14005 = vmatprep.mubr.bf16.mxu1 %v29520_v33 }
 0xaf3   : > { %10876 = vmatmul.mubr.bf16.gmra.mrb[72].mxu0 %v29520_v33 }
 0xaf4   : > { %14006 = vmatmul.mubr.bf16.gmra.mrb[72].mxu1 %v29520_v33  ;;  %10885 = vmatprep.mubr.bf16.mxu0 %v29520_v33 }
 0xaf5   : > { %14015 = vmatprep.mubr.bf16.mxu1 %v29520_v33 }
 0xaf6   : > { %v10617_v8 = vpop.f32.mrb[224].mxu0 }
 0xaf7   : > { %v13747_v34 = vpop.f32.mrb[224].mxu1  ;;  %v10619_v63 = vpop.f32.mrb[225].mxu0 }
 0xaf8   : > { %v14026_v43 = vmax.f32 %v10617_v8, %v13747_v34  ;;  %v13749_v15 = vpop.f32.mrb[225].mxu1  ;;  %v10621_v40 = vpop.f32.mrb[226].mxu0 }
 0xaf9   : > { %v14027_v57 = vmax.f32 %v10619_v63, %v13749_v15  ;;  %v13751_v45 = vpop.f32.mrb[226].mxu1  ;;  %v10623_v47 = vpop.f32.mrb[227].mxu0 }
 0xafa   : > { %v14028_v48 = vmax.f32 %v10621_v40, %v13751_v45  ;;  %v13753_v9 = vpop.f32.mrb[227].mxu1 }
 0xafb   : > { %v14029_v42 = vmax.f32 %v10623_v47, %v13753_v9  ;;  %10886 = vmatmul.mubr.bf16.gmra.mrb[76].mxu0 %v29520_v33 }
 0xafc   : > { %14016 = vmatmul.mubr.bf16.gmra.mrb[76].mxu1 %v29520_v33 }
 0xafe   : > { %v27347_v4 = vpop.f32.mrb[228].mxu0 }
 0xaff   : > { %v27349_v7 = vpop.f32.mrb[228].mxu1  ;;  %v27353_v62 = vpop.f32.mrb[229].mxu0 }
 0xb00   : > { %v14030_v44 = vmax.f32 %v27347_v4, %v27349_v7  ;;  %v27355_v23 = vpop.f32.mrb[229].mxu1  ;;  %v27359_v24 = vpop.f32.mrb[230].mxu0  ;;  %v22243_v4 = vld [vmem:[%s28885_s5 + $0x180] sm:$0xff]  }
 0xb01   : > { %v14031_v13 = vmax.f32 %v27353_v62, %v27355_v23  ;;  %v27361_v2 = vpop.f32.mrb[230].mxu1  ;;  %v27365_v41 = vpop.f32.mrb[231].mxu0  ;;  %v22244_v23 = vld [vmem:[%s28885_s5 + $0x148] sm:$0xff]  }
 0xb02   : > { %v14032_v33 = vmax.f32 %v27359_v24, %v27361_v2  ;;  %v27367_v31 = vpop.f32.mrb[231].mxu1 }
 0xb03   : > { %v14033_v5 = vmax.f32 %v27365_v41, %v27367_v31 }
 0xb06   : > { %v10637_v10 = vpop.f32.mrb[232].mxu0 }
 0xb07   : > { %v13767_v27 = vpop.f32.mrb[232].mxu1  ;;  %v10639_v17 = vpop.f32.mrb[233].mxu0 }
 0xb08   : > { %v14034_v6 = vmax.f32 %v10637_v10, %v13767_v27  ;;  %v13769_v46 = vpop.f32.mrb[233].mxu1  ;;  %v10641_v12 = vpop.f32.mrb[234].mxu0 }
 0xb09   : > { %v14035_v0 = vmax.f32 %v10639_v17, %v13769_v46  ;;  %v13771_v61 = vpop.f32.mrb[234].mxu1  ;;  %v10643_v20 = vpop.f32.mrb[235].mxu0  ;;  %v22242_v46 = vld [vmem:[%s28885_s5 + $0x100] sm:$0xff]  }
 0xb0a   : > { %v14138_v30 = vmax.f32 %v14026_v43, %v14034_v6  ;;  %v14036_v53 = vmax.f32 %v10641_v12, %v13771_v61  ;;  %v13773_v14 = vpop.f32.mrb[235].mxu1 }
 0xb0b   : > { %v14139_v56 = vmax.f32 %v14027_v57, %v14035_v0  ;;  %v14037_v28 = vmax.f32 %v10643_v20, %v13773_v14  ;;  %v22247_v14 = vld [vmem:[%s28885_s5 + $0x188] sm:$0xff]  }
 0xb0c   : > { %v14216_v11 = vadd.f32 %v27376_v1, %v14138_v30  ;;  %v14218_v37 = vadd.f32 %v27380_v55, %v14138_v30  ;;  %v14140_v54 = vmax.f32 %v14028_v48, %v14036_v53 }
 0xb0d   : > { %v14217_v60 = vadd.f32 %v27384_v16, %v14139_v56  ;;  %v14219_v38 = vadd.f32 %v27388_v26, %v14139_v56  ;;  %v14141_v39 = vmax.f32 %v14029_v42, %v14037_v28 }
 0xb0e   : > { %v14328_v35 = vmax.f32 %v14216_v11, 0.0  ;;  %v14330_v58 = vmax.f32 %v14218_v37, 0.0  ;;  %v14220_v29 = vadd.f32 %v27376_v1, %v14140_v54  ;;  %v14222_v25 = vadd.f32 %v27380_v55, %v14140_v54  ;;  %v10647_v18 = vpop.f32.mrb[236].mxu0 }
 0xb0f   : > { %v14329_v22 = vmax.f32 %v14217_v60, 0.0  ;;  %v14331_v51 = vmax.f32 %v14219_v38, 0.0  ;;  %v14221_v32 = vadd.f32 %v27384_v16, %v14141_v39  ;;  %v14223_v52 = vadd.f32 %v27388_v26, %v14141_v39  ;;  %v13777_v3 = vpop.f32.mrb[236].mxu1  ;;  %v10649_v63 = vpop.f32.mrb[237].mxu0  ;;  %v22248_v60 = vld [vmem:[%s28885_s5 + $0x150] sm:$0xff]  }
 0xb10   : > { %14440 = vst [vmem:[%s27399_s27] sm:$0xff] %v14328_v35  ;;  %14442 = vst [vmem:[%s27399_s27 + $0x10] sm:$0xff] %v14330_v58  ;;  %v14332_v8 = vmax.f32 %v14220_v29, 0.0  ;;  %v14334_v34 = vmax.f32 %v14222_v25, 0.0  ;;  %v14038_v43 = vmax.f32 %v10647_v18, %v13777_v3  ;;  %v13779_v15 = vpop.f32.mrb[237].mxu1  ;;  %v10651_v48 = vpop.f32.mrb[238].mxu0  ;;  %v22249_v38 = vld [vmem:[%s28885_s5 + $0x1d0] sm:$0xff]  }
 0xb11   : > { %14441 = vst [vmem:[%s27399_s27 + $0x8] sm:$0xff] %v14329_v22  ;;  %14443 = vst [vmem:[%s27399_s27 + $0x18] sm:$0xff] %v14331_v51  ;;  %v14333_v57 = vmax.f32 %v14221_v32, 0.0  ;;  %v14335_v40 = vmax.f32 %v14223_v52, 0.0  ;;  %v14039_v45 = vmax.f32 %v10649_v63, %v13779_v15  ;;  %v13781_v47 = vpop.f32.mrb[238].mxu1  ;;  %v10653_v27 = vpop.f32.mrb[239].mxu0 }
 0xb12   : > { %14444 = vst [vmem:[%s27399_s27 + $0x20] sm:$0xff] %v14332_v8  ;;  %14446 = vst [vmem:[%s27399_s27 + $0x30] sm:$0xff] %v14334_v34  ;;  %v14552_v9 = vpack.c.bf16 %v14332_v8, %v14328_v35  ;;  %v14554_v42 = vpack.c.bf16 %v14334_v34, %v14330_v58  ;;  %v14142_v59 = vmax.f32 %v14030_v44, %v14038_v43  ;;  %v13783_v6 = vpop.f32.mrb[239].mxu1  ;;  %v22250_v43 = vld [vmem:[%s28885_s5 + $0x110] sm:$0xff]   ;;  %v22252_v15 = vld [vmem:[%s28885_s5 + $0x158] sm:$0xff]  }
 0xb13   : > { %v14040_v10 = vmax.f32 %v10651_v48, %v13781_v47  ;;  %14445 = vst [vmem:[%s27399_s27 + $0x28] sm:$0xff] %v14333_v57  ;;  %14447 = vst [vmem:[%s27399_s27 + $0x38] sm:$0xff] %v14335_v40  ;;  %v14143_v21 = vmax.f32 %v14031_v13, %v14039_v45  ;;  %v14041_v49 = vmax.f32 %v10653_v27, %v13783_v6  ;;  %v22245_v13 = vld [vmem:[%s28885_s5 + $0x1c8] sm:$0xff]   ;;  %v22251_v63 = vld [vmem:[%s28885_s5 + $0x190] sm:$0xff]  }
 0xb14   : > { %v14553_v50 = vpack.c.bf16 %v14333_v57, %v14329_v22  ;;  %v14555_v17 = vpack.c.bf16 %v14335_v40, %v14331_v51  ;;  %v14224_v7 = vadd.f32 %v27376_v1, %v14142_v59  ;;  %v14226_v44 = vadd.f32 %v27380_v55, %v14142_v59  ;;  %v22253_v57 = vld [vmem:[%s28885_s5 + $0x1d8] sm:$0xff]   ;;  %v22257_v27 = vld [vmem:[%s28885_s5 + $0x1e0] sm:$0xff]  }
 0xb15   : > { %v14144_v62 = vmax.f32 %v14032_v33, %v14040_v10  ;;  %v14225_v0 = vadd.f32 %v27384_v16, %v14143_v21  ;;  %v14227_v36 = vadd.f32 %v27388_v26, %v14143_v21  ;;  %v14145_v19 = vmax.f32 %v14033_v5, %v14041_v49  ;;  %v22246_v5 = vld [vmem:[%s28885_s5 + $0x108] sm:$0xff]   ;;  %v22254_v48 = vld [vmem:[%s28885_s5 + $0x118] sm:$0xff]   ;;  %v22256_v10 = vld [vmem:[%s28885_s5 + $0x160] sm:$0xff]  }
 0xb16   : > { %16439 = vmatprep.mubr.bf16.mxu0 %v14553_v50  ;;  %16488 = vmatprep.mubr.bf16.mxu1 %v14555_v17  ;;  %v14336_v24 = vmax.f32 %v14224_v7, 0.0  ;;  %v14338_v2 = vmax.f32 %v14226_v44, 0.0  ;;  %v27441_v41 = vpop.f32.mrb[240].mxu0  ;;  %v22255_v47 = vld [vmem:[%s28885_s5 + $0x198] sm:$0xff]   ;;  %v22258_v7 = vld [vmem:[%s28885_s5 + $0x120] sm:$0xff]  }
 0xb17   : > { %v14228_v33 = vadd.f32 %v27376_v1, %v14144_v62  ;;  %v14230_v12 = vadd.f32 %v27380_v55, %v14144_v62  ;;  %16440 = vmatmul.mubr.bf16.vlgmr.msra.gmra.mrb[80].mxu0 %v14552_v9  ;;  %16489 = vmatmul.mubr.bf16.vlgmr.msra.gmra.mrb[80].mxu1 %v14554_v42  ;;  %v14337_v61 = vmax.f32 %v14225_v0, 0.0  ;;  %v14339_v30 = vmax.f32 %v14227_v36, 0.0  ;;  %v27443_v31 = vpop.f32.mrb[240].mxu1  ;;  %v27455_v37 = vpop.f32.mrb[241].mxu0  ;;  %v22259_v44 = vld [vmem:[%s28885_s5 + $0x1a0] sm:$0xff]   ;;  %v22260_v62 = vld [vmem:[%s28885_s5 + $0x168] sm:$0xff]  }
 0xb18   : > { %v14229_v53 = vadd.f32 %v27384_v16, %v14145_v19  ;;  %v14231_v20 = vadd.f32 %v27388_v26, %v14145_v19  ;;  %18642 = vmatpush3.bf16.msra.mxu0 %v22242_v46  ;;  %18670 = vmatpush3.bf16.msra.mxu1 %v22243_v4  ;;  %14448 = vst [vmem:[%s27399_s27 + $0x40] sm:$0xff] %v14336_v24  ;;  %14450 = vst [vmem:[%s27399_s27 + $0x50] sm:$0xff] %v14338_v2  ;;  %v27457_v54 = vpop.f32.mrb[241].mxu1  ;;  %v27469_v29 = vpop.f32.mrb[242].mxu0  ;;  %v22262_v36 = vld [vmem:[%s28885_s5 + $0x128] sm:$0xff]  }
 0xb19   : > { %v14340_v56 = vmax.f32 %v14228_v33, 0.0  ;;  %v14342_v28 = vmax.f32 %v14230_v12, 0.0  ;;  %v14042_v11 = vmax.f32 %v27441_v41, %v27443_v31  ;;  %18643 = vmatprep.subr.bf16.mxu0 %v22244_v23  ;;  %18671 = vmatprep.subr.bf16.mxu1 %v22245_v13  ;;  %14449 = vst [vmem:[%s27399_s27 + $0x48] sm:$0xff] %v14337_v61  ;;  %14451 = vst [vmem:[%s27399_s27 + $0x58] sm:$0xff] %v14339_v30  ;;  %v27471_v25 = vpop.f32.mrb[242].mxu1  ;;  %v27477_v52 = vpop.f32.mrb[243].mxu0 }
 0xb1a   : > { %v14341_v39 = vmax.f32 %v14229_v53, 0.0  ;;  %v14343_v35 = vmax.f32 %v14231_v20, 0.0  ;;  %v14043_v58 = vmax.f32 %v27455_v37, %v27457_v54  ;;  %v14044_v32 = vmax.f32 %v27469_v29, %v27471_v25  ;;  %v27479_v18 = vpop.f32.mrb[243].mxu1  ;;  %v22261_v23 = vld [vmem:[%s28885_s5 + $0x1e8] sm:$0xff]   ;;  %v22264_v12 = vld [vmem:[%s28885_s5 + $0x170] sm:$0xff]   ;;  %v22268_v37 = vld [vmem:[%s28885_s5 + $0x178] sm:$0xff]  }
 0xb1b   : > { %14452 = vst [vmem:[%s27399_s27 + $0x60] sm:$0xff] %v14340_v56  ;;  %14454 = vst [vmem:[%s27399_s27 + $0x70] sm:$0xff] %v14342_v28  ;;  %v14580_v22 = vpack.c.bf16 %v14340_v56, %v14336_v24  ;;  %v14582_v51 = vpack.c.bf16 %v14342_v28, %v14338_v2  ;;  %v14045_v3 = vmax.f32 %v27477_v52, %v27479_v18  ;;  %v22263_v19 = vld [vmem:[%s28885_s5 + $0x1a8] sm:$0xff]   ;;  %v22269_v54 = vld [vmem:[%s28885_s5 + $0x1f8] sm:$0xff]  }
 0xb1c   : > { %14453 = vst [vmem:[%s27399_s27 + $0x68] sm:$0xff] %v14341_v39  ;;  %14455 = vst [vmem:[%s27399_s27 + $0x78] sm:$0xff] %v14343_v35  ;;  %18644 = vmatpush3.bf16.msra.mxu0 %v22246_v5  ;;  %18672 = vmatpush3.bf16.msra.mxu1 %v22247_v14  ;;  %v14581_v8 = vpack.c.bf16 %v14341_v39, %v14337_v61  ;;  %v14583_v34 = vpack.c.bf16 %v14343_v35, %v14339_v30  ;;  %v22265_v61 = vld [vmem:[%s28885_s5 + $0x1f0] sm:$0xff]   ;;  %v22270_v52 = vld [vmem:[%s28885_s5 + $0x138] sm:$0xff]  }
 0xb1d   : > { %18645 = vmatprep.subr.bf16.mxu0 %v22248_v60  ;;  %18673 = vmatprep.subr.bf16.mxu1 %v22249_v38  ;;  %v22266_v39 = vld [vmem:[%s28885_s5 + $0x130] sm:$0xff]   ;;  %v22271_v18 = vld [vmem:[%s28885_s5 + $0x1b8] sm:$0xff]  }
 0xb1e   : > { %16447 = vmatprep.mubr.bf16.mxu0 %v14581_v8  ;;  %16496 = vmatprep.mubr.bf16.mxu1 %v14583_v34  ;;  %v27497_v40 = vpop.f32.mrb[244].mxu0  ;;  %v22267_v35 = vld [vmem:[%s28885_s5 + $0x1b0] sm:$0xff]  }
 0xb1f   : > { %16448 = vmatmul.mubr.bf16.gmra.mrb[84].mxu0 %v14580_v22  ;;  %16497 = vmatmul.mubr.bf16.gmra.mrb[84].mxu1 %v14582_v51  ;;  %v27499_v45 = vpop.f32.mrb[244].mxu1  ;;  %v27509_v42 = vpop.f32.mrb[245].mxu0 }
 0xb20   : > { %18646 = vmatpush3.bf16.msra.mxu0 %v22250_v43  ;;  %18674 = vmatpush3.bf16.msra.mxu1 %v22251_v63  ;;  %v14046_v9 = vmax.f32 %v27497_v40, %v27499_v45  ;;  %v27511_v59 = vpop.f32.mrb[245].mxu1  ;;  %v27521_v21 = vpop.f32.mrb[246].mxu0 }
 0xb21   : > { %18647 = vmatprep.subr.bf16.mxu0 %v22252_v15  ;;  %18675 = vmatprep.subr.bf16.mxu1 %v22253_v57  ;;  %v14047_v6 = vmax.f32 %v27509_v42, %v27511_v59  ;;  %v27523_v49 = vpop.f32.mrb[246].mxu1  ;;  %v27527_v17 = vpop.f32.mrb[247].mxu0  ;;  %v22275_v42 = vld [vmem:[%s28885_s5 + $0x280] sm:$0xff]   ;;  %v22276_v59 = vld [vmem:[%s28885_s5 + $0x248] sm:$0xff]  }
 0xb22   : > { %v14048_v50 = vmax.f32 %v27521_v21, %v27523_v49  ;;  %v27529_v46 = vpop.f32.mrb[247].mxu1  ;;  %v22277_v21 = vld [vmem:[%s28885_s5 + $0x2c8] sm:$0xff]  }
 0xb23   : > { %v14049_v4 = vmax.f32 %v27527_v17, %v27529_v46 }
 0xb24   : > { %18648 = vmatpush3.bf16.msra.mxu0 %v22254_v48  ;;  %18676 = vmatpush3.bf16.msra.mxu1 %v22255_v47 }
 0xb25   : > { %18649 = vmatprep.subr.bf16.mxu0 %v22256_v10  ;;  %18677 = vmatprep.subr.bf16.mxu1 %v22257_v27 }
 0xb26   : > { %v10677_v13 = vpop.f32.mrb[248].mxu0 }
 0xb27   : > { %v13807_v0 = vpop.f32.mrb[248].mxu1  ;;  %v10679_v2 = vpop.f32.mrb[249].mxu0 }
 0xb28   : > { %18650 = vmatpush3.bf16.msra.mxu0 %v22258_v7  ;;  %18678 = vmatpush3.bf16.msra.mxu1 %v22259_v44  ;;  %v14050_v24 = vmax.f32 %v10677_v13, %v13807_v0  ;;  %v13809_v33 = vpop.f32.mrb[249].mxu1  ;;  %v10681_v53 = vpop.f32.mrb[250].mxu0  ;;  %v22272_v44 = vld [vmem:[%s28885_s5 + $0x240] sm:$0xff]  }
 0xb29   : > { %18651 = vmatprep.subr.bf16.mxu0 %v22260_v62  ;;  %18679 = vmatprep.subr.bf16.mxu1 %v22261_v23  ;;  %v14051_v30 = vmax.f32 %v10679_v2, %v13809_v33  ;;  %v13811_v20 = vpop.f32.mrb[250].mxu1  ;;  %v10683_v56 = vpop.f32.mrb[251].mxu0 }
 0xb2a   : > { %v14146_v5 = vmax.f32 %v14042_v11, %v14050_v24  ;;  %v14052_v14 = vmax.f32 %v10681_v53, %v13811_v20  ;;  %v13813_v28 = vpop.f32.mrb[251].mxu1 }
 0xb2b   : > { %v14147_v60 = vmax.f32 %v14043_v58, %v14051_v30  ;;  %v14053_v38 = vmax.f32 %v10683_v56, %v13813_v28 }
 0xb2c   : > { %18652 = vmatpush3.bf16.msra.mxu0 %v22262_v36  ;;  %18680 = vmatpush3.bf16.msra.mxu1 %v22263_v19  ;;  %v14232_v41 = vadd.f32 %v27376_v1, %v14146_v5  ;;  %v14234_v31 = vadd.f32 %v27380_v55, %v14146_v5  ;;  %v14148_v11 = vmax.f32 %v14044_v32, %v14052_v14  ;;  %v22273_v19 = vld [vmem:[%s28885_s5 + $0x2c0] sm:$0xff]  }
 0xb2d   : > { %18653 = vmatprep.subr.bf16.mxu0 %v22264_v12  ;;  %18681 = vmatprep.subr.bf16.mxu1 %v22265_v61  ;;  %v14233_v58 = vadd.f32 %v27384_v16, %v14147_v60  ;;  %v14235_v22 = vadd.f32 %v27388_v26, %v14147_v60  ;;  %v14149_v29 = vmax.f32 %v14045_v3, %v14053_v38  ;;  %v22274_v14 = vld [vmem:[%s28885_s5 + $0x200] sm:$0xff]  }
 0xb2e   : > { %v14344_v25 = vmax.f32 %v14232_v41, 0.0  ;;  %v14346_v51 = vmax.f32 %v14234_v31, 0.0  ;;  %v14236_v32 = vadd.f32 %v27376_v1, %v14148_v11  ;;  %v14238_v8 = vadd.f32 %v27380_v55, %v14148_v11  ;;  %v10687_v57 = vpop.f32.mrb[252].mxu0  ;;  %v22278_v11 = vld [vmem:[%s28885_s5 + $0x208] sm:$0xff]  }
 0xb2f   : > { %v14345_v34 = vmax.f32 %v14233_v58, 0.0  ;;  %v14347_v43 = vmax.f32 %v14235_v22, 0.0  ;;  %v14237_v63 = vadd.f32 %v27384_v16, %v14149_v29  ;;  %v14239_v15 = vadd.f32 %v27388_v26, %v14149_v29  ;;  %v13817_v48 = vpop.f32.mrb[252].mxu1  ;;  %v10689_v27 = vpop.f32.mrb[253].mxu0 }
 0xb30   : > { %18654 = vmatpush3.bf16.msra.mxu0 %v22266_v39  ;;  %18682 = vmatpush3.bf16.msra.mxu1 %v22267_v35  ;;  %14456 = vst [vmem:[%s27399_s27 + $0x80] sm:$0xff] %v14344_v25  ;;  %14458 = vst [vmem:[%s27399_s27 + $0x90] sm:$0xff] %v14346_v51  ;;  %v14348_v3 = vmax.f32 %v14236_v32, 0.0  ;;  %v14350_v47 = vmax.f32 %v14238_v8, 0.0  ;;  %v14054_v10 = vmax.f32 %v10687_v57, %v13817_v48  ;;  %v13819_v7 = vpop.f32.mrb[253].mxu1  ;;  %v10691_v0 = vpop.f32.mrb[254].mxu0 }
 0xb31   : > { %18655 = vmatprep.subr.bf16.mxu0 %v22268_v37  ;;  %18683 = vmatprep.subr.bf16.mxu1 %v22269_v54  ;;  %14457 = vst [vmem:[%s27399_s27 + $0x88] sm:$0xff] %v14345_v34  ;;  %14459 = vst [vmem:[%s27399_s27 + $0x98] sm:$0xff] %v14347_v43  ;;  %v14349_v62 = vmax.f32 %v14237_v63, 0.0  ;;  %v14351_v23 = vmax.f32 %v14239_v15, 0.0  ;;  %v14055_v13 = vmax.f32 %v10689_v27, %v13819_v7  ;;  %v13821_v36 = vpop.f32.mrb[254].mxu1  ;;  %v10693_v61 = vpop.f32.mrb[255].mxu0 }
 0xb32   : > { %14460 = vst [vmem:[%s27399_s27 + $0xa0] sm:$0xff] %v14348_v3  ;;  %14462 = vst [vmem:[%s27399_s27 + $0xb0] sm:$0xff] %v14350_v47  ;;  %v14556_v24 = vpack.c.bf16 %v14348_v3, %v14344_v25  ;;  %v14558_v2 = vpack.c.bf16 %v14350_v47, %v14346_v51  ;;  %v14150_v33 = vmax.f32 %v14046_v9, %v14054_v10  ;;  %v13823_v30 = vpop.f32.mrb[255].mxu1  ;;  %v22279_v25 = vld [vmem:[%s28885_s5 + $0x288] sm:$0xff]   ;;  %v22280_v51 = vld [vmem:[%s28885_s5 + $0x250] sm:$0xff]  }
 0xb33   : > { %v14056_v12 = vmax.f32 %v10691_v0, %v13821_v36  ;;  %14461 = vst [vmem:[%s27399_s27 + $0xa8] sm:$0xff] %v14349_v62  ;;  %14463 = vst [vmem:[%s27399_s27 + $0xb8] sm:$0xff] %v14351_v23  ;;  %v14151_v53 = vmax.f32 %v14047_v6, %v14055_v13  ;;  %v14057_v20 = vmax.f32 %v10693_v61, %v13823_v30  ;;  %v22281_v3 = vld [vmem:[%s28885_s5 + $0x2d0] sm:$0xff]   ;;  %v22286_v36 = vld [vmem:[%s28885_s5 + $0x218] sm:$0xff]  }
 0xb34   : > { %18656 = vmatpush3.bf16.msra.mxu0 %v22270_v52  ;;  %18684 = vmatpush3.bf16.msra.mxu1 %v22271_v18  ;;  %v14557_v5 = vpack.c.bf16 %v14349_v62, %v14345_v34  ;;  %v14240_v40 = vadd.f32 %v27376_v1, %v14150_v33  ;;  %v14242_v45 = vadd.f32 %v27380_v55, %v14150_v33  ;;  %v22282_v7 = vld [vmem:[%s28885_s5 + $0x210] sm:$0xff]   ;;  %v22284_v62 = vld [vmem:[%s28885_s5 + $0x258] sm:$0xff]  }
 0xb35   : > { %v14152_v9 = vmax.f32 %v14048_v50, %v14056_v12  ;;  %v14559_v56 = vpack.c.bf16 %v14351_v23, %v14347_v43  ;;  %18697 = vmatprep.subr.bf16.mxu0 %v22272_v44  ;;  %v14241_v6 = vadd.f32 %v27384_v16, %v14151_v53  ;;  %v14243_v28 = vadd.f32 %v27388_v26, %v14151_v53  ;;  %v22283_v44 = vld [vmem:[%s28885_s5 + $0x290] sm:$0xff]   ;;  %v22285_v23 = vld [vmem:[%s28885_s5 + $0x2d8] sm:$0xff]   ;;  %v22288_v12 = vld [vmem:[%s28885_s5 + $0x260] sm:$0xff]  }
 0xb36   : > { %v14153_v60 = vmax.f32 %v14049_v4, %v14057_v20  ;;  %16537 = vmatprep.mubr.bf16.mxu0 %v14557_v5  ;;  %18725 = vmatprep.subr.bf16.mxu1 %v22273_v19  ;;  %v14352_v49 = vmax.f32 %v14240_v40, 0.0  ;;  %v14354_v50 = vmax.f32 %v14242_v45, 0.0  ;;  %v27641_v4 = vpop.f32.mrb[0].mxu0  ;;  %v22287_v33 = vld [vmem:[%s28885_s5 + $0x298] sm:$0xff]   ;;  %v22289_v20 = vld [vmem:[%s28885_s5 + $0x2e0] sm:$0xff]  }
 0xb37   : > { %v14244_v38 = vadd.f32 %v27376_v1, %v14152_v9  ;;  %v14246_v39 = vadd.f32 %v27380_v55, %v14152_v9  ;;  %16586 = vmatprep.mubr.bf16.mxu1 %v14559_v56  ;;  %16538 = vmatmul.mubr.bf16.vlgmr.msra.gmra.mrb[88].mxu0 %v14556_v24  ;;  %v14353_v35 = vmax.f32 %v14241_v6, 0.0  ;;  %v14355_v41 = vmax.f32 %v14243_v28, 0.0  ;;  %v27643_v31 = vpop.f32.mrb[0].mxu1  ;;  %v27652_v22 = vpop.f32.mrb[1].mxu0  ;;  %v22290_v9 = vld [vmem:[%s28885_s5 + $0x220] sm:$0xff]  }
 0xb38   : > { %v14245_v17 = vadd.f32 %v27384_v16, %v14153_v60  ;;  %v14247_v46 = vadd.f32 %v27388_v26, %v14153_v60  ;;  %16587 = vmatmul.mubr.bf16.vlgmr.msra.gmra.mrb[88].mxu1 %v14558_v2  ;;  %18698 = vmatpush3.bf16.msra.mxu0 %v22274_v14  ;;  %14464 = vst [vmem:[%s27399_s27 + $0xc0] sm:$0xff] %v14352_v49  ;;  %14466 = vst [vmem:[%s27399_s27 + $0xd0] sm:$0xff] %v14354_v50  ;;  %v27654_v29 = vpop.f32.mrb[1].mxu1  ;;  %v27666_v43 = vpop.f32.mrb[2].mxu0  ;;  %v22291_v56 = vld [vmem:[%s28885_s5 + $0x2a0] sm:$0xff]   ;;  %v22294_v60 = vld [vmem:[%s28885_s5 + $0x228] sm:$0xff]  }
 0xb39   : > { %v14356_v37 = vmax.f32 %v14244_v38, 0.0  ;;  %v14358_v54 = vmax.f32 %v14246_v39, 0.0  ;;  %v14058_v58 = vmax.f32 %v27641_v4, %v27643_v31  ;;  %18726 = vmatpush3.bf16.msra.mxu1 %v22275_v42  ;;  %18699 = vmatprep.subr.bf16.mxu0 %v22276_v59  ;;  %14465 = vst [vmem:[%s27399_s27 + $0xc8] sm:$0xff] %v14353_v35  ;;  %14467 = vst [vmem:[%s27399_s27 + $0xd8] sm:$0xff] %v14355_v41  ;;  %v27668_v63 = vpop.f32.mrb[2].mxu1  ;;  %v27674_v52 = vpop.f32.mrb[3].mxu0 }
 0xb3a   : > { %v14357_v32 = vmax.f32 %v14245_v17, 0.0  ;;  %v14359_v8 = vmax.f32 %v14247_v46, 0.0  ;;  %v14059_v34 = vmax.f32 %v27652_v22, %v27654_v29  ;;  %18727 = vmatprep.subr.bf16.mxu1 %v22277_v21  ;;  %v14060_v48 = vmax.f32 %v27666_v43, %v27668_v63  ;;  %v27676_v18 = vpop.f32.mrb[3].mxu1  ;;  %v22292_v42 = vld [vmem:[%s28885_s5 + $0x268] sm:$0xff]   ;;  %v22296_v39 = vld [vmem:[%s28885_s5 + $0x270] sm:$0xff]   ;;  %v22301_v43 = vld [vmem:[%s28885_s5 + $0x2f8] sm:$0xff]  }
 0xb3b   : > { %14468 = vst [vmem:[%s27399_s27 + $0xe0] sm:$0xff] %v14356_v37  ;;  %14470 = vst [vmem:[%s27399_s27 + $0xf0] sm:$0xff] %v14358_v54  ;;  %v14584_v15 = vpack.c.bf16 %v14356_v37, %v14352_v49  ;;  %v14586_v57 = vpack.c.bf16 %v14358_v54, %v14354_v50  ;;  %v14061_v47 = vmax.f32 %v27674_v52, %v27676_v18  ;;  %v22293_v59 = vld [vmem:[%s28885_s5 + $0x2e8] sm:$0xff]   ;;  %v22297_v46 = vld [vmem:[%s28885_s5 + $0x2f0] sm:$0xff]  }
 0xb3c   : > { %14469 = vst [vmem:[%s27399_s27 + $0xe8] sm:$0xff] %v14357_v32  ;;  %14471 = vst [vmem:[%s27399_s27 + $0xf8] sm:$0xff] %v14359_v8  ;;  %18700 = vmatpush3.bf16.msra.mxu0 %v22278_v11  ;;  %v14585_v10 = vpack.c.bf16 %v14357_v32, %v14353_v35  ;;  %v14587_v27 = vpack.c.bf16 %v14359_v8, %v14355_v41  ;;  %v22295_v38 = vld [vmem:[%s28885_s5 + $0x2a8] sm:$0xff]   ;;  %v22298_v8 = vld [vmem:[%s28885_s5 + $0x230] sm:$0xff]  }
 0xb3d   : > { %18728 = vmatpush3.bf16.msra.mxu1 %v22279_v25  ;;  %18701 = vmatprep.subr.bf16.mxu0 %v22280_v51  ;;  %v22299_v31 = vld [vmem:[%s28885_s5 + $0x2b0] sm:$0xff]  }
 0xb3e   : > { %16545 = vmatprep.mubr.bf16.mxu0 %v14585_v10  ;;  %16594 = vmatprep.mubr.bf16.mxu1 %v14587_v27  ;;  %v27697_v13 = vpop.f32.mrb[4].mxu0 }
 0xb3f   : > { %16546 = vmatmul.mubr.bf16.gmra.mrb[92].mxu0 %v14584_v15  ;;  %18729 = vmatprep.subr.bf16.mxu1 %v22281_v3  ;;  %v27699_v0 = vpop.f32.mrb[4].mxu1  ;;  %v27706_v24 = vpop.f32.mrb[5].mxu0 }
 0xb40   : > { %16595 = vmatmul.mubr.bf16.gmra.mrb[92].mxu1 %v14586_v57  ;;  %18702 = vmatpush3.bf16.msra.mxu0 %v22282_v7  ;;  %v14062_v19 = vmax.f32 %v27697_v13, %v27699_v0  ;;  %v27708_v2 = vpop.f32.mrb[5].mxu1  ;;  %v27718_v30 = vpop.f32.mrb[6].mxu0  ;;  %v22306_v13 = vld [vmem:[%s28885_s5 + $0x300] sm:$0xff]  }
 0xb41   : > { %18730 = vmatpush3.bf16.msra.mxu1 %v22283_v44  ;;  %18703 = vmatprep.subr.bf16.mxu0 %v22284_v62  ;;  %v14063_v61 = vmax.f32 %v27706_v24, %v27708_v2  ;;  %v27720_v53 = vpop.f32.mrb[6].mxu1  ;;  %v27727_v14 = vpop.f32.mrb[7].mxu0  ;;  %v22302_v62 = vld [vmem:[%s28885_s5 + $0x238] sm:$0xff]   ;;  %v22307_v24 = vld [vmem:[%s28885_s5 + $0x380] sm:$0xff]   ;;  %v22308_v2 = vld [vmem:[%s28885_s5 + $0x348] sm:$0xff]  }
 0xb42   : > { %18731 = vmatprep.subr.bf16.mxu1 %v22285_v23  ;;  %v14064_v5 = vmax.f32 %v27718_v30, %v27720_v53  ;;  %v27729_v40 = vpop.f32.mrb[7].mxu1  ;;  %v22309_v30 = vld [vmem:[%s28885_s5 + $0x3c8] sm:$0xff]  }
 0xb43   : > { %v14065_v45 = vmax.f32 %v27727_v14, %v27729_v40 }
 0xb44   : > { %18704 = vmatpush3.bf16.msra.mxu0 %v22286_v36 }
 0xb45   : > { %18732 = vmatpush3.bf16.msra.mxu1 %v22287_v33  ;;  %18705 = vmatprep.subr.bf16.mxu0 %v22288_v12 }
 0xb46   : > { %18733 = vmatprep.subr.bf16.mxu1 %v22289_v20  ;;  %v10717_v6 = vpop.f32.mrb[8].mxu0 }
 0xb47   : > { %v13847_v28 = vpop.f32.mrb[8].mxu1  ;;  %v10719_v49 = vpop.f32.mrb[9].mxu0 }
 0xb48   : > { %18706 = vmatpush3.bf16.msra.mxu0 %v22290_v9  ;;  %v14066_v21 = vmax.f32 %v10717_v6, %v13847_v28  ;;  %v13849_v50 = vpop.f32.mrb[9].mxu1  ;;  %v10721_v41 = vpop.f32.mrb[10].mxu0  ;;  %v22303_v9 = vld [vmem:[%s28885_s5 + $0x2b8] sm:$0xff]  }
 0xb49   : > { %18734 = vmatpush3.bf16.msra.mxu1 %v22291_v56  ;;  %18707 = vmatprep.subr.bf16.mxu0 %v22292_v42  ;;  %v14067_v35 = vmax.f32 %v10719_v49, %v13849_v50  ;;  %v13851_v17 = vpop.f32.mrb[10].mxu1  ;;  %v10723_v54 = vpop.f32.mrb[11].mxu0  ;;  %v22304_v56 = vld [vmem:[%s28885_s5 + $0x340] sm:$0xff]  }
 0xb4a   : > { %18735 = vmatprep.subr.bf16.mxu1 %v22293_v59  ;;  %v14154_v11 = vmax.f32 %v14058_v58, %v14066_v21  ;;  %v14068_v37 = vmax.f32 %v10721_v41, %v13851_v17  ;;  %v13853_v25 = vpop.f32.mrb[11].mxu1  ;;  %v22300_v58 = vld [vmem:[%s28885_s5 + $0x278] sm:$0xff]   ;;  %v22305_v41 = vld [vmem:[%s28885_s5 + $0x3c0] sm:$0xff]  }
 0xb4b   : > { %v14155_v51 = vmax.f32 %v14059_v34, %v14067_v35  ;;  %v14069_v32 = vmax.f32 %v10723_v54, %v13853_v25 }
 0xb4c   : > { %18708 = vmatpush3.bf16.msra.mxu0 %v22294_v60  ;;  %v14248_v15 = vadd.f32 %v27376_v1, %v14154_v11  ;;  %v14250_v57 = vadd.f32 %v27380_v55, %v14154_v11  ;;  %v14156_v4 = vmax.f32 %v14060_v48, %v14068_v37 }
 0xb4d   : > { %18736 = vmatpush3.bf16.msra.mxu1 %v22295_v38  ;;  %18709 = vmatprep.subr.bf16.mxu0 %v22296_v39  ;;  %v14249_v22 = vadd.f32 %v27384_v16, %v14155_v51  ;;  %v14251_v29 = vadd.f32 %v27388_v26, %v14155_v51  ;;  %v14157_v34 = vmax.f32 %v14061_v47, %v14069_v32 }
 0xb4e   : > { %18737 = vmatprep.subr.bf16.mxu1 %v22297_v46  ;;  %v14360_v63 = vmax.f32 %v14248_v15, 0.0  ;;  %v14362_v48 = vmax.f32 %v14250_v57, 0.0  ;;  %v14252_v3 = vadd.f32 %v27376_v1, %v14156_v4  ;;  %v14254_v10 = vadd.f32 %v27380_v55, %v14156_v4  ;;  %v10727_v18 = vpop.f32.mrb[12].mxu0 }
 0xb4f   : > { %v14361_v27 = vmax.f32 %v14249_v22, 0.0  ;;  %v14363_v7 = vmax.f32 %v14251_v29, 0.0  ;;  %v14253_v44 = vadd.f32 %v27384_v16, %v14157_v34  ;;  %v14255_v52 = vadd.f32 %v27388_v26, %v14157_v34  ;;  %v13857_v47 = vpop.f32.mrb[12].mxu1  ;;  %v10729_v12 = vpop.f32.mrb[13].mxu0 }
 0xb50   : > { %18710 = vmatpush3.bf16.msra.mxu0 %v22298_v8  ;;  %14472 = vst [vmem:[%s27399_s27 + $0x100] sm:$0xff] %v14360_v63  ;;  %14474 = vst [vmem:[%s27399_s27 + $0x110] sm:$0xff] %v14362_v48  ;;  %v14364_v23 = vmax.f32 %v14252_v3, 0.0  ;;  %v14366_v36 = vmax.f32 %v14254_v10, 0.0  ;;  %v14070_v33 = vmax.f32 %v10727_v18, %v13857_v47  ;;  %v13859_v20 = vpop.f32.mrb[13].mxu1  ;;  %v10731_v28 = vpop.f32.mrb[14].mxu0 }
 0xb51   : > { %18738 = vmatpush3.bf16.msra.mxu1 %v22299_v31  ;;  %18711 = vmatprep.subr.bf16.mxu0 %v22300_v58  ;;  %14473 = vst [vmem:[%s27399_s27 + $0x108] sm:$0xff] %v14361_v27  ;;  %14475 = vst [vmem:[%s27399_s27 + $0x118] sm:$0xff] %v14363_v7  ;;  %v14365_v42 = vmax.f32 %v14253_v44, 0.0  ;;  %v14367_v59 = vmax.f32 %v14255_v52, 0.0  ;;  %v14071_v6 = vmax.f32 %v10729_v12, %v13859_v20  ;;  %v13861_v60 = vpop.f32.mrb[14].mxu1  ;;  %v10733_v39 = vpop.f32.mrb[15].mxu0 }
 0xb52   : > { %18739 = vmatprep.subr.bf16.mxu1 %v22301_v43  ;;  %14476 = vst [vmem:[%s27399_s27 + $0x120] sm:$0xff] %v14364_v23  ;;  %14478 = vst [vmem:[%s27399_s27 + $0x130] sm:$0xff] %v14366_v36  ;;  %v14560_v21 = vpack.c.bf16 %v14364_v23, %v14360_v63  ;;  %v14562_v49 = vpack.c.bf16 %v14366_v36, %v14362_v48  ;;  %v14158_v50 = vmax.f32 %v14062_v19, %v14070_v33  ;;  %v13863_v35 = vpop.f32.mrb[15].mxu1  ;;  %v22310_v31 = vld [vmem:[%s28885_s5 + $0x308] sm:$0xff]   ;;  %v22312_v48 = vld [vmem:[%s28885_s5 + $0x350] sm:$0xff]  }
 0xb53   : > { %v14072_v38 = vmax.f32 %v10731_v28, %v13861_v60  ;;  %14477 = vst [vmem:[%s27399_s27 + $0x128] sm:$0xff] %v14365_v42  ;;  %14479 = vst [vmem:[%s27399_s27 + $0x138] sm:$0xff] %v14367_v59  ;;  %v14159_v17 = vmax.f32 %v14063_v61, %v14071_v6  ;;  %v14073_v46 = vmax.f32 %v10733_v39, %v13863_v35  ;;  %v22311_v63 = vld [vmem:[%s28885_s5 + $0x388] sm:$0xff]   ;;  %v22313_v36 = vld [vmem:[%s28885_s5 + $0x3d0] sm:$0xff]  }
 0xb54   : > { %18712 = vmatpush3.bf16.msra.mxu0 %v22302_v62  ;;  %v14561_v11 = vpack.c.bf16 %v14365_v42, %v14361_v27  ;;  %v14563_v37 = vpack.c.bf16 %v14367_v59, %v14363_v7  ;;  %v14256_v0 = vadd.f32 %v27376_v1, %v14158_v50  ;;  %v14258_v19 = vadd.f32 %v27380_v55, %v14158_v50  ;;  %v22316_v42 = vld [vmem:[%s28885_s5 + $0x358] sm:$0xff]   ;;  %v22320_v39 = vld [vmem:[%s28885_s5 + $0x360] sm:$0xff]  }
 0xb55   : > { %v14160_v54 = vmax.f32 %v14064_v5, %v14072_v38  ;;  %18740 = vmatpush3.bf16.msra.mxu1 %v22303_v9  ;;  %18753 = vmatprep.subr.bf16.mxu0 %v22304_v56  ;;  %v14257_v61 = vadd.f32 %v27384_v16, %v14159_v17  ;;  %v14259_v25 = vadd.f32 %v27388_v26, %v14159_v17  ;;  %v22314_v9 = vld [vmem:[%s28885_s5 + $0x310] sm:$0xff]   ;;  %v22317_v59 = vld [vmem:[%s28885_s5 + $0x3d8] sm:$0xff]  }
 0xb56   : > { %v14161_v51 = vmax.f32 %v14065_v45, %v14073_v46  ;;  %16635 = vmatprep.mubr.bf16.mxu0 %v14561_v11  ;;  %16684 = vmatprep.mubr.bf16.mxu1 %v14563_v37  ;;  %v14368_v53 = vmax.f32 %v14256_v0, 0.0  ;;  %v14370_v5 = vmax.f32 %v14258_v19, 0.0  ;;  %v27841_v45 = vpop.f32.mrb[16].mxu0  ;;  %v22315_v56 = vld [vmem:[%s28885_s5 + $0x390] sm:$0xff]   ;;  %v22318_v60 = vld [vmem:[%s28885_s5 + $0x318] sm:$0xff]   ;;  %v22321_v46 = vld [vmem:[%s28885_s5 + $0x3e0] sm:$0xff]  }
 0xb57   : > { %v14260_v32 = vadd.f32 %v27376_v1, %v14160_v54  ;;  %v14262_v8 = vadd.f32 %v27380_v55, %v14160_v54  ;;  %16636 = vmatmul.mubr.bf16.vlgmr.msra.gmra.mrb[96].mxu0 %v14560_v21  ;;  %18781 = vmatprep.subr.bf16.mxu1 %v22305_v41  ;;  %v14369_v15 = vmax.f32 %v14257_v61, 0.0  ;;  %v14371_v57 = vmax.f32 %v14259_v25, 0.0  ;;  %v27843_v4 = vpop.f32.mrb[16].mxu1  ;;  %v27852_v34 = vpop.f32.mrb[17].mxu0  ;;  %v22319_v38 = vld [vmem:[%s28885_s5 + $0x398] sm:$0xff]   ;;  %v22322_v19 = vld [vmem:[%s28885_s5 + $0x320] sm:$0xff]  }
 0xb58   : > { %v14261_v14 = vadd.f32 %v27384_v16, %v14161_v51  ;;  %v14263_v40 = vadd.f32 %v27388_v26, %v14161_v51  ;;  %16685 = vmatmul.mubr.bf16.vlgmr.msra.gmra.mrb[96].mxu1 %v14562_v49  ;;  %18754 = vmatpush3.bf16.msra.mxu0 %v22306_v13  ;;  %14480 = vst [vmem:[%s27399_s27 + $0x140] sm:$0xff] %v14368_v53  ;;  %14482 = vst [vmem:[%s27399_s27 + $0x150] sm:$0xff] %v14370_v5  ;;  %v27854_v43 = vpop.f32.mrb[17].mxu1  ;;  %v27866_v7 = vpop.f32.mrb[18].mxu0  ;;  %v22323_v54 = vld [vmem:[%s28885_s5 + $0x3a0] sm:$0xff]   ;;  %v22326_v51 = vld [vmem:[%s28885_s5 + $0x328] sm:$0xff]  }
 0xb59   : > { %v14372_v58 = vmax.f32 %v14260_v32, 0.0  ;;  %v14374_v22 = vmax.f32 %v14262_v8, 0.0  ;;  %v14074_v29 = vmax.f32 %v27841_v45, %v27843_v4  ;;  %18782 = vmatpush3.bf16.msra.mxu1 %v22307_v24  ;;  %18755 = vmatprep.subr.bf16.mxu0 %v22308_v2  ;;  %14481 = vst [vmem:[%s27399_s27 + $0x148] sm:$0xff] %v14369_v15  ;;  %14483 = vst [vmem:[%s27399_s27 + $0x158] sm:$0xff] %v14371_v57  ;;  %v27868_v44 = vpop.f32.mrb[18].mxu1  ;;  %v27874_v62 = vpop.f32.mrb[19].mxu0 }
 0xb5a   : > { %v14373_v3 = vmax.f32 %v14261_v14, 0.0  ;;  %v14375_v10 = vmax.f32 %v14263_v40, 0.0  ;;  %v14075_v27 = vmax.f32 %v27852_v34, %v27854_v43  ;;  %18783 = vmatprep.subr.bf16.mxu1 %v22309_v30  ;;  %v14076_v47 = vmax.f32 %v27866_v7, %v27868_v44  ;;  %v27876_v23 = vpop.f32.mrb[19].mxu1  ;;  %v22324_v24 = vld [vmem:[%s28885_s5 + $0x368] sm:$0xff]   ;;  %v22328_v8 = vld [vmem:[%s28885_s5 + $0x370] sm:$0xff]   ;;  %v22333_v7 = vld [vmem:[%s28885_s5 + $0x3f8] sm:$0xff]  }
 0xb5b   : > { %14484 = vst [vmem:[%s27399_s27 + $0x160] sm:$0xff] %v14372_v58  ;;  %14486 = vst [vmem:[%s27399_s27 + $0x170] sm:$0xff] %v14374_v22  ;;  %v14588_v52 = vpack.c.bf16 %v14372_v58, %v14368_v53  ;;  %v14590_v18 = vpack.c.bf16 %v14374_v22, %v14370_v5  ;;  %v14077_v33 = vmax.f32 %v27874_v62, %v27876_v23  ;;  %v22325_v2 = vld [vmem:[%s28885_s5 + $0x3e8] sm:$0xff]   ;;  %v22329_v40 = vld [vmem:[%s28885_s5 + $0x3f0] sm:$0xff]  }
 0xb5c   : > { %14485 = vst [vmem:[%s27399_s27 + $0x168] sm:$0xff] %v14373_v3  ;;  %14487 = vst [vmem:[%s27399_s27 + $0x178] sm:$0xff] %v14375_v10  ;;  %18756 = vmatpush3.bf16.msra.mxu0 %v22310_v31  ;;  %v14589_v12 = vpack.c.bf16 %v14373_v3, %v14369_v15  ;;  %v14591_v20 = vpack.c.bf16 %v14375_v10, %v14371_v57  ;;  %v22327_v32 = vld [vmem:[%s28885_s5 + $0x3a8] sm:$0xff]   ;;  %v22330_v10 = vld [vmem:[%s28885_s5 + $0x330] sm:$0xff]  }
 0xb5d   : > { %18784 = vmatpush3.bf16.msra.mxu1 %v22311_v63  ;;  %18757 = vmatprep.subr.bf16.mxu0 %v22312_v48  ;;  %v22331_v4 = vld [vmem:[%s28885_s5 + $0x3b0] sm:$0xff]  }
 0xb5e   : > { %16643 = vmatprep.mubr.bf16.mxu0 %v14589_v12  ;;  %16692 = vmatprep.mubr.bf16.mxu1 %v14591_v20  ;;  %v27897_v6 = vpop.f32.mrb[20].mxu0 }
 0xb5f   : > { %16644 = vmatmul.mubr.bf16.gmra.mrb[100].mxu0 %v14588_v52  ;;  %18785 = vmatprep.subr.bf16.mxu1 %v22313_v36  ;;  %v27899_v28 = vpop.f32.mrb[20].mxu1  ;;  %v27906_v49 = vpop.f32.mrb[21].mxu0 }
 0xb60   : > { %16693 = vmatmul.mubr.bf16.gmra.mrb[100].mxu1 %v14590_v18  ;;  %18758 = vmatpush3.bf16.msra.mxu0 %v22314_v9  ;;  %v14078_v21 = vmax.f32 %v27897_v6, %v27899_v28  ;;  %v27908_v50 = vpop.f32.mrb[21].mxu1  ;;  %v27918_v41 = vpop.f32.mrb[22].mxu0  ;;  %v22338_v6 = vld [vmem:[%s28885_s5 + $0x400] sm:$0xff]  }
 0xb61   : > { %18786 = vmatpush3.bf16.msra.mxu1 %v22315_v56  ;;  %18759 = vmatprep.subr.bf16.mxu0 %v22316_v42  ;;  %v14079_v35 = vmax.f32 %v27906_v49, %v27908_v50  ;;  %v27920_v17 = vpop.f32.mrb[22].mxu1  ;;  %v27927_v37 = vpop.f32.mrb[23].mxu0  ;;  %v22334_v42 = vld [vmem:[%s28885_s5 + $0x338] sm:$0xff]   ;;  %v22339_v49 = vld [vmem:[%s28885_s5 + $0x480] sm:$0xff]   ;;  %v22340_v50 = vld [vmem:[%s28885_s5 + $0x448] sm:$0xff]  }
 0xb62   : > { %18787 = vmatprep.subr.bf16.mxu1 %v22317_v59  ;;  %v14080_v11 = vmax.f32 %v27918_v41, %v27920_v17  ;;  %v27929_v13 = vpop.f32.mrb[23].mxu1  ;;  %v22341_v41 = vld [vmem:[%s28885_s5 + $0x4c8] sm:$0xff]  }
 0xb63   : > { %v14081_v0 = vmax.f32 %v27927_v37, %v27929_v13 }
 0xb64   : > { %18760 = vmatpush3.bf16.msra.mxu0 %v22318_v60 }
 0xb65   : > { %18788 = vmatpush3.bf16.msra.mxu1 %v22319_v38  ;;  %18761 = vmatprep.subr.bf16.mxu0 %v22320_v39 }
 0xb66   : > { %18789 = vmatprep.subr.bf16.mxu1 %v22321_v46  ;;  %v10757_v61 = vpop.f32.mrb[24].mxu0 }
 0xb67   : > { %v13887_v25 = vpop.f32.mrb[24].mxu1  ;;  %v10759_v53 = vpop.f32.mrb[25].mxu0 }
 0xb68   : > { %18762 = vmatpush3.bf16.msra.mxu0 %v22322_v19  ;;  %v14082_v30 = vmax.f32 %v10757_v61, %v13887_v25  ;;  %v13889_v5 = vpop.f32.mrb[25].mxu1  ;;  %v10761_v57 = vpop.f32.mrb[26].mxu0  ;;  %v22335_v19 = vld [vmem:[%s28885_s5 + $0x3b8] sm:$0xff]  }
 0xb69   : > { %18790 = vmatpush3.bf16.msra.mxu1 %v22323_v54  ;;  %18763 = vmatprep.subr.bf16.mxu0 %v22324_v24  ;;  %v14083_v15 = vmax.f32 %v10759_v53, %v13889_v5  ;;  %v13891_v14 = vpop.f32.mrb[26].mxu1  ;;  %v10763_v22 = vpop.f32.mrb[27].mxu0  ;;  %v22336_v54 = vld [vmem:[%s28885_s5 + $0x440] sm:$0xff]  }
 0xb6a   : > { %18791 = vmatprep.subr.bf16.mxu1 %v22325_v2  ;;  %v14162_v31 = vmax.f32 %v14074_v29, %v14082_v30  ;;  %v14084_v58 = vmax.f32 %v10761_v57, %v13891_v14  ;;  %v13893_v63 = vpop.f32.mrb[27].mxu1  ;;  %v22332_v29 = vld [vmem:[%s28885_s5 + $0x378] sm:$0xff]   ;;  %v22337_v57 = vld [vmem:[%s28885_s5 + $0x4c0] sm:$0xff]  }
 0xb6b   : > { %v14163_v48 = vmax.f32 %v14075_v27, %v14083_v15  ;;  %v14085_v3 = vmax.f32 %v10763_v22, %v13893_v63 }
 0xb6c   : > { %18764 = vmatpush3.bf16.msra.mxu0 %v22326_v51  ;;  %v14264_v52 = vadd.f32 %v27376_v1, %v14162_v31  ;;  %v14266_v18 = vadd.f32 %v27380_v55, %v14162_v31  ;;  %v14164_v45 = vmax.f32 %v14076_v47, %v14084_v58 }
 0xb6d   : > { %18792 = vmatpush3.bf16.msra.mxu1 %v22327_v32  ;;  %18765 = vmatprep.subr.bf16.mxu0 %v22328_v8  ;;  %v14265_v34 = vadd.f32 %v27384_v16, %v14163_v48  ;;  %v14267_v43 = vadd.f32 %v27388_v26, %v14163_v48  ;;  %v14165_v27 = vmax.f32 %v14077_v33, %v14085_v3 }
 0xb6e   : > { %18793 = vmatprep.subr.bf16.mxu1 %v22329_v40  ;;  %v14376_v44 = vmax.f32 %v14264_v52, 0.0  ;;  %v14378_v47 = vmax.f32 %v14266_v18, 0.0  ;;  %v14268_v36 = vadd.f32 %v27376_v1, %v14164_v45  ;;  %v14270_v12 = vadd.f32 %v27380_v55, %v14164_v45  ;;  %v10767_v23 = vpop.f32.mrb[28].mxu0 }
 0xb6f   : > { %v14377_v20 = vmax.f32 %v14265_v34, 0.0  ;;  %v14379_v9 = vmax.f32 %v14267_v43, 0.0  ;;  %v14269_v56 = vadd.f32 %v27384_v16, %v14165_v27  ;;  %v14271_v62 = vadd.f32 %v27388_v26, %v14165_v27  ;;  %v13897_v33 = vpop.f32.mrb[28].mxu1  ;;  %v10769_v39 = vpop.f32.mrb[29].mxu0 }
 0xb70   : > { %18766 = vmatpush3.bf16.msra.mxu0 %v22330_v10  ;;  %14488 = vst [vmem:[%s27399_s27 + $0x180] sm:$0xff] %v14376_v44  ;;  %14490 = vst [vmem:[%s27399_s27 + $0x190] sm:$0xff] %v14378_v47  ;;  %v14380_v59 = vmax.f32 %v14268_v36, 0.0  ;;  %v14382_v60 = vmax.f32 %v14270_v12, 0.0  ;;  %v14086_v38 = vmax.f32 %v10767_v23, %v13897_v33  ;;  %v13899_v46 = vpop.f32.mrb[29].mxu1  ;;  %v10771_v25 = vpop.f32.mrb[30].mxu0 }
 0xb71   : > { %18794 = vmatpush3.bf16.msra.mxu1 %v22331_v4  ;;  %18767 = vmatprep.subr.bf16.mxu0 %v22332_v29  ;;  %14489 = vst [vmem:[%s27399_s27 + $0x188] sm:$0xff] %v14377_v20  ;;  %14491 = vst [vmem:[%s27399_s27 + $0x198] sm:$0xff] %v14379_v9  ;;  %v14381_v24 = vmax.f32 %v14269_v56, 0.0  ;;  %v14383_v2 = vmax.f32 %v14271_v62, 0.0  ;;  %v14087_v61 = vmax.f32 %v10769_v39, %v13899_v46  ;;  %v13901_v51 = vpop.f32.mrb[30].mxu1  ;;  %v10773_v8 = vpop.f32.mrb[31].mxu0 }
 0xb72   : > { %18795 = vmatprep.subr.bf16.mxu1 %v22333_v7  ;;  %14492 = vst [vmem:[%s27399_s27 + $0x1a0] sm:$0xff] %v14380_v59  ;;  %14494 = vst [vmem:[%s27399_s27 + $0x1b0] sm:$0xff] %v14382_v60  ;;  %v14564_v30 = vpack.c.bf16 %v14380_v59, %v14376_v44  ;;  %v14566_v53 = vpack.c.bf16 %v14382_v60, %v14378_v47  ;;  %v14166_v5 = vmax.f32 %v14078_v21, %v14086_v38  ;;  %v13903_v15 = vpop.f32.mrb[31].mxu1  ;;  %v22342_v4 = vld [vmem:[%s28885_s5 + $0x408] sm:$0xff]   ;;  %v22344_v47 = vld [vmem:[%s28885_s5 + $0x450] sm:$0xff]  }
 0xb73   : > { %v14088_v32 = vmax.f32 %v10771_v25, %v13901_v51  ;;  %14493 = vst [vmem:[%s27399_s27 + $0x1a8] sm:$0xff] %v14381_v24  ;;  %14495 = vst [vmem:[%s27399_s27 + $0x1b8] sm:$0xff] %v14383_v2  ;;  %v14167_v14 = vmax.f32 %v14079_v35, %v14087_v61  ;;  %v14089_v40 = vmax.f32 %v10773_v8, %v13903_v15  ;;  %v22343_v44 = vld [vmem:[%s28885_s5 + $0x488] sm:$0xff]   ;;  %v22345_v60 = vld [vmem:[%s28885_s5 + $0x4d0] sm:$0xff]  }
 0xb74   : > { %18768 = vmatpush3.bf16.msra.mxu0 %v22334_v42  ;;  %v14565_v31 = vpack.c.bf16 %v14381_v24, %v14377_v20  ;;  %v14567_v58 = vpack.c.bf16 %v14383_v2, %v14379_v9  ;;  %v14272_v28 = vadd.f32 %v27376_v1, %v14166_v5  ;;  %v14274_v21 = vadd.f32 %v27380_v55, %v14166_v5  ;;  %v22348_v24 = vld [vmem:[%s28885_s5 + $0x458] sm:$0xff]   ;;  %v22352_v8 = vld [vmem:[%s28885_s5 + $0x460] sm:$0xff]  }
 0xb75   : > { %v14168_v22 = vmax.f32 %v14080_v11, %v14088_v32  ;;  %18796 = vmatpush3.bf16.msra.mxu1 %v22335_v19  ;;  %18809 = vmatprep.subr.bf16.mxu0 %v22336_v54  ;;  %v14273_v35 = vadd.f32 %v27384_v16, %v14167_v14  ;;  %v14275_v63 = vadd.f32 %v27388_v26, %v14167_v14  ;;  %v22346_v19 = vld [vmem:[%s28885_s5 + $0x410] sm:$0xff]   ;;  %v22349_v2 = vld [vmem:[%s28885_s5 + $0x4d8] sm:$0xff]  }
 0xb76   : > { %v14169_v48 = vmax.f32 %v14081_v0, %v14089_v40  ;;  %16733 = vmatprep.mubr.bf16.mxu0 %v14565_v31  ;;  %16782 = vmatprep.mubr.bf16.mxu1 %v14567_v58  ;;  %v14384_v17 = vmax.f32 %v14272_v28, 0.0  ;;  %v14386_v11 = vmax.f32 %v14274_v21, 0.0  ;;  %v28041_v0 = vpop.f32.mrb[32].mxu0  ;;  %v22347_v54 = vld [vmem:[%s28885_s5 + $0x490] sm:$0xff]   ;;  %v22350_v51 = vld [vmem:[%s28885_s5 + $0x418] sm:$0xff]   ;;  %v22353_v40 = vld [vmem:[%s28885_s5 + $0x4e0] sm:$0xff]  }
 0xb77   : > { %v14276_v3 = vadd.f32 %v27376_v1, %v14168_v22  ;;  %v14278_v10 = vadd.f32 %v27380_v55, %v14168_v22  ;;  %16734 = vmatmul.mubr.bf16.vlgmr.msra.gmra.mrb[104].mxu0 %v14564_v30  ;;  %18837 = vmatprep.subr.bf16.mxu1 %v22337_v57  ;;  %v14385_v52 = vmax.f32 %v14273_v35, 0.0  ;;  %v14387_v18 = vmax.f32 %v14275_v63, 0.0  ;;  %v28043_v45 = vpop.f32.mrb[32].mxu1  ;;  %v28052_v27 = vpop.f32.mrb[33].mxu0  ;;  %v22351_v32 = vld [vmem:[%s28885_s5 + $0x498] sm:$0xff]   ;;  %v22354_v21 = vld [vmem:[%s28885_s5 + $0x420] sm:$0xff]  }
 0xb78   : > { %v14277_v37 = vadd.f32 %v27384_v16, %v14169_v48  ;;  %v14279_v13 = vadd.f32 %v27388_v26, %v14169_v48  ;;  %16783 = vmatmul.mubr.bf16.vlgmr.msra.gmra.mrb[104].mxu1 %v14566_v53  ;;  %18810 = vmatpush3.bf16.msra.mxu0 %v22338_v6  ;;  %14496 = vst [vmem:[%s27399_s27 + $0x1c0] sm:$0xff] %v14384_v17  ;;  %14498 = vst [vmem:[%s27399_s27 + $0x1d0] sm:$0xff] %v14386_v11  ;;  %v28054_v7 = vpop.f32.mrb[33].mxu1  ;;  %v28066_v9 = vpop.f32.mrb[34].mxu0  ;;  %v22355_v22 = vld [vmem:[%s28885_s5 + $0x4a0] sm:$0xff]   ;;  %v22358_v48 = vld [vmem:[%s28885_s5 + $0x428] sm:$0xff]  }
 0xb79   : > { %v14388_v29 = vmax.f32 %v14276_v3, 0.0  ;;  %v14390_v34 = vmax.f32 %v14278_v10, 0.0  ;;  %v14090_v43 = vmax.f32 %v28041_v0, %v28043_v45  ;;  %18838 = vmatpush3.bf16.msra.mxu1 %v22339_v49  ;;  %18811 = vmatprep.subr.bf16.mxu0 %v22340_v50  ;;  %14497 = vst [vmem:[%s27399_s27 + $0x1c8] sm:$0xff] %v14385_v52  ;;  %14499 = vst [vmem:[%s27399_s27 + $0x1d8] sm:$0xff] %v14387_v18  ;;  %v28068_v56 = vpop.f32.mrb[34].mxu1  ;;  %v28074_v42 = vpop.f32.mrb[35].mxu0 }
 0xb7a   : > { %v14389_v36 = vmax.f32 %v14277_v37, 0.0  ;;  %v14391_v12 = vmax.f32 %v14279_v13, 0.0  ;;  %v14091_v20 = vmax.f32 %v28052_v27, %v28054_v7  ;;  %18839 = vmatprep.subr.bf16.mxu1 %v22341_v41  ;;  %v14092_v33 = vmax.f32 %v28066_v9, %v28068_v56  ;;  %v28076_v59 = vpop.f32.mrb[35].mxu1  ;;  %v22356_v49 = vld [vmem:[%s28885_s5 + $0x468] sm:$0xff]   ;;  %v22360_v10 = vld [vmem:[%s28885_s5 + $0x470] sm:$0xff]   ;;  %v22365_v9 = vld [vmem:[%s28885_s5 + $0x4f8] sm:$0xff]  }
 0xb7b   : > { %14500 = vst [vmem:[%s27399_s27 + $0x1e0] sm:$0xff] %v14388_v29  ;;  %14502 = vst [vmem:[%s27399_s27 + $0x1f0] sm:$0xff] %v14390_v34  ;;  %v14592_v62 = vpack.c.bf16 %v14388_v29, %v14384_v17  ;;  %v14594_v23 = vpack.c.bf16 %v14390_v34, %v14386_v11  ;;  %v14093_v38 = vmax.f32 %v28074_v42, %v28076_v59  ;;  %v22357_v50 = vld [vmem:[%s28885_s5 + $0x4e8] sm:$0xff]   ;;  %v22361_v13 = vld [vmem:[%s28885_s5 + $0x4f0] sm:$0xff]  }
 0xb7c   : > { %14501 = vst [vmem:[%s27399_s27 + $0x1e8] sm:$0xff] %v14389_v36  ;;  %14503 = vst [vmem:[%s27399_s27 + $0x1f8] sm:$0xff] %v14391_v12  ;;  %18812 = vmatpush3.bf16.msra.mxu0 %v22342_v4  ;;  %v14593_v39 = vpack.c.bf16 %v14389_v36, %v14385_v52  ;;  %v14595_v46 = vpack.c.bf16 %v14391_v12, %v14387_v18  ;;  %v22359_v3 = vld [vmem:[%s28885_s5 + $0x4a8] sm:$0xff]   ;;  %v22362_v12 = vld [vmem:[%s28885_s5 + $0x430] sm:$0xff]  }
 0xb7d   : > { %18840 = vmatpush3.bf16.msra.mxu1 %v22343_v44  ;;  %18813 = vmatprep.subr.bf16.mxu0 %v22344_v47  ;;  %v22363_v45 = vld [vmem:[%s28885_s5 + $0x4b0] sm:$0xff]  }
 0xb7e   : > { %16741 = vmatprep.mubr.bf16.mxu0 %v14593_v39  ;;  %16790 = vmatprep.mubr.bf16.mxu1 %v14595_v46  ;;  %v28097_v61 = vpop.f32.mrb[36].mxu0 }
 0xb7f   : > { %16742 = vmatmul.mubr.bf16.gmra.mrb[108].mxu0 %v14592_v62  ;;  %18841 = vmatprep.subr.bf16.mxu1 %v22345_v60  ;;  %v28099_v25 = vpop.f32.mrb[36].mxu1  ;;  %v28106_v53 = vpop.f32.mrb[37].mxu0 }
 0xb80   : > { %16791 = vmatmul.mubr.bf16.gmra.mrb[108].mxu1 %v14594_v23  ;;  %18814 = vmatpush3.bf16.msra.mxu0 %v22346_v19  ;;  %v14094_v30 = vmax.f32 %v28097_v61, %v28099_v25  ;;  %v28108_v5 = vpop.f32.mrb[37].mxu1  ;;  %v28118_v57 = vpop.f32.mrb[38].mxu0  ;;  %v22370_v61 = vld [vmem:[%s28885_s5 + $0x500] sm:$0xff]  }
 0xb81   : > { %18842 = vmatpush3.bf16.msra.mxu1 %v22347_v54  ;;  %18815 = vmatprep.subr.bf16.mxu0 %v22348_v24  ;;  %v14095_v15 = vmax.f32 %v28106_v53, %v28108_v5  ;;  %v28120_v14 = vpop.f32.mrb[38].mxu1  ;;  %v28127_v58 = vpop.f32.mrb[39].mxu0  ;;  %v22366_v24 = vld [vmem:[%s28885_s5 + $0x438] sm:$0xff]   ;;  %v22371_v53 = vld [vmem:[%s28885_s5 + $0x580] sm:$0xff]   ;;  %v22372_v5 = vld [vmem:[%s28885_s5 + $0x548] sm:$0xff]  }
 0xb82   : > { %18843 = vmatprep.subr.bf16.mxu1 %v22349_v2  ;;  %v14096_v31 = vmax.f32 %v28118_v57, %v28120_v14  ;;  %v28129_v6 = vpop.f32.mrb[39].mxu1  ;;  %v22373_v57 = vld [vmem:[%s28885_s5 + $0x5c8] sm:$0xff]  }
 0xb83   : > { %v14097_v28 = vmax.f32 %v28127_v58, %v28129_v6 }
 0xb84   : > { %18816 = vmatpush3.bf16.msra.mxu0 %v22350_v51 }
 0xb85   : > { %18844 = vmatpush3.bf16.msra.mxu1 %v22351_v32  ;;  %18817 = vmatprep.subr.bf16.mxu0 %v22352_v8 }
 0xb86   : > { %18845 = vmatprep.subr.bf16.mxu1 %v22353_v40  ;;  %v10797_v35 = vpop.f32.mrb[40].mxu0 }
 0xb87   : > { %v13927_v63 = vpop.f32.mrb[40].mxu1  ;;  %v10799_v17 = vpop.f32.mrb[41].mxu0 }
 0xb88   : > { %18818 = vmatpush3.bf16.msra.mxu0 %v22354_v21  ;;  %v14098_v41 = vmax.f32 %v10797_v35, %v13927_v63  ;;  %v13929_v11 = vpop.f32.mrb[41].mxu1  ;;  %v10801_v18 = vpop.f32.mrb[42].mxu0  ;;  %v22367_v21 = vld [vmem:[%s28885_s5 + $0x4b8] sm:$0xff]  }
 0xb89   : > { %18846 = vmatpush3.bf16.msra.mxu1 %v22355_v22  ;;  %18819 = vmatprep.subr.bf16.mxu0 %v22356_v49  ;;  %v14099_v52 = vmax.f32 %v10799_v17, %v13929_v11  ;;  %v13931_v37 = vpop.f32.mrb[42].mxu1  ;;  %v10803_v34 = vpop.f32.mrb[43].mxu0  ;;  %v22368_v22 = vld [vmem:[%s28885_s5 + $0x540] sm:$0xff]  }
 0xb8a   : > { %18847 = vmatprep.subr.bf16.mxu1 %v22357_v50  ;;  %v14170_v4 = vmax.f32 %v14090_v43, %v14098_v41  ;;  %v14100_v29 = vmax.f32 %v10801_v18, %v13931_v37  ;;  %v13933_v44 = vpop.f32.mrb[43].mxu1  ;;  %v22364_v43 = vld [vmem:[%s28885_s5 + $0x478] sm:$0xff]   ;;  %v22369_v18 = vld [vmem:[%s28885_s5 + $0x5c0] sm:$0xff]  }
 0xb8b   : > { %v14171_v47 = vmax.f32 %v14091_v20, %v14099_v52  ;;  %v14101_v36 = vmax.f32 %v10803_v34, %v13933_v44 }
 0xb8c   : > { %18820 = vmatpush3.bf16.msra.mxu0 %v22358_v48  ;;  %v14280_v62 = vadd.f32 %v27376_v1, %v14170_v4  ;;  %v14282_v23 = vadd.f32 %v27380_v55, %v14170_v4  ;;  %v14172_v0 = vmax.f32 %v14092_v33, %v14100_v29 }
 0xb8d   : > { %18848 = vmatpush3.bf16.msra.mxu1 %v22359_v3  ;;  %18821 = vmatprep.subr.bf16.mxu0 %v22360_v10  ;;  %v14281_v27 = vadd.f32 %v27384_v16, %v14171_v47  ;;  %v14283_v7 = vadd.f32 %v27388_v26, %v14171_v47  ;;  %v14173_v20 = vmax.f32 %v14093_v38, %v14101_v36 }
 0xb8e   : > { %18849 = vmatprep.subr.bf16.mxu1 %v22361_v13  ;;  %v14392_v56 = vmax.f32 %v14280_v62, 0.0  ;;  %v14394_v33 = vmax.f32 %v14282_v23, 0.0  ;;  %v14284_v60 = vadd.f32 %v27376_v1, %v14172_v0  ;;  %v14286_v39 = vadd.f32 %v27380_v55, %v14172_v0  ;;  %v10807_v59 = vpop.f32.mrb[44].mxu0 }
 0xb8f   : > { %v14393_v46 = vmax.f32 %v14281_v27, 0.0  ;;  %v14395_v19 = vmax.f32 %v14283_v7, 0.0  ;;  %v14285_v54 = vadd.f32 %v27384_v16, %v14173_v20  ;;  %v14287_v42 = vadd.f32 %v27388_v26, %v14173_v20  ;;  %v13937_v38 = vpop.f32.mrb[44].mxu1  ;;  %v10809_v8 = vpop.f32.mrb[45].mxu0 }
 0xb90   : > { %18822 = vmatpush3.bf16.msra.mxu0 %v22362_v12  ;;  %14504 = vst [vmem:[%s27399_s27 + $0x200] sm:$0xff] %v14392_v56  ;;  %14506 = vst [vmem:[%s27399_s27 + $0x210] sm:$0xff] %v14394_v33  ;;  %v14396_v2 = vmax.f32 %v14284_v60, 0.0  ;;  %v14398_v51 = vmax.f32 %v14286_v39, 0.0  ;;  %v14102_v32 = vmax.f32 %v10807_v59, %v13937_v38  ;;  %v13939_v40 = vpop.f32.mrb[45].mxu1  ;;  %v10811_v63 = vpop.f32.mrb[46].mxu0 }
 0xb91   : > { %18850 = vmatpush3.bf16.msra.mxu1 %v22363_v45  ;;  %18823 = vmatprep.subr.bf16.mxu0 %v22364_v43  ;;  %14505 = vst [vmem:[%s27399_s27 + $0x208] sm:$0xff] %v14393_v46  ;;  %14507 = vst [vmem:[%s27399_s27 + $0x218] sm:$0xff] %v14395_v19  ;;  %v14397_v49 = vmax.f32 %v14285_v54, 0.0  ;;  %v14399_v50 = vmax.f32 %v14287_v42, 0.0  ;;  %v14103_v35 = vmax.f32 %v10809_v8, %v13939_v40  ;;  %v13941_v48 = vpop.f32.mrb[46].mxu1  ;;  %v10813_v10 = vpop.f32.mrb[47].mxu0 }
 0xb92   : > { %18851 = vmatprep.subr.bf16.mxu1 %v22365_v9  ;;  %14508 = vst [vmem:[%s27399_s27 + $0x220] sm:$0xff] %v14396_v2  ;;  %14510 = vst [vmem:[%s27399_s27 + $0x230] sm:$0xff] %v14398_v51  ;;  %v14568_v41 = vpack.c.bf16 %v14396_v2, %v14392_v56  ;;  %v14570_v17 = vpack.c.bf16 %v14398_v51, %v14394_v33  ;;  %v14174_v11 = vmax.f32 %v14094_v30, %v14102_v32  ;;  %v13943_v52 = vpop.f32.mrb[47].mxu1  ;;  %v22374_v45 = vld [vmem:[%s28885_s5 + $0x508] sm:$0xff]   ;;  %v22376_v33 = vld [vmem:[%s28885_s5 + $0x550] sm:$0xff]  }
 0xb93   : > { %v14104_v3 = vmax.f32 %v10811_v63, %v13941_v48  ;;  %14509 = vst [vmem:[%s27399_s27 + $0x228] sm:$0xff] %v14397_v49  ;;  %14511 = vst [vmem:[%s27399_s27 + $0x238] sm:$0xff] %v14399_v50  ;;  %v14175_v37 = vmax.f32 %v14095_v15, %v14103_v35  ;;  %v14105_v13 = vmax.f32 %v10813_v10, %v13943_v52  ;;  %v22375_v56 = vld [vmem:[%s28885_s5 + $0x588] sm:$0xff]   ;;  %v22377_v51 = vld [vmem:[%s28885_s5 + $0x5d0] sm:$0xff]  }
 0xb94   : > { %18824 = vmatpush3.bf16.msra.mxu0 %v22366_v24  ;;  %v14569_v4 = vpack.c.bf16 %v14397_v49, %v14393_v46  ;;  %v14571_v29 = vpack.c.bf16 %v14399_v50, %v14395_v19  ;;  %v14288_v25 = vadd.f32 %v27376_v1, %v14174_v11  ;;  %v14290_v30 = vadd.f32 %v27380_v55, %v14174_v11  ;;  %v22380_v49 = vld [vmem:[%s28885_s5 + $0x558] sm:$0xff]   ;;  %v22384_v10 = vld [vmem:[%s28885_s5 + $0x560] sm:$0xff]  }
 0xb95   : > { %v14176_v34 = vmax.f32 %v14096_v31, %v14104_v3  ;;  %18852 = vmatpush3.bf16.msra.mxu1 %v22367_v21  ;;  %18865 = vmatprep.subr.bf16.mxu0 %v22368_v22  ;;  %v14289_v15 = vadd.f32 %v27384_v16, %v14175_v37  ;;  %v14291_v44 = vadd.f32 %v27388_v26, %v14175_v37  ;;  %v22378_v21 = vld [vmem:[%s28885_s5 + $0x510] sm:$0xff]   ;;  %v22381_v50 = vld [vmem:[%s28885_s5 + $0x5d8] sm:$0xff]  }
 0xb96   : > { %v14177_v47 = vmax.f32 %v14097_v28, %v14105_v13  ;;  %16831 = vmatprep.mubr.bf16.mxu0 %v14569_v4  ;;  %16880 = vmatprep.mubr.bf16.mxu1 %v14571_v29  ;;  %v14400_v14 = vmax.f32 %v14288_v25, 0.0  ;;  %v14402_v31 = vmax.f32 %v14290_v30, 0.0  ;;  %v28241_v28 = vpop.f32.mrb[48].mxu0  ;;  %v22379_v22 = vld [vmem:[%s28885_s5 + $0x590] sm:$0xff]   ;;  %v22382_v48 = vld [vmem:[%s28885_s5 + $0x518] sm:$0xff]   ;;  %v22385_v13 = vld [vmem:[%s28885_s5 + $0x5e0] sm:$0xff]  }
 0xb97   : > { %v14292_v36 = vadd.f32 %v27376_v1, %v14176_v34  ;;  %v14294_v12 = vadd.f32 %v27380_v55, %v14176_v34  ;;  %16832 = vmatmul.mubr.bf16.vlgmr.msra.gmra.mrb[112].mxu0 %v14568_v41  ;;  %18893 = vmatprep.subr.bf16.mxu1 %v22369_v18  ;;  %v14401_v62 = vmax.f32 %v14289_v15, 0.0  ;;  %v14403_v23 = vmax.f32 %v14291_v44, 0.0  ;;  %v28243_v0 = vpop.f32.mrb[48].mxu1  ;;  %v28252_v20 = vpop.f32.mrb[49].mxu0  ;;  %v22383_v3 = vld [vmem:[%s28885_s5 + $0x598] sm:$0xff]   ;;  %v22386_v30 = vld [vmem:[%s28885_s5 + $0x520] sm:$0xff]  }
 0xb98   : > { %v14293_v58 = vadd.f32 %v27384_v16, %v14177_v47  ;;  %v14295_v6 = vadd.f32 %v27388_v26, %v14177_v47  ;;  %16881 = vmatmul.mubr.bf16.vlgmr.msra.gmra.mrb[112].mxu1 %v14570_v17  ;;  %18866 = vmatpush3.bf16.msra.mxu0 %v22370_v61  ;;  %14512 = vst [vmem:[%s27399_s27 + $0x240] sm:$0xff] %v14400_v14  ;;  %14514 = vst [vmem:[%s27399_s27 + $0x250] sm:$0xff] %v14402_v31  ;;  %v28254_v9 = vpop.f32.mrb[49].mxu1  ;;  %v28266_v19 = vpop.f32.mrb[50].mxu0  ;;  %v22387_v34 = vld [vmem:[%s28885_s5 + $0x5a0] sm:$0xff]   ;;  %v22390_v47 = vld [vmem:[%s28885_s5 + $0x528] sm:$0xff]  }
 0xb99   : > { %v14404_v43 = vmax.f32 %v14292_v36, 0.0  ;;  %v14406_v27 = vmax.f32 %v14294_v12, 0.0  ;;  %v14106_v7 = vmax.f32 %v28241_v28, %v28243_v0  ;;  %18894 = vmatpush3.bf16.msra.mxu1 %v22371_v53  ;;  %18867 = vmatprep.subr.bf16.mxu0 %v22372_v5  ;;  %14513 = vst [vmem:[%s27399_s27 + $0x248] sm:$0xff] %v14401_v62  ;;  %14515 = vst [vmem:[%s27399_s27 + $0x258] sm:$0xff] %v14403_v23  ;;  %v28268_v54 = vpop.f32.mrb[50].mxu1  ;;  %v28274_v24 = vpop.f32.mrb[51].mxu0 }
 0xb9a   : > { %v14405_v60 = vmax.f32 %v14293_v58, 0.0  ;;  %v14407_v39 = vmax.f32 %v14295_v6, 0.0  ;;  %v14107_v46 = vmax.f32 %v28252_v20, %v28254_v9  ;;  %18895 = vmatprep.subr.bf16.mxu1 %v22373_v57  ;;  %v14108_v38 = vmax.f32 %v28266_v19, %v28268_v54  ;;  %v28276_v2 = vpop.f32.mrb[51].mxu1  ;;  %v22388_v53 = vld [vmem:[%s28885_s5 + $0x568] sm:$0xff]   ;;  %v22392_v12 = vld [vmem:[%s28885_s5 + $0x570] sm:$0xff]   ;;  %v22397_v19 = vld [vmem:[%s28885_s5 + $0x5f8] sm:$0xff]  }
 0xb9b   : > { %14516 = vst [vmem:[%s27399_s27 + $0x260] sm:$0xff] %v14404_v43  ;;  %14518 = vst [vmem:[%s27399_s27 + $0x270] sm:$0xff] %v14406_v27  ;;  %v14596_v42 = vpack.c.bf16 %v14404_v43, %v14400_v14  ;;  %v14598_v59 = vpack.c.bf16 %v14406_v27, %v14402_v31  ;;  %v14109_v32 = vmax.f32 %v28274_v24, %v28276_v2  ;;  %v22389_v5 = vld [vmem:[%s28885_s5 + $0x5e8] sm:$0xff]   ;;  %v22393_v6 = vld [vmem:[%s28885_s5 + $0x5f0] sm:$0xff]  }
 0xb9c   : > { %14517 = vst [vmem:[%s27399_s27 + $0x268] sm:$0xff] %v14405_v60  ;;  %14519 = vst [vmem:[%s27399_s27 + $0x278] sm:$0xff] %v14407_v39  ;;  %18868 = vmatpush3.bf16.msra.mxu0 %v22374_v45  ;;  %v14597_v8 = vpack.c.bf16 %v14405_v60, %v14401_v62  ;;  %v14599_v40 = vpack.c.bf16 %v14407_v39, %v14403_v23  ;;  %v22391_v36 = vld [vmem:[%s28885_s5 + $0x5a8] sm:$0xff]   ;;  %v22394_v39 = vld [vmem:[%s28885_s5 + $0x530] sm:$0xff]  }
 0xb9d   : > { %18896 = vmatpush3.bf16.msra.mxu1 %v22375_v56  ;;  %18869 = vmatprep.subr.bf16.mxu0 %v22376_v33  ;;  %v22395_v0 = vld [vmem:[%s28885_s5 + $0x5b0] sm:$0xff]  }
 0xb9e   : > { %16839 = vmatprep.mubr.bf16.mxu0 %v14597_v8  ;;  %16888 = vmatprep.mubr.bf16.mxu1 %v14599_v40  ;;  %v28297_v35 = vpop.f32.mrb[52].mxu0 }
 0xb9f   : > { %16840 = vmatmul.mubr.bf16.gmra.mrb[116].mxu0 %v14596_v42  ;;  %18897 = vmatprep.subr.bf16.mxu1 %v22377_v51  ;;  %v28299_v63 = vpop.f32.mrb[52].mxu1  ;;  %v28306_v17 = vpop.f32.mrb[53].mxu0 }
 0xba0   : > { %16889 = vmatmul.mubr.bf16.gmra.mrb[116].mxu1 %v14598_v59  ;;  %18870 = vmatpush3.bf16.msra.mxu0 %v22378_v21  ;;  %v14110_v41 = vmax.f32 %v28297_v35, %v28299_v63  ;;  %v28308_v11 = vpop.f32.mrb[53].mxu1  ;;  %v28318_v18 = vpop.f32.mrb[54].mxu0  ;;  %v22402_v35 = vld [vmem:[%s28885_s5 + $0x600] sm:$0xff]  }
 0xba1   : > { %18898 = vmatpush3.bf16.msra.mxu1 %v22379_v22  ;;  %18871 = vmatprep.subr.bf16.mxu0 %v22380_v49  ;;  %v14111_v52 = vmax.f32 %v28306_v17, %v28308_v11  ;;  %v28320_v37 = vpop.f32.mrb[54].mxu1  ;;  %v28327_v29 = vpop.f32.mrb[55].mxu0  ;;  %v22398_v49 = vld [vmem:[%s28885_s5 + $0x538] sm:$0xff]   ;;  %v22403_v17 = vld [vmem:[%s28885_s5 + $0x680] sm:$0xff]   ;;  %v22404_v11 = vld [vmem:[%s28885_s5 + $0x648] sm:$0xff]  }
 0xba2   : > { %18899 = vmatprep.subr.bf16.mxu1 %v22381_v50  ;;  %v14112_v4 = vmax.f32 %v28318_v18, %v28320_v37  ;;  %v28329_v61 = vpop.f32.mrb[55].mxu1  ;;  %v22405_v18 = vld [vmem:[%s28885_s5 + $0x6c8] sm:$0xff]  }
 0xba3   : > { %v14113_v25 = vmax.f32 %v28327_v29, %v28329_v61 }
 0xba4   : > { %18872 = vmatpush3.bf16.msra.mxu0 %v22382_v48 }
 0xba5   : > { %18900 = vmatpush3.bf16.msra.mxu1 %v22383_v3  ;;  %18873 = vmatprep.subr.bf16.mxu0 %v22384_v10 }
 0xba6   : > { %18901 = vmatprep.subr.bf16.mxu1 %v22385_v13  ;;  %v10837_v15 = vpop.f32.mrb[56].mxu0 }
 0xba7   : > { %v13967_v44 = vpop.f32.mrb[56].mxu1  ;;  %v10839_v14 = vpop.f32.mrb[57].mxu0 }
 0xba8   : > { %18874 = vmatpush3.bf16.msra.mxu0 %v22386_v30  ;;  %v14114_v57 = vmax.f32 %v10837_v15, %v13967_v44  ;;  %v13969_v31 = vpop.f32.mrb[57].mxu1  ;;  %v10841_v23 = vpop.f32.mrb[58].mxu0  ;;  %v22399_v30 = vld [vmem:[%s28885_s5 + $0x5b8] sm:$0xff]  }
 0xba9   : > { %18902 = vmatpush3.bf16.msra.mxu1 %v22387_v34  ;;  %18875 = vmatprep.subr.bf16.mxu0 %v22388_v53  ;;  %v14115_v62 = vmax.f32 %v10839_v14, %v13969_v31  ;;  %v13971_v58 = vpop.f32.mrb[58].mxu1  ;;  %v10843_v27 = vpop.f32.mrb[59].mxu0  ;;  %v22400_v34 = vld [vmem:[%s28885_s5 + $0x640] sm:$0xff]  }
 0xbaa   : > { %18903 = vmatprep.subr.bf16.mxu1 %v22389_v5  ;;  %v14178_v45 = vmax.f32 %v14106_v7, %v14114_v57  ;;  %v14116_v43 = vmax.f32 %v10841_v23, %v13971_v58  ;;  %v13973_v56 = vpop.f32.mrb[59].mxu1  ;;  %v22396_v7 = vld [vmem:[%s28885_s5 + $0x578] sm:$0xff]   ;;  %v22401_v23 = vld [vmem:[%s28885_s5 + $0x6c0] sm:$0xff]  }
 0xbab   : > { %v14179_v33 = vmax.f32 %v14107_v46, %v14115_v62  ;;  %v14117_v60 = vmax.f32 %v10843_v27, %v13973_v56 }
 0xbac   : > { %18876 = vmatpush3.bf16.msra.mxu0 %v22390_v47  ;;  %v14296_v42 = vadd.f32 %v27376_v1, %v14178_v45  ;;  %v14298_v59 = vadd.f32 %v27380_v55, %v14178_v45  ;;  %v14180_v28 = vmax.f32 %v14108_v38, %v14116_v43 }
 0xbad   : > { %18904 = vmatpush3.bf16.msra.mxu1 %v22391_v36  ;;  %18877 = vmatprep.subr.bf16.mxu0 %v22392_v12  ;;  %v14297_v20 = vadd.f32 %v27384_v16, %v14179_v33  ;;  %v14299_v9 = vadd.f32 %v27388_v26, %v14179_v33  ;;  %v14181_v46 = vmax.f32 %v14109_v32, %v14117_v60 }
 0xbae   : > { %18905 = vmatprep.subr.bf16.mxu1 %v22393_v6  ;;  %v14408_v54 = vmax.f32 %v14296_v42, 0.0  ;;  %v14410_v38 = vmax.f32 %v14298_v59, 0.0  ;;  %v14300_v51 = vadd.f32 %v27376_v1, %v14180_v28  ;;  %v14302_v8 = vadd.f32 %v27380_v55, %v14180_v28  ;;  %v10847_v2 = vpop.f32.mrb[60].mxu0 }
 0xbaf   : > { %v14409_v40 = vmax.f32 %v14297_v20, 0.0  ;;  %v14411_v21 = vmax.f32 %v14299_v9, 0.0  ;;  %v14301_v22 = vadd.f32 %v27384_v16, %v14181_v46  ;;  %v14303_v24 = vadd.f32 %v27388_v26, %v14181_v46  ;;  %v13977_v32 = vpop.f32.mrb[60].mxu1  ;;  %v10849_v10 = vpop.f32.mrb[61].mxu0 }
 0xbb0   : > { %18878 = vmatpush3.bf16.msra.mxu0 %v22394_v39  ;;  %14520 = vst [vmem:[%s27399_s27 + $0x280] sm:$0xff] %v14408_v54  ;;  %14522 = vst [vmem:[%s27399_s27 + $0x290] sm:$0xff] %v14410_v38  ;;  %v14412_v50 = vmax.f32 %v14300_v51, 0.0  ;;  %v14414_v48 = vmax.f32 %v14302_v8, 0.0  ;;  %v14118_v3 = vmax.f32 %v10847_v2, %v13977_v32  ;;  %v13979_v13 = vpop.f32.mrb[61].mxu1  ;;  %v10851_v44 = vpop.f32.mrb[62].mxu0 }
 0xbb1   : > { %18906 = vmatpush3.bf16.msra.mxu1 %v22395_v0  ;;  %18879 = vmatprep.subr.bf16.mxu0 %v22396_v7  ;;  %14521 = vst [vmem:[%s27399_s27 + $0x288] sm:$0xff] %v14409_v40  ;;  %14523 = vst [vmem:[%s27399_s27 + $0x298] sm:$0xff] %v14411_v21  ;;  %v14413_v53 = vmax.f32 %v14301_v22, 0.0  ;;  %v14415_v5 = vmax.f32 %v14303_v24, 0.0  ;;  %v14119_v15 = vmax.f32 %v10849_v10, %v13979_v13  ;;  %v13981_v47 = vpop.f32.mrb[62].mxu1  ;;  %v10853_v12 = vpop.f32.mrb[63].mxu0 }
 0xbb2   : > { %18907 = vmatprep.subr.bf16.mxu1 %v22397_v19  ;;  %14524 = vst [vmem:[%s27399_s27 + $0x2a0] sm:$0xff] %v14412_v50  ;;  %14526 = vst [vmem:[%s27399_s27 + $0x2b0] sm:$0xff] %v14414_v48  ;;  %v14572_v57 = vpack.c.bf16 %v14412_v50, %v14408_v54  ;;  %v14574_v14 = vpack.c.bf16 %v14414_v48, %v14410_v38  ;;  %v14182_v31 = vmax.f32 %v14110_v41, %v14118_v3  ;;  %v13983_v62 = vpop.f32.mrb[63].mxu1  ;;  %v22406_v0 = vld [vmem:[%s28885_s5 + $0x608] sm:$0xff]   ;;  %v22408_v38 = vld [vmem:[%s28885_s5 + $0x650] sm:$0xff]  }
 0xbb3   : > { %v14120_v36 = vmax.f32 %v10851_v44, %v13981_v47  ;;  %14525 = vst [vmem:[%s27399_s27 + $0x2a8] sm:$0xff] %v14413_v53  ;;  %14527 = vst [vmem:[%s27399_s27 + $0x2b8] sm:$0xff] %v14415_v5  ;;  %v14183_v58 = vmax.f32 %v14111_v52, %v14119_v15  ;;  %v14121_v6 = vmax.f32 %v10853_v12, %v13983_v62  ;;  %v22407_v54 = vld [vmem:[%s28885_s5 + $0x688] sm:$0xff]   ;;  %v22409_v48 = vld [vmem:[%s28885_s5 + $0x6d0] sm:$0xff]  }
 0xbb4   : > { %18880 = vmatpush3.bf16.msra.mxu0 %v22398_v49  ;;  %v14573_v45 = vpack.c.bf16 %v14413_v53, %v14409_v40  ;;  %v14575_v43 = vpack.c.bf16 %v14415_v5, %v14411_v21  ;;  %v14304_v63 = vadd.f32 %v27376_v1, %v14182_v31  ;;  %v14306_v41 = vadd.f32 %v27380_v55, %v14182_v31  ;;  %v22412_v53 = vld [vmem:[%s28885_s5 + $0x658] sm:$0xff]   ;;  %v22416_v12 = vld [vmem:[%s28885_s5 + $0x660] sm:$0xff]  }
 0xbb5   : > { %v14184_v27 = vmax.f32 %v14112_v4, %v14120_v36  ;;  %18908 = vmatpush3.bf16.msra.mxu1 %v22399_v30  ;;  %18921 = vmatprep.subr.bf16.mxu0 %v22400_v34  ;;  %v14305_v52 = vadd.f32 %v27384_v16, %v14183_v58  ;;  %v14307_v56 = vadd.f32 %v27388_v26, %v14183_v58  ;;  %v22410_v30 = vld [vmem:[%s28885_s5 + $0x610] sm:$0xff]   ;;  %v22413_v5 = vld [vmem:[%s28885_s5 + $0x6d8] sm:$0xff]  }
 0xbb6   : > { %v14185_v33 = vmax.f32 %v14113_v25, %v14121_v6  ;;  %16929 = vmatprep.mubr.bf16.mxu0 %v14573_v45  ;;  %16978 = vmatprep.mubr.bf16.mxu1 %v14575_v43  ;;  %v14416_v37 = vmax.f32 %v14304_v63, 0.0  ;;  %v14418_v4 = vmax.f32 %v14306_v41, 0.0  ;;  %v28441_v25 = vpop.f32.mrb[64].mxu0  ;;  %v22411_v34 = vld [vmem:[%s28885_s5 + $0x690] sm:$0xff]   ;;  %v22414_v47 = vld [vmem:[%s28885_s5 + $0x618] sm:$0xff]   ;;  %v22417_v6 = vld [vmem:[%s28885_s5 + $0x6e0] sm:$0xff]  }
 0xbb7   : > { %v14308_v60 = vadd.f32 %v27376_v1, %v14184_v27  ;;  %v14310_v39 = vadd.f32 %v27380_v55, %v14184_v27  ;;  %16930 = vmatmul.mubr.bf16.vlgmr.msra.gmra.mrb[120].mxu0 %v14572_v57  ;;  %18949 = vmatprep.subr.bf16.mxu1 %v22401_v23  ;;  %v14417_v42 = vmax.f32 %v14305_v52, 0.0  ;;  %v14419_v59 = vmax.f32 %v14307_v56, 0.0  ;;  %v28443_v28 = vpop.f32.mrb[64].mxu1  ;;  %v28452_v46 = vpop.f32.mrb[65].mxu0  ;;  %v22415_v36 = vld [vmem:[%s28885_s5 + $0x698] sm:$0xff]   ;;  %v22418_v41 = vld [vmem:[%s28885_s5 + $0x620] sm:$0xff]  }
 0xbb8   : > { %v14309_v29 = vadd.f32 %v27384_v16, %v14185_v33  ;;  %v14311_v61 = vadd.f32 %v27388_v26, %v14185_v33  ;;  %16979 = vmatmul.mubr.bf16.vlgmr.msra.gmra.mrb[120].mxu1 %v14574_v14  ;;  %18922 = vmatpush3.bf16.msra.mxu0 %v22402_v35  ;;  %14528 = vst [vmem:[%s27399_s27 + $0x2c0] sm:$0xff] %v14416_v37  ;;  %14530 = vst [vmem:[%s27399_s27 + $0x2d0] sm:$0xff] %v14418_v4  ;;  %v28454_v19 = vpop.f32.mrb[65].mxu1  ;;  %v28466_v21 = vpop.f32.mrb[66].mxu0  ;;  %v22419_v27 = vld [vmem:[%s28885_s5 + $0x6a0] sm:$0xff]   ;;  %v22422_v33 = vld [vmem:[%s28885_s5 + $0x628] sm:$0xff]  }
 0xbb9   : > { %v14420_v7 = vmax.f32 %v14308_v60, 0.0  ;;  %v14422_v20 = vmax.f32 %v14310_v39, 0.0  ;;  %v14122_v9 = vmax.f32 %v28441_v25, %v28443_v28  ;;  %18950 = vmatpush3.bf16.msra.mxu1 %v22403_v17  ;;  %18923 = vmatprep.subr.bf16.mxu0 %v22404_v11  ;;  %14529 = vst [vmem:[%s27399_s27 + $0x2c8] sm:$0xff] %v14417_v42  ;;  %14531 = vst [vmem:[%s27399_s27 + $0x2d8] sm:$0xff] %v14419_v59  ;;  %v28468_v22 = vpop.f32.mrb[66].mxu1  ;;  %v28474_v49 = vpop.f32.mrb[67].mxu0 }
 0xbba   : > { %v14421_v51 = vmax.f32 %v14309_v29, 0.0  ;;  %v14423_v8 = vmax.f32 %v14311_v61, 0.0  ;;  %v14123_v40 = vmax.f32 %v28452_v46, %v28454_v19  ;;  %18951 = vmatprep.subr.bf16.mxu1 %v22405_v18  ;;  %v14124_v32 = vmax.f32 %v28466_v21, %v28468_v22  ;;  %v28476_v50 = vpop.f32.mrb[67].mxu1  ;;  %v22420_v17 = vld [vmem:[%s28885_s5 + $0x668] sm:$0xff]   ;;  %v22424_v39 = vld [vmem:[%s28885_s5 + $0x670] sm:$0xff]   ;;  %v22429_v21 = vld [vmem:[%s28885_s5 + $0x6f8] sm:$0xff]  }
 0xbbb   : > { %14532 = vst [vmem:[%s27399_s27 + $0x2e0] sm:$0xff] %v14420_v7  ;;  %14534 = vst [vmem:[%s27399_s27 + $0x2f0] sm:$0xff] %v14422_v20  ;;  %v14600_v24 = vpack.c.bf16 %v14420_v7, %v14416_v37  ;;  %v14602_v2 = vpack.c.bf16 %v14422_v20, %v14418_v4  ;;  %v14125_v3 = vmax.f32 %v28474_v49, %v28476_v50  ;;  %v22421_v11 = vld [vmem:[%s28885_s5 + $0x6e8] sm:$0xff]   ;;  %v22425_v61 = vld [vmem:[%s28885_s5 + $0x6f0] sm:$0xff]  }
 0xbbc   : > { %14533 = vst [vmem:[%s27399_s27 + $0x2e8] sm:$0xff] %v14421_v51  ;;  %14535 = vst [vmem:[%s27399_s27 + $0x2f8] sm:$0xff] %v14423_v8  ;;  %18924 = vmatpush3.bf16.msra.mxu0 %v22406_v0  ;;  %v14601_v10 = vpack.c.bf16 %v14421_v51, %v14417_v42  ;;  %v14603_v13 = vpack.c.bf16 %v14423_v8, %v14419_v59  ;;  %v22423_v60 = vld [vmem:[%s28885_s5 + $0x6a8] sm:$0xff]   ;;  %v22426_v8 = vld [vmem:[%s28885_s5 + $0x630] sm:$0xff]  }
 0xbbd   : > { %18952 = vmatpush3.bf16.msra.mxu1 %v22407_v54  ;;  %18925 = vmatprep.subr.bf16.mxu0 %v22408_v38  ;;  %v22427_v28 = vld [vmem:[%s28885_s5 + $0x6b0] sm:$0xff]  }
 0xbbe   : > { %16937 = vmatprep.mubr.bf16.mxu0 %v14601_v10  ;;  %16986 = vmatprep.mubr.bf16.mxu1 %v14603_v13  ;;  %v28497_v15 = vpop.f32.mrb[68].mxu0 }
 0xbbf   : > { %16938 = vmatmul.mubr.bf16.gmra.mrb[124].mxu0 %v14600_v24  ;;  %18953 = vmatprep.subr.bf16.mxu1 %v22409_v48  ;;  %v28499_v44 = vpop.f32.mrb[68].mxu1  ;;  %v28506_v14 = vpop.f32.mrb[69].mxu0 }
 0xbc0   : > { %16987 = vmatmul.mubr.bf16.gmra.mrb[124].mxu1 %v14602_v2  ;;  %18926 = vmatpush3.bf16.msra.mxu0 %v22410_v30  ;;  %v14126_v57 = vmax.f32 %v28497_v15, %v28499_v44  ;;  %v28508_v31 = vpop.f32.mrb[69].mxu1  ;;  %v28518_v23 = vpop.f32.mrb[70].mxu0 }
 0xbc1   : > { %18954 = vmatpush3.bf16.msra.mxu1 %v22411_v34  ;;  %18927 = vmatprep.subr.bf16.mxu0 %v22412_v53  ;;  %v14127_v62 = vmax.f32 %v28506_v14, %v28508_v31  ;;  %v28520_v58 = vpop.f32.mrb[70].mxu1  ;;  %v28527_v43 = vpop.f32.mrb[71].mxu0  ;;  %v22430_v53 = vld [vmem:[%s28885_s5 + $0x638] sm:$0xff]  }
 0xbc2   : > { %18955 = vmatprep.subr.bf16.mxu1 %v22413_v5  ;;  %v14128_v45 = vmax.f32 %v28518_v23, %v28520_v58  ;;  %v28529_v35 = vpop.f32.mrb[71].mxu1 }
 0xbc3   : > { %v14129_v63 = vmax.f32 %v28527_v43, %v28529_v35 }
 0xbc4   : > { %18928 = vmatpush3.bf16.msra.mxu0 %v22414_v47 }
 0xbc5   : > { %18956 = vmatpush3.bf16.msra.mxu1 %v22415_v36  ;;  %18929 = vmatprep.subr.bf16.mxu0 %v22416_v12 }
 0xbc6   : > { %18957 = vmatprep.subr.bf16.mxu1 %v22417_v6  ;;  %v10877_v52 = vpop.f32.mrb[72].mxu0 }
 0xbc7   : > { %v14007_v56 = vpop.f32.mrb[72].mxu1  ;;  %v10879_v37 = vpop.f32.mrb[73].mxu0 }
 0xbc8   : > { %18930 = vmatpush3.bf16.msra.mxu0 %v22418_v41  ;;  %v14130_v18 = vmax.f32 %v10877_v52, %v14007_v56  ;;  %v14009_v4 = vpop.f32.mrb[73].mxu1  ;;  %v10881_v59 = vpop.f32.mrb[74].mxu0  ;;  %v22431_v41 = vld [vmem:[%s28885_s5 + $0x6b8] sm:$0xff]  }
 0xbc9   : > { %18958 = vmatpush3.bf16.msra.mxu1 %v22419_v27  ;;  %18931 = vmatprep.subr.bf16.mxu0 %v22420_v17  ;;  %v14131_v42 = vmax.f32 %v10879_v37, %v14009_v4  ;;  %v14011_v29 = vpop.f32.mrb[74].mxu1  ;;  %v10883_v20 = vpop.f32.mrb[75].mxu0 }
 0xbca   : > { %18959 = vmatprep.subr.bf16.mxu1 %v22421_v11  ;;  %v14186_v0 = vmax.f32 %v14122_v9, %v14130_v18  ;;  %v14132_v7 = vmax.f32 %v10881_v59, %v14011_v29  ;;  %v14013_v54 = vpop.f32.mrb[75].mxu1  ;;  %v22428_v9 = vld [vmem:[%s28885_s5 + $0x678] sm:$0xff]  }
 0xbcb   : > { %v14187_v38 = vmax.f32 %v14123_v40, %v14131_v42  ;;  %v14133_v51 = vmax.f32 %v10883_v20, %v14013_v54 }
 0xbcc   : > { %18932 = vmatpush3.bf16.msra.mxu0 %v22422_v33  ;;  %v14312_v24 = vadd.f32 %v27376_v1, %v14186_v0  ;;  %v14314_v2 = vadd.f32 %v27380_v55, %v14186_v0  ;;  %v14188_v25 = vmax.f32 %v14124_v32, %v14132_v7 }
 0xbcd   : > { %18960 = vmatpush3.bf16.msra.mxu1 %v22423_v60  ;;  %18933 = vmatprep.subr.bf16.mxu0 %v22424_v39  ;;  %v14313_v46 = vadd.f32 %v27384_v16, %v14187_v38  ;;  %v14315_v19 = vadd.f32 %v27388_v26, %v14187_v38  ;;  %v14189_v40 = vmax.f32 %v14125_v3, %v14133_v51 }
 0xbce   : > { %18961 = vmatprep.subr.bf16.mxu1 %v22425_v61  ;;  %v14424_v22 = vmax.f32 %v14312_v24, 0.0  ;;  %v14426_v32 = vmax.f32 %v14314_v2, 0.0  ;;  %v14316_v48 = vadd.f32 %v27376_v1, %v14188_v25  ;;  %v14318_v10 = vadd.f32 %v27380_v55, %v14188_v25  ;;  %v10887_v50 = vpop.f32.mrb[76].mxu0  ;;  %v18351_v2 = vld [vmem:[%s28886_s6] ss:$0 sm:$0xff] }
 0xbcf   : > { %v14425_v13 = vmax.f32 %v14313_v46, 0.0  ;;  %v14427_v30 = vmax.f32 %v14315_v19, 0.0  ;;  %v14317_v34 = vadd.f32 %v27384_v16, %v14189_v40  ;;  %v14319_v49 = vadd.f32 %v27388_v26, %v14189_v40  ;;  %v14017_v3 = vpop.f32.mrb[76].mxu1  ;;  %v10889_v12 = vpop.f32.mrb[77].mxu0 }
 0xbd0   : > { %18934 = vmatpush3.bf16.msra.mxu0 %v22426_v8  ;;  %14536 = vst [vmem:[%s27399_s27 + $0x300] sm:$0xff] %v14424_v22  ;;  %14538 = vst [vmem:[%s27399_s27 + $0x310] sm:$0xff] %v14426_v32  ;;  %v14428_v5 = vmax.f32 %v14316_v48, 0.0  ;;  %v14430_v47 = vmax.f32 %v14318_v10, 0.0  ;;  %v14134_v36 = vmax.f32 %v10887_v50, %v14017_v3  ;;  %v14019_v6 = vpop.f32.mrb[77].mxu1  ;;  %v10891_v52 = vpop.f32.mrb[78].mxu0 }
 0xbd1   : > { %18962 = vmatpush3.bf16.msra.mxu1 %v22427_v28  ;;  %18935 = vmatprep.subr.bf16.mxu0 %v22428_v9  ;;  %14537 = vst [vmem:[%s27399_s27 + $0x308] sm:$0xff] %v14425_v13  ;;  %14539 = vst [vmem:[%s27399_s27 + $0x318] sm:$0xff] %v14427_v30  ;;  %v14429_v27 = vmax.f32 %v14317_v34, 0.0  ;;  %v14431_v17 = vmax.f32 %v14319_v49, 0.0  ;;  %v14135_v11 = vmax.f32 %v10889_v12, %v14019_v6  ;;  %v14021_v56 = vpop.f32.mrb[78].mxu1  ;;  %v10893_v60 = vpop.f32.mrb[79].mxu0 }
 0xbd2   : > { %18963 = vmatprep.subr.bf16.mxu1 %v22429_v21  ;;  %14540 = vst [vmem:[%s27399_s27 + $0x320] sm:$0xff] %v14428_v5  ;;  %14542 = vst [vmem:[%s27399_s27 + $0x330] sm:$0xff] %v14430_v47  ;;  %v14576_v33 = vpack.c.bf16 %v14428_v5, %v14424_v22  ;;  %v14578_v18 = vpack.c.bf16 %v14430_v47, %v14426_v32  ;;  %v14190_v37 = vmax.f32 %v14126_v57, %v14134_v36  ;;  %v14023_v39 = vpop.f32.mrb[79].mxu1 }
 0xbd3   : > { %v14136_v4 = vmax.f32 %v10891_v52, %v14021_v56  ;;  %14541 = vst [vmem:[%s27399_s27 + $0x328] sm:$0xff] %v14429_v27  ;;  %14543 = vst [vmem:[%s27399_s27 + $0x338] sm:$0xff] %v14431_v17  ;;  %v14191_v42 = vmax.f32 %v14127_v62, %v14135_v11  ;;  %v14137_v59 = vmax.f32 %v10893_v60, %v14023_v39 }
 0xbd4   : > { %18936 = vmatpush3.bf16.msra.mxu0 %v22430_v53  ;;  %v14577_v29 = vpack.c.bf16 %v14429_v27, %v14425_v13  ;;  %v14579_v61 = vpack.c.bf16 %v14431_v17, %v14427_v30  ;;  %v14320_v0 = vadd.f32 %v27376_v1, %v14190_v37  ;;  %v14322_v7 = vadd.f32 %v27380_v55, %v14190_v37 }
 0xbd5   : > { %v14192_v15 = vmax.f32 %v14128_v45, %v14136_v4  ;;  %18964 = vmatpush3.bf16.msra.mxu1 %v22431_v41  ;;  %v14321_v44 = vadd.f32 %v27384_v16, %v14191_v42  ;;  %v14323_v57 = vadd.f32 %v27388_v26, %v14191_v42  ;;  %v14193_v14 = vmax.f32 %v14129_v63, %v14137_v59 }
 0xbd6   : > { %17027 = vmatprep.mubr.bf16.mxu0 %v14577_v29  ;;  %17076 = vmatprep.mubr.bf16.mxu1 %v14579_v61  ;;  %v14432_v31 = vmax.f32 %v14320_v0, 0.0  ;;  %v14434_v62 = vmax.f32 %v14322_v7, 0.0 }
 0xbd7   : > { %v14324_v23 = vadd.f32 %v27376_v1, %v14192_v15  ;;  %v14326_v58 = vadd.f32 %v27380_v55, %v14192_v15  ;;  %17028 = vmatmul.mubr.bf16.vlgmr.msra.gmra.mrb[128].mxu0 %v14576_v33  ;;  %v14433_v45 = vmax.f32 %v14321_v44, 0.0  ;;  %v14435_v20 = vmax.f32 %v14323_v57, 0.0 }
 0xbd8   : > { %v14325_v54 = vadd.f32 %v27384_v16, %v14193_v14  ;;  %v14327_v43 = vadd.f32 %v27388_v26, %v14193_v14  ;;  %17077 = vmatmul.mubr.bf16.vlgmr.msra.gmra.mrb[128].mxu1 %v14578_v18  ;;  %14544 = vst [vmem:[%s27399_s27 + $0x340] sm:$0xff] %v14432_v31  ;;  %14546 = vst [vmem:[%s27399_s27 + $0x350] sm:$0xff] %v14434_v62 }
 0xbd9   : > { %v14436_v35 = vmax.f32 %v14324_v23, 0.0  ;;  %v14438_v63 = vmax.f32 %v14326_v58, 0.0  ;;  %14545 = vst [vmem:[%s27399_s27 + $0x348] sm:$0xff] %v14433_v45  ;;  %14547 = vst [vmem:[%s27399_s27 + $0x358] sm:$0xff] %v14435_v20 }
 0xbda   : > { %v14437_v1 = vmax.f32 %v14325_v54, 0.0  ;;  %v14439_v38 = vmax.f32 %v14327_v43, 0.0 }
 0xbdb   : > { %14548 = vst [vmem:[%s27399_s27 + $0x360] sm:$0xff] %v14436_v35  ;;  %14550 = vst [vmem:[%s27399_s27 + $0x370] sm:$0xff] %v14438_v63  ;;  %v14604_v55 = vpack.c.bf16 %v14436_v35, %v14432_v31  ;;  %v14606_v51 = vpack.c.bf16 %v14438_v63, %v14434_v62 }
 0xbdc   : > { %14549 = vst [vmem:[%s27399_s27 + $0x368] sm:$0xff] %v14437_v1  ;;  %14551 = vst [vmem:[%s27399_s27 + $0x378] sm:$0xff] %v14439_v38  ;;  %v14605_v8 = vpack.c.bf16 %v14437_v1, %v14433_v45  ;;  %v14607_v16 = vpack.c.bf16 %v14439_v38, %v14435_v20 }
 0xbde   : > { %17035 = vmatprep.mubr.bf16.mxu0 %v14605_v8  ;;  %17084 = vmatprep.mubr.bf16.mxu1 %v14607_v16 }
 0xbdf   : > { %17036 = vmatmul.mubr.bf16.gmra.mrb[132].mxu0 %v14604_v55 }
 0xbe0   : > { %17085 = vmatmul.mubr.bf16.gmra.mrb[132].mxu1 %v14606_v51 }
 0xbea   : > { %v18601_v26 = vpop.f32.mrb[80].mxu0  ;;  %v18629_v24 = vpop.f32.mrb[80].mxu1 }
 0xbeb   : > { %v18602_v25 = vpop.f32.mrb[81].mxu0  ;;  %v18630_v28 = vpop.f32.mrb[81].mxu1 }
 0xbec   : > { %v18603_v9 = vadd.f32 %v18602_v25, %v18601_v26  ;;  %v18631_v46 = vadd.f32 %v18630_v28, %v18629_v24  ;;  %v18604_v19 = vpop.f32.mrb[82].mxu0  ;;  %v18632_v40 = vpop.f32.mrb[82].mxu1 }
 0xbed   : > { %v18605_v21 = vpop.f32.mrb[83].mxu0  ;;  %v18633_v22 = vpop.f32.mrb[83].mxu1 }
 0xbee   : > { %v16442_v32 = vadd.f32 %v18603_v9, %v18351_v2  ;;  %v18606_v48 = vadd.f32 %v18605_v21, %v18604_v19  ;;  %v18634_v10 = vadd.f32 %v18633_v22, %v18632_v40 }
 0xbf0   : > { %v16491_v13 = vadd.f32 %v18631_v46, %v16442_v32  ;;  %v16445_v30 = vadd.f32 %v18606_v48, %v18351_v2 }
 0xbf2   : > { %v16494_v34 = vadd.f32 %v18634_v10, %v16445_v30  ;;  %v18607_v49 = vpop.f32.mrb[84].mxu0  ;;  %v18635_v50 = vpop.f32.mrb[84].mxu1 }
 0xbf3   : > { %v18608_v3 = vpop.f32.mrb[85].mxu0  ;;  %v18636_v53 = vpop.f32.mrb[85].mxu1 }
 0xbf4   : > { %v18609_v5 = vadd.f32 %v18608_v3, %v18607_v49  ;;  %v18637_v47 = vadd.f32 %v18636_v53, %v18635_v50  ;;  %v18610_v36 = vpop.f32.mrb[86].mxu0  ;;  %v18638_v12 = vpop.f32.mrb[86].mxu1 }
 0xbf5   : > { %v18611_v6 = vpop.f32.mrb[87].mxu0  ;;  %v18639_v41 = vpop.f32.mrb[87].mxu1 }
 0xbf6   : > { %v16450_v27 = vadd.f32 %v18609_v5, %v18351_v2  ;;  %v18612_v17 = vadd.f32 %v18611_v6, %v18610_v36  ;;  %v18640_v11 = vadd.f32 %v18639_v41, %v18638_v12 }
 0xbf8   : > { %v16499_v52 = vadd.f32 %v18637_v47, %v16450_v27  ;;  %v16453_v56 = vadd.f32 %v18612_v17, %v18351_v2 }
 0xbfa   : > { %v16502_v33 = vadd.f32 %v18640_v11, %v16453_v56 }
 0xc0a   : > { %v18657_v18 = vpop.f32.mrb[88].mxu0 }
 0xc0b   : > { %v18685_v37 = vpop.f32.mrb[88].mxu1  ;;  %v18658_v4 = vpop.f32.mrb[89].mxu0 }
 0xc0c   : > { %v18659_v60 = vadd.f32 %v18658_v4, %v18657_v18  ;;  %v18686_v39 = vpop.f32.mrb[89].mxu1  ;;  %v18660_v42 = vpop.f32.mrb[90].mxu0 }
 0xc0d   : > { %v18687_v59 = vadd.f32 %v18686_v39, %v18685_v37  ;;  %v18688_v29 = vpop.f32.mrb[90].mxu1  ;;  %v18661_v61 = vpop.f32.mrb[91].mxu0 }
 0xc0e   : > { %v16540_v0 = vadd.f32 %v18659_v60, %v16491_v13  ;;  %v18662_v7 = vadd.f32 %v18661_v61, %v18660_v42  ;;  %v18689_v15 = vpop.f32.mrb[91].mxu1 }
 0xc0f   : > { %v18690_v44 = vadd.f32 %v18689_v15, %v18688_v29 }
 0xc10   : > { %v16589_v57 = vadd.f32 %v18687_v59, %v16540_v0  ;;  %v16543_v14 = vadd.f32 %v18662_v7, %v16494_v34 }
 0xc12   : > { %v16592_v31 = vadd.f32 %v18690_v44, %v16543_v14  ;;  %v18663_v62 = vpop.f32.mrb[92].mxu0 }
 0xc13   : > { %v18691_v23 = vpop.f32.mrb[92].mxu1  ;;  %v18664_v58 = vpop.f32.mrb[93].mxu0 }
 0xc14   : > { %v18665_v45 = vadd.f32 %v18664_v58, %v18663_v62  ;;  %v18692_v20 = vpop.f32.mrb[93].mxu1  ;;  %v18666_v54 = vpop.f32.mrb[94].mxu0 }
 0xc15   : > { %v18693_v43 = vadd.f32 %v18692_v20, %v18691_v23  ;;  %v18694_v35 = vpop.f32.mrb[94].mxu1  ;;  %v18667_v63 = vpop.f32.mrb[95].mxu0 }
 0xc16   : > { %v16548_v1 = vadd.f32 %v18665_v45, %v16499_v52  ;;  %v18668_v38 = vadd.f32 %v18667_v63, %v18666_v54  ;;  %v18695_v55 = vpop.f32.mrb[95].mxu1 }
 0xc17   : > { %v18696_v51 = vadd.f32 %v18695_v55, %v18694_v35 }
 0xc18   : > { %v16597_v8 = vadd.f32 %v18693_v43, %v16548_v1  ;;  %v16551_v16 = vadd.f32 %v18668_v38, %v16502_v33 }
 0xc1a   : > { %v16600_v26 = vadd.f32 %v18696_v51, %v16551_v16 }
 0xc2a   : > { %v18713_v24 = vpop.f32.mrb[96].mxu0 }
 0xc2b   : > { %v18741_v2 = vpop.f32.mrb[96].mxu1  ;;  %v18714_v25 = vpop.f32.mrb[97].mxu0 }
 0xc2c   : > { %v18715_v28 = vadd.f32 %v18714_v25, %v18713_v24  ;;  %v18742_v9 = vpop.f32.mrb[97].mxu1  ;;  %v18716_v46 = vpop.f32.mrb[98].mxu0 }
 0xc2d   : > { %v18743_v19 = vadd.f32 %v18742_v9, %v18741_v2  ;;  %v18744_v40 = vpop.f32.mrb[98].mxu1  ;;  %v18717_v21 = vpop.f32.mrb[99].mxu0 }
 0xc2e   : > { %v16638_v22 = vadd.f32 %v18715_v28, %v16589_v57  ;;  %v18718_v32 = vadd.f32 %v18717_v21, %v18716_v46  ;;  %v18745_v48 = vpop.f32.mrb[99].mxu1 }
 0xc2f   : > { %v18746_v10 = vadd.f32 %v18745_v48, %v18744_v40 }
 0xc30   : > { %v16687_v13 = vadd.f32 %v18743_v19, %v16638_v22  ;;  %v16641_v30 = vadd.f32 %v18718_v32, %v16592_v31 }
 0xc32   : > { %v16690_v34 = vadd.f32 %v18746_v10, %v16641_v30  ;;  %v18719_v49 = vpop.f32.mrb[100].mxu0 }
 0xc33   : > { %v18747_v50 = vpop.f32.mrb[100].mxu1  ;;  %v18720_v3 = vpop.f32.mrb[101].mxu0 }
 0xc34   : > { %v18721_v53 = vadd.f32 %v18720_v3, %v18719_v49  ;;  %v18748_v5 = vpop.f32.mrb[101].mxu1  ;;  %v18722_v47 = vpop.f32.mrb[102].mxu0 }
 0xc35   : > { %v18749_v36 = vadd.f32 %v18748_v5, %v18747_v50  ;;  %v18750_v12 = vpop.f32.mrb[102].mxu1  ;;  %v18723_v6 = vpop.f32.mrb[103].mxu0 }
 0xc36   : > { %v16646_v41 = vadd.f32 %v18721_v53, %v16597_v8  ;;  %v18724_v27 = vadd.f32 %v18723_v6, %v18722_v47  ;;  %v18751_v17 = vpop.f32.mrb[103].mxu1 }
 0xc37   : > { %v18752_v11 = vadd.f32 %v18751_v17, %v18750_v12 }
 0xc38   : > { %v16695_v52 = vadd.f32 %v18749_v36, %v16646_v41  ;;  %v16649_v56 = vadd.f32 %v18724_v27, %v16600_v26 }
 0xc3a   : > { %v16698_v33 = vadd.f32 %v18752_v11, %v16649_v56 }
 0xc4a   : > { %v18769_v18 = vpop.f32.mrb[104].mxu0 }
 0xc4b   : > { %v18797_v37 = vpop.f32.mrb[104].mxu1  ;;  %v18770_v4 = vpop.f32.mrb[105].mxu0 }
 0xc4c   : > { %v18771_v60 = vadd.f32 %v18770_v4, %v18769_v18  ;;  %v18798_v39 = vpop.f32.mrb[105].mxu1  ;;  %v18772_v42 = vpop.f32.mrb[106].mxu0 }
 0xc4d   : > { %v18799_v59 = vadd.f32 %v18798_v39, %v18797_v37  ;;  %v18800_v29 = vpop.f32.mrb[106].mxu1  ;;  %v18773_v61 = vpop.f32.mrb[107].mxu0 }
 0xc4e   : > { %v16736_v0 = vadd.f32 %v18771_v60, %v16687_v13  ;;  %v18774_v7 = vadd.f32 %v18773_v61, %v18772_v42  ;;  %v18801_v15 = vpop.f32.mrb[107].mxu1 }
 0xc4f   : > { %v18802_v44 = vadd.f32 %v18801_v15, %v18800_v29 }
 0xc50   : > { %v16785_v57 = vadd.f32 %v18799_v59, %v16736_v0  ;;  %v16739_v14 = vadd.f32 %v18774_v7, %v16690_v34 }
 0xc52   : > { %v16788_v31 = vadd.f32 %v18802_v44, %v16739_v14  ;;  %v18775_v62 = vpop.f32.mrb[108].mxu0 }
 0xc53   : > { %v18803_v23 = vpop.f32.mrb[108].mxu1  ;;  %v18776_v58 = vpop.f32.mrb[109].mxu0 }
 0xc54   : > { %v18777_v45 = vadd.f32 %v18776_v58, %v18775_v62  ;;  %v18804_v20 = vpop.f32.mrb[109].mxu1  ;;  %v18778_v54 = vpop.f32.mrb[110].mxu0 }
 0xc55   : > { %v18805_v43 = vadd.f32 %v18804_v20, %v18803_v23  ;;  %v18806_v35 = vpop.f32.mrb[110].mxu1  ;;  %v18779_v63 = vpop.f32.mrb[111].mxu0 }
 0xc56   : > { %v16744_v1 = vadd.f32 %v18777_v45, %v16695_v52  ;;  %v18780_v38 = vadd.f32 %v18779_v63, %v18778_v54  ;;  %v18807_v55 = vpop.f32.mrb[111].mxu1 }
 0xc57   : > { %v18808_v51 = vadd.f32 %v18807_v55, %v18806_v35 }
 0xc58   : > { %v16793_v8 = vadd.f32 %v18805_v43, %v16744_v1  ;;  %v16747_v16 = vadd.f32 %v18780_v38, %v16698_v33 }
 0xc5a   : > { %v16796_v26 = vadd.f32 %v18808_v51, %v16747_v16 }
 0xc6a   : > { %v18825_v24 = vpop.f32.mrb[112].mxu0 }
 0xc6b   : > { %v18853_v2 = vpop.f32.mrb[112].mxu1  ;;  %v18826_v25 = vpop.f32.mrb[113].mxu0 }
 0xc6c   : > { %v18827_v28 = vadd.f32 %v18826_v25, %v18825_v24  ;;  %v18854_v9 = vpop.f32.mrb[113].mxu1  ;;  %v18828_v46 = vpop.f32.mrb[114].mxu0 }
 0xc6d   : > { %v18855_v19 = vadd.f32 %v18854_v9, %v18853_v2  ;;  %v18856_v40 = vpop.f32.mrb[114].mxu1  ;;  %v18829_v21 = vpop.f32.mrb[115].mxu0 }
 0xc6e   : > { %v16834_v22 = vadd.f32 %v18827_v28, %v16785_v57  ;;  %v18830_v32 = vadd.f32 %v18829_v21, %v18828_v46  ;;  %v18857_v48 = vpop.f32.mrb[115].mxu1 }
 0xc6f   : > { %v18858_v10 = vadd.f32 %v18857_v48, %v18856_v40 }
 0xc70   : > { %v16883_v13 = vadd.f32 %v18855_v19, %v16834_v22  ;;  %v16837_v30 = vadd.f32 %v18830_v32, %v16788_v31 }
 0xc72   : > { %v16886_v34 = vadd.f32 %v18858_v10, %v16837_v30  ;;  %v18831_v49 = vpop.f32.mrb[116].mxu0 }
 0xc73   : > { %v18859_v50 = vpop.f32.mrb[116].mxu1  ;;  %v18832_v3 = vpop.f32.mrb[117].mxu0 }
 0xc74   : > { %v18833_v53 = vadd.f32 %v18832_v3, %v18831_v49  ;;  %v18860_v5 = vpop.f32.mrb[117].mxu1  ;;  %v18834_v47 = vpop.f32.mrb[118].mxu0 }
 0xc75   : > { %v18861_v36 = vadd.f32 %v18860_v5, %v18859_v50  ;;  %v18862_v12 = vpop.f32.mrb[118].mxu1  ;;  %v18835_v6 = vpop.f32.mrb[119].mxu0 }
 0xc76   : > { %v16842_v41 = vadd.f32 %v18833_v53, %v16793_v8  ;;  %v18836_v27 = vadd.f32 %v18835_v6, %v18834_v47  ;;  %v18863_v17 = vpop.f32.mrb[119].mxu1 }
 0xc77   : > { %v18864_v11 = vadd.f32 %v18863_v17, %v18862_v12 }
 0xc78   : > { %v16891_v52 = vadd.f32 %v18861_v36, %v16842_v41  ;;  %v16845_v56 = vadd.f32 %v18836_v27, %v16796_v26 }
 0xc7a   : > { %v16894_v33 = vadd.f32 %v18864_v11, %v16845_v56 }
 0xc8a   : > { %v18881_v18 = vpop.f32.mrb[120].mxu0 }
 0xc8b   : > { %v18909_v37 = vpop.f32.mrb[120].mxu1  ;;  %v18882_v4 = vpop.f32.mrb[121].mxu0 }
 0xc8c   : > { %v18883_v60 = vadd.f32 %v18882_v4, %v18881_v18  ;;  %v18910_v39 = vpop.f32.mrb[121].mxu1  ;;  %v18884_v42 = vpop.f32.mrb[122].mxu0  ;;  %v17129_v18 = vld [vmem:[%s27399_s27] sm:$0xff] (%p22533_p5)  ;;  %v17133_v4 = vld [vmem:[%s27399_s27 + $0x10] sm:$0xff] (%p22533_p5) }
 0xc8d   : > { %v18911_v59 = vadd.f32 %v18910_v39, %v18909_v37  ;;  %v18912_v29 = vpop.f32.mrb[122].mxu1  ;;  %v18885_v61 = vpop.f32.mrb[123].mxu0  ;;  %v17131_v37 = vld [vmem:[%s27399_s27 + $0x8] sm:$0xff] (%p22533_p5)  ;;  %v17137_v39 = vld [vmem:[%s27399_s27 + $0x20] sm:$0xff] (%p22533_p5)  ;;  %17130 = vst [vmem:[%s28647_s14] sm:$0xff] (%p22533_p5), %v17129_v18  ;;  %17134 = vst [vmem:[%s28647_s14 + $0x10] sm:$0xff] (%p22533_p5), %v17133_v4 }
 0xc8e   : > { %v16932_v0 = vadd.f32 %v18883_v60, %v16883_v13  ;;  %v18886_v7 = vadd.f32 %v18885_v61, %v18884_v42  ;;  %v18913_v15 = vpop.f32.mrb[123].mxu1  ;;  %v17135_v60 = vld [vmem:[%s27399_s27 + $0x18] sm:$0xff] (%p22533_p5)  ;;  %v17139_v42 = vld [vmem:[%s27399_s27 + $0x28] sm:$0xff] (%p22533_p5)  ;;  %17132 = vst [vmem:[%s28647_s14 + $0x8] sm:$0xff] (%p22533_p5), %v17131_v37  ;;  %17138 = vst [vmem:[%s28647_s14 + $0x20] sm:$0xff] (%p22533_p5), %v17137_v39 }
 0xc8f   : > { %v18914_v44 = vadd.f32 %v18913_v15, %v18912_v29  ;;  %17136 = vst [vmem:[%s28647_s14 + $0x18] sm:$0xff] (%p22533_p5), %v17135_v60  ;;  %17140 = vst [vmem:[%s28647_s14 + $0x28] sm:$0xff] (%p22533_p5), %v17139_v42  ;;  %v17143_v29 = vld [vmem:[%s27399_s27 + $0x38] sm:$0xff] (%p22533_p5)  ;;  %v17145_v61 = vld [vmem:[%s27399_s27 + $0x40] sm:$0xff] (%p22533_p5) }
 0xc90   : > { %v16981_v57 = vadd.f32 %v18911_v59, %v16932_v0  ;;  %v16935_v14 = vadd.f32 %v18886_v7, %v16886_v34  ;;  %v17141_v59 = vld [vmem:[%s27399_s27 + $0x30] sm:$0xff] (%p22533_p5)  ;;  %17144 = vst [vmem:[%s28647_s14 + $0x38] sm:$0xff] (%p22533_p5), %v17143_v29  ;;  %17146 = vst [vmem:[%s28647_s14 + $0x40] sm:$0xff] (%p22533_p5), %v17145_v61  ;;  %v17147_v0 = vld [vmem:[%s27399_s27 + $0x48] sm:$0xff] (%p22533_p5) }
 0xc91   : > { %17142 = vst [vmem:[%s28647_s14 + $0x30] sm:$0xff] (%p22533_p5), %v17141_v59  ;;  %v17149_v7 = vld [vmem:[%s27399_s27 + $0x50] sm:$0xff] (%p22533_p5)  ;;  %v17151_v15 = vld [vmem:[%s27399_s27 + $0x58] sm:$0xff] (%p22533_p5)  ;;  %17148 = vst [vmem:[%s28647_s14 + $0x48] sm:$0xff] (%p22533_p5), %v17147_v0 }
 0xc92   : > { %v16984_v31 = vadd.f32 %v18914_v44, %v16935_v14  ;;  %v18887_v62 = vpop.f32.mrb[124].mxu0  ;;  %17150 = vst [vmem:[%s28647_s14 + $0x50] sm:$0xff] (%p22533_p5), %v17149_v7  ;;  %17152 = vst [vmem:[%s28647_s14 + $0x58] sm:$0xff] (%p22533_p5), %v17151_v15  ;;  %v17153_v44 = vld [vmem:[%s27399_s27 + $0x60] sm:$0xff] (%p22533_p5)  ;;  %v17157_v14 = vld [vmem:[%s27399_s27 + $0x70] sm:$0xff] (%p22533_p5) }
 0xc93   : > { %v18915_v23 = vpop.f32.mrb[124].mxu1  ;;  %v18888_v58 = vpop.f32.mrb[125].mxu0  ;;  %17154 = vst [vmem:[%s28647_s14 + $0x60] sm:$0xff] (%p22533_p5), %v17153_v44  ;;  %17158 = vst [vmem:[%s28647_s14 + $0x70] sm:$0xff] (%p22533_p5), %v17157_v14  ;;  %v17257_v18 = vld [vmem:[%s27399_s27 + $0x200] sm:$0xff] (%p22533_p5)  ;;  %v17259_v37 = vld [vmem:[%s27399_s27 + $0x208] sm:$0xff] (%p22533_p5) }
 0xc94   : > { %v18889_v45 = vadd.f32 %v18888_v58, %v18887_v62  ;;  %v18916_v20 = vpop.f32.mrb[125].mxu1  ;;  %v18890_v54 = vpop.f32.mrb[126].mxu0  ;;  %v17161_v62 = vld [vmem:[%s27399_s27 + $0x80] sm:$0xff] (%p22533_p5)  ;;  %v17165_v58 = vld [vmem:[%s27399_s27 + $0x90] sm:$0xff] (%p22533_p5)  ;;  %17258 = vst [vmem:[%s28647_s14 + $0x400] sm:$0xff] (%p22533_p5), %v17257_v18  ;;  %17260 = vst [vmem:[%s28647_s14 + $0x408] sm:$0xff] (%p22533_p5), %v17259_v37 }
 0xc95   : > { %v18917_v43 = vadd.f32 %v18916_v20, %v18915_v23  ;;  %v18918_v35 = vpop.f32.mrb[126].mxu1  ;;  %v18891_v63 = vpop.f32.mrb[127].mxu0  ;;  %v17163_v23 = vld [vmem:[%s27399_s27 + $0x88] sm:$0xff] (%p22533_p5)  ;;  %17162 = vst [vmem:[%s28647_s14 + $0x100] sm:$0xff] (%p22533_p5), %v17161_v62  ;;  %v17169_v20 = vld [vmem:[%s27399_s27 + $0xa0] sm:$0xff] (%p22533_p5)  ;;  %17166 = vst [vmem:[%s28647_s14 + $0x110] sm:$0xff] (%p22533_p5), %v17165_v58 }
 0xc96   : > { %v16940_v1 = vadd.f32 %v18889_v45, %v16891_v52  ;;  %v18892_v38 = vadd.f32 %v18891_v63, %v18890_v54  ;;  %v18919_v55 = vpop.f32.mrb[127].mxu1  ;;  %17164 = vst [vmem:[%s28647_s14 + $0x108] sm:$0xff] (%p22533_p5), %v17163_v23  ;;  %v17167_v45 = vld [vmem:[%s27399_s27 + $0x98] sm:$0xff] (%p22533_p5)  ;;  %17170 = vst [vmem:[%s28647_s14 + $0x120] sm:$0xff] (%p22533_p5), %v17169_v20  ;;  %v17171_v54 = vld [vmem:[%s27399_s27 + $0xa8] sm:$0xff] (%p22533_p5) }
 0xc97   : > { %v18920_v51 = vadd.f32 %v18919_v55, %v18918_v35  ;;  %17168 = vst [vmem:[%s28647_s14 + $0x118] sm:$0xff] (%p22533_p5), %v17167_v45  ;;  %v17175_v35 = vld [vmem:[%s27399_s27 + $0xb8] sm:$0xff] (%p22533_p5)  ;;  %17172 = vst [vmem:[%s28647_s14 + $0x128] sm:$0xff] (%p22533_p5), %v17171_v54  ;;  %v17177_v63 = vld [vmem:[%s27399_s27 + $0xc0] sm:$0xff] (%p22533_p5) }
 0xc98   : > { %v16989_v8 = vadd.f32 %v18917_v43, %v16940_v1  ;;  %v16943_v16 = vadd.f32 %v18892_v38, %v16894_v33  ;;  %v17173_v43 = vld [vmem:[%s27399_s27 + $0xb0] sm:$0xff] (%p22533_p5)  ;;  %17176 = vst [vmem:[%s28647_s14 + $0x138] sm:$0xff] (%p22533_p5), %v17175_v35  ;;  %v17179_v1 = vld [vmem:[%s27399_s27 + $0xc8] sm:$0xff] (%p22533_p5)  ;;  %17178 = vst [vmem:[%s28647_s14 + $0x140] sm:$0xff] (%p22533_p5), %v17177_v63 }
 0xc99   : > { %17174 = vst [vmem:[%s28647_s14 + $0x130] sm:$0xff] (%p22533_p5), %v17173_v43  ;;  %v17181_v38 = vld [vmem:[%s27399_s27 + $0xd0] sm:$0xff] (%p22533_p5)  ;;  %17180 = vst [vmem:[%s28647_s14 + $0x148] sm:$0xff] (%p22533_p5), %v17179_v1  ;;  %v17183_v55 = vld [vmem:[%s27399_s27 + $0xd8] sm:$0xff] (%p22533_p5) }
 0xc9a   : > { %v16992_v26 = vadd.f32 %v18920_v51, %v16943_v16  ;;  %17182 = vst [vmem:[%s28647_s14 + $0x150] sm:$0xff] (%p22533_p5), %v17181_v38  ;;  %v17185_v51 = vld [vmem:[%s27399_s27 + $0xe0] sm:$0xff] (%p22533_p5)  ;;  %17184 = vst [vmem:[%s28647_s14 + $0x158] sm:$0xff] (%p22533_p5), %v17183_v55  ;;  %v17189_v16 = vld [vmem:[%s27399_s27 + $0xf0] sm:$0xff] (%p22533_p5) }
 0xc9b   : > { %17186 = vst [vmem:[%s28647_s14 + $0x160] sm:$0xff] (%p22533_p5), %v17185_v51  ;;  %17190 = vst [vmem:[%s28647_s14 + $0x170] sm:$0xff] (%p22533_p5), %v17189_v16  ;;  %v17261_v4 = vld [vmem:[%s27399_s27 + $0x210] sm:$0xff] (%p22533_p5)  ;;  %v17263_v60 = vld [vmem:[%s27399_s27 + $0x218] sm:$0xff] (%p22533_p5) }
 0xc9c   : > { %v17265_v39 = vld [vmem:[%s27399_s27 + $0x220] sm:$0xff] (%p22533_p5)  ;;  %17262 = vst [vmem:[%s28647_s14 + $0x410] sm:$0xff] (%p22533_p5), %v17261_v4  ;;  %17264 = vst [vmem:[%s28647_s14 + $0x418] sm:$0xff] (%p22533_p5), %v17263_v60  ;;  %v17267_v42 = vld [vmem:[%s27399_s27 + $0x228] sm:$0xff] (%p22533_p5) }
 0xc9d   : > { %17266 = vst [vmem:[%s28647_s14 + $0x420] sm:$0xff] (%p22533_p5), %v17265_v39  ;;  %v17269_v59 = vld [vmem:[%s27399_s27 + $0x230] sm:$0xff] (%p22533_p5)  ;;  %v17271_v29 = vld [vmem:[%s27399_s27 + $0x238] sm:$0xff] (%p22533_p5)  ;;  %17268 = vst [vmem:[%s28647_s14 + $0x428] sm:$0xff] (%p22533_p5), %v17267_v42 }
 0xc9e   : > { %17270 = vst [vmem:[%s28647_s14 + $0x430] sm:$0xff] (%p22533_p5), %v17269_v59  ;;  %17272 = vst [vmem:[%s28647_s14 + $0x438] sm:$0xff] (%p22533_p5), %v17271_v29  ;;  %v17273_v61 = vld [vmem:[%s27399_s27 + $0x240] sm:$0xff] (%p22533_p5)  ;;  %v17275_v0 = vld [vmem:[%s27399_s27 + $0x248] sm:$0xff] (%p22533_p5) }
 0xc9f   : > { %v17277_v7 = vld [vmem:[%s27399_s27 + $0x250] sm:$0xff] (%p22533_p5)  ;;  %17274 = vst [vmem:[%s28647_s14 + $0x440] sm:$0xff] (%p22533_p5), %v17273_v61  ;;  %17276 = vst [vmem:[%s28647_s14 + $0x448] sm:$0xff] (%p22533_p5), %v17275_v0  ;;  %v17279_v15 = vld [vmem:[%s27399_s27 + $0x258] sm:$0xff] (%p22533_p5) }
 0xca0   : > { %17278 = vst [vmem:[%s28647_s14 + $0x450] sm:$0xff] (%p22533_p5), %v17277_v7  ;;  %v17281_v44 = vld [vmem:[%s27399_s27 + $0x260] sm:$0xff] (%p22533_p5)  ;;  %17280 = vst [vmem:[%s28647_s14 + $0x458] sm:$0xff] (%p22533_p5), %v17279_v15  ;;  %v17285_v14 = vld [vmem:[%s27399_s27 + $0x270] sm:$0xff] (%p22533_p5) }
 0xca1   : > { %17282 = vst [vmem:[%s28647_s14 + $0x460] sm:$0xff] (%p22533_p5), %v17281_v44  ;;  %v17289_v62 = vld [vmem:[%s27399_s27 + $0x280] sm:$0xff] (%p22533_p5)  ;;  %17286 = vst [vmem:[%s28647_s14 + $0x470] sm:$0xff] (%p22533_p5), %v17285_v14  ;;  %v17291_v23 = vld [vmem:[%s27399_s27 + $0x288] sm:$0xff] (%p22533_p5) }
 0xca2   : > { %17290 = vst [vmem:[%s28647_s14 + $0x500] sm:$0xff] (%p22533_p5), %v17289_v62  ;;  %v17293_v58 = vld [vmem:[%s27399_s27 + $0x290] sm:$0xff] (%p22533_p5)  ;;  %v17295_v45 = vld [vmem:[%s27399_s27 + $0x298] sm:$0xff] (%p22533_p5)  ;;  %17292 = vst [vmem:[%s28647_s14 + $0x508] sm:$0xff] (%p22533_p5), %v17291_v23 }
 0xca3   : > { %17294 = vst [vmem:[%s28647_s14 + $0x510] sm:$0xff] (%p22533_p5), %v17293_v58  ;;  %17296 = vst [vmem:[%s28647_s14 + $0x518] sm:$0xff] (%p22533_p5), %v17295_v45  ;;  %v17297_v20 = vld [vmem:[%s27399_s27 + $0x2a0] sm:$0xff] (%p22533_p5)  ;;  %v17299_v54 = vld [vmem:[%s27399_s27 + $0x2a8] sm:$0xff] (%p22533_p5) }
 0xca4   : > { %v17301_v43 = vld [vmem:[%s27399_s27 + $0x2b0] sm:$0xff] (%p22533_p5)  ;;  %17298 = vst [vmem:[%s28647_s14 + $0x520] sm:$0xff] (%p22533_p5), %v17297_v20  ;;  %17300 = vst [vmem:[%s28647_s14 + $0x528] sm:$0xff] (%p22533_p5), %v17299_v54  ;;  %v17303_v35 = vld [vmem:[%s27399_s27 + $0x2b8] sm:$0xff] (%p22533_p5) }
 0xca5   : > { %17302 = vst [vmem:[%s28647_s14 + $0x530] sm:$0xff] (%p22533_p5), %v17301_v43  ;;  %v17305_v63 = vld [vmem:[%s27399_s27 + $0x2c0] sm:$0xff] (%p22533_p5)  ;;  %v17307_v1 = vld [vmem:[%s27399_s27 + $0x2c8] sm:$0xff] (%p22533_p5)  ;;  %17304 = vst [vmem:[%s28647_s14 + $0x538] sm:$0xff] (%p22533_p5), %v17303_v35 }
 0xca6   : > { %17306 = vst [vmem:[%s28647_s14 + $0x540] sm:$0xff] (%p22533_p5), %v17305_v63  ;;  %17308 = vst [vmem:[%s28647_s14 + $0x548] sm:$0xff] (%p22533_p5), %v17307_v1  ;;  %v17309_v38 = vld [vmem:[%s27399_s27 + $0x2d0] sm:$0xff] (%p22533_p5)  ;;  %v17311_v55 = vld [vmem:[%s27399_s27 + $0x2d8] sm:$0xff] (%p22533_p5) }
 0xca7   : > { %v17313_v51 = vld [vmem:[%s27399_s27 + $0x2e0] sm:$0xff] (%p22533_p5)  ;;  %17310 = vst [vmem:[%s28647_s14 + $0x550] sm:$0xff] (%p22533_p5), %v17309_v38  ;;  %17312 = vst [vmem:[%s28647_s14 + $0x558] sm:$0xff] (%p22533_p5), %v17311_v55  ;;  %v17317_v16 = vld [vmem:[%s27399_s27 + $0x2f0] sm:$0xff] (%p22533_p5) }
 0xca8   : > { %17314 = vst [vmem:[%s28647_s14 + $0x560] sm:$0xff] (%p22533_p5), %v17313_v51  ;;  %17318 = vst [vmem:[%s28647_s14 + $0x570] sm:$0xff] (%p22533_p5), %v17317_v16 }
 0xcaa   : > { %v18937_v24 = vpop.f32.mrb[128].mxu0 }
 0xcab   : > { %v18965_v2 = vpop.f32.mrb[128].mxu1  ;;  %v18938_v25 = vpop.f32.mrb[129].mxu0 }
 0xcac   : > { %v18939_v28 = vadd.f32 %v18938_v25, %v18937_v24  ;;  %v18966_v9 = vpop.f32.mrb[129].mxu1  ;;  %v18940_v46 = vpop.f32.mrb[130].mxu0  ;;  %v17193_v24 = vld [vmem:[%s27399_s27 + $0x100] sm:$0xff] (%p22533_p5)  ;;  %v17197_v25 = vld [vmem:[%s27399_s27 + $0x110] sm:$0xff] (%p22533_p5) }
 0xcad   : > { %v18967_v19 = vadd.f32 %v18966_v9, %v18965_v2  ;;  %v18968_v40 = vpop.f32.mrb[130].mxu1  ;;  %v18941_v21 = vpop.f32.mrb[131].mxu0  ;;  %17194 = vst [vmem:[%s28647_s14 + $0x200] sm:$0xff] (%p22533_p5), %v17193_v24  ;;  %v17195_v2 = vld [vmem:[%s27399_s27 + $0x108] sm:$0xff] (%p22533_p5)  ;;  %17198 = vst [vmem:[%s28647_s14 + $0x210] sm:$0xff] (%p22533_p5), %v17197_v25  ;;  %v17201_v9 = vld [vmem:[%s27399_s27 + $0x120] sm:$0xff] (%p22533_p5) }
 0xcae   : > { %v17030_v22 = vadd.f32 %v18939_v28, %v16981_v57  ;;  %v18942_v32 = vadd.f32 %v18941_v21, %v18940_v46  ;;  %v18969_v48 = vpop.f32.mrb[131].mxu1  ;;  %v17155_v57 = vld [vmem:[%s27399_s27 + $0x68] sm:$0xff] (%p22533_p5)  ;;  %v17199_v28 = vld [vmem:[%s27399_s27 + $0x118] sm:$0xff] (%p22533_p5)  ;;  %17196 = vst [vmem:[%s28647_s14 + $0x208] sm:$0xff] (%p22533_p5), %v17195_v2  ;;  %17202 = vst [vmem:[%s28647_s14 + $0x220] sm:$0xff] (%p22533_p5), %v17201_v9 }
 0xcaf   : > { %v18970_v10 = vadd.f32 %v18969_v48, %v18968_v40  ;;  %17156 = vst [vmem:[%s28647_s14 + $0x68] sm:$0xff] (%p22533_p5), %v17155_v57  ;;  %17200 = vst [vmem:[%s28647_s14 + $0x218] sm:$0xff] (%p22533_p5), %v17199_v28  ;;  %v17203_v46 = vld [vmem:[%s27399_s27 + $0x128] sm:$0xff] (%p22533_p5)  ;;  %v17207_v40 = vld [vmem:[%s27399_s27 + $0x138] sm:$0xff] (%p22533_p5) }
 0xcb0   : > { %v17079_v13 = vadd.f32 %v18967_v19, %v17030_v22  ;;  %v17033_v30 = vadd.f32 %v18942_v32, %v16984_v31  ;;  %v17159_v31 = vld [vmem:[%s27399_s27 + $0x78] sm:$0xff] (%p22533_p5)  ;;  %v17205_v19 = vld [vmem:[%s27399_s27 + $0x130] sm:$0xff] (%p22533_p5)  ;;  %17204 = vst [vmem:[%s28647_s14 + $0x228] sm:$0xff] (%p22533_p5), %v17203_v46  ;;  %v17209_v21 = vld [vmem:[%s27399_s27 + $0x140] sm:$0xff] (%p22533_p5) }
 0xcb1   : > { %17160 = vst [vmem:[%s28647_s14 + $0x78] sm:$0xff] (%p22533_p5), %v17159_v31  ;;  %17206 = vst [vmem:[%s28647_s14 + $0x230] sm:$0xff] (%p22533_p5), %v17205_v19  ;;  %v17211_v22 = vld [vmem:[%s27399_s27 + $0x148] sm:$0xff] (%p22533_p5)  ;;  %v17213_v32 = vld [vmem:[%s27399_s27 + $0x150] sm:$0xff] (%p22533_p5) }
 0xcb2   : > { %17093 = vst [vmem:[%s793_s26] sm:$0xff] %v17079_v13  ;;  %v17082_v34 = vadd.f32 %v18970_v10, %v17033_v30  ;;  %v18943_v49 = vpop.f32.mrb[132].mxu0  ;;  %17208 = vst [vmem:[%s28647_s14 + $0x238] sm:$0xff] (%p22533_p5), %v17207_v40  ;;  %v17215_v48 = vld [vmem:[%s27399_s27 + $0x158] sm:$0xff] (%p22533_p5)  ;;  %v17217_v10 = vld [vmem:[%s27399_s27 + $0x160] sm:$0xff] (%p22533_p5) }
 0xcb3   : > { %v18971_v50 = vpop.f32.mrb[132].mxu1  ;;  %v18944_v3 = vpop.f32.mrb[133].mxu0  ;;  %17210 = vst [vmem:[%s28647_s14 + $0x240] sm:$0xff] (%p22533_p5), %v17209_v21  ;;  %17212 = vst [vmem:[%s28647_s14 + $0x248] sm:$0xff] (%p22533_p5), %v17211_v22  ;;  %v17219_v13 = vld [vmem:[%s27399_s27 + $0x168] sm:$0xff] (%p22533_p5)  ;;  %v17221_v30 = vld [vmem:[%s27399_s27 + $0x170] sm:$0xff] (%p22533_p5) }
 0xcb4   : > { %17094 = vst [vmem:[%s793_s26 + $0x8] sm:$0xff] %v17082_v34  ;;  %v18945_v53 = vadd.f32 %v18944_v3, %v18943_v49  ;;  %v18972_v5 = vpop.f32.mrb[133].mxu1  ;;  %v18946_v47 = vpop.f32.mrb[134].mxu0  ;;  %17214 = vst [vmem:[%s28647_s14 + $0x250] sm:$0xff] (%p22533_p5), %v17213_v32  ;;  %v17223_v34 = vld [vmem:[%s27399_s27 + $0x178] sm:$0xff] (%p22533_p5)  ;;  %v17225_v49 = vld [vmem:[%s27399_s27 + $0x180] sm:$0xff] (%p22533_p5) }
 0xcb5   : > { %v18973_v36 = vadd.f32 %v18972_v5, %v18971_v50  ;;  %v18974_v12 = vpop.f32.mrb[134].mxu1  ;;  %v18947_v6 = vpop.f32.mrb[135].mxu0  ;;  %17216 = vst [vmem:[%s28647_s14 + $0x258] sm:$0xff] (%p22533_p5), %v17215_v48  ;;  %17218 = vst [vmem:[%s28647_s14 + $0x260] sm:$0xff] (%p22533_p5), %v17217_v10  ;;  %v17227_v50 = vld [vmem:[%s27399_s27 + $0x188] sm:$0xff] (%p22533_p5)  ;;  %v17229_v3 = vld [vmem:[%s27399_s27 + $0x190] sm:$0xff] (%p22533_p5) }
 0xcb6   : > { %v17038_v41 = vadd.f32 %v18945_v53, %v16989_v8  ;;  %v18948_v27 = vadd.f32 %v18947_v6, %v18946_v47  ;;  %v18975_v17 = vpop.f32.mrb[135].mxu1  ;;  %17112 = sbr.rel (!%p22533_p5) target bundleno = 3276 (0xccc), region = 94  ;;  %v17187_v8 = vld [vmem:[%s27399_s27 + $0xe8] sm:$0xff] (%p22533_p5)  ;;  %17220 = vst [vmem:[%s28647_s14 + $0x268] sm:$0xff] (%p22533_p5), %v17219_v13  ;;  %17222 = vst [vmem:[%s28647_s14 + $0x270] sm:$0xff] (%p22533_p5), %v17221_v30  ;;  %v17231_v53 = vld [vmem:[%s27399_s27 + $0x198] sm:$0xff] (%p22533_p5) }
 0xcb7   : > { %v18976_v11 = vadd.f32 %v18975_v17, %v18974_v12  ;;  %17188 = vst [vmem:[%s28647_s14 + $0x168] sm:$0xff] (%p22533_p5), %v17187_v8  ;;  %17224 = vst [vmem:[%s28647_s14 + $0x278] sm:$0xff] (%p22533_p5), %v17223_v34  ;;  %v17233_v5 = vld [vmem:[%s27399_s27 + $0x1a0] sm:$0xff] (%p22533_p5)  ;;  %v17235_v47 = vld [vmem:[%s27399_s27 + $0x1a8] sm:$0xff] (%p22533_p5) }
 0xcb8   : > { %v17087_v52 = vadd.f32 %v18973_v36, %v17038_v41  ;;  %v17041_v56 = vadd.f32 %v18948_v27, %v16992_v26  ;;  %v17191_v26 = vld [vmem:[%s27399_s27 + $0xf8] sm:$0xff] (%p22533_p5)  ;;  %17226 = vst [vmem:[%s28647_s14 + $0x300] sm:$0xff] (%p22533_p5), %v17225_v49  ;;  %17228 = vst [vmem:[%s28647_s14 + $0x308] sm:$0xff] (%p22533_p5), %v17227_v50  ;;  %v17237_v36 = vld [vmem:[%s27399_s27 + $0x1b0] sm:$0xff] (%p22533_p5) }
 0xcb9   : > { %17192 = vst [vmem:[%s28647_s14 + $0x178] sm:$0xff] (%p22533_p5), %v17191_v26  ;;  %17230 = vst [vmem:[%s28647_s14 + $0x310] sm:$0xff] (%p22533_p5), %v17229_v3  ;;  %v17239_v12 = vld [vmem:[%s27399_s27 + $0x1b8] sm:$0xff] (%p22533_p5)  ;;  %v17241_v6 = vld [vmem:[%s27399_s27 + $0x1c0] sm:$0xff] (%p22533_p5) }
 0xcba   : > { %17095 = vst [vmem:[%s793_s26 + $0x10] sm:$0xff] %v17087_v52  ;;  %v17090_v33 = vadd.f32 %v18976_v11, %v17041_v56  ;;  %17232 = vst [vmem:[%s28647_s14 + $0x318] sm:$0xff] (%p22533_p5), %v17231_v53  ;;  %v17243_v41 = vld [vmem:[%s27399_s27 + $0x1c8] sm:$0xff] (%p22533_p5)  ;;  %v17245_v27 = vld [vmem:[%s27399_s27 + $0x1d0] sm:$0xff] (%p22533_p5) }
 0xcbb   : > { %17234 = vst [vmem:[%s28647_s14 + $0x320] sm:$0xff] (%p22533_p5), %v17233_v5  ;;  %17236 = vst [vmem:[%s28647_s14 + $0x328] sm:$0xff] (%p22533_p5), %v17235_v47  ;;  %v17247_v17 = vld [vmem:[%s27399_s27 + $0x1d8] sm:$0xff] (%p22533_p5)  ;;  %v17249_v11 = vld [vmem:[%s27399_s27 + $0x1e0] sm:$0xff] (%p22533_p5) }
 0xcbc   : > { %17096 = vst [vmem:[%s793_s26 + $0x18] sm:$0xff] %v17090_v33  ;;  %17238 = vst [vmem:[%s28647_s14 + $0x330] sm:$0xff] (%p22533_p5), %v17237_v36  ;;  %v17251_v52 = vld [vmem:[%s27399_s27 + $0x1e8] sm:$0xff] (%p22533_p5)  ;;  %v17253_v56 = vld [vmem:[%s27399_s27 + $0x1f0] sm:$0xff] (%p22533_p5) }
 0xcbd   : > { %17240 = vst [vmem:[%s28647_s14 + $0x338] sm:$0xff] %v17239_v12  ;;  %17242 = vst [vmem:[%s28647_s14 + $0x340] sm:$0xff] %v17241_v6  ;;  %v17255_v33 = vld [vmem:[%s27399_s27 + $0x1f8] sm:$0xff]  ;;  %v17283_v57 = vld [vmem:[%s27399_s27 + $0x268] sm:$0xff] }
 0xcbe   : > { %17244 = vst [vmem:[%s28647_s14 + $0x348] sm:$0xff] %v17243_v41  ;;  %17246 = vst [vmem:[%s28647_s14 + $0x350] sm:$0xff] %v17245_v27  ;;  %v17287_v31 = vld [vmem:[%s27399_s27 + $0x278] sm:$0xff]  ;;  %v17315_v8 = vld [vmem:[%s27399_s27 + $0x2e8] sm:$0xff] }
 0xcbf   : > { %17248 = vst [vmem:[%s28647_s14 + $0x358] sm:$0xff] %v17247_v17  ;;  %17250 = vst [vmem:[%s28647_s14 + $0x360] sm:$0xff] %v17249_v11  ;;  %v17319_v26 = vld [vmem:[%s27399_s27 + $0x2f8] sm:$0xff]  ;;  %v17321_v24 = vld [vmem:[%s27399_s27 + $0x300] sm:$0xff] }
 0xcc0   : > { %17252 = vst [vmem:[%s28647_s14 + $0x368] sm:$0xff] %v17251_v52  ;;  %17254 = vst [vmem:[%s28647_s14 + $0x370] sm:$0xff] %v17253_v56  ;;  %v17323_v2 = vld [vmem:[%s27399_s27 + $0x308] sm:$0xff]  ;;  %v17325_v25 = vld [vmem:[%s27399_s27 + $0x310] sm:$0xff] }
 0xcc1   : > { %17256 = vst [vmem:[%s28647_s14 + $0x378] sm:$0xff] %v17255_v33  ;;  %17284 = vst [vmem:[%s28647_s14 + $0x468] sm:$0xff] %v17283_v57  ;;  %v17327_v28 = vld [vmem:[%s27399_s27 + $0x318] sm:$0xff]  ;;  %v17329_v9 = vld [vmem:[%s27399_s27 + $0x320] sm:$0xff] }
 0xcc2   : > { %17288 = vst [vmem:[%s28647_s14 + $0x478] sm:$0xff] %v17287_v31  ;;  %17316 = vst [vmem:[%s28647_s14 + $0x568] sm:$0xff] %v17315_v8  ;;  %v17331_v46 = vld [vmem:[%s27399_s27 + $0x328] sm:$0xff]  ;;  %v17333_v19 = vld [vmem:[%s27399_s27 + $0x330] sm:$0xff] }
 0xcc3   : > { %17320 = vst [vmem:[%s28647_s14 + $0x578] sm:$0xff] %v17319_v26  ;;  %17322 = vst [vmem:[%s28647_s14 + $0x600] sm:$0xff] %v17321_v24  ;;  %v17335_v40 = vld [vmem:[%s27399_s27 + $0x338] sm:$0xff]  ;;  %v17337_v21 = vld [vmem:[%s27399_s27 + $0x340] sm:$0xff] }
 0xcc4   : > { %17324 = vst [vmem:[%s28647_s14 + $0x608] sm:$0xff] %v17323_v2  ;;  %17326 = vst [vmem:[%s28647_s14 + $0x610] sm:$0xff] %v17325_v25  ;;  %v17339_v22 = vld [vmem:[%s27399_s27 + $0x348] sm:$0xff]  ;;  %v17341_v32 = vld [vmem:[%s27399_s27 + $0x350] sm:$0xff] }
 0xcc5   : > { %17328 = vst [vmem:[%s28647_s14 + $0x618] sm:$0xff] %v17327_v28  ;;  %17330 = vst [vmem:[%s28647_s14 + $0x620] sm:$0xff] %v17329_v9  ;;  %v17343_v48 = vld [vmem:[%s27399_s27 + $0x358] sm:$0xff]  ;;  %v17345_v10 = vld [vmem:[%s27399_s27 + $0x360] sm:$0xff] }
 0xcc6   : > { %17332 = vst [vmem:[%s28647_s14 + $0x628] sm:$0xff] %v17331_v46  ;;  %17334 = vst [vmem:[%s28647_s14 + $0x630] sm:$0xff] %v17333_v19  ;;  %v17347_v13 = vld [vmem:[%s27399_s27 + $0x368] sm:$0xff]  ;;  %v17349_v30 = vld [vmem:[%s27399_s27 + $0x370] sm:$0xff] }
 0xcc7   : > { %17336 = vst [vmem:[%s28647_s14 + $0x638] sm:$0xff] %v17335_v40  ;;  %17338 = vst [vmem:[%s28647_s14 + $0x640] sm:$0xff] %v17337_v21  ;;  %v17351_v34 = vld [vmem:[%s27399_s27 + $0x378] sm:$0xff] }
 0xcc8   : > { %17340 = vst [vmem:[%s28647_s14 + $0x648] sm:$0xff] %v17339_v22  ;;  %17342 = vst [vmem:[%s28647_s14 + $0x650] sm:$0xff] %v17341_v32 }
 0xcc9   : > { %17344 = vst [vmem:[%s28647_s14 + $0x658] sm:$0xff] %v17343_v48  ;;  %17346 = vst [vmem:[%s28647_s14 + $0x660] sm:$0xff] %v17345_v10 }
 0xcca   : > { %17348 = vst [vmem:[%s28647_s14 + $0x668] sm:$0xff] %v17347_v13  ;;  %17350 = vst [vmem:[%s28647_s14 + $0x670] sm:$0xff] %v17349_v30 }
 0xccb   : > { %17352 = vst [vmem:[%s28647_s14 + $0x678] sm:$0xff] %v17351_v34 }
 0xccc PF: > { %p16_p11 = scmp.ge.s32.totalorder %s22521_s9, 4   ;;  %s29576_s27 = smov %s22450_s28 }
 0xccd   : > { %s29577_s28 = smov %s22531_s12  ;;  %s29578_s29 = smov %s22521_s9 }
 0xcce   :  { %18 = sbr.rel (!%p16_p11) target bundleno = 2 (0x2), region = 156 }

</bundles_post_ra>
